<compile_context>
chip_gen: v7x
topology: tpu7x:2x2x1
jax: 0.10.0
libtpu: 0.0.40
codegen_flags: <defaults>
</compile_context>

<pallas_src>
import jax
import jax.numpy as jnp
from jax.experimental import pallas as pl
from jax.experimental.pallas import tpu as pltpu

# ---------------- small config (module defaults shrunk for the demo) ----------------
B = 2              # batch
N_PTS = 128        # conditioning point-cloud size        pp : B x N_PTS x 3
N_Q = 256          # query points                         p  : B x N_Q  x 3
C_DIM = 32         # c_dim (latent code per point)        fea: B x N_PTS x C_DIM
HIDDEN = 32        # decoder hidden size
N_BLOCKS = 5       # ResnetBlockFC blocks
GAUSSIAN_VAL = 0.5
VAR = GAUSSIAN_VAL ** 2        # self.var = gaussian_val ** 2
TQ = 256           # query rows per kernel tile (whole per-batch query set -> 1 step/batch)


# =====================================================================================
# Fused Pallas kernel: gaussian point-feature sampling + full decoder MLP
# =====================================================================================
def local_point_decoder_kernel(q_ref, ppt_ref, fea_ref,
                               wp_ref, bp_ref, wcf_ref, bcf_ref,
                               w0_ref, b0_ref, w1_ref, b1_ref,
                               wo8_ref, bo_ref, out_ref):
    relu = jax.nn.relu
    q = q_ref[0]                      # (TQ, 3)  f32 query points of this tile
    ppt = ppt_ref[0]                  # (3, N)   f32 conditioning points (pre-transposed)
    fea = fea_ref[0]                  # (N, C)   bf16 per-point features

    tq = q.shape[0]
    n = ppt.shape[1]
    h_dim = wp_ref.shape[1]
    n_blocks = w0_ref.shape[0]

    # ---- sample_point_feature (sample_mode='gaussian') --------------------------------
    # Squared distances accumulated per coordinate on the VPU: avoids a K=3 MXU push and
    # keeps d2 >= 0 by construction.
    d2 = jnp.zeros((tq, n), jnp.float32)
    for k in range(3):                                        # static unroll (dim == 3)
        diff = q[:, k:k + 1] - ppt[k:k + 1, :]                # (TQ, N) broadcast
        d2 = d2 + diff * diff
    dist = jnp.sqrt(d2) + 1e-5                                # sqrt on the EUP
    w = jnp.exp(-(dist * dist) * (1.0 / VAR))                 # (TQ, N)  exp on the EUP
    inv_wsum = pl.reciprocal(jnp.sum(w, axis=-1, keepdims=True), approx=True)  # (TQ, 1)
    # normalize after the matmul (mathematically identical, scales C instead of N columns)
    c = jnp.dot(w.astype(jnp.bfloat16), fea,
                preferred_element_type=jnp.float32) * inv_wsum    # (TQ, C) f32

    # ---- fc_p as 3 VPU broadcast-FMAs (skip the wasteful K=3 MXU matmul) ---------------
    wp = wp_ref[...]                                          # (3, H) f32
    net = (q[:, 0:1] * wp[0:1, :] + q[:, 1:2] * wp[1:2, :]
           + q[:, 2:3] * wp[2:3, :] + bp_ref[...])            # (TQ, H) f32

    # ---- all n_blocks fc_c projections fused into one (C, n_blocks*H) GEMM -------------
    cw = jnp.dot(c.astype(jnp.bfloat16), wcf_ref[...],
                 preferred_element_type=jnp.float32) + bcf_ref[...]   # (TQ, n_blocks*H)

    # ---- ResnetBlockFC stack (size_in == size_out == hidden -> identity shortcut) ------
    for i in range(n_blocks):                                 # static unroll
        net = net + cw[:, i * h_dim:(i + 1) * h_dim]
        h = jnp.dot(relu(net).astype(jnp.bfloat16), w0_ref[i],
                    preferred_element_type=jnp.float32) + b0_ref[i]
        dx = jnp.dot(relu(h).astype(jnp.bfloat16), w1_ref[i],
                     preferred_element_type=jnp.float32) + b1_ref[i]
        net = net + dx

    # ---- fc_out, produced lane-major so the final store is lane-dense ------------------
    # wo8 row 0 holds fc_out.weight; rows 1..7 are zero padding (full MXU sublane group).
    r_t = relu(net).T                                         # (H, TQ) small XLU transpose
    out8 = jnp.dot(wo8_ref[...], r_t,
                   preferred_element_type=jnp.float32)        # (8, TQ) f32
    out_ref[...] = (out8[0:1, :] + bo_ref[...]).reshape(1, 1, tq)


def _full_spec(arr):
    nd = arr.ndim
    return pl.BlockSpec(arr.shape, lambda b, t, _nd=nd: (0,) * _nd)


def run_local_point_decoder(params, p_q, pp, fea):
    Bq, T, _ = p_q.shape
    N = pp.shape[1]
    C = fea.shape[-1]
    H = params["wp"].shape[1]
    assert T % TQ == 0

    ppt = jnp.transpose(pp, (0, 2, 1))              # (B, 3, N): coordinate rows for lane-broadcast
    fea_b = fea.astype(jnp.bfloat16)                # bf16 matmul inputs, f32 accumulation
    wo8 = jnp.zeros((8, H), jnp.float32).at[0:1, :].set(params["wo_row"])

    weights = [
        params["wp"], params["bp"],                                     # fc_p   (f32, VPU path)
        params["wc_f"].astype(jnp.bfloat16), params["bc_f"],            # fused fc_c
        params["w0"].astype(jnp.bfloat16), params["b0"],                # blocks fc_0
        params["w1"].astype(jnp.bfloat16), params["b1"],                # blocks fc_1
        wo8, params["bo"],                                              # fc_out
    ]

    out = pl.pallas_call(
        local_point_decoder_kernel,
        out_shape=jax.ShapeDtypeStruct((Bq, 1, T), jnp.float32),
        grid=(Bq, T // TQ),
        in_specs=[
            pl.BlockSpec((1, TQ, 3), lambda b, t: (b, t, 0)),           # queries (tiled over T)
            pl.BlockSpec((1, 3, N), lambda b, t: (b, 0, 0)),            # point cloud (per batch)
            pl.BlockSpec((1, N, C), lambda b, t: (b, 0, 0)),            # point features
        ] + [_full_spec(wgt) for wgt in weights],                       # weights stay resident
        out_specs=pl.BlockSpec((1, 1, TQ), lambda b, t: (b, 0, t)),     # lane-dense output
        compiler_params=pltpu.CompilerParams(
            dimension_semantics=("parallel", "parallel")),              # v7x: shard over 2 TCs
    )(p_q, ppt, fea_b, *weights)
    return out.reshape(Bq, T)                                           # == out.squeeze(-1)


# =====================================================================================
# Module forward (mirrors LocalPointDecoder.forward)
# =====================================================================================
def local_point_decoder_forward(params, p, c):
    pp, fea = c
    # TODO(synk): the PyTorch n_points>=30000 torch.split path only chunks queries to bound
    # host memory; the Pallas grid already tiles queries per (batch, TQ) block, identical math.
    return run_local_point_decoder(params, p.astype(jnp.float32), pp, fea)


# =====================================================================================
# Pure-JAX f32 reference (for an in-script numerical sanity check)
# =====================================================================================
def reference_forward(params, p_q, pp, fea):
    relu = jax.nn.relu
    d = jnp.sqrt(jnp.sum((pp[:, None, :, :] - p_q[:, :, None, :]) ** 2, axis=-1))   # (B,T,N)
    w = jnp.exp(-((d + 1e-5) ** 2) / VAR)
    w = w / jnp.sum(w, axis=-1, keepdims=True)
    c = jnp.einsum("btn,bnc->btc", w, fea)
    net = jnp.einsum("btd,dh->bth", p_q, params["wp"]) + params["bp"]
    H = params["wp"].shape[1]
    for i in range(N_BLOCKS):
        net = net + jnp.einsum("btc,ch->bth", c, params["wc_f"][:, i * H:(i + 1) * H]) \
                  + params["bc_f"][:, i * H:(i + 1) * H]
        h = jnp.einsum("bth,hk->btk", relu(net), params["w0"][i]) + params["b0"][i]
        dx = jnp.einsum("bth,hk->btk", relu(h), params["w1"][i]) + params["b1"][i]
        net = net + dx
    out = jnp.einsum("bth,h->bt", relu(net), params["wo_row"][0]) + params["bo"][0, 0]
    return out


# =====================================================================================
# Deterministic parameter construction (shapes follow LocalPointDecoder.__init__)
# =====================================================================================
def _linear(key, fin, fout):
    kw, kb = jax.random.split(key)
    s = 1.0 / float(fin) ** 0.5
    w = jax.random.uniform(kw, (fin, fout), jnp.float32, -s, s)
    b = jax.random.uniform(kb, (1, fout), jnp.float32, -s, s)
    return w, b


def init_params(key):
    keys = jax.random.split(key, 2 + 3 * N_BLOCKS)
    ki = iter(keys)
    wp, bp = _linear(next(ki), 3, HIDDEN)                                # fc_p
    wcs, bcs, w0s, b0s, w1s, b1s = [], [], [], [], [], []
    for _ in range(N_BLOCKS):
        w, b_ = _linear(next(ki), C_DIM, HIDDEN); wcs.append(w); bcs.append(b_)    # fc_c[i]
        w, b_ = _linear(next(ki), HIDDEN, HIDDEN); w0s.append(w); b0s.append(b_)   # block.fc_0
        w, b_ = _linear(next(ki), HIDDEN, HIDDEN); w1s.append(w); b1s.append(b_)   # block.fc_1
    wo, bo = _linear(next(ki), HIDDEN, 1)                                # fc_out
    return dict(
        wp=wp, bp=bp,
        wc_f=jnp.concatenate(wcs, axis=1),          # (C, n_blocks*H)  fused fc_c weights
        bc_f=jnp.concatenate(bcs, axis=1),          # (1, n_blocks*H)
        w0=jnp.stack(w0s), b0=jnp.stack(b0s),       # (n_blocks, H, H), (n_blocks, 1, H)
        w1=jnp.stack(w1s), b1=jnp.stack(b1s),
        wo_row=wo.T,                                # (1, H)  fc_out weight as a row
        bo=bo,                                      # (1, 1)
    )


if __name__ == "__main__":
    key = jax.random.PRNGKey(0)
    kq, kp, kf, kpar = jax.random.split(key, 4)
    p_q = jax.random.uniform(kq, (B, N_Q, 3), jnp.float32, -0.5, 0.5)      # query points
    pp = jax.random.uniform(kp, (B, N_PTS, 3), jnp.float32, -0.5, 0.5)     # conditioning cloud
    fea = jax.random.uniform(kf, (B, N_PTS, C_DIM), jnp.float32, -1.0, 1.0)
    params = init_params(kpar)

    fwd = jax.jit(local_point_decoder_forward)
    out = fwd(params, p_q, (pp, fea))
    jax.block_until_ready(out)

    assert out.shape == (B, N_Q) and out.dtype == jnp.float32
    assert bool(jnp.all(jnp.isfinite(out)))
    ref = reference_forward(params, p_q, pp, fea)
    max_err = float(jnp.max(jnp.abs(out - ref)))
    assert bool(jnp.allclose(out, ref, rtol=5e-2, atol=5e-2)), \
        f"kernel/reference mismatch: max abs err = {max_err}"
    print("KERNEL_OK")
</pallas_src>

<mosaic_0001>
module attributes {stable_mosaic.version = 11 : i64} {
  func.func @local_point_decoder_kernel(%arg0: i32, %arg1: i32, %arg2: memref<1x256x3xf32, #tpu.memory_space<vmem>>, %arg3: memref<1x3x128xf32, #tpu.memory_space<vmem>>, %arg4: memref<1x128x32xbf16, #tpu.memory_space<vmem>>, %arg5: memref<3x32xf32, #tpu.memory_space<vmem>>, %arg6: memref<1x32xf32, #tpu.memory_space<vmem>>, %arg7: memref<32x160xbf16, #tpu.memory_space<vmem>>, %arg8: memref<1x160xf32, #tpu.memory_space<vmem>>, %arg9: memref<5x32x32xbf16, #tpu.memory_space<vmem>>, %arg10: memref<5x1x32xf32, #tpu.memory_space<vmem>>, %arg11: memref<5x32x32xbf16, #tpu.memory_space<vmem>>, %arg12: memref<5x1x32xf32, #tpu.memory_space<vmem>>, %arg13: memref<8x32xf32, #tpu.memory_space<vmem>>, %arg14: memref<1x1xf32, #tpu.memory_space<vmem>>, %arg15: memref<1x1x256xf32, #tpu.memory_space<vmem>>) attributes {dimension_semantics = [#tpu.dimension_semantics<parallel>, #tpu.dimension_semantics<parallel>], iteration_bounds = array<i64: 2, 1>, scalar_prefetch = 0 : i64, scratch_operands = 0 : i64, tpu.core_type = #tpu.core_type<tc>, window_params = [{transform_indices = @transform_0, window_bounds = array<i64: 1, 256, 3>}, {transform_indices = @transform_1, window_bounds = array<i64: 1, 3, 128>}, {transform_indices = @transform_2, window_bounds = array<i64: 1, 128, 32>}, {pipeline_mode = #tpu.pipeline_mode<synchronous>, transform_indices = @transform_3, window_bounds = array<i64: 3, 32>}, {pipeline_mode = #tpu.pipeline_mode<synchronous>, transform_indices = @transform_4, window_bounds = array<i64: 1, 32>}, {pipeline_mode = #tpu.pipeline_mode<synchronous>, transform_indices = @transform_5, window_bounds = array<i64: 32, 160>}, {pipeline_mode = #tpu.pipeline_mode<synchronous>, transform_indices = @transform_6, window_bounds = array<i64: 1, 160>}, {pipeline_mode = #tpu.pipeline_mode<synchronous>, transform_indices = @transform_7, window_bounds = array<i64: 5, 32, 32>}, {pipeline_mode = #tpu.pipeline_mode<synchronous>, transform_indices = @transform_8, window_bounds = array<i64: 5, 1, 32>}, {pipeline_mode = #tpu.pipeline_mode<synchronous>, transform_indices = @transform_9, window_bounds = array<i64: 5, 32, 32>}, {pipeline_mode = #tpu.pipeline_mode<synchronous>, transform_indices = @transform_10, window_bounds = array<i64: 5, 1, 32>}, {pipeline_mode = #tpu.pipeline_mode<synchronous>, transform_indices = @transform_11, window_bounds = array<i64: 8, 32>}, {pipeline_mode = #tpu.pipeline_mode<synchronous>, transform_indices = @transform_12, window_bounds = array<i64: 1, 1>}, {transform_indices = @transform_13, window_bounds = array<i64: 1, 1, 256>}]} {
    %c0 = arith.constant 0 : index
    %c0_0 = arith.constant 0 : index
    %c0_1 = arith.constant 0 : index
    %0 = vector.load %arg2[%c0, %c0_0, %c0_1] : memref<1x256x3xf32, #tpu.memory_space<vmem>>, vector<1x256x3xf32>
    %1 = vector.shape_cast %0 : vector<1x256x3xf32> to vector<256x3xf32>
    %c0_2 = arith.constant 0 : index
    %c0_3 = arith.constant 0 : index
    %c0_4 = arith.constant 0 : index
    %2 = vector.load %arg3[%c0_2, %c0_3, %c0_4] : memref<1x3x128xf32, #tpu.memory_space<vmem>>, vector<1x3x128xf32>
    %3 = vector.shape_cast %2 : vector<1x3x128xf32> to vector<3x128xf32>
    %c0_5 = arith.constant 0 : index
    %c0_6 = arith.constant 0 : index
    %c0_7 = arith.constant 0 : index
    %4 = vector.load %arg4[%c0_5, %c0_6, %c0_7] : memref<1x128x32xbf16, #tpu.memory_space<vmem>>, vector<1x128x32xbf16>
    %5 = vector.shape_cast %4 : vector<1x128x32xbf16> to vector<128x32xbf16>
    %cst = arith.constant 0.000000e+00 : f32
    %6 = vector.broadcast %cst : f32 to vector<256x128xf32>
    %7 = vector.extract_strided_slice %1 {offsets = [0, 0], sizes = [256, 1], strides = [1, 1]} : vector<256x3xf32> to vector<256x1xf32>
    %8 = vector.extract_strided_slice %3 {offsets = [0, 0], sizes = [1, 128], strides = [1, 1]} : vector<3x128xf32> to vector<1x128xf32>
    %9 = vector.broadcast %7 : vector<256x1xf32> to vector<256x128xf32>
    %10 = vector.broadcast %8 : vector<1x128xf32> to vector<256x128xf32>
    %11 = arith.subf %9, %10 : vector<256x128xf32>
    %12 = arith.mulf %11, %11 : vector<256x128xf32>
    %13 = arith.addf %6, %12 : vector<256x128xf32>
    %14 = vector.extract_strided_slice %1 {offsets = [0, 1], sizes = [256, 1], strides = [1, 1]} : vector<256x3xf32> to vector<256x1xf32>
    %15 = vector.extract_strided_slice %3 {offsets = [1, 0], sizes = [1, 128], strides = [1, 1]} : vector<3x128xf32> to vector<1x128xf32>
    %16 = vector.broadcast %14 : vector<256x1xf32> to vector<256x128xf32>
    %17 = vector.broadcast %15 : vector<1x128xf32> to vector<256x128xf32>
    %18 = arith.subf %16, %17 : vector<256x128xf32>
    %19 = arith.mulf %18, %18 : vector<256x128xf32>
    %20 = arith.addf %13, %19 : vector<256x128xf32>
    %21 = vector.extract_strided_slice %1 {offsets = [0, 2], sizes = [256, 1], strides = [1, 1]} : vector<256x3xf32> to vector<256x1xf32>
    %22 = vector.extract_strided_slice %3 {offsets = [2, 0], sizes = [1, 128], strides = [1, 1]} : vector<3x128xf32> to vector<1x128xf32>
    %23 = vector.broadcast %21 : vector<256x1xf32> to vector<256x128xf32>
    %24 = vector.broadcast %22 : vector<1x128xf32> to vector<256x128xf32>
    %25 = arith.subf %23, %24 : vector<256x128xf32>
    %26 = arith.mulf %25, %25 : vector<256x128xf32>
    %27 = arith.addf %20, %26 : vector<256x128xf32>
    %28 = math.sqrt %27 : vector<256x128xf32>
    %cst_8 = arith.constant 9.99999974E-6 : f32
    %29 = vector.broadcast %cst_8 : f32 to vector<256x128xf32>
    %30 = arith.addf %28, %29 : vector<256x128xf32>
    %31 = arith.mulf %30, %30 : vector<256x128xf32>
    %cst_9 = arith.constant 0.000000e+00 : f32
    %32 = vector.broadcast %cst_9 : f32 to vector<256x128xf32>
    %33 = arith.subf %32, %31 : vector<256x128xf32>
    %cst_10 = arith.constant 4.000000e+00 : f32
    %34 = vector.broadcast %cst_10 : f32 to vector<256x128xf32>
    %35 = arith.mulf %33, %34 : vector<256x128xf32>
    %36 = math.exp %35 : vector<256x128xf32>
    %cst_11 = arith.constant dense<0.000000e+00> : vector<256xf32>
    %37 = vector.multi_reduction <add>, %36, %cst_11 [1] : vector<256x128xf32> to vector<256xf32>
    %38 = vector.shape_cast %37 : vector<256xf32> to vector<256x1xf32>
    %39 = tpu.reciprocal %38 {approx = true} : vector<256x1xf32> -> vector<256x1xf32>
    %40 = arith.truncf %36 : vector<256x128xf32> to vector<256x128xbf16>
    %cst_12 = arith.constant dense<0.000000e+00> : vector<256x32xf32>
    %41 = tpu.matmul %40, %5, %cst_12 {dimension_numbers = #tpu.dot_dimension_numbers<[1], [0], [0], [1], [0, 0, 1, 1], [], []>} : vector<256x128xbf16>, vector<128x32xbf16>, vector<256x32xf32> -> vector<256x32xf32>
    %42 = vector.broadcast %39 : vector<256x1xf32> to vector<256x32xf32>
    %43 = arith.mulf %41, %42 : vector<256x32xf32>
    %c0_13 = arith.constant 0 : index
    %c0_14 = arith.constant 0 : index
    %44 = vector.load %arg5[%c0_13, %c0_14] : memref<3x32xf32, #tpu.memory_space<vmem>>, vector<3x32xf32>
    %45 = vector.extract_strided_slice %1 {offsets = [0, 0], sizes = [256, 1], strides = [1, 1]} : vector<256x3xf32> to vector<256x1xf32>
    %46 = vector.extract_strided_slice %44 {offsets = [0, 0], sizes = [1, 32], strides = [1, 1]} : vector<3x32xf32> to vector<1x32xf32>
    %47 = vector.broadcast %45 : vector<256x1xf32> to vector<256x32xf32>
    %48 = vector.broadcast %46 : vector<1x32xf32> to vector<256x32xf32>
    %49 = arith.mulf %47, %48 : vector<256x32xf32>
    %50 = vector.extract_strided_slice %1 {offsets = [0, 1], sizes = [256, 1], strides = [1, 1]} : vector<256x3xf32> to vector<256x1xf32>
    %51 = vector.extract_strided_slice %44 {offsets = [1, 0], sizes = [1, 32], strides = [1, 1]} : vector<3x32xf32> to vector<1x32xf32>
    %52 = vector.broadcast %50 : vector<256x1xf32> to vector<256x32xf32>
    %53 = vector.broadcast %51 : vector<1x32xf32> to vector<256x32xf32>
    %54 = arith.mulf %52, %53 : vector<256x32xf32>
    %55 = arith.addf %49, %54 : vector<256x32xf32>
    %56 = vector.extract_strided_slice %1 {offsets = [0, 2], sizes = [256, 1], strides = [1, 1]} : vector<256x3xf32> to vector<256x1xf32>
    %57 = vector.extract_strided_slice %44 {offsets = [2, 0], sizes = [1, 32], strides = [1, 1]} : vector<3x32xf32> to vector<1x32xf32>
    %58 = vector.broadcast %56 : vector<256x1xf32> to vector<256x32xf32>
    %59 = vector.broadcast %57 : vector<1x32xf32> to vector<256x32xf32>
    %60 = arith.mulf %58, %59 : vector<256x32xf32>
    %61 = arith.addf %55, %60 : vector<256x32xf32>
    %c0_15 = arith.constant 0 : index
    %c0_16 = arith.constant 0 : index
    %62 = vector.load %arg6[%c0_15, %c0_16] : memref<1x32xf32, #tpu.memory_space<vmem>>, vector<1x32xf32>
    %63 = vector.broadcast %62 : vector<1x32xf32> to vector<256x32xf32>
    %64 = arith.addf %61, %63 : vector<256x32xf32>
    %65 = arith.truncf %43 : vector<256x32xf32> to vector<256x32xbf16>
    %c0_17 = arith.constant 0 : index
    %c0_18 = arith.constant 0 : index
    %66 = vector.load %arg7[%c0_17, %c0_18] : memref<32x160xbf16, #tpu.memory_space<vmem>>, vector<32x160xbf16>
    %cst_19 = arith.constant dense<0.000000e+00> : vector<256x160xf32>
    %67 = tpu.matmul %65, %66, %cst_19 {dimension_numbers = #tpu.dot_dimension_numbers<[1], [0], [0], [1], [0, 0, 1, 1], [], []>} : vector<256x32xbf16>, vector<32x160xbf16>, vector<256x160xf32> -> vector<256x160xf32>
    %c0_20 = arith.constant 0 : index
    %c0_21 = arith.constant 0 : index
    %68 = vector.load %arg8[%c0_20, %c0_21] : memref<1x160xf32, #tpu.memory_space<vmem>>, vector<1x160xf32>
    %69 = vector.broadcast %68 : vector<1x160xf32> to vector<256x160xf32>
    %70 = arith.addf %67, %69 : vector<256x160xf32>
    %71 = vector.extract_strided_slice %70 {offsets = [0, 0], sizes = [256, 32], strides = [1, 1]} : vector<256x160xf32> to vector<256x32xf32>
    %72 = arith.addf %64, %71 : vector<256x32xf32>
    %cst_22 = arith.constant 0.000000e+00 : f32
    %73 = vector.broadcast %cst_22 : f32 to vector<256x32xf32>
    %74 = arith.maximumf %72, %73 : vector<256x32xf32>
    %75 = arith.truncf %74 : vector<256x32xf32> to vector<256x32xbf16>
    %c0_23 = arith.constant 0 : index
    %c0_24 = arith.constant 0 : index
    %c0_25 = arith.constant 0 : index
    %76 = vector.load %arg9[%c0_23, %c0_24, %c0_25] : memref<5x32x32xbf16, #tpu.memory_space<vmem>>, vector<1x32x32xbf16>
    %77 = vector.shape_cast %76 : vector<1x32x32xbf16> to vector<32x32xbf16>
    %cst_26 = arith.constant dense<0.000000e+00> : vector<256x32xf32>
    %78 = tpu.matmul %75, %77, %cst_26 {dimension_numbers = #tpu.dot_dimension_numbers<[1], [0], [0], [1], [0, 0, 1, 1], [], []>} : vector<256x32xbf16>, vector<32x32xbf16>, vector<256x32xf32> -> vector<256x32xf32>
    %c0_27 = arith.constant 0 : index
    %c0_28 = arith.constant 0 : index
    %c0_29 = arith.constant 0 : index
    %79 = vector.load %arg10[%c0_27, %c0_28, %c0_29] : memref<5x1x32xf32, #tpu.memory_space<vmem>>, vector<1x1x32xf32>
    %80 = vector.shape_cast %79 : vector<1x1x32xf32> to vector<1x32xf32>
    %81 = vector.broadcast %80 : vector<1x32xf32> to vector<256x32xf32>
    %82 = arith.addf %78, %81 : vector<256x32xf32>
    %cst_30 = arith.constant 0.000000e+00 : f32
    %83 = vector.broadcast %cst_30 : f32 to vector<256x32xf32>
    %84 = arith.maximumf %82, %83 : vector<256x32xf32>
    %85 = arith.truncf %84 : vector<256x32xf32> to vector<256x32xbf16>
    %c0_31 = arith.constant 0 : index
    %c0_32 = arith.constant 0 : index
    %c0_33 = arith.constant 0 : index
    %86 = vector.load %arg11[%c0_31, %c0_32, %c0_33] : memref<5x32x32xbf16, #tpu.memory_space<vmem>>, vector<1x32x32xbf16>
    %87 = vector.shape_cast %86 : vector<1x32x32xbf16> to vector<32x32xbf16>
    %cst_34 = arith.constant dense<0.000000e+00> : vector<256x32xf32>
    %88 = tpu.matmul %85, %87, %cst_34 {dimension_numbers = #tpu.dot_dimension_numbers<[1], [0], [0], [1], [0, 0, 1, 1], [], []>} : vector<256x32xbf16>, vector<32x32xbf16>, vector<256x32xf32> -> vector<256x32xf32>
    %c0_35 = arith.constant 0 : index
    %c0_36 = arith.constant 0 : index
    %c0_37 = arith.constant 0 : index
    %89 = vector.load %arg12[%c0_35, %c0_36, %c0_37] : memref<5x1x32xf32, #tpu.memory_space<vmem>>, vector<1x1x32xf32>
    %90 = vector.shape_cast %89 : vector<1x1x32xf32> to vector<1x32xf32>
    %91 = vector.broadcast %90 : vector<1x32xf32> to vector<256x32xf32>
    %92 = arith.addf %88, %91 : vector<256x32xf32>
    %93 = arith.addf %72, %92 : vector<256x32xf32>
    %94 = vector.extract_strided_slice %70 {offsets = [0, 32], sizes = [256, 32], strides = [1, 1]} : vector<256x160xf32> to vector<256x32xf32>
    %95 = arith.addf %93, %94 : vector<256x32xf32>
    %cst_38 = arith.constant 0.000000e+00 : f32
    %96 = vector.broadcast %cst_38 : f32 to vector<256x32xf32>
    %97 = arith.maximumf %95, %96 : vector<256x32xf32>
    %98 = arith.truncf %97 : vector<256x32xf32> to vector<256x32xbf16>
    %c1 = arith.constant 1 : index
    %c0_39 = arith.constant 0 : index
    %c0_40 = arith.constant 0 : index
    %99 = vector.load %arg9[%c1, %c0_39, %c0_40] : memref<5x32x32xbf16, #tpu.memory_space<vmem>>, vector<1x32x32xbf16>
    %100 = vector.shape_cast %99 : vector<1x32x32xbf16> to vector<32x32xbf16>
    %cst_41 = arith.constant dense<0.000000e+00> : vector<256x32xf32>
    %101 = tpu.matmul %98, %100, %cst_41 {dimension_numbers = #tpu.dot_dimension_numbers<[1], [0], [0], [1], [0, 0, 1, 1], [], []>} : vector<256x32xbf16>, vector<32x32xbf16>, vector<256x32xf32> -> vector<256x32xf32>
    %c1_42 = arith.constant 1 : index
    %c0_43 = arith.constant 0 : index
    %c0_44 = arith.constant 0 : index
    %102 = vector.load %arg10[%c1_42, %c0_43, %c0_44] : memref<5x1x32xf32, #tpu.memory_space<vmem>>, vector<1x1x32xf32>
    %103 = vector.shape_cast %102 : vector<1x1x32xf32> to vector<1x32xf32>
    %104 = vector.broadcast %103 : vector<1x32xf32> to vector<256x32xf32>
    %105 = arith.addf %101, %104 : vector<256x32xf32>
    %cst_45 = arith.constant 0.000000e+00 : f32
    %106 = vector.broadcast %cst_45 : f32 to vector<256x32xf32>
    %107 = arith.maximumf %105, %106 : vector<256x32xf32>
    %108 = arith.truncf %107 : vector<256x32xf32> to vector<256x32xbf16>
    %c1_46 = arith.constant 1 : index
    %c0_47 = arith.constant 0 : index
    %c0_48 = arith.constant 0 : index
    %109 = vector.load %arg11[%c1_46, %c0_47, %c0_48] : memref<5x32x32xbf16, #tpu.memory_space<vmem>>, vector<1x32x32xbf16>
    %110 = vector.shape_cast %109 : vector<1x32x32xbf16> to vector<32x32xbf16>
    %cst_49 = arith.constant dense<0.000000e+00> : vector<256x32xf32>
    %111 = tpu.matmul %108, %110, %cst_49 {dimension_numbers = #tpu.dot_dimension_numbers<[1], [0], [0], [1], [0, 0, 1, 1], [], []>} : vector<256x32xbf16>, vector<32x32xbf16>, vector<256x32xf32> -> vector<256x32xf32>
    %c1_50 = arith.constant 1 : index
    %c0_51 = arith.constant 0 : index
    %c0_52 = arith.constant 0 : index
    %112 = vector.load %arg12[%c1_50, %c0_51, %c0_52] : memref<5x1x32xf32, #tpu.memory_space<vmem>>, vector<1x1x32xf32>
    %113 = vector.shape_cast %112 : vector<1x1x32xf32> to vector<1x32xf32>
    %114 = vector.broadcast %113 : vector<1x32xf32> to vector<256x32xf32>
    %115 = arith.addf %111, %114 : vector<256x32xf32>
    %116 = arith.addf %95, %115 : vector<256x32xf32>
    %117 = vector.extract_strided_slice %70 {offsets = [0, 64], sizes = [256, 32], strides = [1, 1]} : vector<256x160xf32> to vector<256x32xf32>
    %118 = arith.addf %116, %117 : vector<256x32xf32>
    %cst_53 = arith.constant 0.000000e+00 : f32
    %119 = vector.broadcast %cst_53 : f32 to vector<256x32xf32>
    %120 = arith.maximumf %118, %119 : vector<256x32xf32>
    %121 = arith.truncf %120 : vector<256x32xf32> to vector<256x32xbf16>
    %c2 = arith.constant 2 : index
    %c0_54 = arith.constant 0 : index
    %c0_55 = arith.constant 0 : index
    %122 = vector.load %arg9[%c2, %c0_54, %c0_55] : memref<5x32x32xbf16, #tpu.memory_space<vmem>>, vector<1x32x32xbf16>
    %123 = vector.shape_cast %122 : vector<1x32x32xbf16> to vector<32x32xbf16>
    %cst_56 = arith.constant dense<0.000000e+00> : vector<256x32xf32>
    %124 = tpu.matmul %121, %123, %cst_56 {dimension_numbers = #tpu.dot_dimension_numbers<[1], [0], [0], [1], [0, 0, 1, 1], [], []>} : vector<256x32xbf16>, vector<32x32xbf16>, vector<256x32xf32> -> vector<256x32xf32>
    %c2_57 = arith.constant 2 : index
    %c0_58 = arith.constant 0 : index
    %c0_59 = arith.constant 0 : index
    %125 = vector.load %arg10[%c2_57, %c0_58, %c0_59] : memref<5x1x32xf32, #tpu.memory_space<vmem>>, vector<1x1x32xf32>
    %126 = vector.shape_cast %125 : vector<1x1x32xf32> to vector<1x32xf32>
    %127 = vector.broadcast %126 : vector<1x32xf32> to vector<256x32xf32>
    %128 = arith.addf %124, %127 : vector<256x32xf32>
    %cst_60 = arith.constant 0.000000e+00 : f32
    %129 = vector.broadcast %cst_60 : f32 to vector<256x32xf32>
    %130 = arith.maximumf %128, %129 : vector<256x32xf32>
    %131 = arith.truncf %130 : vector<256x32xf32> to vector<256x32xbf16>
    %c2_61 = arith.constant 2 : index
    %c0_62 = arith.constant 0 : index
    %c0_63 = arith.constant 0 : index
    %132 = vector.load %arg11[%c2_61, %c0_62, %c0_63] : memref<5x32x32xbf16, #tpu.memory_space<vmem>>, vector<1x32x32xbf16>
    %133 = vector.shape_cast %132 : vector<1x32x32xbf16> to vector<32x32xbf16>
    %cst_64 = arith.constant dense<0.000000e+00> : vector<256x32xf32>
    %134 = tpu.matmul %131, %133, %cst_64 {dimension_numbers = #tpu.dot_dimension_numbers<[1], [0], [0], [1], [0, 0, 1, 1], [], []>} : vector<256x32xbf16>, vector<32x32xbf16>, vector<256x32xf32> -> vector<256x32xf32>
    %c2_65 = arith.constant 2 : index
    %c0_66 = arith.constant 0 : index
    %c0_67 = arith.constant 0 : index
    %135 = vector.load %arg12[%c2_65, %c0_66, %c0_67] : memref<5x1x32xf32, #tpu.memory_space<vmem>>, vector<1x1x32xf32>
    %136 = vector.shape_cast %135 : vector<1x1x32xf32> to vector<1x32xf32>
    %137 = vector.broadcast %136 : vector<1x32xf32> to vector<256x32xf32>
    %138 = arith.addf %134, %137 : vector<256x32xf32>
    %139 = arith.addf %118, %138 : vector<256x32xf32>
    %140 = vector.extract_strided_slice %70 {offsets = [0, 96], sizes = [256, 32], strides = [1, 1]} : vector<256x160xf32> to vector<256x32xf32>
    %141 = arith.addf %139, %140 : vector<256x32xf32>
    %cst_68 = arith.constant 0.000000e+00 : f32
    %142 = vector.broadcast %cst_68 : f32 to vector<256x32xf32>
    %143 = arith.maximumf %141, %142 : vector<256x32xf32>
    %144 = arith.truncf %143 : vector<256x32xf32> to vector<256x32xbf16>
    %c3 = arith.constant 3 : index
    %c0_69 = arith.constant 0 : index
    %c0_70 = arith.constant 0 : index
    %145 = vector.load %arg9[%c3, %c0_69, %c0_70] : memref<5x32x32xbf16, #tpu.memory_space<vmem>>, vector<1x32x32xbf16>
    %146 = vector.shape_cast %145 : vector<1x32x32xbf16> to vector<32x32xbf16>
    %cst_71 = arith.constant dense<0.000000e+00> : vector<256x32xf32>
    %147 = tpu.matmul %144, %146, %cst_71 {dimension_numbers = #tpu.dot_dimension_numbers<[1], [0], [0], [1], [0, 0, 1, 1], [], []>} : vector<256x32xbf16>, vector<32x32xbf16>, vector<256x32xf32> -> vector<256x32xf32>
    %c3_72 = arith.constant 3 : index
    %c0_73 = arith.constant 0 : index
    %c0_74 = arith.constant 0 : index
    %148 = vector.load %arg10[%c3_72, %c0_73, %c0_74] : memref<5x1x32xf32, #tpu.memory_space<vmem>>, vector<1x1x32xf32>
    %149 = vector.shape_cast %148 : vector<1x1x32xf32> to vector<1x32xf32>
    %150 = vector.broadcast %149 : vector<1x32xf32> to vector<256x32xf32>
    %151 = arith.addf %147, %150 : vector<256x32xf32>
    %cst_75 = arith.constant 0.000000e+00 : f32
    %152 = vector.broadcast %cst_75 : f32 to vector<256x32xf32>
    %153 = arith.maximumf %151, %152 : vector<256x32xf32>
    %154 = arith.truncf %153 : vector<256x32xf32> to vector<256x32xbf16>
    %c3_76 = arith.constant 3 : index
    %c0_77 = arith.constant 0 : index
    %c0_78 = arith.constant 0 : index
    %155 = vector.load %arg11[%c3_76, %c0_77, %c0_78] : memref<5x32x32xbf16, #tpu.memory_space<vmem>>, vector<1x32x32xbf16>
    %156 = vector.shape_cast %155 : vector<1x32x32xbf16> to vector<32x32xbf16>
    %cst_79 = arith.constant dense<0.000000e+00> : vector<256x32xf32>
    %157 = tpu.matmul %154, %156, %cst_79 {dimension_numbers = #tpu.dot_dimension_numbers<[1], [0], [0], [1], [0, 0, 1, 1], [], []>} : vector<256x32xbf16>, vector<32x32xbf16>, vector<256x32xf32> -> vector<256x32xf32>
    %c3_80 = arith.constant 3 : index
    %c0_81 = arith.constant 0 : index
    %c0_82 = arith.constant 0 : index
    %158 = vector.load %arg12[%c3_80, %c0_81, %c0_82] : memref<5x1x32xf32, #tpu.memory_space<vmem>>, vector<1x1x32xf32>
    %159 = vector.shape_cast %158 : vector<1x1x32xf32> to vector<1x32xf32>
    %160 = vector.broadcast %159 : vector<1x32xf32> to vector<256x32xf32>
    %161 = arith.addf %157, %160 : vector<256x32xf32>
    %162 = arith.addf %141, %161 : vector<256x32xf32>
    %163 = vector.extract_strided_slice %70 {offsets = [0, 128], sizes = [256, 32], strides = [1, 1]} : vector<256x160xf32> to vector<256x32xf32>
    %164 = arith.addf %162, %163 : vector<256x32xf32>
    %cst_83 = arith.constant 0.000000e+00 : f32
    %165 = vector.broadcast %cst_83 : f32 to vector<256x32xf32>
    %166 = arith.maximumf %164, %165 : vector<256x32xf32>
    %167 = arith.truncf %166 : vector<256x32xf32> to vector<256x32xbf16>
    %c4 = arith.constant 4 : index
    %c0_84 = arith.constant 0 : index
    %c0_85 = arith.constant 0 : index
    %168 = vector.load %arg9[%c4, %c0_84, %c0_85] : memref<5x32x32xbf16, #tpu.memory_space<vmem>>, vector<1x32x32xbf16>
    %169 = vector.shape_cast %168 : vector<1x32x32xbf16> to vector<32x32xbf16>
    %cst_86 = arith.constant dense<0.000000e+00> : vector<256x32xf32>
    %170 = tpu.matmul %167, %169, %cst_86 {dimension_numbers = #tpu.dot_dimension_numbers<[1], [0], [0], [1], [0, 0, 1, 1], [], []>} : vector<256x32xbf16>, vector<32x32xbf16>, vector<256x32xf32> -> vector<256x32xf32>
    %c4_87 = arith.constant 4 : index
    %c0_88 = arith.constant 0 : index
    %c0_89 = arith.constant 0 : index
    %171 = vector.load %arg10[%c4_87, %c0_88, %c0_89] : memref<5x1x32xf32, #tpu.memory_space<vmem>>, vector<1x1x32xf32>
    %172 = vector.shape_cast %171 : vector<1x1x32xf32> to vector<1x32xf32>
    %173 = vector.broadcast %172 : vector<1x32xf32> to vector<256x32xf32>
    %174 = arith.addf %170, %173 : vector<256x32xf32>
    %cst_90 = arith.constant 0.000000e+00 : f32
    %175 = vector.broadcast %cst_90 : f32 to vector<256x32xf32>
    %176 = arith.maximumf %174, %175 : vector<256x32xf32>
    %177 = arith.truncf %176 : vector<256x32xf32> to vector<256x32xbf16>
    %c4_91 = arith.constant 4 : index
    %c0_92 = arith.constant 0 : index
    %c0_93 = arith.constant 0 : index
    %178 = vector.load %arg11[%c4_91, %c0_92, %c0_93] : memref<5x32x32xbf16, #tpu.memory_space<vmem>>, vector<1x32x32xbf16>
    %179 = vector.shape_cast %178 : vector<1x32x32xbf16> to vector<32x32xbf16>
    %cst_94 = arith.constant dense<0.000000e+00> : vector<256x32xf32>
    %180 = tpu.matmul %177, %179, %cst_94 {dimension_numbers = #tpu.dot_dimension_numbers<[1], [0], [0], [1], [0, 0, 1, 1], [], []>} : vector<256x32xbf16>, vector<32x32xbf16>, vector<256x32xf32> -> vector<256x32xf32>
    %c4_95 = arith.constant 4 : index
    %c0_96 = arith.constant 0 : index
    %c0_97 = arith.constant 0 : index
    %181 = vector.load %arg12[%c4_95, %c0_96, %c0_97] : memref<5x1x32xf32, #tpu.memory_space<vmem>>, vector<1x1x32xf32>
    %182 = vector.shape_cast %181 : vector<1x1x32xf32> to vector<1x32xf32>
    %183 = vector.broadcast %182 : vector<1x32xf32> to vector<256x32xf32>
    %184 = arith.addf %180, %183 : vector<256x32xf32>
    %185 = arith.addf %164, %184 : vector<256x32xf32>
    %cst_98 = arith.constant 0.000000e+00 : f32
    %186 = vector.broadcast %cst_98 : f32 to vector<256x32xf32>
    %187 = arith.maximumf %185, %186 : vector<256x32xf32>
    %188 = tpu.transpose %187, [1, 0] : vector<256x32xf32> -> vector<32x256xf32>
    %c0_99 = arith.constant 0 : index
    %c0_100 = arith.constant 0 : index
    %189 = vector.load %arg13[%c0_99, %c0_100] : memref<8x32xf32, #tpu.memory_space<vmem>>, vector<8x32xf32>
    %cst_101 = arith.constant dense<0.000000e+00> : vector<8x256xf32>
    %190 = tpu.matmul %189, %188, %cst_101 {dimension_numbers = #tpu.dot_dimension_numbers<[1], [0], [0], [1], [0, 0, 1, 1], [], []>} : vector<8x32xf32>, vector<32x256xf32>, vector<8x256xf32> -> vector<8x256xf32>
    %191 = vector.extract_strided_slice %190 {offsets = [0, 0], sizes = [1, 256], strides = [1, 1]} : vector<8x256xf32> to vector<1x256xf32>
    %c0_102 = arith.constant 0 : index
    %c0_103 = arith.constant 0 : index
    %192 = vector.load %arg14[%c0_102, %c0_103] : memref<1x1xf32, #tpu.memory_space<vmem>>, vector<1x1xf32>
    %193 = vector.broadcast %192 : vector<1x1xf32> to vector<1x256xf32>
    %194 = arith.addf %191, %193 : vector<1x256xf32>
    %195 = vector.shape_cast %194 : vector<1x256xf32> to vector<1x1x256xf32>
    %c0_104 = arith.constant 0 : index
    %c0_105 = arith.constant 0 : index
    %c0_106 = arith.constant 0 : index
    %196 = vector.load %arg15[%c0_104, %c0_105, %c0_106] : memref<1x1x256xf32, #tpu.memory_space<vmem>>, vector<1x1x256xf32>
    tpu.vector_store %arg15[%c0_104, %c0_105, %c0_106], %195 {strides = array<i32>} : memref<1x1x256xf32, #tpu.memory_space<vmem>>, vector<1x1x256xf32>,
    return
  }
  func.func @transform_0(%arg0: i32, %arg1: i32) -> (i32, i32, i32) {
    %c0_i32 = arith.constant 0 : i32
    %c0_i32_0 = arith.constant 0 : i32
    return %arg0, %arg1, %c0_i32 : i32, i32, i32
  }
  func.func @transform_1(%arg0: i32, %arg1: i32) -> (i32, i32, i32) {
    %c0_i32 = arith.constant 0 : i32
    %c0_i32_0 = arith.constant 0 : i32
    %c0_i32_1 = arith.constant 0 : i32
    return %arg0, %c0_i32, %c0_i32_0 : i32, i32, i32
  }
  func.func @transform_2(%arg0: i32, %arg1: i32) -> (i32, i32, i32) {
    %c0_i32 = arith.constant 0 : i32
    %c0_i32_0 = arith.constant 0 : i32
    %c0_i32_1 = arith.constant 0 : i32
    return %arg0, %c0_i32, %c0_i32_0 : i32, i32, i32
  }
  func.func @transform_3(%arg0: i32, %arg1: i32) -> (i32, i32) {
    %c0_i32 = arith.constant 0 : i32
    %c0_i32_0 = arith.constant 0 : i32
    %c0_i32_1 = arith.constant 0 : i32
    return %c0_i32, %c0_i32_0 : i32, i32
  }
  func.func @transform_4(%arg0: i32, %arg1: i32) -> (i32, i32) {
    %c0_i32 = arith.constant 0 : i32
    %c0_i32_0 = arith.constant 0 : i32
    %c0_i32_1 = arith.constant 0 : i32
    return %c0_i32, %c0_i32_0 : i32, i32
  }
  func.func @transform_5(%arg0: i32, %arg1: i32) -> (i32, i32) {
    %c0_i32 = arith.constant 0 : i32
    %c0_i32_0 = arith.constant 0 : i32
    %c0_i32_1 = arith.constant 0 : i32
    return %c0_i32, %c0_i32_0 : i32, i32
  }
  func.func @transform_6(%arg0: i32, %arg1: i32) -> (i32, i32) {
    %c0_i32 = arith.constant 0 : i32
    %c0_i32_0 = arith.constant 0 : i32
    %c0_i32_1 = arith.constant 0 : i32
    return %c0_i32, %c0_i32_0 : i32, i32
  }
  func.func @transform_7(%arg0: i32, %arg1: i32) -> (i32, i32, i32) {
    %c0_i32 = arith.constant 0 : i32
    %c0_i32_0 = arith.constant 0 : i32
    %c0_i32_1 = arith.constant 0 : i32
    %c0_i32_2 = arith.constant 0 : i32
    return %c0_i32, %c0_i32_0, %c0_i32_1 : i32, i32, i32
  }
  func.func @transform_8(%arg0: i32, %arg1: i32) -> (i32, i32, i32) {
    %c0_i32 = arith.constant 0 : i32
    %c0_i32_0 = arith.constant 0 : i32
    %c0_i32_1 = arith.constant 0 : i32
    %c0_i32_2 = arith.constant 0 : i32
    return %c0_i32, %c0_i32_0, %c0_i32_1 : i32, i32, i32
  }
  func.func @transform_9(%arg0: i32, %arg1: i32) -> (i32, i32, i32) {
    %c0_i32 = arith.constant 0 : i32
    %c0_i32_0 = arith.constant 0 : i32
    %c0_i32_1 = arith.constant 0 : i32
    %c0_i32_2 = arith.constant 0 : i32
    return %c0_i32, %c0_i32_0, %c0_i32_1 : i32, i32, i32
  }
  func.func @transform_10(%arg0: i32, %arg1: i32) -> (i32, i32, i32) {
    %c0_i32 = arith.constant 0 : i32
    %c0_i32_0 = arith.constant 0 : i32
    %c0_i32_1 = arith.constant 0 : i32
    %c0_i32_2 = arith.constant 0 : i32
    return %c0_i32, %c0_i32_0, %c0_i32_1 : i32, i32, i32
  }
  func.func @transform_11(%arg0: i32, %arg1: i32) -> (i32, i32) {
    %c0_i32 = arith.constant 0 : i32
    %c0_i32_0 = arith.constant 0 : i32
    %c0_i32_1 = arith.constant 0 : i32
    return %c0_i32, %c0_i32_0 : i32, i32
  }
  func.func @transform_12(%arg0: i32, %arg1: i32) -> (i32, i32) {
    %c0_i32 = arith.constant 0 : i32
    %c0_i32_0 = arith.constant 0 : i32
    %c0_i32_1 = arith.constant 0 : i32
    return %c0_i32, %c0_i32_0 : i32, i32
  }
  func.func @transform_13(%arg0: i32, %arg1: i32) -> (i32, i32, i32) {
    %c0_i32 = arith.constant 0 : i32
    %c0_i32_0 = arith.constant 0 : i32
    return %arg0, %c0_i32, %arg1 : i32, i32, i32
  }
}

</mosaic_0001>

<bundles_post_ra>
// kernel: local_point_decoder_forward.1
= control target key start
LH: loop header
LB: loop body
LE: loop exit
PB: predicated region body
PF: predicated region fallthrough
CT: control target
= control target key end

     0   :  { %s7772_s27 = smov 0   ;;  %s7774_s28 = smov 0   ;;  %s10608_s0 = inlined_call_operand.vmem [shape: f32[2,256,3], index: 0, kind: input, shape index: {}]   ;;  %s10609_s1 = inlined_call_operand.vmem [shape: f32[2,3,128], index: 1, kind: input, shape index: {}]   ;;  %s10610_s2 = inlined_call_operand.vmem [shape: bf16[2,128,32], index: 2, kind: input, shape index: {}]   ;;  %s10611_s3 = inlined_call_operand.vmem [shape: f32[3,32], index: 3, kind: input, shape index: {}]   ;;  %s10612_s4 = inlined_call_operand.vmem [shape: f32[1,32], index: 4, kind: input, shape index: {}]   ;;  %s10613_s5 = inlined_call_operand.vmem [shape: bf16[32,160], index: 5, kind: input, shape index: {}]   ;;  %s10614_s6 = inlined_call_operand.vmem [shape: f32[1,160], index: 6, kind: input, shape index: {}]   ;;  %s10615_s7 = inlined_call_operand.vmem [shape: bf16[5,32,32], index: 7, kind: input, shape index: {}]   ;;  %s10616_s8 = inlined_call_operand.vmem [shape: f32[5,1,32], index: 8, kind: input, shape index: {}]   ;;  %s10617_s9 = inlined_call_operand.vmem [shape: bf16[5,32,32], index: 9, kind: input, shape index: {}]   ;;  %s10618_s10 = inlined_call_operand.vmem [shape: f32[5,1,32], index: 10, kind: input, shape index: {}]   ;;  %s10619_s11 = inlined_call_operand.vmem [shape: f32[8,32], index: 11, kind: input, shape index: {}]   ;;  %s10620_s12 = inlined_call_operand.<no memory space> [shape: f32[1,1], index: 12, kind: input, shape index: {}]   ;;  %s10621_s13 = inlined_call_operand.vmem [shape: f32[2,1,256], index: 13, kind: output, shape index: {}]  }
   0x1   :  { %v18_v0 = vstv %s10620_s12  ;;  %s7776_s29 = smov 0  }
   0x2   :  { %19 = vst [vmem:[#allocation2] sm:$0x1] %v18_v0 }
   0x3 LB: > { %s37_s12 = sadd.s32 1, %s7686_s28  ;;  %p6361_p0 = scmp.ge.s32.totalorder %s7690_s29, 1  ;;  %s7690_s29 = sphi %s7776_s29, %s25_s29   ;;  %s7686_s28 = sphi %s7774_s28, %s10945_s28   ;;  %s7682_s27 = sphi %s7772_s27, %s10944_s27  }
   0x4   : > { %p39_p1 = scmp.ge.s32.totalorder %s37_s12, 2  ;;  %p429_p2 = scmp.lt.s32.totalorder %s7690_s29, 3 }
   0x6   : > { %s10947_s12 = smov (%p39_p1, %s37_s12), 0  ;;  %p430_p3 = pnand %p6361_p0, %p429_p2 }
   0x8   : > { %433 = sbr.rel (%p430_p3) target bundleno = 3387 (0xd3b), region = 72 }
   0xf   : > { %p490_p4 = scmp.lt.s32.totalorder %s7682_s27, 1  ;;  %v10626_v1 = vmov 2   ;;  %v10628_v2 = vmov 1   ;;  %v10624_v3 = vmov 0   ;;  %v10622_v37 = vlaneseq  ;;  %s7695_s15 = smov 96  }
  0x10   : > { %7397 = vset.pattern.permute.xlu0 %v10626_v1  ;;  %7393 = vset.pattern.permute.xlu1 %v10628_v2  ;;  %s7697_s23 = smov 32  }
  0x11   : > { %s10949_s27 = smov (!%p490_p4, %s7682_s27), 1  ;;  %2417 = vmatprep.mubr.bf16.mxu1 %v10624_v3  ;;  %v7919_v40 = vshrl.u32 %v10622_v37, 7 }
  0x12   : > { %s6662_s30 = sshll.u32 %s10949_s27, 8  ;;  %s6663_s17 = sshll.u32 %s10949_s27, 6 }
  0x13   : > { %s7799_s16 = scalar_lea.vmem %s10608_s0, %s6662_s30  ;;  %s7846_s20 = scalar_lea.vmem %s10610_s2, %s6663_s17  ;;  %10713 = vst [vmem:[#allocation3_spill] sm:$0xff] %v7919_v40  ;;  %v7938_v45 = vsub.s32 1, %v7919_v40  ;;  %v7950_v50 = vsub.s32 0, %v7919_v40  ;;  %v10623_v52 = vsub.s32 2, %v7919_v40 }
  0x14   : > { %v519_v4 = vld [vmem:[%s7799_s16 + $0x8] sm:$0xff]  ;;  %v518_v5 = vld [vmem:[%s7799_s16] sm:$0xff]  ;;  %v525_v7 = vld [vmem:[%s7799_s16 + $0x38] sm:$0xff]  ;;  %s6364_s21 = sshll.u32 %s10949_s27, 2  ;;  %s6367_s22 = sshll.u32 %s10949_s27, 1 }
  0x15   : > { %1060 = vperm.xlu0 %7397, %v519_v4   ;;  %828 = vperm.xlu1 %7393, %v518_v5   ;;  %v522_v6 = vld [vmem:[%s7799_s16 + $0x20] sm:$0xff]  ;;  %v521_v8 = vld [vmem:[%s7799_s16 + $0x18] sm:$0xff]  ;;  %v527_v9 = vld [vmem:[%s7799_s16 + $0x48] sm:$0xff]  ;;  %s502_s24 = scalar_lea.vmem %s10609_s1, %s6364_s21  ;;  %10715 = vst [vmem:[#allocation5_spill] sm:$0xff] %v7938_v45  ;;  %s515_s25 = scalar_lea.vmem %s10621_s13, %s6367_s22 }
  0x16   : > { %v520_v10 = vld [vmem:[%s7799_s16 + $0x10] sm:$0xff]  ;;  %v523_v11 = vld [vmem:[%s7799_s16 + $0x28] sm:$0xff]  ;;  %v7820_v13 = vld [vmem:[%s7799_s16 + $0x60] sm:$0xff]  ;;  %10718 = vst [vmem:[#allocation8_spill] sm:$0xff] %v7950_v50 }
  0x17   : > { %v7815_v12 = vld [vmem:[%s7799_s16 + $0x50] sm:$0xff]  ;;  %v7826_v15 = vld [vmem:[%s7799_s16 + $0x88] sm:$0xff]  ;;  %v526_v17 = vld [vmem:[%s7799_s16 + $0x40] sm:$0xff] }
  0x18   : > { %v524_v14 = vld [vmem:[%s7799_s16 + $0x30] sm:$0xff]  ;;  %v7840_v18 = vld [vmem:[%s7799_s16 + $0x68] sm:$0xff]  ;;  %v7441_v20 = vld [vmem:[%s7846_s20] sm:$0xff]  }
  0x19   : > { %1072 = vperm.xlu0 %7397, %v522_v6   ;;  %832 = vperm.xlu1 %7393, %v519_v4   ;;  %v7830_v16 = vld [vmem:[%s7799_s16 + $0x90] sm:$0xff]  ;;  %v7442_v21 = vld [vmem:[%s7846_s20 + $0x8] sm:$0xff]   ;;  %v529_v22 = vld [vmem:[%s7799_s16 + $0x58] sm:$0xff] }
  0x1a   : > { %v7850_v19 = vld [vmem:[%s7799_s16 + $0x70] sm:$0xff]  ;;  %6902 = vmatprep.subr.bf16.mxu0 %v7441_v20  ;;  %v7861_v24 = vld [vmem:[%s7799_s16 + $0xa8] sm:$0xff]  ;;  %v7444_v25 = vld [vmem:[%s7846_s20 + $0x18] sm:$0xff]  }
  0x1b   : > { %6903 = vmatpush3.bf16.msra.mxu0 %v7441_v20  ;;  %v7443_v23 = vld [vmem:[%s7846_s20 + $0x10] sm:$0xff]   ;;  %v7445_v27 = vld [vmem:[%s7846_s20 + $0x20] sm:$0xff]   ;;  %v7446_v28 = vld [vmem:[%s7846_s20 + $0x28] sm:$0xff]  }
  0x1c   : > { %6904 = vmatprep.subr.bf16.mxu0 %v7442_v21  ;;  %v7867_v26 = vld [vmem:[%s7799_s16 + $0xb0] sm:$0xff]  ;;  %v533_v30 = vld [vmem:[%s7799_s16 + $0x78] sm:$0xff]  ;;  %v7881_v32 = vld [vmem:[%s7799_s16 + $0xa0] sm:$0xff] }
  0x1d   : > { %1084 = vperm.xlu0 %7397, %v525_v7   ;;  %7394 = vset.pattern.permute.xlu1 %v10624_v3  ;;  %v7447_v29 = vld [vmem:[%s7846_s20 + $0x30] sm:$0xff]   ;;  %v7448_v31 = vld [vmem:[%s7846_s20 + $0x38] sm:$0xff]   ;;  %v7893_v34 = vld [vmem:[%s7799_s16 + $0xc8] sm:$0xff]  ;;  %s7696_s20 = smov 64  }
  0x1e   : > { %584 = vperm.xlu1 %7394, %v521_v8   ;;  %v7887_v33 = vld [vmem:[%s7799_s16 + $0xb8] sm:$0xff]  ;;  %v7903_v35 = vld [vmem:[%s7799_s16 + $0xd0] sm:$0xff]  ;;  %v7908_v36 = vld [vmem:[%s7799_s16 + $0xe0] sm:$0xff] }
  0x1f   : > { %6905 = vmatpush3.bf16.msra.mxu0 %v7442_v21  ;;  %v7926_v43 = vld [vmem:[%s7799_s16 + $0x80] sm:$0xff]  ;;  %v7935_v44 = vld [vmem:[%s7799_s16 + $0xe8] sm:$0xff]  ;;  %v7947_v49 = vld [vmem:[%s7799_s16 + $0xf0] sm:$0xff] }
  0x20   : > { %6906 = vmatprep.subr.bf16.mxu0 %v7443_v23  ;;  %v550_v47 = vld [vmem:[%s502_s24] sm:$0x7]  ;;  %v537_v62 = vld [vmem:[%s7799_s16 + $0x98] sm:$0xff] }
  0x21   : > { %1092 = vperm.xlu0 %7397, %v527_v9   ;;  %v7953_v51 = vrot.slane %v550_v47, %v7938_v45  ;;  %v7964_v55 = vrot.slane %v550_v47, %v7950_v50  ;;  %v7968_v56 = vrot.slane %v550_v47, %v10623_v52 }
  0x22   : > { %7395 = vset.pattern.permute.xlu1 %v10628_v2 }
  0x23   : > { %840 = vperm.xlu1 %7395, %v521_v8   ;;  %6907 = vmatpush3.bf16.msra.mxu0 %v7443_v23 }
  0x24   : > { %6908 = vmatprep.subr.bf16.mxu0 %v7444_v25 }
  0x25   : > { %7408 = vset.pattern.permute.xlu0 %v10624_v3 }
  0x26   : > { %569 = vperm.xlu0 %7408, %v518_v5  }
  0x27   : > { %7396 = vset.pattern.permute.xlu1 %v10626_v1  ;;  %6909 = vmatpush3.bf16.msra.mxu0 %v7444_v25 }
  0x28   : > { %1056 = vperm.xlu1 %7396, %v518_v5   ;;  %6910 = vmatprep.subr.bf16.mxu0 %v7445_v27 }
  0x2a   : > { %574 = vperm.xlu0 %7408, %v519_v4  }
  0x2b   : > { %6911 = vmatpush3.bf16.msra.mxu0 %v7445_v27 }
  0x2c   : > { %1064 = vperm.xlu1 %7396, %v520_v10   ;;  %6912 = vmatprep.subr.bf16.mxu0 %v7446_v28 }
  0x2e   : > { %579 = vperm.xlu0 %7408, %v520_v10  }
  0x2f   : > { %6913 = vmatpush3.bf16.msra.mxu0 %v7446_v28 }
  0x30   : > { %1068 = vperm.xlu1 %7396, %v521_v8   ;;  %6914 = vmatprep.subr.bf16.mxu0 %v7447_v29 }
  0x32   : > { %589 = vperm.xlu0 %7408, %v522_v6  }
  0x33   : > { %6915 = vmatpush3.bf16.msra.mxu0 %v7447_v29 }
  0x34   : > { %7398 = vset.pattern.permute.xlu1 %v10624_v3  ;;  %6916 = vmatprep.subr.bf16.mxu0 %v7448_v31 }
  0x35   : > { %594 = vperm.xlu1 %7398, %v523_v11  }
  0x36   : > { %614 = vperm.xlu0 %7408, %v527_v9  }
  0x37   : > { %6917 = vmatpush3.bf16.msra.mxu0 %v7448_v31 }
  0x39   : > { %7399 = vset.pattern.permute.xlu1 %v10628_v2 }
  0x3a   : > { %619 = vperm.xlu0 %7408, %v7815_v12   ;;  %844 = vperm.xlu1 %7399, %v522_v6   ;;  %v7989_v6 = vld [vmem:[%s7799_s16 + $0xf8] sm:$0xff] }
  0x3e   : > { %629 = vperm.xlu0 %7408, %v7820_v13   ;;  %7400 = vset.pattern.permute.xlu1 %v10624_v3 }
  0x3f   : > { %599 = vperm.xlu1 %7400, %v524_v14  }
  0x42   : > { %654 = vperm.xlu0 %7408, %v7826_v15  }
  0x43   : > { %604 = vperm.xlu1 %7400, %v525_v7  }
  0x46   : > { %659 = vperm.xlu0 %7408, %v7830_v16  }
  0x47   : > { %7401 = vset.pattern.permute.xlu1 %v10628_v2 }
  0x48   : > { %856 = vperm.xlu1 %7401, %v525_v7  }
  0x4a   : > { %7416 = vset.pattern.permute.xlu0 %v10628_v2 }
  0x4b   : > { %836 = vperm.xlu0 %7416, %v520_v10  }
  0x4c   : > { %7402 = vset.pattern.permute.xlu1 %v10626_v1 }
  0x4d   : > { %1076 = vperm.xlu1 %7402, %v523_v11  }
  0x4f   : > { %848 = vperm.xlu0 %7416, %v523_v11  }
  0x51   : > { %1080 = vperm.xlu1 %7402, %v524_v14  }
  0x53   : > { %852 = vperm.xlu0 %7416, %v524_v14  }
  0x55   : > { %7403 = vset.pattern.permute.xlu1 %v10624_v3 }
  0x56   : > { %609 = vperm.xlu1 %7403, %v526_v17  }
  0x57   : > { %868 = vperm.xlu0 %7416, %v7815_v12  }
  0x5a   : > { %7404 = vset.pattern.permute.xlu1 %v10628_v2 }
  0x5b   : > { %860 = vperm.xlu1 %7404, %v526_v17   ;;  %880 = vperm.xlu0 %7416, %v7840_v18  }
  0x5f   : > { %864 = vperm.xlu1 %7404, %v527_v9   ;;  %884 = vperm.xlu0 %7416, %v7850_v19  }
  0x63   : > { %7405 = vset.pattern.permute.xlu1 %v10624_v3  ;;  %900 = vperm.xlu0 %7416, %v7830_v16  }
  0x64   : > { %624 = vperm.xlu1 %7405, %v529_v22  }
  0x67   : > { %912 = vperm.xlu0 %7416, %v7861_v24  }
  0x68   : > { %7406 = vset.pattern.permute.xlu1 %v10628_v2 }
  0x69   : > { %872 = vperm.xlu1 %7406, %v529_v22  }
  0x6b   : > { %916 = vperm.xlu0 %7416, %v7867_v26  }
  0x6d   : > { %7407 = vset.pattern.permute.xlu1 %v10626_v1 }
  0x6e   : > { %1088 = vperm.xlu1 %7407, %v526_v17  }
  0x6f   : > { %7423 = vset.pattern.permute.xlu0 %v10626_v1 }
  0x70   : > { %1104 = vperm.xlu0 %7423, %v7820_v13  }
  0x72   : > { %1096 = vperm.xlu1 %7407, %v7815_v12  }
  0x74   : > { %1116 = vperm.xlu0 %7423, %v533_v30  }
  0x76   : > { %1100 = vperm.xlu1 %7407, %v529_v22  }
  0x78   : > { %1124 = vperm.xlu0 %7423, %v7826_v15  }
  0x7a   : > { %7409 = vset.pattern.permute.xlu1 %v10624_v3 }
  0x7b   : > { %634 = vperm.xlu1 %7409, %v7840_v18  }
  0x7c   : > { %1136 = vperm.xlu0 %7423, %v7881_v32  }
  0x7f   : > { %7410 = vset.pattern.permute.xlu1 %v10628_v2 }
  0x80   : > { %876 = vperm.xlu1 %7410, %v7820_v13   ;;  %1148 = vperm.xlu0 %7423, %v7887_v33  }
  0x84   : > { %7411 = vset.pattern.permute.xlu1 %v10624_v3  ;;  %1156 = vperm.xlu0 %7423, %v7893_v34  }
  0x85   : > { %639 = vperm.xlu1 %7411, %v7850_v19  }
  0x88   : > { %7431 = vset.pattern.permute.xlu0 %v10624_v3 }
  0x89   : > { %644 = vperm.xlu1 %7411, %v533_v30   ;;  %669 = vperm.xlu0 %7431, %v7881_v32  }
  0x8d   : > { %7412 = vset.pattern.permute.xlu1 %v10628_v2  ;;  %694 = vperm.xlu0 %7431, %v7893_v34  }
  0x8e   : > { %888 = vperm.xlu1 %7412, %v533_v30  }
  0x91   : > { %699 = vperm.xlu0 %7431, %v7903_v35  }
  0x92   : > { %7413 = vset.pattern.permute.xlu1 %v10626_v1 }
  0x93   : > { %1108 = vperm.xlu1 %7413, %v7840_v18  }
  0x94   : > { %v7911_v38 = vpop.permute.xlu1 %828  ;;  %v7913_v39 = vpop.permute.xlu0 %1060 }
  0x95   : > { %709 = vperm.xlu0 %7431, %v7908_v36   ;;  %v959_v57 = vsub.f32 %v7911_v38, %v7953_v51  ;;  %v1188_v60 = vsub.f32 %v7913_v39, %v7968_v56 }
  0x97   : > { %1112 = vperm.xlu1 %7413, %v7850_v19   ;;  %v991_v63 = vmul.f32 %v959_v57, %v959_v57  ;;  %v1220_v12 = vmul.f32 %v1188_v60, %v1188_v60 }
  0x98   : > { %v7921_v41 = vpop.permute.xlu1 %832  ;;  %v7923_v42 = vpop.permute.xlu0 %1072 }
  0x99   : > { %10714 = vst [vmem:[#allocation4_spill] sm:$0xff] %v7923_v42  ;;  %7432 = vset.pattern.permute.xlu0 %v10628_v2  ;;  %v960_v0 = vsub.f32 %v7921_v41, %v7953_v51 }
  0x9a   : > { %932 = vperm.xlu0 %7432, %v7903_v35  }
  0x9b   : > { %7414 = vset.pattern.permute.xlu1 %v10624_v3  ;;  %v992_v14 = vmul.f32 %v960_v0, %v960_v0 }
  0x9c   : > { %649 = vperm.xlu1 %7414, %v7926_v43   ;;  %v7941_v46 = vpop.permute.xlu0 %1084 }
  0x9d   : > { %10716 = vst [vmem:[#allocation6_spill] sm:$0xff] %v7941_v46  ;;  %v7943_v48 = vpop.permute.xlu1 %584 }
  0x9e   : > { %10717 = vst [vmem:[#allocation7_spill] sm:$0xff] %v7943_v48  ;;  %944 = vperm.xlu0 %7432, %v7935_v44  }
  0xa0   : > { %7415 = vset.pattern.permute.xlu1 %v10628_v2  ;;  %v7957_v53 = vpop.permute.xlu0 %1092 }
  0xa1   : > { %10719 = vst [vmem:[#allocation9_spill] sm:$0xff] %v7957_v53  ;;  %892 = vperm.xlu1 %7415, %v7926_v43  }
  0xa2   : > { %v7960_v54 = vpop.permute.xlu1 %840  ;;  %948 = vperm.xlu0 %7432, %v7947_v49  }
  0xa3   : > { %v962_v8 = vsub.f32 %v7960_v54, %v7953_v51 }
  0xa5   : > { %v7972_v58 = vpop.permute.xlu0 %569  ;;  %896 = vperm.xlu1 %7415, %v7826_v15   ;;  %v734_v15 = vsub.f32 %v7943_v48, %v7964_v55  ;;  %v994_v20 = vmul.f32 %v962_v8, %v962_v8 }
  0xa6   : > { %v731_v59 = vsub.f32 %v7972_v58, %v7964_v55  ;;  %7437 = vset.pattern.permute.xlu0 %v10626_v1 }
  0xa7   : > { %v7980_v61 = vpop.permute.xlu1 %1056  ;;  %1168 = vperm.xlu0 %7437, %v7908_v36   ;;  %v766_v23 = vmul.f32 %v734_v15, %v734_v15 }
  0xa8   : > { %v763_v4 = vmul.f32 %v731_v59, %v731_v59  ;;  %v1187_v5 = vsub.f32 %v7980_v61, %v7968_v56 }
  0xa9   : > { %v7991_v7 = vpop.permute.xlu0 %574  ;;  %7417 = vset.pattern.permute.xlu1 %v10624_v3  ;;  %v1026_v29 = vadd.f32 %v994_v20, %v766_v23 }
  0xaa   : > { %v1023_v9 = vadd.f32 %v991_v63, %v763_v4  ;;  %v1219_v10 = vmul.f32 %v1187_v5, %v1187_v5  ;;  %v732_v11 = vsub.f32 %v7991_v7, %v7964_v55  ;;  %664 = vperm.xlu1 %7417, %v537_v62   ;;  %v1191_v63 = vsub.f32 %v7923_v42, %v7968_v56 }
  0xab   : > { %v7998_v13 = vpop.permute.xlu1 %1064  ;;  %1180 = vperm.xlu0 %7437, %v7989_v6  }
  0xac   : > { %10720 = vst [vmem:[#allocation10_spill] sm:$0xff] %v7998_v13  ;;  %v1251_v17 = vadd.f32 %v1219_v10, %v1023_v9  ;;  %v764_v18 = vmul.f32 %v732_v11, %v732_v11 }
  0xad   : > { %v8003_v19 = vpop.permute.xlu0 %579 }
  0xae   : > { %7475 = vrsqrt.f32 %v1251_v17  ;;  %v1024_v21 = vadd.f32 %v992_v14, %v764_v18  ;;  %7418 = vset.pattern.permute.xlu1 %v10628_v2  ;;  %vm1285_vm0 = vcmp.eq.f32.partialorder %v1251_v17, inf  ;;  %v1288_v9 = vand.u32 2147483648, %v1251_v17 }
  0xaf   : > { %904 = vperm.xlu1 %7418, %v537_v62   ;;  %v8006_v22 = vpop.permute.xlu1 %1068  ;;  %7440 = vset.pattern.permute.xlu0 %v10624_v3  ;;  %vm1287_vm1 = vcmp.eq.f32.partialorder %v1251_v17, 0.0  ;;  %v1223_v14 = vmul.f32 %v1191_v63, %v1191_v63 }
  0xb0   : > { %10721 = vst [vmem:[#allocation11_spill] sm:$0xff] %v8006_v22  ;;  %v1252_v25 = vadd.f32 %v1220_v12, %v1024_v21  ;;  %v1190_v27 = vsub.f32 %v8006_v22, %v7968_v56 }
  0xb1   : > { %v8011_v28 = vpop.permute.xlu0 %589 }
  0xb2   : > { %7477 = vrsqrt.f32 %v1252_v25  ;;  %v1222_v30 = vmul.f32 %v1190_v27, %v1190_v27  ;;  %v735_v59 = vsub.f32 %v8011_v28, %v7964_v55  ;;  %vm1292_vm2 = vcmp.eq.f32.partialorder %v1252_v25, inf }
  0xb3   : > { %7419 = vset.pattern.permute.xlu1 %v10626_v1  ;;  %v1295_v27 = vand.u32 2147483648, %v1252_v25  ;;  %vm1294_vm3 = vcmp.eq.f32.partialorder %v1252_v25, 0.0 }
  0xb4   : > { %v8014_v31 = vadd.f32 %v1222_v30, %v1026_v29  ;;  %1120 = vperm.xlu1 %7419, %v7926_v43   ;;  %v8017_v47 = vpop.permute.xlu1 %594  ;;  %v767_v5 = vmul.f32 %v735_v59, %v735_v59 }
  0xb5   : > { %v8019_v57 = vpop.permute.xlu0 %614 }
  0xb6   : > { %10722 = vst [vmem:[#allocation12_spill] sm:$0xff] %v8019_v57  ;;  %7479 = vrsqrt.f32 %v8014_v31  ;;  %vm1306_vm4 = vcmp.eq.f32.partialorder %v8014_v31, inf  ;;  %vm1308_vm5 = vcmp.eq.f32.partialorder %v8014_v31, 0.0 }
  0xb8   : > { %v7476_v60 = vpop.eup %7475  ;;  %1128 = vperm.xlu1 %7419, %v7830_v16  }
  0xb9   : > { %v8027_v0 = vpop.permute.xlu1 %844  ;;  %v8029_v4 = vpop.permute.xlu0 %619  ;;  %v1284_v43 = vmul.f32 %v7476_v60, %v1251_v17 }
  0xba   : > { %10723 = vst [vmem:[#allocation13_spill] sm:$0xff] %v8029_v4  ;;  %v963_v8 = vsub.f32 %v8027_v0, %v7953_v51 }
  0xbb   : > { %v1286_v10 = vsel %vm1285_vm0, %v1251_v17, %v1284_v43 }
  0xbc   : > { %v7478_v11 = vpop.eup %7477  ;;  %v995_v12 = vmul.f32 %v963_v8, %v963_v8  ;;  %1132 = vperm.xlu1 %7419, %v537_v62   ;;  %v1289_v16 = vsel %vm1287_vm1, %v1288_v9, %v1286_v10 }
  0xbd   : > { %v8033_v15 = vpop.permute.xlu0 %629  ;;  %v1291_v18 = vmul.f32 %v7478_v11, %v1252_v25  ;;  %v1507_v20 = vadd.f32 1e-05, %v1289_v16  ;;  %v733_v16 = vsub.f32 %v8003_v19, %v7964_v55 }
  0xbe   : > { %10724 = vst [vmem:[#allocation14_spill] sm:$0xff] %v8033_v15  ;;  %v1027_v21 = vadd.f32 %v995_v12, %v767_v5  ;;  %v8035_v23 = vpop.permute.xlu1 %599 }
  0xbf   : > { %10725 = vst [vmem:[#allocation15_spill] sm:$0xff] %v8035_v23  ;;  %v1293_v29 = vsel %vm1292_vm2, %v1252_v25, %v1291_v18  ;;  %v1539_v30 = vmul.f32 %v1507_v20, %v1507_v20  ;;  %v1194_v20 = vsub.f32 %v7941_v46, %v7968_v56 }
  0xc0   : > { %7420 = vset.pattern.permute.xlu1 %v10624_v3  ;;  %v1296_v17 = vsel %vm1294_vm3, %v1295_v27, %v1293_v29  ;;  %v7480_v59 = vpop.eup %7479  ;;  %v8038_v60 = vadd.f32 %v1223_v14, %v1027_v21 }
  0xc1   : > { %674 = vperm.xlu1 %7420, %v7861_v24   ;;  %v8041_v62 = vpop.permute.xlu0 %654  ;;  %v1508_v63 = vadd.f32 1e-05, %v1296_v17  ;;  %v1571_v43 = vsub.f32 0.0, %v1539_v30  ;;  %v1305_v9 = vmul.f32 %v7480_v59, %v8014_v31  ;;  %v1189_v17 = vsub.f32 %v7998_v13, %v7968_v56 }
  0xc2   : > { %10726 = vst [vmem:[#allocation16_spill] sm:$0xff] %v8041_v62  ;;  %v8043_v5 = vpop.permute.xlu1 %604  ;;  %7481 = vrsqrt.f32 %v8038_v60  ;;  %vm1313_vm6 = vcmp.eq.f32.partialorder %v8038_v60, inf  ;;  %vm1315_vm7 = vcmp.eq.f32.partialorder %v8038_v60, 0.0 }
  0xc3   : > { %10727 = vst [vmem:[#allocation17_spill] sm:$0xff] %v8043_v5  ;;  %v1540_v8 = vmul.f32 %v1508_v63, %v1508_v63  ;;  %v1603_v10 = vmul.f32 4.0, %v1571_v43  ;;  %v738_v12 = vsub.f32 %v8043_v5, %v7964_v55  ;;  %v1307_v29 = vsel %vm1306_vm4, %v8014_v31, %v1305_v9 }
  0xc4   : > { %v1221_v1 = vmul.f32 %v1189_v17, %v1189_v17 }
  0xc5   : > { %7421 = vset.pattern.permute.xlu1 %v10628_v2  ;;  %v8048_v25 = vpop.permute.xlu0 %659  ;;  %v1572_v11 = vsub.f32 0.0, %v1540_v8  ;;  %v1635_v27 = vmul.f32 1.442695, %v1603_v10  ;;  %v770_v59 = vmul.f32 %v738_v12, %v738_v12  ;;  %v765_v8 = vmul.f32 %v733_v16, %v733_v16 }
  0xc6   : > { %10728 = vst [vmem:[#allocation18_spill] sm:$0xff] %v8048_v25  ;;  %908 = vperm.xlu1 %7421, %v7881_v32   ;;  %v1309_v32 = vand.u32 2147483648, %v8014_v31  ;;  %v736_v12 = vsub.f32 %v8017_v47, %v7964_v55 }
  0xc7   : > { %v8055_v14 = vpop.permute.xlu1 %856  ;;  %v1604_v18 = vmul.f32 4.0, %v1572_v11  ;;  %v1226_v11 = vmul.f32 %v1194_v20, %v1194_v20 }
  0xc8   : > { %10729 = vst [vmem:[#allocation19_spill] sm:$0xff] %v8055_v14  ;;  %v966_v21 = vsub.f32 %v8055_v14, %v7953_v51  ;;  %v1310_v9 = vsel %vm1308_vm5, %v1309_v32, %v1307_v29  ;;  %v737_v32 = vsub.f32 %v8035_v23, %v7964_v55  ;;  %v10738_v14 = vmov 0  }
  0xc9   : > { %v1637_v30 = vmul.f32 1.442695, %v1604_v18  ;;  %v1510_v52 = vadd.f32 1e-05, %v1310_v9 }
  0xca   : > { %v998_v63 = vmul.f32 %v966_v21, %v966_v21  ;;  %v8066_v43 = vpop.permute.xlu0 %836  ;;  %7422 = vset.pattern.permute.xlu1 %v10624_v3 }
  0xcb   : > { %v961_v10 = vsub.f32 %v8066_v43, %v7953_v51  ;;  %679 = vperm.xlu1 %7422, %v7867_v26   ;;  %7483 = vpow2.f32 %v1637_v30  ;;  %v768_v30 = vmul.f32 %v736_v12, %v736_v12  ;;  %v1542_v17 = vmul.f32 %v1510_v52, %v1510_v52 }
  0xcc   : > { %v1030_v18 = vadd.f32 %v998_v63, %v770_v59  ;;  %v8073_v37 = vpop.permute.xlu1 %1076  ;;  %7485 = vpow2.f32 %v1635_v27  ;;  %v7482_v3 = vpop.eup %7481  ;;  %v10733_v12 = vmov 1  }
  0xcd   : > { %10730 = vst [vmem:[#allocation20_spill] sm:$0xff] %v8073_v37  ;;  %v993_v21 = vmul.f32 %v961_v10, %v961_v10  ;;  %v1192_v31 = vsub.f32 %v8073_v37, %v7968_v56 }
  0xce   : > { %v8079_v16 = vpop.permute.xlu0 %848  ;;  %v8084_v29 = vadd.f32 %v1226_v11, %v1030_v18 }
  0xcf   : > { %v1025_v2 = vadd.f32 %v993_v21, %v765_v8  ;;  %v964_v20 = vsub.f32 %v8079_v16, %v7953_v51  ;;  %684 = vperm.xlu1 %7422, %v7887_v33   ;;  %v1224_v10 = vmul.f32 %v1192_v31, %v1192_v31  ;;  %v1312_v8 = vmul.f32 %v7482_v3, %v8038_v60 }
  0xd0   : > { %v8086_v27 = vpop.permute.xlu1 %1080  ;;  %vm1334_vm11 = vcmp.eq.f32.partialorder %v8084_v29, inf  ;;  %vm1336_vm13 = vcmp.eq.f32.partialorder %v8084_v29, 0.0 }
  0xd1   : > { %10731 = vst [vmem:[#allocation21_spill] sm:$0xff] %v8086_v27  ;;  %v1253_v59 = vadd.f32 %v1221_v1, %v1025_v2  ;;  %v996_v63 = vmul.f32 %v964_v20, %v964_v20  ;;  %v1193_v11 = vsub.f32 %v8086_v27, %v7968_v56  ;;  %v769_v2 = vmul.f32 %v737_v32, %v737_v32 }
  0xd2   : > { %v8090_v9 = vpop.permute.xlu0 %852 }
  0xd3   : > { %10732 = vst [vmem:[#allocation22_spill] sm:$0xff] %v8090_v9  ;;  %7487 = vrsqrt.f32 %v1253_v59  ;;  %v1028_v21 = vadd.f32 %v996_v63, %v768_v30  ;;  %v965_v18 = vsub.f32 %v8090_v9, %v7953_v51  ;;  %7424 = vset.pattern.permute.xlu1 %v10733_v12  ;;  %v1574_v30 = vsub.f32 0.0, %v1542_v17 }
  0xd4   : > { %7489 = vrsqrt.f32 %v8084_v29  ;;  %920 = vperm.xlu1 %7424, %v7887_v33   ;;  %v1314_v63 = vsel %vm1313_vm6, %v8038_v60, %v1312_v8  ;;  %v1225_v27 = vmul.f32 %v1193_v11, %v1193_v11  ;;  %v740_v17 = vsub.f32 %v8019_v57, %v7964_v55 }
  0xd5   : > { %v8100_v1 = vpop.eup %7483  ;;  %v8102_v52 = vadd.f32 %v1224_v10, %v1028_v21  ;;  %v997_v3 = vmul.f32 %v965_v18, %v965_v18  ;;  %v8104_v31 = vpop.permute.xlu1 %609  ;;  %v10735_v10 = vmov 2   ;;  %v1316_v21 = vand.u32 2147483648, %v8038_v60 }
  0xd6   : > { %v8107_v20 = vpop.eup %7485  ;;  %v8113_v32 = vpop.permute.xlu0 %868  ;;  %v772_v60 = vmul.f32 %v740_v17, %v740_v17  ;;  %vm1299_vm8 = vcmp.eq.f32.partialorder %v1253_v59, inf  ;;  %vm1301_vm9 = vcmp.eq.f32.partialorder %v1253_v59, 0.0 }
  0xd7   : > { %7491 = vrsqrt.f32 %v8102_v52  ;;  %v1029_v23 = vadd.f32 %v997_v3, %v769_v2  ;;  %v1795_v33 = vpack.c.bf16 %v8100_v1, %v8107_v20  ;;  %10734 = vst [vmem:[#allocation23_spill] sm:$0xff] %v8113_v32  ;;  %v1317_v11 = vsel %vm1315_vm7, %v1316_v21, %v1314_v63  ;;  %v8136_v21 = vld [vmem:[%s7799_s16 + $0xc0] sm:$0xff] }
  0xd8   : > { %7425 = vset.pattern.permute.xlu1 %v10735_v10  ;;  %v1606_v2 = vmul.f32 4.0, %v1574_v30  ;;  %v1302_v30 = vand.u32 2147483648, %v1253_v59  ;;  %vm1320_vm10 = vcmp.eq.f32.partialorder %v8102_v52, inf  ;;  %vm1322_vm12 = vcmp.eq.f32.partialorder %v8102_v52, 0.0 }
  0xd9   : > { %v8117_v18 = vadd.f32 %v1225_v27, %v1029_v23  ;;  %6918 = vmatprep.mubr.bf16.mxu0 %v1795_v33  ;;  %1140 = vperm.xlu1 %7425, %v7861_v24   ;;  %v1511_v27 = vadd.f32 1e-05, %v1317_v11  ;;  %v1196_v24 = vsub.f32 %v7957_v53, %v7968_v56 }
  0xda   : > { %v8123_v8 = vpop.permute.xlu1 %860  ;;  %v8127_v23 = vpop.permute.xlu0 %880  ;;  %v1641_v9 = vmul.f32 1.442695, %v1606_v2 }
  0xdb   : > { %10736 = vst [vmem:[#allocation24_spill] sm:$0xff] %v8123_v8  ;;  %7493 = vrsqrt.f32 %v8117_v18  ;;  %v1543_v53 = vmul.f32 %v1511_v27, %v1511_v27  ;;  %v1228_v37 = vmul.f32 %v1196_v24, %v1196_v24  ;;  %v1323_v24 = vand.u32 2147483648, %v8102_v52 }
  0xdc   : > { %7495 = vpow2.f32 %v1641_v9  ;;  %vm1327_vm14 = vcmp.eq.f32.partialorder %v8117_v18, inf  ;;  %vm1329_vm15 = vcmp.eq.f32.partialorder %v8117_v18, 0.0 }
  0xdd   : > { %v7488_v3 = vpop.eup %7487  ;;  %1144 = vperm.xlu1 %7425, %v7867_v26  }
  0xde   : > { %v7490_v33 = vpop.eup %7489  ;;  %v8131_v5 = vpop.permute.xlu1 %864  ;;  %v1298_v57 = vmul.f32 %v7488_v3, %v1253_v59  ;;  %v741_v3 = vsub.f32 %v8029_v4, %v7964_v55 }
  0xdf   : > { %10737 = vst [vmem:[#allocation25_spill] sm:$0xff] %v8131_v5  ;;  %v968_v63 = vsub.f32 %v8131_v5, %v7953_v51  ;;  %v1333_v17 = vmul.f32 %v7490_v33, %v8084_v29 }
  0xe0   : > { %v1300_v26 = vsel %vm1299_vm8, %v1253_v59, %v1298_v57  ;;  %v8146_v59 = vpop.permute.xlu0 %884 }
  0xe1   : > { %v7492_v46 = vpop.eup %7491  ;;  %v1000_v11 = vmul.f32 %v968_v63, %v968_v63  ;;  %7426 = vset.pattern.permute.xlu1 %v10738_v14  ;;  %v1303_v13 = vsel %vm1301_vm9, %v1302_v30, %v1300_v26  ;;  %v1335_v63 = vsel %vm1334_vm11, %v8084_v29, %v1333_v17 }
  0xe2   : > { %689 = vperm.xlu1 %7426, %v8136_v21   ;;  %v1509_v5 = vadd.f32 1e-05, %v1303_v13  ;;  %v1319_v42 = vmul.f32 %v7492_v46, %v8102_v52  ;;  %v967_v46 = vsub.f32 %v8123_v8, %v7953_v51 }
  0xe3   : > { %v1032_v2 = vadd.f32 %v1000_v11, %v772_v60  ;;  %v8144_v57 = vpop.permute.xlu1 %624  ;;  %v1575_v60 = vsub.f32 0.0, %v1543_v53  ;;  %v1330_v53 = vand.u32 2147483648, %v8117_v18 }
  0xe4   : > { %10739 = vst [vmem:[#allocation26_spill] sm:$0xff] %v8144_v57  ;;  %v1541_v27 = vmul.f32 %v1509_v5, %v1509_v5  ;;  %v1321_v33 = vsel %vm1320_vm10, %v8102_v52, %v1319_v42  ;;  %v1337_v42 = vand.u32 2147483648, %v8084_v29  ;;  %v739_v29 = vsub.f32 %v8104_v31, %v7964_v55 }
  0xe5   : > { %v7494_v13 = vpop.eup %7493  ;;  %v1324_v30 = vsel %vm1322_vm12, %v1323_v24, %v1321_v33  ;;  %v8160_v26 = vadd.f32 %v1228_v37, %v1032_v2  ;;  %v969_v37 = vsub.f32 %v8113_v32, %v7953_v51  ;;  %v8173_v2 = vpop.permute.xlu0 %900  ;;  %v1607_v24 = vmul.f32 4.0, %v1575_v60 }
  0xe6   : > { %7427 = vset.pattern.permute.xlu1 %v10733_v12  ;;  %v1573_v9 = vsub.f32 0.0, %v1541_v27  ;;  %v1326_v5 = vmul.f32 %v7494_v13, %v8117_v18  ;;  %v1512_v17 = vadd.f32 1e-05, %v1324_v30  ;;  %v1338_v33 = vsel %vm1336_vm13, %v1337_v42, %v1335_v63  ;;  %10741 = vst [vmem:[#allocation28_spill] sm:$0xff] %v8173_v2 }
  0xe7   : > { %924 = vperm.xlu1 %7427, %v8136_v21   ;;  %v1514_v48 = vadd.f32 1e-05, %v1338_v33  ;;  %7497 = vrsqrt.f32 %v8160_v26  ;;  %v773_v42 = vmul.f32 %v741_v3, %v741_v3  ;;  %v771_v32 = vmul.f32 %v739_v29, %v739_v29 }
  0xe8   : > { %v8166_v52 = vpop.permute.xlu1 %872  ;;  %v1605_v11 = vmul.f32 4.0, %v1573_v9  ;;  %v1328_v27 = vsel %vm1327_vm14, %v8117_v18, %v1326_v5  ;;  %v1544_v8 = vmul.f32 %v1512_v17, %v1512_v17  ;;  %v999_v9 = vmul.f32 %v967_v46, %v967_v46  ;;  %v8177_v5 = vpop.eup %7495 }
  0xe9   : > { %10740 = vst [vmem:[#allocation27_spill] sm:$0xff] %v8166_v52  ;;  %v1331_v13 = vsel %vm1329_vm15, %v1330_v53, %v1328_v27  ;;  %v1546_v30 = vmul.f32 %v1514_v48, %v1514_v48  ;;  %v1001_v60 = vmul.f32 %v969_v37, %v969_v37  ;;  %v1643_v27 = vmul.f32 1.442695, %v1607_v24 }
  0xea   : > { %v1639_v4 = vmul.f32 1.442695, %v1605_v11  ;;  %v1513_v22 = vadd.f32 1e-05, %v1331_v13  ;;  %v1576_v18 = vsub.f32 0.0, %v1544_v8  ;;  %v8182_v11 = vld [vmem:[%s7799_s16 + $0xd8] sm:$0xff] }
  0xeb   : > { %928 = vperm.xlu1 %7427, %v7893_v34   ;;  %v1031_v34 = vadd.f32 %v999_v9, %v771_v32  ;;  %v1578_v48 = vsub.f32 0.0, %v1546_v30  ;;  %v1033_v37 = vadd.f32 %v1001_v60, %v773_v42  ;;  %v742_v32 = vsub.f32 %v8144_v57, %v7964_v55 }
  0xec   : > { %7499 = vpow2.f32 %v1639_v4  ;;  %v1545_v63 = vmul.f32 %v1513_v22, %v1513_v22  ;;  %v1608_v17 = vmul.f32 4.0, %v1576_v18  ;;  %v8187_v22 = vpop.permute.xlu0 %912  ;;  %v970_v4 = vsub.f32 %v8166_v52, %v7953_v51 }
  0xed   : > { %v8179_v53 = vpop.permute.xlu1 %1088  ;;  %v1610_v18 = vmul.f32 4.0, %v1578_v48  ;;  %7501 = vpow2.f32 %v1643_v27  ;;  %v774_v27 = vmul.f32 %v742_v32, %v742_v32  ;;  %vm1348_vm0 = vcmp.eq.f32.partialorder %v8160_v26, inf }
  0xee   : > { %v1195_v46 = vsub.f32 %v8179_v53, %v7968_v56  ;;  %v1577_v33 = vsub.f32 0.0, %v1545_v63  ;;  %v1645_v3 = vmul.f32 1.442695, %v1608_v17  ;;  %vm1350_vm1 = vcmp.eq.f32.partialorder %v8160_v26, 0.0 }
  0xef   : > { %7428 = vset.pattern.permute.xlu1 %v10738_v14  ;;  %v1649_v30 = vmul.f32 1.442695, %v1610_v18 }
  0xf0   : > { %v1227_v8 = vmul.f32 %v1195_v46, %v1195_v46  ;;  %704 = vperm.xlu1 %7428, %v8182_v11   ;;  %v1609_v29 = vmul.f32 4.0, %v1577_v33  ;;  %7503 = vpow2.f32 %v1645_v3  ;;  %v1002_v46 = vmul.f32 %v970_v4, %v970_v4  ;;  %v8205_v33 = vpop.permute.xlu0 %916 }
  0xf1   : > { %v8192_v13 = vpop.permute.xlu1 %1096  ;;  %v7498_v42 = vpop.eup %7497 }
  0xf2   : > { %10742 = vst [vmem:[#allocation29_spill] sm:$0xff] %v8192_v13  ;;  %v8196_v24 = vadd.f32 %v1227_v8, %v1031_v34  ;;  %v1197_v9 = vsub.f32 %v8192_v13, %v7968_v56  ;;  %v1647_v63 = vmul.f32 1.442695, %v1609_v29  ;;  %v1034_v3 = vadd.f32 %v1002_v46, %v774_v27 }
  0xf3   : > { %v1347_v18 = vmul.f32 %v7498_v42, %v8160_v26  ;;  %v743_v42 = vsub.f32 %v8033_v15, %v7964_v55 }
  0xf4   : > { %7505 = vrsqrt.f32 %v8196_v24  ;;  %v1229_v17 = vmul.f32 %v1197_v9, %v1197_v9  ;;  %7429 = vset.pattern.permute.xlu1 %v10733_v12  ;;  %vm1341_vm2 = vcmp.eq.f32.partialorder %v8196_v24, inf  ;;  %vm1343_vm3 = vcmp.eq.f32.partialorder %v8196_v24, 0.0 }
  0xf5   : > { %936 = vperm.xlu1 %7429, %v8182_v11   ;;  %v8203_v60 = vpop.permute.xlu1 %1100  ;;  %7507 = vpow2.f32 %v1647_v63  ;;  %v1349_v63 = vsel %vm1348_vm0, %v8160_v26, %v1347_v18 }
  0xf6   : > { %10743 = vst [vmem:[#allocation30_spill] sm:$0xff] %v8203_v60  ;;  %v8207_v34 = vpop.eup %7499  ;;  %v8209_v48 = vadd.f32 %v1229_v17, %v1033_v37  ;;  %v1198_v4 = vsub.f32 %v8203_v60, %v7968_v56  ;;  %7509 = vpow2.f32 %v1649_v30  ;;  %v1351_v37 = vand.u32 2147483648, %v8160_v26  ;;  %v8227_v30 = vpop.permute.xlu0 %1104 }
  0xf7   : > { %v1796_v8 = vpack.c.bf16 %v8177_v5, %v8207_v34  ;;  %10744 = vst [vmem:[#allocation31_spill] sm:$0xff] %v8227_v30  ;;  %v8229_v17 = vpop.eup %7501  ;;  %v1199_v26 = vsub.f32 %v8227_v30, %v7968_v56 }
  0xf8   : > { %7511 = vrsqrt.f32 %v8209_v48  ;;  %v1230_v29 = vmul.f32 %v1198_v4, %v1198_v4  ;;  %v1352_v46 = vsel %vm1350_vm1, %v1351_v37, %v1349_v63  ;;  %v775_v63 = vmul.f32 %v743_v42, %v743_v42 }
  0xf9   : > { %7430 = vset.pattern.permute.xlu1 %v10735_v10  ;;  %6919 = vmatmul.mubr.bf16.vlgmr.msra.gmra.mrb[0].mxu0 %v1796_v8  ;;  %v1516_v27 = vadd.f32 1e-05, %v1352_v46  ;;  %v1231_v57 = vmul.f32 %v1199_v26, %v1199_v26  ;;  %vm1355_vm4 = vcmp.eq.f32.partialorder %v8209_v48, inf  ;;  %v1358_v26 = vand.u32 2147483648, %v8209_v48 }
  0xfa   : > { %v8220_v32 = vadd.f32 %v1230_v29, %v1034_v3  ;;  %1152 = vperm.xlu1 %7430, %v8136_v21   ;;  %v8223_v9 = vpop.permute.xlu1 %634  ;;  %v7504_v4 = vpop.eup %7503  ;;  %vm1357_vm5 = vcmp.eq.f32.partialorder %v8209_v48, 0.0 }
  0xfb   : > { %1709 = vadd.xlane.f32.xlu0 %v7504_v4  ;;  %v1797_v21 = vpack.c.bf16 %v7504_v4, %v8229_v17  ;;  %v1548_v3 = vmul.f32 %v1516_v27, %v1516_v27  ;;  %v1344_v4 = vand.u32 2147483648, %v8196_v24 }
  0xfc   : > { %7513 = vrsqrt.f32 %v8220_v32  ;;  %vm1362_vm6 = vcmp.eq.f32.partialorder %v8220_v32, inf  ;;  %vm1364_vm7 = vcmp.eq.f32.partialorder %v8220_v32, 0.0 }
  0xfd   : > { %6922 = vmatprep.mubr.bf16.mxu0 %v1797_v21  ;;  %v1580_v30 = vsub.f32 0.0, %v1548_v3 }
  0xfe   : > { %v7506_v8 = vpop.eup %7505  ;;  %1160 = vperm.xlu1 %7430, %v7903_v35  }
  0xff   : > { %v7508_v29 = vpop.eup %7507  ;;  %v8238_v18 = vpop.permute.xlu1 %876  ;;  %v1340_v37 = vmul.f32 %v7506_v8, %v8196_v24  ;;  %v1612_v3 = vmul.f32 4.0, %v1580_v30 }
 0x100   : > { %10745 = vst [vmem:[#allocation32_spill] sm:$0xff] %v8238_v18  ;;  %v971_v46 = vsub.f32 %v8238_v18, %v7953_v51  ;;  %v8244_v15 = vpop.eup %7509  ;;  %1711 = vadd.xlane.f32.xlu0 %v7508_v29 }
 0x101   : > { %v1342_v35 = vsel %vm1341_vm2, %v8196_v24, %v1340_v37  ;;  %v1798_v8 = vpack.c.bf16 %v8244_v15, %v7508_v29 }
 0x102   : > { %v7512_v27 = vpop.eup %7511  ;;  %v1003_v60 = vmul.f32 %v971_v46, %v971_v46  ;;  %1164 = vperm.xlu1 %7430, %v8182_v11   ;;  %v1345_v42 = vsel %vm1343_vm3, %v1344_v4, %v1342_v35  ;;  %v8271_v35 = vpop.permute.xlu0 %1116 }
 0x103   : > { %v1354_v21 = vmul.f32 %v7512_v27, %v8209_v48  ;;  %6923 = vmatmul.mubr.bf16.gmra.mrb[4].mxu0 %v1798_v8  ;;  %v1515_v37 = vadd.f32 1e-05, %v1345_v42  ;;  %10747 = vst [vmem:[#allocation34_spill] sm:$0xff] %v8271_v35  ;;  %v744_v27 = vsub.f32 %v8223_v9, %v7964_v55 }
 0x104   : > { %v1035_v18 = vadd.f32 %v1003_v60, %v775_v63  ;;  %v8252_v13 = vpop.permute.xlu1 %639  ;;  %1699 = vadd.xlane.f32.xlu0 %v8107_v20  ;;  %v1365_v20 = vand.u32 2147483648, %v8220_v32  ;;  %v972_v63 = vsub.f32 %v8127_v23, %v7953_v51 }
 0x105   : > { %v1356_v46 = vsel %vm1355_vm4, %v8209_v48, %v1354_v21  ;;  %v1547_v11 = vmul.f32 %v1515_v37, %v1515_v37  ;;  %v1653_v48 = vmul.f32 1.442695, %v1612_v3  ;;  %v1202_v3 = vsub.f32 %v8271_v35, %v7968_v56 }
 0x106   : > { %v7514_v29 = vpop.eup %7513  ;;  %v8257_v52 = vadd.f32 %v1231_v57, %v1035_v18  ;;  %7433 = vset.pattern.permute.xlu1 %v10738_v14  ;;  %v1359_v60 = vsel %vm1357_vm5, %v1358_v26, %v1356_v46 }
 0x107   : > { %v1361_v24 = vmul.f32 %v7514_v29, %v8220_v32  ;;  %714 = vperm.xlu1 %7433, %v7935_v44   ;;  %v1579_v57 = vsub.f32 0.0, %v1547_v11  ;;  %v1517_v18 = vadd.f32 1e-05, %v1359_v60  ;;  %v973_v11 = vsub.f32 %v8146_v59, %v7953_v51 }
 0x108   : > { %7515 = vrsqrt.f32 %v8257_v52  ;;  %v8266_v30 = vpop.permute.xlu1 %644  ;;  %vm1369_vm8 = vcmp.eq.f32.partialorder %v8257_v52, inf  ;;  %vm1371_vm9 = vcmp.eq.f32.partialorder %v8257_v52, 0.0 }
 0x109   : > { %10746 = vst [vmem:[#allocation33_spill] sm:$0xff] %v8266_v30  ;;  %v1363_v4 = vsel %vm1362_vm6, %v8220_v32, %v1361_v24  ;;  %v1611_v8 = vmul.f32 4.0, %v1579_v57  ;;  %v1549_v42 = vmul.f32 %v1517_v18, %v1517_v18  ;;  %v746_v46 = vsub.f32 %v8266_v30, %v7964_v55 }
 0x10a   : > { %v1366_v21 = vsel %vm1364_vm7, %v1365_v20, %v1363_v4  ;;  %v1004_v32 = vmul.f32 %v972_v63, %v972_v63  ;;  %7517 = vpow2.f32 %v1653_v48  ;;  %v776_v57 = vmul.f32 %v744_v27, %v744_v27 }
 0x10b   : > { %7434 = vset.pattern.permute.xlu1 %v10733_v12  ;;  %v1518_v37 = vadd.f32 1e-05, %v1366_v21  ;;  %v1651_v26 = vmul.f32 1.442695, %v1611_v8  ;;  %v1581_v29 = vsub.f32 0.0, %v1549_v42  ;;  %v778_v8 = vmul.f32 %v746_v46, %v746_v46 }
 0x10c   : > { %940 = vperm.xlu1 %7434, %v7908_v36   ;;  %v745_v36 = vsub.f32 %v8252_v13, %v7964_v55  ;;  %v1234_v63 = vmul.f32 %v1202_v3, %v1202_v3  ;;  %v1005_v27 = vmul.f32 %v973_v11, %v973_v11  ;;  %v1036_v35 = vadd.f32 %v1004_v32, %v776_v57 }
 0x10d   : > { %v8285_v24 = vpop.permute.xlu1 %888  ;;  %v1550_v60 = vmul.f32 %v1518_v37, %v1518_v37  ;;  %7519 = vpow2.f32 %v1651_v26  ;;  %v1613_v20 = vmul.f32 4.0, %v1581_v29 }
 0x10e   : > { %10748 = vst [vmem:[#allocation35_spill] sm:$0xff] %v8285_v24  ;;  %v974_v18 = vsub.f32 %v8285_v24, %v7953_v51  ;;  %v777_v26 = vmul.f32 %v745_v36, %v745_v36 }
 0x10f   : > { %v1582_v4 = vsub.f32 0.0, %v1550_v60  ;;  %v1655_v21 = vmul.f32 1.442695, %v1613_v20 }
 0x110   : > { %v1006_v42 = vmul.f32 %v974_v18, %v974_v18  ;;  %7435 = vset.pattern.permute.xlu1 %v10738_v14  ;;  %v1372_v18 = vand.u32 2147483648, %v8257_v52 }
 0x111   : > { %719 = vperm.xlu1 %7435, %v7947_v49   ;;  %v1614_v48 = vmul.f32 4.0, %v1582_v4  ;;  %7521 = vpow2.f32 %v1655_v21 }
 0x112   : > { %v7516_v37 = vpop.eup %7515  ;;  %v1038_v30 = vadd.f32 %v1006_v42, %v778_v8  ;;  %v8293_v24 = vpop.permute.xlu1 %1108 }
 0x113   : > { %v1200_v29 = vsub.f32 %v8293_v24, %v7968_v56  ;;  %v1657_v60 = vmul.f32 1.442695, %v1614_v48  ;;  %v1368_v46 = vmul.f32 %v7516_v37, %v8257_v52 }
 0x114   : > { %v1266_v3 = vadd.f32 %v1234_v63, %v1038_v30  ;;  %v8305_v36 = vpop.eup %7517  ;;  %v1037_v63 = vadd.f32 %v1005_v27, %v777_v26 }
 0x115   : > { %v1232_v20 = vmul.f32 %v1200_v29, %v1200_v29  ;;  %724 = vperm.xlu1 %7435, %v7989_v6   ;;  %7523 = vpow2.f32 %v1657_v60  ;;  %v1370_v32 = vsel %vm1369_vm8, %v8257_v52, %v1368_v46 }
 0x116   : > { %7525 = vrsqrt.f32 %v1266_v3  ;;  %v8303_v11 = vpop.permute.xlu1 %1112  ;;  %v1373_v57 = vsel %vm1371_vm9, %v1372_v18, %v1370_v32  ;;  %v8322_v18 = vpop.permute.xlu0 %1124  ;;  %vm1390_vm10 = vcmp.eq.f32.partialorder %v1266_v3, inf  ;;  %vm1392_vm11 = vcmp.eq.f32.partialorder %v1266_v3, 0.0 }
 0x117   : > { %v1264_v30 = vadd.f32 %v1232_v20, %v1036_v35  ;;  %v1201_v4 = vsub.f32 %v8303_v11, %v7968_v56  ;;  %v7520_v8 = vpop.eup %7519  ;;  %v1519_v42 = vadd.f32 1e-05, %v1373_v57  ;;  %10750 = vst [vmem:[#allocation37_spill] sm:$0xff] %v8322_v18 }
 0x118   : > { %1715 = vadd.xlane.f32.xlu0 %v7520_v8  ;;  %v1799_v52 = vpack.c.bf16 %v8305_v36, %v7520_v8 }
 0x119   : > { %7527 = vrsqrt.f32 %v1264_v30  ;;  %v1233_v21 = vmul.f32 %v1201_v4, %v1201_v4  ;;  %7436 = vset.pattern.permute.xlu1 %v10733_v12  ;;  %v1551_v48 = vmul.f32 %v1519_v42, %v1519_v42  ;;  %vm1376_vm12 = vcmp.eq.f32.partialorder %v1264_v30, inf }
 0x11a   : > { %952 = vperm.xlu1 %7436, %v7989_v6   ;;  %6926 = vmatprep.mubr.bf16.mxu0 %v1799_v52  ;;  %v1379_v52 = vand.u32 2147483648, %v1264_v30  ;;  %vm1378_vm13 = vcmp.eq.f32.partialorder %v1264_v30, 0.0 }
 0x11b   : > { %v1265_v37 = vadd.f32 %v1233_v21, %v1037_v63  ;;  %v8312_v29 = vpop.permute.xlu1 %649  ;;  %v1583_v35 = vsub.f32 0.0, %v1551_v48  ;;  %v7522_v60 = vpop.eup %7521 }
 0x11c   : > { %10749 = vst [vmem:[#allocation36_spill] sm:$0xff] %v8312_v29  ;;  %1703 = vadd.xlane.f32.xlu0 %v8207_v34  ;;  %v748_v34 = vsub.f32 %v8041_v62, %v7964_v55 }
 0x11d   : > { %7529 = vrsqrt.f32 %v1265_v37  ;;  %v1615_v27 = vmul.f32 4.0, %v1583_v35  ;;  %vm1383_vm14 = vcmp.eq.f32.partialorder %v1265_v37, inf  ;;  %vm1385_vm15 = vcmp.eq.f32.partialorder %v1265_v37, 0.0 }
 0x11e   : > { %7438 = vset.pattern.permute.xlu1 %v10735_v10  ;;  %v1393_v10 = vand.u32 2147483648, %v1266_v3  ;;  %v780_v35 = vmul.f32 %v748_v34, %v748_v34 }
 0x11f   : > { %v8316_v26 = vpop.eup %7523  ;;  %1172 = vperm.xlu1 %7438, %v7935_v44   ;;  %v1659_v20 = vmul.f32 1.442695, %v1615_v27  ;;  %v1204_v44 = vsub.f32 %v8322_v18, %v7968_v56 }
 0x120   : > { %v7526_v12 = vpop.eup %7525  ;;  %v8319_v46 = vpop.permute.xlu1 %892  ;;  %v1800_v6 = vpack.c.bf16 %v8316_v26, %v7522_v60  ;;  %1719 = vadd.xlane.f32.xlu0 %v7522_v60 }
 0x121   : > { %v1389_v32 = vmul.f32 %v7526_v12, %v1266_v3  ;;  %7531 = vpow2.f32 %v1659_v20  ;;  %v1236_v12 = vmul.f32 %v1204_v44, %v1204_v44 }
 0x122   : > { %6927 = vmatmul.mubr.bf16.gmra.mrb[8].mxu0 %v1800_v6 }
 0x123   : > { %v7528_v57 = vpop.eup %7527  ;;  %1176 = vperm.xlu1 %7438, %v7947_v49   ;;  %v1391_v4 = vsel %vm1390_vm10, %v1266_v3, %v1389_v32 }
 0x124   : > { %v1375_v8 = vmul.f32 %v7528_v57, %v1264_v30  ;;  %v8329_v42 = vpop.permute.xlu1 %896  ;;  %v1394_v63 = vsel %vm1392_vm11, %v1393_v10, %v1391_v4  ;;  %v1386_v4 = vand.u32 2147483648, %v1265_v37 }
 0x125   : > { %10751 = vst [vmem:[#allocation38_spill] sm:$0xff] %v8329_v42  ;;  %v976_v21 = vsub.f32 %v8329_v42, %v7953_v51  ;;  %v1522_v48 = vadd.f32 1e-05, %v1394_v63 }
 0x126   : > { %v1377_v60 = vsel %vm1376_vm12, %v1264_v30, %v1375_v8 }
 0x127   : > { %v7530_v27 = vpop.eup %7529  ;;  %v1008_v49 = vmul.f32 %v976_v21, %v976_v21  ;;  %v1380_v6 = vsel %vm1378_vm13, %v1379_v52, %v1377_v60  ;;  %v1554_v20 = vmul.f32 %v1522_v48, %v1522_v48  ;;  %7439 = vset.pattern.permute.xlu1 %v10738_v14  ;;  %v8336_v21 = vpop.permute.xlu0 %1136 }
 0x128   : > { %v1520_v3 = vadd.f32 1e-05, %v1380_v6  ;;  %v1382_v32 = vmul.f32 %v7530_v27, %v1265_v37  ;;  %10753 = vst [vmem:[#allocation40_spill] sm:$0xff] %v8336_v21 }
 0x129   : > { %v1040_v57 = vadd.f32 %v1008_v49, %v780_v35  ;;  %v8334_v10 = vpop.permute.xlu1 %664  ;;  %v1586_v18 = vsub.f32 0.0, %v1554_v20  ;;  %v975_v35 = vsub.f32 %v8319_v46, %v7953_v51  ;;  %v749_v20 = vsub.f32 %v8048_v25, %v7964_v55 }
 0x12a   : > { %10752 = vst [vmem:[#allocation39_spill] sm:$0xff] %v8334_v10  ;;  %v1552_v62 = vmul.f32 %v1520_v3, %v1520_v3  ;;  %v1384_v63 = vsel %vm1383_vm14, %v1265_v37, %v1382_v32  ;;  %v747_v37 = vsub.f32 %v8312_v29, %v7964_v55 }
 0x12b   : > { %v1268_v34 = vadd.f32 %v1236_v12, %v1040_v57  ;;  %v1387_v30 = vsel %vm1385_vm15, %v1386_v4, %v1384_v63  ;;  %v7532_v8 = vpop.eup %7531  ;;  %v1618_v48 = vmul.f32 4.0, %v1586_v18  ;;  %v1007_v18 = vmul.f32 %v975_v35, %v975_v35  ;;  %v8348_v32 = vpop.permute.xlu0 %1148 }
 0x12c   : > { %v1584_v44 = vsub.f32 0.0, %v1552_v62  ;;  %v1521_v52 = vadd.f32 1e-05, %v1387_v30  ;;  %1723 = vadd.xlane.f32.xlu0 %v7532_v8  ;;  %v977_v62 = vsub.f32 %v8173_v2, %v7953_v51  ;;  %10755 = vst [vmem:[#allocation42_spill] sm:$0xff] %v8348_v32  ;;  %v779_v63 = vmul.f32 %v747_v37, %v747_v37 }
 0x12d   : > { %7533 = vrsqrt.f32 %v1268_v34  ;;  %v1665_v3 = vmul.f32 1.442695, %v1618_v48  ;;  %v750_v37 = vsub.f32 %v8334_v10, %v7964_v55  ;;  %vm1404_vm0 = vcmp.eq.f32.partialorder %v1268_v34, inf }
 0x12e   : > { %v8340_v60 = vpop.permute.xlu1 %904  ;;  %v1616_v27 = vmul.f32 4.0, %v1584_v44  ;;  %v1553_v49 = vmul.f32 %v1521_v52, %v1521_v52  ;;  %v781_v52 = vmul.f32 %v749_v20, %v749_v20  ;;  %vm1406_vm1 = vcmp.eq.f32.partialorder %v1268_v34, 0.0 }
 0x12f   : > { %10754 = vst [vmem:[#allocation41_spill] sm:$0xff] %v8340_v60  ;;  %v978_v2 = vsub.f32 %v8340_v60, %v7953_v51  ;;  %v8362_v20 = vpop.permute.xlu0 %1156  ;;  %v782_v60 = vmul.f32 %v750_v37, %v750_v37 }
 0x130   : > { %v1661_v12 = vmul.f32 1.442695, %v1616_v27  ;;  %v1585_v6 = vsub.f32 0.0, %v1553_v49  ;;  %v1009_v27 = vmul.f32 %v977_v62, %v977_v62  ;;  %v1039_v49 = vadd.f32 %v1007_v18, %v779_v63  ;;  %10758 = vst [vmem:[#allocation45_spill] sm:$0xff] %v8362_v20 }
 0x131   : > { %v1407_v63 = vand.u32 2147483648, %v1268_v34 }
 0x132   : > { %7535 = vpow2.f32 %v1661_v12  ;;  %v1617_v57 = vmul.f32 4.0, %v1585_v6  ;;  %v1041_v62 = vadd.f32 %v1009_v27, %v781_v52 }
 0x133   : > { %v8350_v4 = vpop.permute.xlu1 %1120  ;;  %7537 = vpow2.f32 %v1665_v3  ;;  %v1010_v3 = vmul.f32 %v978_v2, %v978_v2  ;;  %v8371_v27 = vpop.permute.xlu0 %669 }
 0x134   : > { %10756 = vst [vmem:[#allocation43_spill] sm:$0xff] %v8350_v4  ;;  %v1203_v30 = vsub.f32 %v8350_v4, %v7968_v56  ;;  %v1663_v44 = vmul.f32 1.442695, %v1617_v57  ;;  %10760 = vst [vmem:[#allocation47_spill] sm:$0xff] %v8371_v27 }
 0x135   : > { %v1042_v52 = vadd.f32 %v1010_v3, %v782_v60  ;;  %v1207_v3 = vsub.f32 %v8336_v21, %v7968_v56 }
 0x136   : > { %v1235_v48 = vmul.f32 %v1203_v30, %v1203_v30  ;;  %7539 = vpow2.f32 %v1663_v44 }
 0x137   : > { %v7534_v35 = vpop.eup %7533  ;;  %v8356_v25 = vpop.permute.xlu1 %1128 }
 0x138   : > { %10757 = vst [vmem:[#allocation44_spill] sm:$0xff] %v8356_v25  ;;  %v1403_v12 = vmul.f32 %v7534_v35, %v1268_v34  ;;  %v1267_v6 = vadd.f32 %v1235_v48, %v1039_v49  ;;  %v1205_v57 = vsub.f32 %v8356_v25, %v7968_v56 }
 0x13a   : > { %7541 = vrsqrt.f32 %v1267_v6  ;;  %v1237_v18 = vmul.f32 %v1205_v57, %v1205_v57  ;;  %v1405_v44 = vsel %vm1404_vm0, %v1268_v34, %v1403_v12  ;;  %vm1397_vm2 = vcmp.eq.f32.partialorder %v1267_v6, inf }
 0x13b   : > { %v8364_v30 = vpop.permute.xlu1 %1132  ;;  %v1408_v48 = vsel %vm1406_vm1, %v1407_v63, %v1405_v44  ;;  %vm1399_vm3 = vcmp.eq.f32.partialorder %v1267_v6, 0.0 }
 0x13c   : > { %10759 = vst [vmem:[#allocation46_spill] sm:$0xff] %v8364_v30  ;;  %v8366_v35 = vpop.eup %7535  ;;  %v1269_v10 = vadd.f32 %v1237_v18, %v1041_v62  ;;  %v1206_v49 = vsub.f32 %v8364_v30, %v7968_v56  ;;  %v1524_v57 = vadd.f32 1e-05, %v1408_v48  ;;  %v751_v62 = vsub.f32 %v8371_v27, %v7964_v55 }
 0x13d   : > { %v1801_v25 = vpack.c.bf16 %v8366_v35, %v7532_v8  ;;  %v8373_v4 = vpop.eup %7537 }
 0x13e   : > { %7543 = vrsqrt.f32 %v1269_v10  ;;  %v1238_v2 = vmul.f32 %v1206_v49, %v1206_v49  ;;  %v1556_v8 = vmul.f32 %v1524_v57, %v1524_v57  ;;  %v783_v18 = vmul.f32 %v751_v62, %v751_v62 }
 0x13f   : > { %6930 = vmatprep.mubr.bf16.mxu0 %v1801_v25  ;;  %v1400_v49 = vand.u32 2147483648, %v1267_v6  ;;  %v1239_v57 = vmul.f32 %v1207_v3, %v1207_v3  ;;  %vm1411_vm4 = vcmp.eq.f32.partialorder %v1269_v10, inf  ;;  %v1414_v42 = vand.u32 2147483648, %v1269_v10 }
 0x140   : > { %v7540_v34 = vpop.eup %7539  ;;  %v1270_v12 = vadd.f32 %v1238_v2, %v1042_v52  ;;  %v8375_v29 = vpop.permute.xlu1 %674  ;;  %v1588_v48 = vsub.f32 0.0, %v1556_v8  ;;  %vm1413_vm5 = vcmp.eq.f32.partialorder %v1269_v10, 0.0 }
 0x141   : > { %1727 = vadd.xlane.f32.xlu0 %v7540_v34  ;;  %v1802_v37 = vpack.c.bf16 %v8373_v4, %v7540_v34 }
 0x142   : > { %7545 = vrsqrt.f32 %v1270_v12  ;;  %vm1418_vm6 = vcmp.eq.f32.partialorder %v1270_v12, inf  ;;  %vm1420_vm7 = vcmp.eq.f32.partialorder %v1270_v12, 0.0 }
 0x143   : > { %6931 = vmatmul.mubr.bf16.gmra.mrb[12].mxu0 %v1802_v37 }
 0x144   : > { %v7542_v60 = vpop.eup %7541 }
 0x145   : > { %v8382_v63 = vpop.permute.xlu1 %908  ;;  %v1396_v25 = vmul.f32 %v7542_v60, %v1267_v6  ;;  %v1620_v60 = vmul.f32 4.0, %v1588_v48 }
 0x146   : > { %10761 = vst [vmem:[#allocation48_spill] sm:$0xff] %v8382_v63  ;;  %v979_v44 = vsub.f32 %v8382_v63, %v7953_v51 }
 0x147   : > { %1707 = vadd.xlane.f32.xlu1 %v8229_v17  ;;  %v1398_v52 = vsel %vm1397_vm2, %v1267_v6, %v1396_v25 }
 0x148   : > { %v7544_v2 = vpop.eup %7543  ;;  %v1011_v34 = vmul.f32 %v979_v44, %v979_v44  ;;  %v1401_v37 = vsel %vm1399_vm3, %v1400_v49, %v1398_v52 }
 0x149   : > { %v1523_v27 = vadd.f32 1e-05, %v1401_v37  ;;  %v1410_v21 = vmul.f32 %v7544_v2, %v1269_v10 }
 0x14a   : > { %v1043_v62 = vadd.f32 %v1011_v34, %v783_v18  ;;  %v8387_v30 = vpop.permute.xlu1 %679  ;;  %v1669_v18 = vmul.f32 1.442695, %v1620_v60 }
 0x14b   : > { %1713 = vadd.xlane.f32.xlu1 %v8244_v15  ;;  %v1555_v63 = vmul.f32 %v1523_v27, %v1523_v27  ;;  %v1412_v8 = vsel %vm1411_vm4, %v1269_v10, %v1410_v21  ;;  %v1421_v15 = vand.u32 2147483648, %v1270_v12  ;;  %v1210_v10 = vsub.f32 %v8348_v32, %v7968_v56 }
 0x14c   : > { %v7546_v17 = vpop.eup %7545  ;;  %v8390_v25 = vadd.f32 %v1239_v57, %v1043_v62  ;;  %v1415_v6 = vsel %vm1413_vm5, %v1414_v42, %v1412_v8  ;;  %v980_v8 = vsub.f32 %v8187_v22, %v7953_v51 }
 0x14d   : > { %v1417_v3 = vmul.f32 %v7546_v17, %v1270_v12  ;;  %v1587_v44 = vsub.f32 0.0, %v1555_v63  ;;  %v1525_v52 = vadd.f32 1e-05, %v1415_v6  ;;  %v1242_v17 = vmul.f32 %v1210_v10, %v1210_v10 }
 0x14e   : > { %7547 = vrsqrt.f32 %v8390_v25  ;;  %v8393_v49 = vpop.permute.xlu1 %684  ;;  %vm1425_vm8 = vcmp.eq.f32.partialorder %v8390_v25, inf  ;;  %vm1427_vm9 = vcmp.eq.f32.partialorder %v8390_v25, 0.0 }
 0x14f   : > { %1701 = vadd.xlane.f32.xlu1 %v8100_v1  ;;  %v1619_v48 = vmul.f32 4.0, %v1587_v44  ;;  %v1557_v27 = vmul.f32 %v1525_v52, %v1525_v52  ;;  %v1419_v21 = vsel %vm1418_vm6, %v1270_v12, %v1417_v3  ;;  %v754_v63 = vsub.f32 %v8393_v49, %v7964_v55 }
 0x150   : > { %v1422_v2 = vsel %vm1420_vm7, %v1421_v15, %v1419_v21  ;;  %7549 = vpow2.f32 %v1669_v18  ;;  %v752_v1 = vsub.f32 %v8375_v29, %v7964_v55 }
 0x151   : > { %v1667_v42 = vmul.f32 1.442695, %v1619_v48  ;;  %v1589_v57 = vsub.f32 0.0, %v1557_v27  ;;  %v1526_v34 = vadd.f32 1e-05, %v1422_v2  ;;  %v786_v6 = vmul.f32 %v754_v63, %v754_v63 }
 0x152   : > { %v784_v52 = vmul.f32 %v752_v1, %v752_v1  ;;  %v753_v48 = vsub.f32 %v8387_v30, %v7964_v55  ;;  %v981_v63 = vsub.f32 %v8205_v33, %v7953_v51 }
 0x153   : > { %1717 = vadd.xlane.f32.xlu1 %v8305_v36  ;;  %v8403_v37 = vpop.permute.xlu1 %920  ;;  %7551 = vpow2.f32 %v1667_v42  ;;  %v1621_v62 = vmul.f32 4.0, %v1589_v57  ;;  %v1558_v60 = vmul.f32 %v1526_v34, %v1526_v34  ;;  %v1012_v42 = vmul.f32 %v980_v8, %v980_v8 }
 0x154   : > { %v982_v12 = vsub.f32 %v8403_v37, %v7953_v51 }
 0x155   : > { %v1671_v44 = vmul.f32 1.442695, %v1621_v62  ;;  %v1590_v18 = vsub.f32 0.0, %v1558_v60  ;;  %v1044_v34 = vadd.f32 %v1012_v42, %v784_v52  ;;  %v785_v60 = vmul.f32 %v753_v48, %v753_v48 }
 0x156   : > { %v1014_v3 = vmul.f32 %v982_v12, %v982_v12 }
 0x157   : > { %1705 = vadd.xlane.f32.xlu1 %v8177_v5  ;;  %7553 = vpow2.f32 %v1671_v44  ;;  %v1622_v21 = vmul.f32 4.0, %v1590_v18  ;;  %v1013_v18 = vmul.f32 %v981_v63, %v981_v63 }
 0x158   : > { %v7548_v36 = vpop.eup %7547  ;;  %v1046_v15 = vadd.f32 %v1014_v3, %v786_v6  ;;  %v8412_v27 = vpop.permute.xlu1 %1140  ;;  %v1428_v6 = vand.u32 2147483648, %v8390_v25 }
 0x159   : > { %v1208_v10 = vsub.f32 %v8412_v27, %v7968_v56  ;;  %v1424_v2 = vmul.f32 %v7548_v36, %v8390_v25  ;;  %v1673_v5 = vmul.f32 1.442695, %v1622_v21  ;;  %v1045_v36 = vadd.f32 %v1013_v18, %v785_v60 }
 0x15a   : > { %v1274_v57 = vadd.f32 %v1242_v17, %v1046_v15  ;;  %v7550_v62 = vpop.eup %7549 }
 0x15b   : > { %v1240_v1 = vmul.f32 %v1208_v10, %v1208_v10  ;;  %1721 = vadd.xlane.f32.xlu1 %v8316_v26  ;;  %v1426_v12 = vsel %vm1425_vm8, %v8390_v25, %v1424_v2  ;;  %v7449_v25 = vld [vmem:[%s10613_s5 + $0x4] ss:$8 sps:$4 sm:$0xff]  }
 0x15c   : > { %7555 = vrsqrt.f32 %v1274_v57  ;;  %v8422_v8 = vpop.permute.xlu1 %1144  ;;  %v1429_v26 = vsel %vm1427_vm9, %v1428_v6, %v1426_v12  ;;  %7358 = vmatprep.subr.bf16.mxu1 %v7449_v25  ;;  %2365 = vmatprep.subr.bf16.mxu0 %v7449_v25  ;;  %vm1446_vm10 = vcmp.eq.f32.partialorder %v1274_v57, inf  ;;  %vm1448_vm11 = vcmp.eq.f32.partialorder %v1274_v57, 0.0 }
 0x15d   : > { %v7552_v3 = vpop.eup %7551  ;;  %v1272_v44 = vadd.f32 %v1240_v1, %v1044_v34  ;;  %v1209_v17 = vsub.f32 %v8422_v8, %v7968_v56  ;;  %7557 = vpow2.f32 %v1673_v5  ;;  %v1527_v15 = vadd.f32 1e-05, %v1429_v26 }
 0x15e   : > { %1731 = vadd.xlane.f32.xlu0 %v7552_v3  ;;  %v1803_v52 = vpack.c.bf16 %v7550_v62, %v7552_v3 }
 0x15f   : > { %7559 = vrsqrt.f32 %v1272_v44  ;;  %1725 = vadd.xlane.f32.xlu1 %v8366_v35  ;;  %v1241_v48 = vmul.f32 %v1209_v17, %v1209_v17  ;;  %v1559_v2 = vmul.f32 %v1527_v15, %v1527_v15  ;;  %v8438_v35 = vpop.permute.xlu0 %694  ;;  %v1212_v17 = vsub.f32 %v8362_v20, %v7968_v56 }
 0x160   : > { %6934 = vmatprep.mubr.bf16.mxu0 %v1803_v52  ;;  %10763 = vst [vmem:[#allocation50_spill] sm:$0xff] %v8438_v35  ;;  %v756_v1 = vsub.f32 %v8438_v35, %v7964_v55  ;;  %vm1432_vm12 = vcmp.eq.f32.partialorder %v1272_v44, inf  ;;  %vm1434_vm13 = vcmp.eq.f32.partialorder %v1272_v44, 0.0 }
 0x161   : > { %v8429_v21 = vpop.permute.xlu1 %689  ;;  %v7554_v42 = vpop.eup %7553  ;;  %v8431_v10 = vadd.f32 %v1241_v48, %v1045_v36  ;;  %v1591_v63 = vsub.f32 0.0, %v1559_v2  ;;  %v1244_v20 = vmul.f32 %v1212_v17, %v1212_v17 }
 0x162   : > { %10762 = vst [vmem:[#allocation49_spill] sm:$0xff] %v8429_v21  ;;  %1735 = vadd.xlane.f32.xlu0 %v7554_v42  ;;  %v788_v36 = vmul.f32 %v756_v1, %v756_v1 }
 0x163   : > { %1729 = vadd.xlane.f32.xlu1 %v8373_v4  ;;  %7561 = vrsqrt.f32 %v8431_v10  ;;  %v1623_v60 = vmul.f32 4.0, %v1591_v63  ;;  %v1449_v4 = vand.u32 2147483648, %v1274_v57  ;;  %v8448_v15 = vpop.permute.xlu0 %699  ;;  %v7452_v63 = vld [vmem:[%s10613_s5 + $0x14] ss:$8 sps:$4 sm:$0xff]   ;;  %vm1439_vm14 = vcmp.eq.f32.partialorder %v8431_v10, inf }
 0x164   : > { %10766 = vst [vmem:[#allocation53_spill] sm:$0xff] %v8448_v15  ;;  %vm1441_vm15 = vcmp.eq.f32.partialorder %v8431_v10, 0.0 }
 0x165   : > { %v1675_v25 = vmul.f32 1.442695, %v1623_v60 }
 0x166   : > { %v7556_v5 = vpop.eup %7555  ;;  %v8440_v34 = vpop.permute.xlu1 %924 }
 0x167   : > { %10764 = vst [vmem:[#allocation51_spill] sm:$0xff] %v8440_v34  ;;  %v1445_v12 = vmul.f32 %v7556_v5, %v1274_v57  ;;  %1733 = vadd.xlane.f32.xlu1 %v7550_v62  ;;  %v7558_v6 = vpop.eup %7557  ;;  %v7451_v62 = vld [vmem:[%s10613_s5] ss:$8 sps:$4 sm:$0xff]   ;;  %v1435_v5 = vand.u32 2147483648, %v1272_v44  ;;  %7563 = vpow2.f32 %v1675_v25 }
 0x168   : > { %v1804_v52 = vpack.c.bf16 %v7558_v6, %v7554_v42  ;;  %7360 = vmatpush1.bf16.msra.mxu1 %v7451_v62  ;;  %2366 = vmatpush1.bf16.msra.mxu0 %v7451_v62  ;;  %v1442_v62 = vand.u32 2147483648, %v8431_v10 }
 0x169   : > { %v7560_v3 = vpop.eup %7559  ;;  %v1447_v18 = vsel %vm1446_vm10, %v1274_v57, %v1445_v12  ;;  %v7454_v12 = vld [vmem:[%s10613_s5 + $0x10] ss:$8 sps:$4 sm:$0xff]   ;;  %7359 = vmatprep.subr.bf16.mxu1 %v7452_v63  ;;  %2367 = vmatprep.subr.bf16.mxu0 %v7452_v63  ;;  %v983_v63 = vsub.f32 %v8440_v34, %v7953_v51 }
 0x16a   : > { %v1431_v26 = vmul.f32 %v7560_v3, %v1272_v44  ;;  %v8446_v48 = vpop.permute.xlu1 %928  ;;  %v1450_v2 = vsel %vm1448_vm11, %v1449_v4, %v1447_v18  ;;  %6935 = vmatmul.mubr.bf16.gmra.mrb[16].mxu0 %v1804_v52 }
 0x16b   : > { %10765 = vst [vmem:[#allocation52_spill] sm:$0xff] %v8446_v48  ;;  %v984_v57 = vsub.f32 %v8446_v48, %v7953_v51  ;;  %1737 = vadd.xlane.f32.xlu1 %v7558_v6  ;;  %v1530_v42 = vadd.f32 1e-05, %v1450_v2 }
 0x16c   : > { %v1433_v1 = vsel %vm1432_vm12, %v1272_v44, %v1431_v26  ;;  %v8464_v26 = vpop.permute.xlu0 %709  ;;  %7361 = vmatpush1.bf16.msra.mxu1 %v7454_v12  ;;  %2368 = vmatpush1.bf16.msra.mxu0 %v7454_v12 }
 0x16d   : > { %v1436_v60 = vsel %vm1434_vm13, %v1435_v5, %v1433_v1  ;;  %v1016_v4 = vmul.f32 %v984_v57, %v984_v57  ;;  %v1562_v3 = vmul.f32 %v1530_v42, %v1530_v42  ;;  %v7562_v18 = vpop.eup %7561  ;;  %10768 = vst [vmem:[#allocation55_spill] sm:$0xff] %v8464_v26 }
 0x16e   : > { %v1528_v52 = vadd.f32 1e-05, %v1436_v60  ;;  %v1438_v44 = vmul.f32 %v7562_v18, %v8431_v10 }
 0x16f   : > { %v1048_v48 = vadd.f32 %v1016_v4, %v788_v36  ;;  %v8461_v6 = vpop.permute.xlu1 %704  ;;  %v1594_v2 = vsub.f32 0.0, %v1562_v3  ;;  %v755_v3 = vsub.f32 %v8429_v21, %v7964_v55 }
 0x170   : > { %10767 = vst [vmem:[#allocation54_spill] sm:$0xff] %v8461_v6  ;;  %v1560_v25 = vmul.f32 %v1528_v52, %v1528_v52  ;;  %v1440_v57 = vsel %vm1439_vm14, %v8431_v10, %v1438_v44  ;;  %v1015_v10 = vmul.f32 %v983_v63, %v983_v63  ;;  %v757_v52 = vsub.f32 %v8448_v15, %v7964_v55 }
 0x171   : > { %v1276_v5 = vadd.f32 %v1244_v20, %v1048_v48  ;;  %v1443_v36 = vsel %vm1441_vm15, %v1442_v62, %v1440_v57  ;;  %v1626_v60 = vmul.f32 4.0, %v1594_v2  ;;  %v7564_v12 = vpop.eup %7563  ;;  %v8476_v20 = vpop.permute.xlu0 %932  ;;  %v787_v62 = vmul.f32 %v755_v3, %v755_v3 }
 0x172   : > { %v1592_v17 = vsub.f32 0.0, %v1560_v25  ;;  %v1529_v4 = vadd.f32 1e-05, %v1443_v36  ;;  %10770 = vst [vmem:[#allocation57_spill] sm:$0xff] %v8476_v20  ;;  %1739 = vadd.xlane.f32.xlu0 %v7564_v12  ;;  %v985_v44 = vsub.f32 %v8476_v20, %v7953_v51 }
 0x173   : > { %7565 = vrsqrt.f32 %v1276_v5  ;;  %v1681_v25 = vmul.f32 1.442695, %v1626_v60  ;;  %vm1460_vm0 = vcmp.eq.f32.partialorder %v1276_v5, inf  ;;  %vm1462_vm1 = vcmp.eq.f32.partialorder %v1276_v5, 0.0 }
 0x174   : > { %v8472_v42 = vpop.permute.xlu1 %936  ;;  %v1624_v1 = vmul.f32 4.0, %v1592_v17  ;;  %v1561_v18 = vmul.f32 %v1529_v4, %v1529_v4  ;;  %v789_v4 = vmul.f32 %v757_v52, %v757_v52  ;;  %v1017_v63 = vmul.f32 %v985_v44, %v985_v44 }
 0x175   : > { %10769 = vst [vmem:[#allocation56_spill] sm:$0xff] %v8472_v42  ;;  %v986_v15 = vsub.f32 %v8472_v42, %v7953_v51  ;;  %v1463_v52 = vand.u32 2147483648, %v1276_v5 }
 0x176   : > { %v1677_v48 = vmul.f32 1.442695, %v1624_v1  ;;  %v1593_v2 = vsub.f32 0.0, %v1561_v18  ;;  %v1047_v1 = vadd.f32 %v1015_v10, %v787_v62  ;;  %v758_v18 = vsub.f32 %v8461_v6, %v7964_v55 }
 0x177   : > { %v1049_v44 = vadd.f32 %v1017_v63, %v789_v4 }
 0x178   : > { %7567 = vpow2.f32 %v1677_v48  ;;  %v1625_v36 = vmul.f32 4.0, %v1593_v2  ;;  %v8488_v48 = vpop.permute.xlu0 %944  ;;  %v790_v42 = vmul.f32 %v758_v18, %v758_v18 }
 0x179   : > { %v8482_v57 = vpop.permute.xlu1 %1152  ;;  %7569 = vpow2.f32 %v1681_v25  ;;  %10772 = vst [vmem:[#allocation59_spill] sm:$0xff] %v8488_v48  ;;  %v1018_v25 = vmul.f32 %v986_v15, %v986_v15 }
 0x17a   : > { %10771 = vst [vmem:[#allocation58_spill] sm:$0xff] %v8482_v57  ;;  %v1211_v17 = vsub.f32 %v8482_v57, %v7968_v56  ;;  %v1679_v35 = vmul.f32 1.442695, %v1625_v36 }
 0x17c   : > { %v1243_v21 = vmul.f32 %v1211_v17, %v1211_v17  ;;  %7571 = vpow2.f32 %v1679_v35  ;;  %v8500_v6 = vpop.permute.xlu0 %948  ;;  %v1050_v35 = vadd.f32 %v1018_v25, %v790_v42 }
 0x17d   : > { %v7566_v20 = vpop.eup %7565  ;;  %v8490_v60 = vpop.permute.xlu1 %1160 }
 0x17e   : > { %10773 = vst [vmem:[#allocation60_spill] sm:$0xff] %v8490_v60  ;;  %v1459_v3 = vmul.f32 %v7566_v20, %v1276_v5  ;;  %v1275_v57 = vadd.f32 %v1243_v21, %v1047_v1  ;;  %v1213_v10 = vsub.f32 %v8490_v60, %v7968_v56 }
 0x180   : > { %v1461_v2 = vsel %vm1460_vm0, %v1276_v5, %v1459_v3  ;;  %7573 = vrsqrt.f32 %v1275_v57  ;;  %v1245_v62 = vmul.f32 %v1213_v10, %v1213_v10  ;;  %vm1453_vm2 = vcmp.eq.f32.partialorder %v1275_v57, inf }
 0x181   : > { %v8496_v17 = vpop.permute.xlu1 %1164  ;;  %v1464_v36 = vsel %vm1462_vm1, %v1463_v52, %v1461_v2  ;;  %v8504_v2 = vpop.permute.xlu0 %1168  ;;  %vm1455_vm3 = vcmp.eq.f32.partialorder %v1275_v57, 0.0  ;;  %vm2316_vm0 = vcmask 261120  }
 0x182   : > { %10774 = vst [vmem:[#allocation61_spill] sm:$0xff] %v8496_v17  ;;  %v7568_v20 = vpop.eup %7567  ;;  %v1214_v21 = vsub.f32 %v8496_v17, %v7968_v56  ;;  %v1532_v1 = vadd.f32 1e-05, %v1464_v36  ;;  %v1277_v60 = vadd.f32 %v1245_v62, %v1049_v44  ;;  %10776 = vst [vmem:[#allocation63_spill] sm:$0xff] %v8504_v2  ;;  %v1215_v42 = vsub.f32 %v8504_v2, %v7968_v56 }
 0x183   : > { %1741 = vadd.xlane.f32.xlu1 %v7568_v20  ;;  %v1805_v4 = vpack.c.bf16 %v7568_v20, %v7564_v12  ;;  %v7570_v15 = vpop.eup %7569  ;;  %v759_v12 = vsub.f32 %v8464_v26, %v7964_v55  ;;  %vm10522_vm1 = vmpackc.low %vm2316_vm0, %vm2316_vm0 }
 0x184   : > { %v1246_v63 = vmul.f32 %v1214_v21, %v1214_v21  ;;  %v1564_v5 = vmul.f32 %v1532_v1, %v1532_v1  ;;  %7575 = vrsqrt.f32 %v1277_v60  ;;  %v1456_v21 = vand.u32 2147483648, %v1275_v57 }
 0x185   : > { %6938 = vmatprep.mubr.bf16.mxu0 %v1805_v4  ;;  %vm1467_vm4 = vcmp.eq.f32.partialorder %v1277_v60, inf  ;;  %vm1469_vm5 = vcmp.eq.f32.partialorder %v1277_v60, 0.0 }
 0x186   : > { %v1278_v3 = vadd.f32 %v1246_v63, %v1050_v35  ;;  %v8502_v10 = vpop.permute.xlu1 %714  ;;  %v1596_v52 = vsub.f32 0.0, %v1564_v5  ;;  %v7572_v18 = vpop.eup %7571  ;;  %v791_v35 = vmul.f32 %v759_v12, %v759_v12  ;;  %v1247_v5 = vmul.f32 %v1215_v42, %v1215_v42 }
 0x187   : > { %10775 = vst [vmem:[#allocation62_spill] sm:$0xff] %v8502_v10  ;;  %1745 = vadd.xlane.f32.xlu1 %v7570_v15  ;;  %1743 = vadd.xlane.f32.xlu0 %v7572_v18  ;;  %v1806_v44 = vpack.c.bf16 %v7570_v15, %v7572_v18 }
 0x188   : > { %7577 = vrsqrt.f32 %v1278_v3  ;;  %v1628_v36 = vmul.f32 4.0, %v1596_v52  ;;  %vm1474_vm6 = vcmp.eq.f32.partialorder %v1278_v3, inf  ;;  %v1477_v42 = vand.u32 2147483648, %v1278_v3 }
 0x189   : > { %6939 = vmatmul.mubr.bf16.gmra.mrb[20].mxu0 %v1806_v44  ;;  %vm1476_vm7 = vcmp.eq.f32.partialorder %v1278_v3, 0.0 }
 0x18a   : > { %v7574_v17 = vpop.eup %7573  ;;  %v1685_v20 = vmul.f32 1.442695, %v1628_v36  ;;  %v1470_v36 = vand.u32 2147483648, %v1277_v60 }
 0x18b   : > { %v1452_v25 = vmul.f32 %v7574_v17, %v1275_v57  ;;  %v8510_v62 = vpop.permute.xlu1 %940 }
 0x18c   : > { %10777 = vst [vmem:[#allocation64_spill] sm:$0xff] %v8510_v62  ;;  %v987_v1 = vsub.f32 %v8510_v62, %v7953_v51  ;;  %7579 = vpow2.f32 %v1685_v20 }
 0x18d   : > { %v1454_v4 = vsel %vm1453_vm2, %v1275_v57, %v1452_v25 }
 0x18e   : > { %v1457_v63 = vsel %vm1455_vm3, %v1456_v21, %v1454_v4  ;;  %v1019_v52 = vmul.f32 %v987_v1, %v987_v1  ;;  %v7576_v2 = vpop.eup %7575 }
 0x18f   : > { %v1531_v26 = vadd.f32 1e-05, %v1457_v63  ;;  %v1466_v15 = vmul.f32 %v7576_v2, %v1277_v60 }
 0x190   : > { %v1051_v17 = vadd.f32 %v1019_v52, %v791_v35  ;;  %v8514_v18 = vpop.permute.xlu1 %719  ;;  %v8521_v52 = vpop.permute.xlu0 %1180 }
 0x191   : > { %v1468_v44 = vsel %vm1467_vm4, %v1277_v60, %v1466_v15  ;;  %v1563_v25 = vmul.f32 %v1531_v26, %v1531_v26  ;;  %10779 = vst [vmem:[#allocation66_spill] sm:$0xff] %v8521_v52  ;;  %v1218_v26 = vsub.f32 %v8521_v52, %v7968_v56  ;;  %v988_v15 = vsub.f32 %v8488_v48, %v7953_v51 }
 0x192   : > { %v7578_v34 = vpop.eup %7577  ;;  %v8516_v32 = vadd.f32 %v1247_v5, %v1051_v17  ;;  %v1471_v57 = vsel %vm1469_vm5, %v1470_v36, %v1468_v44 }
 0x193   : > { %v1473_v20 = vmul.f32 %v7578_v34, %v1278_v3  ;;  %v1533_v12 = vadd.f32 1e-05, %v1471_v57  ;;  %v1595_v4 = vsub.f32 0.0, %v1563_v25 }
 0x194   : > { %7581 = vrsqrt.f32 %v8516_v32  ;;  %v8519_v21 = vpop.permute.xlu1 %724  ;;  %vm1481_vm8 = vcmp.eq.f32.partialorder %v8516_v32, inf  ;;  %vm1483_vm9 = vcmp.eq.f32.partialorder %v8516_v32, 0.0 }
 0x195   : > { %10778 = vst [vmem:[#allocation65_spill] sm:$0xff] %v8519_v21  ;;  %v1475_v2 = vsel %vm1474_vm6, %v1278_v3, %v1473_v20  ;;  %v1565_v60 = vmul.f32 %v1533_v12, %v1533_v12  ;;  %v762_v34 = vsub.f32 %v8519_v21, %v7964_v55  ;;  %v1627_v5 = vmul.f32 4.0, %v1595_v4 }
 0x196   : > { %v1478_v1 = vsel %vm1476_vm7, %v1477_v42, %v1475_v2  ;;  %v7580_v35 = vpop.eup %7579  ;;  %v760_v3 = vsub.f32 %v8502_v10, %v7964_v55  ;;  %v1250_v42 = vmul.f32 %v1218_v26, %v1218_v26  ;;  %v1020_v4 = vmul.f32 %v988_v15, %v988_v15 }
 0x197   : > { %v1534_v63 = vadd.f32 1e-05, %v1478_v1  ;;  %1749 = vadd.xlane.f32.xlu1 %v7580_v35  ;;  %v1597_v36 = vsub.f32 0.0, %v1565_v60  ;;  %v1683_v57 = vmul.f32 1.442695, %v1627_v5  ;;  %v794_v2 = vmul.f32 %v762_v34, %v762_v34 }
 0x198   : > { %v792_v52 = vmul.f32 %v760_v3, %v760_v3  ;;  %v989_v10 = vsub.f32 %v8500_v6, %v7953_v51 }
 0x199   : > { %v8531_v17 = vpop.permute.xlu1 %952  ;;  %v1566_v44 = vmul.f32 %v1534_v63, %v1534_v63  ;;  %v1629_v20 = vmul.f32 4.0, %v1597_v36  ;;  %7583 = vpow2.f32 %v1683_v57  ;;  %v761_v63 = vsub.f32 %v8514_v18, %v7964_v55 }
 0x19a   : > { %10780 = vst [vmem:[#allocation67_spill] sm:$0xff] %v8531_v17  ;;  %v990_v25 = vsub.f32 %v8531_v17, %v7953_v51  ;;  %v1052_v3 = vadd.f32 %v1020_v4, %v792_v52  ;;  %v1484_v55 = vand.u32 2147483648, %v8516_v32 }
 0x19b   : > { %v1598_v12 = vsub.f32 0.0, %v1566_v44  ;;  %v1687_v21 = vmul.f32 1.442695, %v1629_v20  ;;  %v1021_v44 = vmul.f32 %v989_v10, %v989_v10 }
 0x19c   : > { %v1022_v1 = vmul.f32 %v990_v25, %v990_v25  ;;  %v793_v25 = vmul.f32 %v761_v63, %v761_v63 }
 0x19d   : > { %v1630_v48 = vmul.f32 4.0, %v1598_v12  ;;  %7585 = vpow2.f32 %v1687_v21 }
 0x19e   : > { %v7582_v62 = vpop.eup %7581  ;;  %v1054_v60 = vadd.f32 %v1022_v1, %v794_v2  ;;  %v8539_v17 = vpop.permute.xlu1 %1172  ;;  %v1053_v52 = vadd.f32 %v1021_v44, %v793_v25 }
 0x19f   : > { %v1480_v5 = vmul.f32 %v7582_v62, %v8516_v32  ;;  %v1216_v26 = vsub.f32 %v8539_v17, %v7968_v56  ;;  %v1689_v15 = vmul.f32 1.442695, %v1630_v48 }
 0x1a0   : > { %v1282_v34 = vadd.f32 %v1250_v42, %v1054_v60 }
 0x1a1   : > { %v1482_v36 = vsel %vm1481_vm8, %v8516_v32, %v1480_v5  ;;  %v1248_v51 = vmul.f32 %v1216_v26, %v1216_v26 }
 0x1a2   : > { %7587 = vrsqrt.f32 %v1282_v34  ;;  %v8547_v57 = vpop.permute.xlu1 %1176  ;;  %v1485_v20 = vsel %vm1483_vm9, %v1484_v55, %v1482_v36  ;;  %vm1502_vm10 = vcmp.eq.f32.partialorder %v1282_v34, inf  ;;  %v1505_v26 = vand.u32 2147483648, %v1282_v34 }
 0x1a3   : > { %v1280_v62 = vadd.f32 %v1248_v51, %v1052_v3  ;;  %v1217_v21 = vsub.f32 %v8547_v57, %v7968_v56  ;;  %7589 = vpow2.f32 %v1689_v15  ;;  %v7584_v48 = vpop.eup %7583  ;;  %v1535_v42 = vadd.f32 1e-05, %v1485_v20 }
 0x1a4   : > { %1747 = vadd.xlane.f32.xlu0 %v7584_v48  ;;  %v1807_v10 = vpack.c.bf16 %v7580_v35, %v7584_v48  ;;  %vm1504_vm11 = vcmp.eq.f32.partialorder %v1282_v34, 0.0 }
 0x1a5   : > { %7591 = vrsqrt.f32 %v1280_v62  ;;  %v1249_v12 = vmul.f32 %v1217_v21, %v1217_v21  ;;  %v1567_v1 = vmul.f32 %v1535_v42, %v1535_v42  ;;  %vm1488_vm12 = vcmp.eq.f32.partialorder %v1280_v62, inf }
 0x1a6   : > { %6942 = vmatprep.mubr.bf16.mxu0 %v1807_v10  ;;  %v1491_v55 = vand.u32 2147483648, %v1280_v62  ;;  %vm1490_vm13 = vcmp.eq.f32.partialorder %v1280_v62, 0.0 }
 0x1a7   : > { %v1281_v2 = vadd.f32 %v1249_v12, %v1053_v52  ;;  %v7586_v4 = vpop.eup %7585  ;;  %v1599_v32 = vsub.f32 0.0, %v1567_v1 }
 0x1a8   : > { %1751 = vadd.xlane.f32.xlu0 %v7586_v4 }
 0x1a9   : > { %7593 = vrsqrt.f32 %v1281_v2  ;;  %v1631_v5 = vmul.f32 4.0, %v1599_v32  ;;  %vm1495_vm14 = vcmp.eq.f32.partialorder %v1281_v2, inf  ;;  %v1498_v10 = vand.u32 2147483648, %v1281_v2 }
 0x1aa   : > { %vm1497_vm15 = vcmp.eq.f32.partialorder %v1281_v2, 0.0 }
 0x1ab   : > { %v1691_v51 = vmul.f32 1.442695, %v1631_v5 }
 0x1ac   : > { %v7588_v63 = vpop.eup %7587 }
 0x1ad   : > { %v1501_v60 = vmul.f32 %v7588_v63, %v1282_v34  ;;  %v7590_v56 = vpop.eup %7589  ;;  %7595 = vpow2.f32 %v1691_v51 }
 0x1ae   : > { %1753 = vadd.xlane.f32.xlu1 %v7590_v56  ;;  %v1808_v36 = vpack.c.bf16 %v7590_v56, %v7586_v4 }
 0x1af   : > { %v7592_v15 = vpop.eup %7591  ;;  %v1503_v3 = vsel %vm1502_vm10, %v1282_v34, %v1501_v60 }
 0x1b0   : > { %v1487_v35 = vmul.f32 %v7592_v15, %v1280_v62  ;;  %v1506_v44 = vsel %vm1504_vm11, %v1505_v26, %v1503_v3  ;;  %6943 = vmatmul.mubr.bf16.gmra.mrb[24].mxu0 %v1808_v36 }
 0x1b1   : > { %v1538_v25 = vadd.f32 1e-05, %v1506_v44 }
 0x1b2   : > { %v1489_v21 = vsel %vm1488_vm12, %v1280_v62, %v1487_v35 }
 0x1b3   : > { %v1492_v20 = vsel %vm1490_vm13, %v1491_v55, %v1489_v21  ;;  %v1570_v48 = vmul.f32 %v1538_v25, %v1538_v25  ;;  %v7594_v52 = vpop.eup %7593 }
 0x1b4   : > { %v1536_v12 = vadd.f32 1e-05, %v1492_v20  ;;  %v1494_v42 = vmul.f32 %v7594_v52, %v1281_v2 }
 0x1b5   : > { %v1602_v1 = vsub.f32 0.0, %v1570_v48 }
 0x1b6   : > { %v1568_v34 = vmul.f32 %v1536_v12, %v1536_v12  ;;  %v1496_v4 = vsel %vm1495_vm14, %v1281_v2, %v1494_v42  ;;  %v1710_v2 = vpop.xlane.xlu0 %1709 }
 0x1b7   : > { %v1499_v32 = vsel %vm1497_vm15, %v1498_v10, %v1496_v4  ;;  %v1634_v56 = vmul.f32 4.0, %v1602_v1  ;;  %v7596_v26 = vpop.eup %7595 }
 0x1b8   : > { %v1600_v63 = vsub.f32 0.0, %v1568_v34  ;;  %v1537_v60 = vadd.f32 1e-05, %v1499_v32  ;;  %1755 = vadd.xlane.f32.xlu0 %v7596_v26 }
 0x1b9   : > { %v1697_v36 = vmul.f32 1.442695, %v1634_v56 }
 0x1ba   : > { %v1632_v5 = vmul.f32 4.0, %v1600_v63  ;;  %v1569_v15 = vmul.f32 %v1537_v60, %v1537_v60  ;;  %v1712_v10 = vpop.xlane.xlu0 %1711 }
 0x1bc   : > { %v1693_v62 = vmul.f32 1.442695, %v1632_v5  ;;  %v1601_v3 = vsub.f32 0.0, %v1569_v15 }
 0x1be   : > { %7597 = vpow2.f32 %v1693_v62  ;;  %v1633_v51 = vmul.f32 4.0, %v1601_v3  ;;  %v1700_v1 = vpop.xlane.xlu0 %1699 }
 0x1bf   : > { %7599 = vpow2.f32 %v1697_v36 }
 0x1c0   : > { %v1695_v35 = vmul.f32 1.442695, %v1633_v51 }
 0x1c2   : > { %7601 = vpow2.f32 %v1695_v35  ;;  %v1716_v56 = vpop.xlane.xlu0 %1715 }
 0x1c3   : > { %7603 = vrcp.f32 %v1710_v2 }
 0x1c6   : > { %v1704_v35 = vpop.xlane.xlu0 %1703 }
 0x1c8   : > { %v7598_v44 = vpop.eup %7597 }
 0x1c9   : > { %1757 = vadd.xlane.f32.xlu1 %v7598_v44  ;;  %v1809_v55 = vpack.c.bf16 %v7598_v44, %v7596_v26  ;;  %v7600_v25 = vpop.eup %7599 }
 0x1cb   : > { %6946 = vmatprep.mubr.bf16.mxu0 %v1809_v55 }
 0x1cc   : > { %v6920_v21 = vpop.f32.mrb[0].mxu0  ;;  %v7602_v20 = vpop.eup %7601 }
 0x1cd   : > { %v1893_v48 = vpop.f32.mrb[1].mxu0  ;;  %1761 = vadd.xlane.f32.xlu1 %v7600_v25  ;;  %1759 = vadd.xlane.f32.xlu0 %v7602_v20  ;;  %v1810_v12 = vpack.c.bf16 %v7600_v25, %v7602_v20  ;;  %v7604_v15 = vpop.eup %7603 }
 0x1ce   : > { %v6921_v52 = vpop.f32.mrb[2].mxu0 }
 0x1cf   : > { %v1896_v42 = vpop.f32.mrb[3].mxu0  ;;  %6947 = vmatmul.mubr.bf16.gmra.mrb[28].mxu0 %v1810_v12 }
 0x1d0   : > { %2397 = vmatprep.mubr.bf16.mxu0 %v10738_v14 }
 0x1d4   : > { %v1708_v34 = vpop.xlane.xlu1 %1707 }
 0x1d5   : > { %7605 = vrcp.f32 %v1708_v34 }
 0x1d6   : > { %v6924_v4 = vpop.f32.mrb[4].mxu0  ;;  %7607 = vrcp.f32 %v1712_v10 }
 0x1d7   : > { %v1909_v32 = vpop.f32.mrb[5].mxu0 }
 0x1d8   : > { %v1714_v63 = vpop.xlane.xlu1 %1713  ;;  %v6925_v60 = vpop.f32.mrb[6].mxu0 }
 0x1d9   : > { %7609 = vrcp.f32 %v1714_v63  ;;  %v1912_v5 = vpop.f32.mrb[7].mxu0 }
 0x1da   : > { %7611 = vrcp.f32 %v1700_v1  ;;  %v2025_v36 = vmul.f32 %v7604_v15, %v1912_v5  ;;  %v1720_v5 = vpop.xlane.xlu0 %1719 }
 0x1dc   : > { %v1702_v26 = vpop.xlane.xlu1 %1701 }
 0x1dd   : > { %7613 = vrcp.f32 %v1702_v26 }
 0x1de   : > { %7615 = vrcp.f32 %v1704_v35 }
 0x1df   : > { %v7606_v62 = vpop.eup %7605 }
 0x1e0   : > { %v2024_v3 = vmul.f32 %v7606_v62, %v1909_v32  ;;  %v1718_v51 = vpop.xlane.xlu1 %1717  ;;  %v7608_v44 = vpop.eup %7607 }
 0x1e1   : > { %v2026_v25 = vmul.f32 %v7608_v44, %v6924_v4 }
 0x1e2   : > { %v2266_v55 = vpack.c.bf16 %v2025_v36, %v2024_v3 }
 0x1e3   : > { %v7610_v2 = vpop.eup %7609 }
 0x1e4   : > { %6383 = vmatmul.mubr.msk.bf16.vlgmr.msra.gmra.mrb[0].mxu1 %vm2316_vm0, %v2266_v55  ;;  %v1706_v20 = vpop.xlane.xlu1 %1705  ;;  %v2027_v12 = vmul.f32 %v7610_v2, %v6925_v60  ;;  %v7612_v10 = vpop.eup %7611 }
 0x1e5   : > { %7617 = vrcp.f32 %v1706_v20  ;;  %2427 = vmatprep.mubr.bf16.mxu1 %v10738_v14  ;;  %v2020_v32 = vmul.f32 %v7612_v10, %v1893_v48 }
 0x1e6   : > { %v2267_v34 = vpack.c.bf16 %v2027_v12, %v2026_v25  ;;  %7619 = vrcp.f32 %v1716_v56 }
 0x1e7   : > { %v7614_v1 = vpop.eup %7613  ;;  %7621 = vrcp.f32 %v1720_v5 }
 0x1e8   : > { %v2021_v63 = vmul.f32 %v7614_v1, %v1896_v42  ;;  %v1722_v15 = vpop.xlane.xlu1 %1721  ;;  %v7616_v4 = vpop.eup %7615 }
 0x1e9   : > { %7623 = vrcp.f32 %v1722_v15  ;;  %v2022_v62 = vmul.f32 %v7616_v4, %v6920_v21 }
 0x1ea   : > { %v2264_v26 = vpack.c.bf16 %v2021_v63, %v2020_v32  ;;  %7625 = vrcp.f32 %v1718_v51 }
 0x1ec   : > { %6381 = vmatmul.mubr.msk.bf16.vlgmr.msra.gmra.mrb[32].mxu0 %vm2316_vm0, %v2264_v26  ;;  %6384 = vmatmul.mubr.msk.bf16.gmra.mrb[4].mxu1 %vm2316_vm0, %v2267_v34  ;;  %v1726_v21 = vpop.xlane.xlu1 %1725 }
 0x1ed   : > { %2407 = vmatprep.mubr.bf16.mxu0 %v10738_v14  ;;  %2437 = vmatprep.mubr.bf16.mxu1 %v10738_v14 }
 0x1ef   : > { %v7618_v60 = vpop.eup %7617 }
 0x1f0   : > { %v2023_v48 = vmul.f32 %v7618_v60, %v6921_v52  ;;  %v7620_v3 = vpop.eup %7619  ;;  %v1724_v52 = vpop.xlane.xlu0 %1723 }
 0x1f1   : > { %v7622_v36 = vpop.eup %7621  ;;  %v1730_v63 = vpop.xlane.xlu1 %1729  ;;  %7627 = vrcp.f32 %v1724_v52 }
 0x1f2   : > { %v2265_v42 = vpack.c.bf16 %v2023_v48, %v2022_v62 }
 0x1f3   : > { %v7624_v44 = vpop.eup %7623 }
 0x1f4   : > { %6382 = vmatmul.mubr.msk.bf16.gmra.mrb[36].mxu0 %vm2316_vm0, %v2265_v42  ;;  %v7626_v2 = vpop.eup %7625  ;;  %v1728_v32 = vpop.xlane.xlu0 %1727 }
 0x1f5   : > { %v6928_v56 = vpop.f32.mrb[8].mxu0  ;;  %7629 = vrcp.f32 %v1728_v32 }
 0x1f6   : > { %v1925_v35 = vpop.f32.mrb[9].mxu0  ;;  %v2030_v25 = vmul.f32 %v7622_v36, %v6928_v56  ;;  %7631 = vrcp.f32 %v1730_v63 }
 0x1f7   : > { %v6929_v55 = vpop.f32.mrb[10].mxu0  ;;  %v2028_v10 = vmul.f32 %v7620_v3, %v1925_v35  ;;  %7633 = vrcp.f32 %v1726_v21 }
 0x1f8   : > { %v2031_v20 = vmul.f32 %v7624_v44, %v6929_v55  ;;  %v1928_v12 = vpop.f32.mrb[11].mxu0 }
 0x1f9   : > { %v2029_v34 = vmul.f32 %v7626_v2, %v1928_v12  ;;  %v1732_v2 = vpop.xlane.xlu0 %1731 }
 0x1fa   : > { %v2269_v1 = vpack.c.bf16 %v2031_v20, %v2030_v25  ;;  %v1734_v25 = vpop.xlane.xlu1 %1733  ;;  %7635 = vrcp.f32 %v1732_v2 }
 0x1fb   : > { %v2268_v51 = vpack.c.bf16 %v2029_v34, %v2028_v10  ;;  %v7628_v5 = vpop.eup %7627 }
 0x1fd   : > { %6385 = vmatmul.mubr.msk.bf16.gmra.mrb[8].mxu1 %vm2316_vm0, %v2268_v51  ;;  %v1736_v20 = vpop.xlane.xlu0 %1735 }
 0x1fe   : > { %2447 = vmatprep.mubr.bf16.mxu1 %v10738_v14  ;;  %v1738_v12 = vpop.xlane.xlu1 %1737  ;;  %7637 = vrcp.f32 %v1736_v20 }
 0x1ff   : > { %v7630_v15 = vpop.eup %7629  ;;  %7639 = vrcp.f32 %v1738_v12 }
 0x200   : > { %v7632_v60 = vpop.eup %7631  ;;  %7641 = vrcp.f32 %v1734_v25 }
 0x201   : > { %v7634_v48 = vpop.eup %7633 }
 0x204   : > { %v7636_v10 = vpop.eup %7635 }
 0x205   : > { %6386 = vmatmul.mubr.msk.bf16.gmra.mrb[12].mxu1 %vm2316_vm0, %v2269_v1 }
 0x206   : > { %2457 = vmatprep.mubr.bf16.mxu1 %v10738_v14 }
 0x208   : > { %v7638_v1 = vpop.eup %7637 }
 0x209   : > { %v7640_v21 = vpop.eup %7639 }
 0x20a   : > { %v7642_v32 = vpop.eup %7641 }
 0x216   : > { %v6932_v26 = vpop.f32.mrb[12].mxu0 }
 0x217   : > { %v1941_v4 = vpop.f32.mrb[13].mxu0  ;;  %v2034_v42 = vmul.f32 %v7630_v15, %v6932_v26 }
 0x218   : > { %v6933_v62 = vpop.f32.mrb[14].mxu0  ;;  %v2032_v36 = vmul.f32 %v7628_v5, %v1941_v4 }
 0x219   : > { %v2035_v3 = vmul.f32 %v7632_v60, %v6933_v62  ;;  %v1944_v56 = vpop.f32.mrb[15].mxu0 }
 0x21a   : > { %v2033_v35 = vmul.f32 %v7634_v48, %v1944_v56  ;;  %v1742_v48 = vpop.xlane.xlu1 %1741  ;;  %v7456_v56 = vld [vmem:[%s10615_s7 + $0x8] sm:$0xff]  }
 0x21b   : > { %v2271_v44 = vpack.c.bf16 %v2035_v3, %v2034_v42  ;;  %v1740_v42 = vpop.xlane.xlu0 %1739  ;;  %v7455_v3 = vld [vmem:[%s10615_s7] sm:$0xff]  }
 0x21c   : > { %v2270_v55 = vpack.c.bf16 %v2033_v35, %v2032_v36  ;;  %6950 = vmatprep.subr.bf16.mxu0 %v7455_v3  ;;  %7643 = vrcp.f32 %v1740_v42 }
 0x21d   : > { %6951 = vmatpush3.bf16.msra.mxu0 %v7455_v3 }
 0x21e   : > { %6387 = vmatmul.mubr.msk.bf16.gmra.mrb[16].mxu1 %vm2316_vm0, %v2270_v55  ;;  %v1746_v36 = vpop.xlane.xlu1 %1745  ;;  %6952 = vmatprep.subr.bf16.mxu0 %v7456_v56 }
 0x21f   : > { %2467 = vmatprep.mubr.bf16.mxu1 %v10738_v14  ;;  %v1744_v35 = vpop.xlane.xlu0 %1743  ;;  %7645 = vrcp.f32 %v1746_v36 }
 0x220   : > { %7647 = vrcp.f32 %v1744_v35 }
 0x221   : > { %6953 = vmatpush3.bf16.msra.mxu0 %v7456_v56  ;;  %7649 = vrcp.f32 %v1742_v48 }
 0x226   : > { %6388 = vmatmul.mubr.msk.bf16.gmra.mrb[20].mxu1 %vm2316_vm0, %v2271_v44  ;;  %v7644_v44 = vpop.eup %7643 }
 0x227   : > { %2477 = vmatprep.mubr.bf16.mxu1 %v10738_v14 }
 0x229   : > { %v7646_v2 = vpop.eup %7645 }
 0x22a   : > { %v7648_v20 = vpop.eup %7647 }
 0x23d   : > { %v6936_v34 = vpop.f32.mrb[16].mxu0 }
 0x23e   : > { %v1957_v51 = vpop.f32.mrb[17].mxu0  ;;  %v2038_v63 = vmul.f32 %v7638_v1, %v6936_v34 }
 0x23f   : > { %v6937_v52 = vpop.f32.mrb[18].mxu0  ;;  %v2036_v15 = vmul.f32 %v7636_v10, %v1957_v51  ;;  %v7650_v10 = vpop.eup %7649 }
 0x240   : > { %v2039_v5 = vmul.f32 %v7640_v21, %v6937_v52  ;;  %v1960_v26 = vpop.f32.mrb[19].mxu0 }
 0x241   : > { %v2037_v4 = vmul.f32 %v7642_v32, %v1960_v26  ;;  %v1750_v26 = vpop.xlane.xlu1 %1749 }
 0x242   : > { %v2273_v60 = vpack.c.bf16 %v2039_v5, %v2038_v63  ;;  %v1748_v5 = vpop.xlane.xlu0 %1747  ;;  %7651 = vrcp.f32 %v1750_v26 }
 0x243   : > { %v2272_v62 = vpack.c.bf16 %v2037_v4, %v2036_v15 }
 0x245   : > { %6389 = vmatmul.mubr.msk.bf16.gmra.mrb[24].mxu1 %vm2316_vm0, %v2272_v62  ;;  %v1754_v4 = vpop.xlane.xlu1 %1753 }
 0x246   : > { %2487 = vmatprep.mubr.bf16.mxu1 %v10738_v14  ;;  %v1752_v15 = vpop.xlane.xlu0 %1751 }
 0x247   : > { %7653 = vrcp.f32 %v1752_v15 }
 0x248   : > { %7655 = vrcp.f32 %v1754_v4 }
 0x249   : > { %7657 = vrcp.f32 %v1748_v5 }
 0x24d   : > { %6390 = vmatmul.mubr.msk.bf16.gmra.mrb[28].mxu1 %vm2316_vm0, %v2273_v60  ;;  %v7652_v60 = vpop.eup %7651 }
 0x24e   : > { %2497 = vmatprep.mubr.bf16.mxu1 %v10738_v14 }
 0x251   : > { %v7654_v48 = vpop.eup %7653 }
 0x252   : > { %v7656_v3 = vpop.eup %7655 }
 0x253   : > { %v7658_v36 = vpop.eup %7657 }
 0x25c   : > { %v6940_v55 = vpop.f32.mrb[20].mxu0 }
 0x25d   : > { %v1973_v25 = vpop.f32.mrb[21].mxu0  ;;  %v2042_v34 = vmul.f32 %v7648_v20, %v6940_v55 }
 0x25e   : > { %v6941_v12 = vpop.f32.mrb[22].mxu0  ;;  %v2040_v21 = vmul.f32 %v7644_v44, %v1973_v25 }
 0x25f   : > { %v2043_v1 = vmul.f32 %v7646_v2, %v6941_v12  ;;  %v1976_v51 = vpop.f32.mrb[23].mxu0 }
 0x260   : > { %v2041_v52 = vmul.f32 %v7650_v10, %v1976_v51  ;;  %v1758_v10 = vpop.xlane.xlu1 %1757 }
 0x261   : > { %v2275_v32 = vpack.c.bf16 %v2043_v1, %v2042_v34  ;;  %v1756_v34 = vpop.xlane.xlu0 %1755 }
 0x262   : > { %v2274_v63 = vpack.c.bf16 %v2041_v52, %v2040_v21  ;;  %7659 = vrcp.f32 %v1756_v34 }
 0x264   : > { %6391 = vmatmul.mubr.msk.bf16.gmra.mrb[32].mxu1 %vm2316_vm0, %v2274_v63  ;;  %v1762_v1 = vpop.xlane.xlu1 %1761 }
 0x265   : > { %2507 = vmatprep.mubr.bf16.mxu1 %v10738_v14  ;;  %v1760_v51 = vpop.xlane.xlu0 %1759  ;;  %7661 = vrcp.f32 %v1762_v1 }
 0x266   : > { %7663 = vrcp.f32 %v1760_v51 }
 0x267   : > { %7665 = vrcp.f32 %v1758_v10 }
 0x26c   : > { %6392 = vmatmul.mubr.msk.bf16.gmra.mrb[36].mxu1 %vm2316_vm0, %v2275_v32  ;;  %v7660_v21 = vpop.eup %7659 }
 0x26d   : > { %2517 = vmatprep.mubr.bf16.mxu1 %v10738_v14 }
 0x26f   : > { %v7662_v32 = vpop.eup %7661 }
 0x270   : > { %v7664_v5 = vpop.eup %7663 }
 0x271   : > { %v7666_v15 = vpop.eup %7665 }
 0x283   : > { %v6944_v62 = vpop.f32.mrb[24].mxu0 }
 0x284   : > { %v1989_v42 = vpop.f32.mrb[25].mxu0  ;;  %v2046_v35 = vmul.f32 %v7654_v48, %v6944_v62 }
 0x285   : > { %v6945_v56 = vpop.f32.mrb[26].mxu0  ;;  %v2044_v2 = vmul.f32 %v7658_v36, %v1989_v42  ;;  %v2052_v36 = vld [vmem:[%s10611_s3] sm:$0x7] }
 0x286   : > { %v2047_v44 = vmul.f32 %v7656_v3, %v6945_v56  ;;  %v1992_v55 = vpop.f32.mrb[27].mxu0 }
 0x287   : > { %v2045_v25 = vmul.f32 %v7652_v60, %v1992_v55  ;;  %v10781_v55 = vsub.s32 2, %v7919_v40  ;;  %v10801_v40 = vld [vmem:[#allocation25_spill] sm:$0xff] }
 0x288   : > { %v2277_v20 = vpack.c.bf16 %v2047_v44, %v2046_v35  ;;  %v8592_v35 = vrot.slane %v2052_v36, %v7938_v45  ;;  %v8595_v44 = vrot.slane %v2052_v36, %v7950_v50 }
 0x289   : > { %v2276_v12 = vpack.c.bf16 %v2045_v25, %v2044_v2  ;;  %v8599_v2 = vrot.slane %v2052_v36, %v10781_v55 }
 0x28a   : > { %v2057_v25 = vmul.f32 %v8595_v44, %v7972_v58 }
 0x28b   : > { %6393 = vmatmul.mubr.msk.bf16.gmra.mrb[40].mxu1 %vm2316_vm0, %v2276_v12  ;;  %v2094_v12 = vmul.f32 %v8592_v35, %v7921_v41  ;;  %v2161_v34 = vmul.f32 %v8599_v2, %v7980_v61  ;;  %v2162_v58 = vmul.f32 %v8599_v2, %v7913_v39  ;;  %v2096_v41 = vmul.f32 %v8592_v35, %v7960_v54  ;;  %v8632_v39 = vld [vmem:[%s10612_s4] ss:$0 sm:$0xff] }
 0x28c   : > { %2527 = vmatprep.mubr.bf16.mxu1 %v10738_v14  ;;  %v2059_v61 = vmul.f32 %v8595_v44, %v8003_v19  ;;  %v2097_v54 = vmul.f32 %v8592_v35, %v8027_v0  ;;  %v2095_v19 = vmul.f32 %v8592_v35, %v8066_v43 }
 0x28e   : > { %v2127_v55 = vadd.f32 %v2095_v19, %v2059_v61 }
 0x293   : > { %6394 = vmatmul.mubr.msk.bf16.gmra.mrb[44].mxu1 %vm2316_vm0, %v2277_v20  ;;  %v2058_v20 = vmul.f32 %v8595_v44, %v7991_v7 }
 0x294   : > { %2537 = vmatprep.mubr.bf16.mxu1 %v10738_v14 }
 0x2a2   : > { %v6948_v52 = vpop.f32.mrb[28].mxu0 }
 0x2a3   : > { %v2005_v63 = vpop.f32.mrb[29].mxu0  ;;  %v2050_v4 = vmul.f32 %v7664_v5, %v6948_v52  ;;  %v2062_v5 = vmul.f32 %v8595_v44, %v8017_v47 }
 0x2a4   : > { %v6949_v26 = vpop.f32.mrb[30].mxu0  ;;  %v2048_v48 = vmul.f32 %v7660_v21, %v2005_v63  ;;  %v2126_v21 = vadd.f32 %v2094_v12, %v2058_v20  ;;  %v2284_v63 = vld [vmem:[%s10614_s6] sm:$0x3] }
 0x2a5   : > { %v2051_v60 = vmul.f32 %v7662_v32, %v6949_v26  ;;  %v2008_v62 = vpop.f32.mrb[31].mxu0  ;;  %v10784_v26 = vld [vmem:[#allocation7_spill] sm:$0xff] }
 0x2a6   : > { %v2049_v42 = vmul.f32 %v7666_v15, %v2008_v62  ;;  %v2060_v15 = vmul.f32 %v8595_v44, %v10784_v26 }
 0x2a7   : > { %v2279_v3 = vpack.c.bf16 %v2051_v60, %v2050_v4  ;;  %v2194_v4 = vadd.f32 %v2162_v58, %v2126_v21  ;;  %v10785_v60 = vld [vmem:[#allocation11_spill] sm:$0xff]  ;;  %v10790_v58 = vld [vmem:[#allocation10_spill] sm:$0xff] }
 0x2a8   : > { %v2278_v56 = vpack.c.bf16 %v2049_v42, %v2048_v48  ;;  %v2164_v62 = vmul.f32 %v8599_v2, %v10785_v60  ;;  %v8647_v42 = vrot.slane %v2284_v63, %v7950_v50  ;;  %v2163_v21 = vmul.f32 %v8599_v2, %v10790_v58  ;;  %v10791_v63 = vld [vmem:[#allocation19_spill] sm:$0xff]  ;;  %v10795_v60 = vld [vmem:[#allocation9_spill] sm:$0xff] }
 0x2a9   : > { %v2100_v61 = vmul.f32 %v8592_v35, %v10791_v63 }
 0x2aa   : > { %6395 = vmatmul.mubr.msk.bf16.gmra.mrb[48].mxu1 %vm2316_vm0, %v2278_v56 }
 0x2ab   : > { %2547 = vmatprep.mubr.bf16.mxu1 %v10738_v14  ;;  %v2093_v14 = vmul.f32 %v8592_v35, %v7911_v38  ;;  %v2098_v38 = vmul.f32 %v8592_v35, %v8079_v16  ;;  %v2061_v16 = vmul.f32 %v8595_v44, %v8011_v28  ;;  %v10786_v28 = vld [vmem:[#allocation4_spill] sm:$0xff] }
 0x2ac   : > { %v2165_v47 = vmul.f32 %v8599_v2, %v10786_v28 }
 0x2ad   : > { %v2125_v10 = vadd.f32 %v2093_v14, %v2057_v25  ;;  %v2130_v48 = vadd.f32 %v2098_v38, %v2062_v5  ;;  %v2129_v43 = vadd.f32 %v2097_v54, %v2061_v16  ;;  %v10787_v25 = vld [vmem:[#allocation20_spill] sm:$0xff] }
 0x2ae   : > { %v2166_v14 = vmul.f32 %v8599_v2, %v10787_v25  ;;  %v2195_v25 = vadd.f32 %v2163_v21, %v2127_v55 }
 0x2af   : > { %v2193_v32 = vadd.f32 %v2161_v34, %v2125_v10  ;;  %v2233_v34 = vadd.f32 %v8632_v39, %v2194_v4 }
 0x2b0   : > { %v2198_v16 = vadd.f32 %v2166_v14, %v2130_v48  ;;  %v10796_v48 = vld [vmem:[#allocation22_spill] sm:$0xff] }
 0x2b1   : > { %v2232_v0 = vadd.f32 %v8632_v39, %v2193_v32  ;;  %v2099_v28 = vmul.f32 %v8592_v35, %v10796_v48 }
 0x2b2   : > { %6396 = vmatmul.mubr.msk.bf16.gmra.mrb[52].mxu1 %vm2316_vm0, %v2279_v3  ;;  %v2128_v3 = vadd.f32 %v2096_v41, %v2060_v15  ;;  %v10794_v15 = vld [vmem:[#allocation6_spill] sm:$0xff]  ;;  %v2237_v55 = vadd.f32 %v8632_v39, %v2198_v16  ;;  %v2234_v16 = vadd.f32 %v8632_v39, %v2195_v25 }
 0x2b3   : > { %v2168_v4 = vmul.f32 %v8599_v2, %v10794_v15  ;;  %v10799_v15 = vld [vmem:[#allocation15_spill] sm:$0xff] }
 0x2b4   : > { %v2196_v38 = vadd.f32 %v2164_v62, %v2128_v3  ;;  %v2170_v62 = vmul.f32 %v8599_v2, %v10795_v60  ;;  %v2197_v3 = vadd.f32 %v2165_v47, %v2129_v43  ;;  %v2063_v60 = vmul.f32 %v8595_v44, %v10799_v15 }
 0x2b6   : > { %v2235_v58 = vadd.f32 %v8632_v39, %v2196_v38  ;;  %v2131_v48 = vadd.f32 %v2099_v28, %v2063_v60  ;;  %v10803_v60 = vld [vmem:[#allocation21_spill] sm:$0xff] }
 0x2b7   : > { %v8612_v1 = vpop.f32.mrb[0].mxu1 }
 0x2b8   : > { %v8614_v51 = vpop.f32.mrb[1].mxu1  ;;  %v8710_v15 = vadd.f32 %v8612_v1, %v8647_v42  ;;  %v2169_v1 = vmul.f32 %v8599_v2, %v8179_v53 }
 0x2b9   : > { %10782 = vst [vmem:[#allocation68_spill] sm:$0xff] %v8614_v51  ;;  %v2423_v52 = vpop.f32.mrb[2].mxu1 }
 0x2ba   : > { %v8620_v7 = vpop.f32.mrb[3].mxu1  ;;  %v8699_v47 = vadd.f32 %v2423_v52, %v8647_v42 }
 0x2bb   : > { %10783 = vst [vmem:[#allocation69_spill] sm:$0xff] %v8620_v7 }
 0x2bc   : > { %v8726_v7 = vadd.f32 %v8699_v47, %v2237_v55 }
 0x2bf   : > { %v2399_v56 = vpop.f32.mrb[32].mxu0  ;;  %v8652_v36 = vpop.f32.mrb[4].mxu1 }
 0x2c0   : > { %v8657_v20 = vadd.f32 %v2399_v56, %v8647_v42  ;;  %v8659_v12 = vpop.f32.mrb[33].mxu0  ;;  %v8661_v10 = vpop.f32.mrb[5].mxu1 }
 0x2c1   : > { %10788 = vst [vmem:[#allocation7_spill] sm:$0xff] %v8659_v12  ;;  %10789 = vst [vmem:[#allocation11_spill] sm:$0xff] %v8661_v10  ;;  %v2403_v41 = vpop.f32.mrb[34].mxu0  ;;  %v2433_v32 = vpop.f32.mrb[6].mxu1  ;;  %v10808_v10 = vld [vmem:[#allocation29_spill] sm:$0xff] }
 0x2c2   : > { %v8669_v5 = vadd.f32 %v8657_v20, %v2232_v0  ;;  %v8672_v54 = vadd.f32 %v2403_v41, %v8647_v42  ;;  %v8674_v19 = vpop.f32.mrb[35].mxu0  ;;  %v8676_v26 = vpop.f32.mrb[7].mxu1  ;;  %3214 = vrot.lane.b32.xlu0 %v8657_v20, %s7695_s15  ;;  %v10797_v0 = vld [vmem:[#allocation17_spill] sm:$0xff]  ;;  %v10798_v41 = vld [vmem:[#allocation12_spill] sm:$0xff] }
 0x2c3   : > { %10792 = vst [vmem:[#allocation4_spill] sm:$0xff] %v8674_v19  ;;  %10793 = vst [vmem:[#allocation20_spill] sm:$0xff] %v8676_v26  ;;  %v2064_v56 = vmul.f32 %v8595_v44, %v10797_v0  ;;  %v2066_v63 = vmul.f32 %v8595_v44, %v10798_v41  ;;  %v10800_v0 = vld [vmem:[#allocation24_spill] sm:$0xff]  ;;  %v2102_v41 = vmul.f32 %v8592_v35, %v10801_v40 }
 0x2c4   : > { %v8689_v14 = vadd.f32 %v8672_v54, %v2233_v34  ;;  %3216 = vrot.lane.b32.xlu1 %v8672_v54, %s7695_s15  ;;  %v2590_v34 = vmax.f32 %v8669_v5, 0.0  ;;  %v2101_v38 = vmul.f32 %v8592_v35, %v10800_v0  ;;  %v2167_v0 = vmul.f32 %v8599_v2, %v10803_v60 }
 0x2c5   : > { %v2132_v43 = vadd.f32 %v2100_v61, %v2064_v56  ;;  %v2236_v61 = vadd.f32 %v8632_v39, %v2197_v3  ;;  %v2065_v40 = vmul.f32 %v8595_v44, %v8104_v31 }
 0x2c6   : > { %v2591_v21 = vmax.f32 %v8689_v14, 0.0  ;;  %v2199_v31 = vadd.f32 %v2167_v0, %v2131_v48 }
 0x2c7   : > { %v2409_v52 = vpop.f32.mrb[36].mxu0  ;;  %v2200_v25 = vadd.f32 %v2168_v4, %v2132_v43  ;;  %v2133_v53 = vadd.f32 %v2101_v38, %v2065_v40  ;;  %v8740_v55 = vadd.f32 %v8710_v15, %v2236_v61  ;;  %v10805_v4 = vld [vmem:[#allocation13_spill] sm:$0xff] }
 0x2c8   : > { %v8715_v56 = vadd.f32 %v2409_v52, %v8647_v42  ;;  %v8717_v50 = vpop.f32.mrb[37].mxu0  ;;  %v2622_v28 = vpack.c.bf16 %v2591_v21, %v2590_v34  ;;  %v2134_v21 = vadd.f32 %v2102_v41, %v2066_v63  ;;  %v2067_v43 = vmul.f32 %v8595_v44, %v10805_v4 }
 0x2c9   : > { %10802 = vst [vmem:[#allocation10_spill] sm:$0xff] %v8717_v50  ;;  %v2413_v3 = vpop.f32.mrb[38].mxu0  ;;  %v2201_v48 = vadd.f32 %v2169_v1, %v2133_v53  ;;  %v2595_v63 = vmax.f32 %v8726_v7, 0.0  ;;  %v2239_v38 = vadd.f32 %v8632_v39, %v2200_v25  ;;  %v8758_v41 = vadd.f32 %v8652_v36, %v8647_v42  ;;  %v10807_v1 = vld [vmem:[#allocation27_spill] sm:$0xff] }
 0x2ca   : > { %v8729_v52 = vadd.f32 %v8715_v56, %v2234_v16  ;;  %v8732_v26 = vadd.f32 %v2413_v3, %v8647_v42  ;;  %v8734_v34 = vpop.f32.mrb[39].mxu0  ;;  %6954 = vmatprep.mubr.msk.bf16.mxu0 %vm2316_vm0, %v2622_v28  ;;  %3218 = vrot.lane.b32.xlu1 %v8715_v56, %s7695_s15  ;;  %v10806_v16 = vld [vmem:[#allocation23_spill] sm:$0xff]  ;;  %v8747_v3 = vadd.f32 %v2433_v32, %v8647_v42  ;;  %v2594_v40 = vmax.f32 %v8740_v55, 0.0 }
 0x2cb   : > { %10804 = vst [vmem:[#allocation19_spill] sm:$0xff] %v8734_v34  ;;  %v2103_v60 = vmul.f32 %v8592_v35, %v10806_v16  ;;  %v2202_v0 = vadd.f32 %v2170_v62, %v2134_v21  ;;  %v2104_v53 = vmul.f32 %v8592_v35, %v10807_v1  ;;  %v2240_v51 = vadd.f32 %v8632_v39, %v2201_v48  ;;  %v10811_v48 = vld [vmem:[#allocation30_spill] sm:$0xff]  ;;  %v10820_v34 = vld [vmem:[#allocation35_spill] sm:$0xff] }
 0x2cc   : > { %v8750_v28 = vadd.f32 %v8732_v26, %v2235_v58  ;;  %3220 = vrot.lane.b32.xlu0 %v8732_v26, %s7695_s15  ;;  %v2592_v61 = vmax.f32 %v8729_v52, 0.0  ;;  %v2238_v58 = vadd.f32 %v8632_v39, %v2199_v31  ;;  %v8769_v4 = vadd.f32 %v8747_v3, %v2239_v38 }
 0x2cd   : > { %v2135_v25 = vadd.f32 %v2103_v60, %v2067_v43  ;;  %v2171_v31 = vmul.f32 %v8599_v2, %v10808_v10  ;;  %v2624_v1 = vpack.c.bf16 %v2595_v63, %v2594_v40  ;;  %v10810_v43 = vld [vmem:[#allocation26_spill] sm:$0xff]  ;;  %v2241_v10 = vadd.f32 %v8632_v39, %v2202_v0 }
 0x2ce   : > { %v2593_v32 = vmax.f32 %v8750_v28, 0.0  ;;  %3222 = vrot.lane.b32.xlu1 %v8710_v15, %s7695_s15  ;;  %v2068_v60 = vmul.f32 %v8595_v44, %v10810_v43  ;;  %v8784_v38 = vadd.f32 %v8758_v41, %v2238_v58  ;;  %v2597_v58 = vmax.f32 %v8769_v4, 0.0 }
 0x2cf   : > { %v2203_v0 = vadd.f32 %v2171_v31, %v2135_v25 }
 0x2d0   : > { %v2623_v36 = vpack.c.bf16 %v2593_v32, %v2592_v61  ;;  %v2439_v16 = vpop.f32.mrb[8].mxu1  ;;  %3224 = vrot.lane.b32.xlu0 %v8699_v47, %s7695_s15  ;;  %v2172_v32 = vmul.f32 %v8599_v2, %v10811_v48 }
 0x2d1   : > { %v8777_v62 = vadd.f32 %v2439_v16, %v8647_v42  ;;  %v8779_v21 = vpop.f32.mrb[9].mxu1 }
 0x2d2   : > { %10809 = vst [vmem:[#allocation6_spill] sm:$0xff] %v8779_v21  ;;  %v2443_v61 = vpop.f32.mrb[10].mxu1  ;;  %3226 = vrot.lane.b32.xlu1 %v8758_v41, %s7695_s15  ;;  %6955 = vmatmul.mubr.msk.bf16.vlgmr.msra.gmra.mrb[40].mxu0 %vm2316_vm0, %v2623_v36  ;;  %v2136_v36 = vadd.f32 %v2104_v53, %v2068_v60  ;;  %v2242_v53 = vadd.f32 %v8632_v39, %v2203_v0 }
 0x2d3   : > { %v8793_v16 = vadd.f32 %v8777_v62, %v2240_v51  ;;  %v8796_v63 = vadd.f32 %v2443_v61, %v8647_v42  ;;  %v8798_v40 = vpop.f32.mrb[11].mxu1  ;;  %6958 = vmatprep.mubr.msk.bf16.mxu0 %vm2316_vm0, %v2624_v1  ;;  %v2596_v51 = vmax.f32 %v8784_v38, 0.0 }
 0x2d4   : > { %10812 = vst [vmem:[#allocation9_spill] sm:$0xff] %v8798_v40  ;;  %3228 = vrot.lane.b32.xlu0 %v8747_v3, %s7695_s15  ;;  %v2204_v61 = vadd.f32 %v2172_v32, %v2136_v36 }
 0x2d5   : > { %v8805_v43 = vadd.f32 %v8796_v63, %v2241_v10  ;;  %v2598_v48 = vmax.f32 %v8793_v16, 0.0  ;;  %v2625_v21 = vpack.c.bf16 %v2597_v58, %v2596_v51 }
 0x2d6   : > { %3230 = vrot.lane.b32.xlu1 %v8777_v62, %s7695_s15  ;;  %v2243_v32 = vadd.f32 %v8632_v39, %v2204_v61  ;;  %v10817_v61 = vld [vmem:[#allocation14_spill] sm:$0xff] }
 0x2d7   : > { %10813 = vst [vmem:[#allocation22_spill] sm:$0xff] %v8805_v43  ;;  %v2599_v1 = vmax.f32 %v8805_v43, 0.0 }
 0x2d8   : > { %3232 = vrot.lane.b32.xlu0 %v8796_v63, %s7695_s15  ;;  %v2449_v40 = vpop.f32.mrb[12].mxu1 }
 0x2d9   : > { %v8816_v25 = vadd.f32 %v2449_v40, %v8647_v42  ;;  %v8818_v31 = vpop.f32.mrb[13].mxu1  ;;  %v2626_v60 = vpack.c.bf16 %v2599_v1, %v2598_v48  ;;  %v2069_v48 = vmul.f32 %v8595_v44, %v10817_v61  ;;  %v10818_v1 = vld [vmem:[#allocation32_spill] sm:$0xff]  ;;  %v2107_v61 = vmul.f32 %v8592_v35, %v8146_v59 }
 0x2da   : > { %10814 = vst [vmem:[#allocation17_spill] sm:$0xff] %v8818_v31  ;;  %v2453_v10 = vpop.f32.mrb[14].mxu1  ;;  %6959 = vmatmul.mubr.msk.bf16.gmra.mrb[44].mxu0 %vm2316_vm0, %v2625_v21 }
 0x2db   : > { %v8823_v36 = vadd.f32 %v8816_v25, %v2242_v53  ;;  %v8826_v19 = vadd.f32 %v2453_v10, %v8647_v42  ;;  %v8828_v58 = vpop.f32.mrb[15].mxu1  ;;  %6962 = vmatprep.mubr.msk.bf16.mxu0 %vm2316_vm0, %v2626_v60  ;;  %3234 = vrot.lane.b32.xlu1 %v8816_v25, %s7695_s15  ;;  %v2105_v53 = vmul.f32 %v8592_v35, %v10818_v1 }
 0x2dc   : > { %10815 = vst [vmem:[#allocation12_spill] sm:$0xff] %v8828_v58  ;;  %v2106_v60 = vmul.f32 %v8592_v35, %v8127_v23  ;;  %v2070_v10 = vmul.f32 %v8595_v44, %v8223_v9  ;;  %v10819_v58 = vld [vmem:[#allocation31_spill] sm:$0xff]  ;;  %v2071_v1 = vmul.f32 %v8595_v44, %v8252_v13  ;;  %v2108_v23 = vmul.f32 %v8592_v35, %v10820_v34  ;;  %v10823_v13 = vld [vmem:[#allocation34_spill] sm:$0xff] }
 0x2dd   : > { %v8834_v40 = vadd.f32 %v8826_v19, %v2243_v32  ;;  %3236 = vrot.lane.b32.xlu0 %v8826_v19, %s7695_s15  ;;  %v2600_v21 = vmax.f32 %v8823_v36, 0.0  ;;  %v2137_v32 = vadd.f32 %v2105_v53, %v2069_v48  ;;  %v2173_v31 = vmul.f32 %v8599_v2, %v10819_v58  ;;  %v10821_v53 = vld [vmem:[#allocation33_spill] sm:$0xff] }
 0x2de   : > { %v2072_v58 = vmul.f32 %v8595_v44, %v10821_v53 }
 0x2df   : > { %10816 = vst [vmem:[#allocation15_spill] sm:$0xff] %v8834_v40  ;;  %v2601_v0 = vmax.f32 %v8834_v40, 0.0 }
 0x2e1   : > { %v2627_v51 = vpack.c.bf16 %v2601_v0, %v2600_v21  ;;  %v2174_v21 = vmul.f32 %v8599_v2, %v8293_v24  ;;  %v2138_v0 = vadd.f32 %v2106_v60, %v2070_v10  ;;  %v2175_v24 = vmul.f32 %v8599_v2, %v8303_v11 }
 0x2e2   : > { %v2139_v60 = vadd.f32 %v2107_v61, %v2071_v1  ;;  %v2176_v10 = vmul.f32 %v8599_v2, %v10823_v13 }
 0x2e3   : > { %6963 = vmatmul.mubr.msk.bf16.gmra.mrb[48].mxu0 %vm2316_vm0, %v2627_v51  ;;  %v2205_v51 = vadd.f32 %v2173_v31, %v2137_v32  ;;  %v2206_v12 = vadd.f32 %v2174_v21, %v2138_v0  ;;  %v2140_v32 = vadd.f32 %v2108_v23, %v2072_v58 }
 0x2e5   : > { %v2244_v48 = vadd.f32 %v8632_v39, %v2205_v51  ;;  %v2245_v21 = vadd.f32 %v8632_v39, %v2206_v12  ;;  %v2208_v1 = vadd.f32 %v2176_v10, %v2140_v32 }
 0x2f1   : > { %v2459_v9 = vpop.f32.mrb[16].mxu1 }
 0x2f2   : > { %v8865_v31 = vadd.f32 %v2459_v9, %v8647_v42  ;;  %v8867_v59 = vpop.f32.mrb[17].mxu1  ;;  %v2207_v9 = vadd.f32 %v2175_v24, %v2139_v60 }
 0x2f3   : > { %10822 = vst [vmem:[#allocation24_spill] sm:$0xff] %v8867_v59  ;;  %v2463_v34 = vpop.f32.mrb[18].mxu1  ;;  %v10834_v59 = vld [vmem:[#allocation43_spill] sm:$0xff] }
 0x2f4   : > { %v8873_v0 = vadd.f32 %v8865_v31, %v2244_v48  ;;  %v8876_v51 = vadd.f32 %v2463_v34, %v8647_v42  ;;  %v8878_v11 = vpop.f32.mrb[19].mxu1  ;;  %3238 = vrot.lane.b32.xlu1 %v8865_v31, %s7695_s15  ;;  %v2246_v53 = vadd.f32 %v8632_v39, %v2207_v9  ;;  %v2247_v34 = vadd.f32 %v8632_v39, %v2208_v1 }
 0x2f5   : > { %10825 = vst [vmem:[#allocation21_spill] sm:$0xff] %v8878_v11  ;;  %v10833_v11 = vld [vmem:[#allocation36_spill] sm:$0xff] }
 0x2f6   : > { %10824 = vst [vmem:[#allocation25_spill] sm:$0xff] %v8873_v0  ;;  %v8883_v61 = vadd.f32 %v8876_v51, %v2245_v21  ;;  %3240 = vrot.lane.b32.xlu0 %v8876_v51, %s7695_s15  ;;  %v2602_v12 = vmax.f32 %v8873_v0, 0.0 }
 0x2f8   : > { %10826 = vst [vmem:[#allocation13_spill] sm:$0xff] %v8883_v61  ;;  %v2603_v23 = vmax.f32 %v8883_v61, 0.0  ;;  %v10836_v61 = vld [vmem:[#allocation18_spill] sm:$0xff] }
 0x2f9   : > { %v2469_v48 = vpop.f32.mrb[20].mxu1 }
 0x2fa   : > { %v8891_v58 = vadd.f32 %v2469_v48, %v8647_v42  ;;  %v8893_v13 = vpop.f32.mrb[21].mxu1  ;;  %v2628_v24 = vpack.c.bf16 %v2603_v23, %v2602_v12  ;;  %v2109_v48 = vmul.f32 %v8592_v35, %v8319_v46  ;;  %v2075_v46 = vmul.f32 %v8595_v44, %v10836_v61  ;;  %v10841_v61 = vld [vmem:[#allocation39_spill] sm:$0xff] }
 0x2fb   : > { %10827 = vst [vmem:[#allocation23_spill] sm:$0xff] %v8893_v13  ;;  %v2473_v60 = vpop.f32.mrb[22].mxu1  ;;  %v2177_v13 = vmul.f32 %v8599_v2, %v10834_v59  ;;  %v10839_v59 = vld [vmem:[#allocation44_spill] sm:$0xff] }
 0x2fc   : > { %v8897_v21 = vadd.f32 %v8891_v58, %v2246_v53  ;;  %v8900_v10 = vadd.f32 %v2473_v60, %v8647_v42  ;;  %v8902_v32 = vpop.f32.mrb[23].mxu1  ;;  %6966 = vmatprep.mubr.msk.bf16.mxu0 %vm2316_vm0, %v2628_v24  ;;  %3242 = vrot.lane.b32.xlu1 %v8891_v58, %s7695_s15  ;;  %v10831_v53 = vld [vmem:[#allocation38_spill] sm:$0xff]  ;;  %v10832_v60 = vld [vmem:[#allocation16_spill] sm:$0xff] }
 0x2fd   : > { %10829 = vst [vmem:[#allocation29_spill] sm:$0xff] %v8902_v32  ;;  %v2110_v24 = vmul.f32 %v8592_v35, %v10831_v53  ;;  %v2073_v32 = vmul.f32 %v8595_v44, %v10833_v11 }
 0x2fe   : > { %10828 = vst [vmem:[#allocation27_spill] sm:$0xff] %v8897_v21  ;;  %v8908_v9 = vadd.f32 %v8900_v10, %v2247_v34  ;;  %3244 = vrot.lane.b32.xlu0 %v8900_v10, %s7695_s15  ;;  %v2604_v1 = vmax.f32 %v8897_v21, 0.0  ;;  %v2074_v34 = vmul.f32 %v8595_v44, %v10832_v60  ;;  %v10838_v21 = vld [vmem:[#allocation41_spill] sm:$0xff] }
 0x2ff   : > { %v2141_v50 = vadd.f32 %v2109_v48, %v2073_v32  ;;  %v2112_v11 = vmul.f32 %v8592_v35, %v10838_v21  ;;  %v2179_v32 = vmul.f32 %v8599_v2, %v10839_v59 }
 0x300   : > { %10830 = vst [vmem:[#allocation26_spill] sm:$0xff] %v8908_v9  ;;  %v2605_v12 = vmax.f32 %v8908_v9, 0.0  ;;  %v2142_v45 = vadd.f32 %v2110_v24, %v2074_v34  ;;  %v10837_v9 = vld [vmem:[#allocation28_spill] sm:$0xff]  ;;  %v2076_v24 = vmul.f32 %v8595_v44, %v10841_v61  ;;  %v10842_v34 = vld [vmem:[#allocation46_spill] sm:$0xff] }
 0x301   : > { %v2111_v53 = vmul.f32 %v8592_v35, %v10837_v9  ;;  %v2180_v21 = vmul.f32 %v8599_v2, %v10842_v34 }
 0x302   : > { %v2629_v23 = vpack.c.bf16 %v2605_v12, %v2604_v1  ;;  %v10835_v1 = vld [vmem:[#allocation37_spill] sm:$0xff] }
 0x303   : > { %v2178_v12 = vmul.f32 %v8599_v2, %v10835_v1 }
 0x304   : > { %6967 = vmatmul.mubr.msk.bf16.gmra.mrb[52].mxu0 %vm2316_vm0, %v2629_v23  ;;  %v2209_v23 = vadd.f32 %v2177_v13, %v2141_v50  ;;  %v2143_v13 = vadd.f32 %v2111_v53, %v2075_v46  ;;  %v2144_v46 = vadd.f32 %v2112_v11, %v2076_v24 }
 0x305   : > { %v2210_v0 = vadd.f32 %v2178_v12, %v2142_v45 }
 0x306   : > { %v2248_v43 = vadd.f32 %v8632_v39, %v2209_v23  ;;  %v2211_v53 = vadd.f32 %v2179_v32, %v2143_v13 }
 0x307   : > { %v2249_v45 = vadd.f32 %v8632_v39, %v2210_v0  ;;  %v2212_v0 = vadd.f32 %v2180_v21, %v2144_v46 }
 0x309   : > { %v2251_v13 = vadd.f32 %v8632_v39, %v2212_v0 }
 0x318   : > { %v2479_v60 = vpop.f32.mrb[24].mxu1 }
 0x319   : > { %v8937_v48 = vadd.f32 %v2479_v60, %v8647_v42  ;;  %v8939_v50 = vpop.f32.mrb[25].mxu1 }
 0x31a   : > { %10840 = vst [vmem:[#allocation30_spill] sm:$0xff] %v8939_v50  ;;  %v2483_v9 = vpop.f32.mrb[26].mxu1  ;;  %v2114_v50 = vmul.f32 %v8592_v35, %v8187_v22  ;;  %v2080_v22 = vmul.f32 %v8595_v44, %v8393_v49 }
 0x31b   : > { %v8947_v1 = vadd.f32 %v8937_v48, %v2248_v43  ;;  %v8950_v12 = vadd.f32 %v2483_v9, %v8647_v42  ;;  %v8952_v23 = vpop.f32.mrb[27].mxu1  ;;  %3246 = vrot.lane.b32.xlu1 %v8937_v48, %s7695_s15  ;;  %v2250_v9 = vadd.f32 %v8632_v39, %v2211_v53 }
 0x31c   : > { %10844 = vst [vmem:[#allocation32_spill] sm:$0xff] %v8952_v23 }
 0x31d   : > { %10843 = vst [vmem:[#allocation14_spill] sm:$0xff] %v8947_v1  ;;  %v8957_v60 = vadd.f32 %v8950_v12, %v2249_v45  ;;  %3248 = vrot.lane.b32.xlu0 %v8950_v12, %s7695_s15  ;;  %v2606_v43 = vmax.f32 %v8947_v1, 0.0 }
 0x31f   : > { %10845 = vst [vmem:[#allocation31_spill] sm:$0xff] %v8957_v60  ;;  %v2607_v59 = vmax.f32 %v8957_v60, 0.0 }
 0x320   : > { %v2489_v61 = vpop.f32.mrb[28].mxu1 }
 0x321   : > { %v8965_v34 = vadd.f32 %v2489_v61, %v8647_v42  ;;  %v8967_v23 = vpop.f32.mrb[29].mxu1  ;;  %v2630_v11 = vpack.c.bf16 %v2607_v59, %v2606_v43  ;;  %v7457_v59 = vld [vmem:[%s10617_s9] sm:$0xff]   ;;  %v7458_v61 = vld [vmem:[%s10617_s9 + $0x8] sm:$0xff]  }
 0x322   : > { %10846 = vst [vmem:[#allocation35_spill] sm:$0xff] %v8967_v23  ;;  %v2493_v32 = vpop.f32.mrb[30].mxu1  ;;  %6986 = vmatprep.subr.bf16.mxu1 %v7457_v59 }
 0x323   : > { %v8971_v24 = vadd.f32 %v8965_v34, %v2250_v9  ;;  %v8974_v45 = vadd.f32 %v2493_v32, %v8647_v42  ;;  %v8976_v21 = vpop.f32.mrb[31].mxu1  ;;  %6970 = vmatprep.mubr.msk.bf16.mxu0 %vm2316_vm0, %v2630_v11  ;;  %3250 = vrot.lane.b32.xlu1 %v8965_v34, %s7695_s15  ;;  %v10850_v9 = vld [vmem:[#allocation47_spill] sm:$0xff]  ;;  %v10851_v32 = vld [vmem:[#allocation48_spill] sm:$0xff] }
 0x324   : > { %10848 = vst [vmem:[#allocation34_spill] sm:$0xff] %v8976_v21  ;;  %v2077_v11 = vmul.f32 %v8595_v44, %v10850_v9  ;;  %6987 = vmatpush3.bf16.msra.mxu1 %v7457_v59  ;;  %v2182_v9 = vmul.f32 %v8599_v2, %v8412_v27  ;;  %v2079_v59 = vmul.f32 %v8595_v44, %v8387_v30 }
 0x325   : > { %10847 = vst [vmem:[#allocation33_spill] sm:$0xff] %v8971_v24  ;;  %v8982_v46 = vadd.f32 %v8974_v45, %v2251_v13  ;;  %3252 = vrot.lane.b32.xlu0 %v8974_v45, %s7695_s15  ;;  %v2608_v53 = vmax.f32 %v8971_v24, 0.0  ;;  %v2113_v13 = vmul.f32 %v8592_v35, %v10851_v32  ;;  %6988 = vmatprep.subr.bf16.mxu1 %v7458_v61  ;;  %v10870_v24 = vld [vmem:[#allocation56_spill] sm:$0xff] }
 0x326   : > { %v2116_v32 = vmul.f32 %v8592_v35, %v8403_v37  ;;  %v2183_v27 = vmul.f32 %v8599_v2, %v8422_v8 }
 0x327   : > { %10849 = vst [vmem:[#allocation38_spill] sm:$0xff] %v8982_v46  ;;  %v2609_v0 = vmax.f32 %v8982_v46, 0.0  ;;  %v2145_v21 = vadd.f32 %v2113_v13, %v2077_v11 }
 0x328   : > { %6989 = vmatpush3.bf16.msra.mxu1 %v7458_v61 }
 0x329   : > { %v2631_v43 = vpack.c.bf16 %v2609_v0, %v2608_v53  ;;  %v10852_v53 = vld [vmem:[#allocation40_spill] sm:$0xff] }
 0x32a   : > { %v2181_v0 = vmul.f32 %v8599_v2, %v10852_v53 }
 0x32b   : > { %6971 = vmatmul.mubr.msk.bf16.gmra.mrb[56].mxu0 %vm2316_vm0, %v2631_v43  ;;  %v2078_v43 = vmul.f32 %v8595_v44, %v8375_v29  ;;  %v2115_v29 = vmul.f32 %v8592_v35, %v8205_v33  ;;  %v2148_v33 = vadd.f32 %v2116_v32, %v2080_v22 }
 0x32c   : > { %v2213_v60 = vadd.f32 %v2181_v0, %v2145_v21  ;;  %v10854_v21 = vld [vmem:[#allocation42_spill] sm:$0xff] }
 0x32d   : > { %v2146_v23 = vadd.f32 %v2114_v50, %v2078_v43  ;;  %v2184_v37 = vmul.f32 %v8599_v2, %v10854_v21 }
 0x32e   : > { %v2252_v61 = vadd.f32 %v8632_v39, %v2213_v60 }
 0x32f   : > { %v2214_v53 = vadd.f32 %v2182_v9, %v2146_v23  ;;  %v2147_v23 = vadd.f32 %v2115_v29, %v2079_v59  ;;  %v2216_v59 = vadd.f32 %v2184_v37, %v2148_v33 }
 0x331   : > { %v2253_v0 = vadd.f32 %v8632_v39, %v2214_v53  ;;  %v2215_v43 = vadd.f32 %v2183_v27, %v2147_v23  ;;  %v2255_v23 = vadd.f32 %v8632_v39, %v2216_v59 }
 0x337   : > { %v2499_v11 = vpop.f32.mrb[32].mxu1 }
 0x338   : > { %v9019_v50 = vadd.f32 %v2499_v11, %v8647_v42  ;;  %v9021_v30 = vpop.f32.mrb[33].mxu1  ;;  %v2254_v11 = vadd.f32 %v8632_v39, %v2215_v43 }
 0x339   : > { %10853 = vst [vmem:[#allocation16_spill] sm:$0xff] %v9021_v30  ;;  %v2503_v13 = vpop.f32.mrb[34].mxu1  ;;  %v10866_v30 = vld [vmem:[#allocation58_spill] sm:$0xff] }
 0x33a   : > { %v9027_v60 = vadd.f32 %v9019_v50, %v2252_v61  ;;  %v9030_v49 = vadd.f32 %v2503_v13, %v8647_v42  ;;  %v9032_v8 = vpop.f32.mrb[35].mxu1  ;;  %3254 = vrot.lane.b32.xlu1 %v9019_v50, %s7695_s15 }
 0x33b   : > { %10856 = vst [vmem:[#allocation43_spill] sm:$0xff] %v9032_v8  ;;  %v10865_v8 = vld [vmem:[#allocation49_spill] sm:$0xff] }
 0x33c   : > { %10855 = vst [vmem:[#allocation36_spill] sm:$0xff] %v9027_v60  ;;  %v9037_v9 = vadd.f32 %v9030_v49, %v2253_v0  ;;  %3256 = vrot.lane.b32.xlu0 %v9030_v49, %s7695_s15  ;;  %v2610_v32 = vmax.f32 %v9027_v60, 0.0  ;;  %v10869_v60 = vld [vmem:[#allocation45_spill] sm:$0xff] }
 0x33e   : > { %10857 = vst [vmem:[#allocation37_spill] sm:$0xff] %v9037_v9  ;;  %v2611_v53 = vmax.f32 %v9037_v9, 0.0 }
 0x33f   : > { %v2509_v29 = vpop.f32.mrb[36].mxu1 }
 0x340   : > { %v9045_v61 = vadd.f32 %v2509_v29, %v8647_v42  ;;  %v9047_v22 = vpop.f32.mrb[37].mxu1  ;;  %v2632_v27 = vpack.c.bf16 %v2611_v53, %v2610_v32  ;;  %v10862_v53 = vld [vmem:[#allocation51_spill] sm:$0xff] }
 0x341   : > { %10858 = vst [vmem:[#allocation18_spill] sm:$0xff] %v9047_v22  ;;  %v2513_v21 = vpop.f32.mrb[38].mxu1  ;;  %v2117_v29 = vmul.f32 %v8592_v35, %v10862_v53  ;;  %v2185_v22 = vmul.f32 %v8599_v2, %v10866_v30 }
 0x342   : > { %v9051_v13 = vadd.f32 %v9045_v61, %v2254_v11  ;;  %v9054_v37 = vadd.f32 %v2513_v21, %v8647_v42  ;;  %v9056_v33 = vpop.f32.mrb[39].mxu1  ;;  %6974 = vmatprep.mubr.msk.bf16.mxu0 %vm2316_vm0, %v2632_v27  ;;  %3258 = vrot.lane.b32.xlu1 %v9045_v61, %s7695_s15  ;;  %v10863_v11 = vld [vmem:[#allocation50_spill] sm:$0xff]  ;;  %v10864_v21 = vld [vmem:[#allocation52_spill] sm:$0xff] }
 0x343   : > { %10860 = vst [vmem:[#allocation41_spill] sm:$0xff] %v9056_v33  ;;  %v2082_v27 = vmul.f32 %v8595_v44, %v10863_v11  ;;  %v2081_v33 = vmul.f32 %v8595_v44, %v10865_v8  ;;  %v2186_v11 = vmul.f32 %v8599_v2, %v10869_v60  ;;  %v2120_v8 = vmul.f32 %v8592_v35, %v10870_v24 }
 0x344   : > { %10859 = vst [vmem:[#allocation28_spill] sm:$0xff] %v9051_v13  ;;  %v9062_v0 = vadd.f32 %v9054_v37, %v2255_v23  ;;  %3260 = vrot.lane.b32.xlu0 %v9054_v37, %s7695_s15  ;;  %v2612_v43 = vmax.f32 %v9051_v13, 0.0  ;;  %v2118_v23 = vmul.f32 %v8592_v35, %v10864_v21 }
 0x345   : > { %v2149_v9 = vadd.f32 %v2117_v29, %v2081_v33  ;;  %v10871_v33 = vld [vmem:[#allocation60_spill] sm:$0xff] }
 0x346   : > { %10861 = vst [vmem:[#allocation44_spill] sm:$0xff] %v9062_v0  ;;  %v2613_v59 = vmax.f32 %v9062_v0, 0.0  ;;  %v2150_v0 = vadd.f32 %v2118_v23, %v2082_v27  ;;  %v2187_v29 = vmul.f32 %v8599_v2, %v10871_v33 }
 0x347   : > { %v2217_v13 = vadd.f32 %v2185_v22, %v2149_v9 }
 0x348   : > { %v2633_v32 = vpack.c.bf16 %v2613_v59, %v2612_v43  ;;  %v10867_v43 = vld [vmem:[#allocation53_spill] sm:$0xff]  ;;  %v2218_v46 = vadd.f32 %v2186_v11, %v2150_v0 }
 0x349   : > { %v2083_v59 = vmul.f32 %v8595_v44, %v10867_v43  ;;  %v2256_v30 = vadd.f32 %v8632_v39, %v2217_v13  ;;  %v10873_v43 = vld [vmem:[#allocation54_spill] sm:$0xff]  ;;  %v10874_v0 = vld [vmem:[#allocation61_spill] sm:$0xff] }
 0x34a   : > { %6975 = vmatmul.mubr.msk.bf16.gmra.mrb[60].mxu0 %vm2316_vm0, %v2633_v32  ;;  %v10868_v32 = vld [vmem:[#allocation57_spill] sm:$0xff]  ;;  %v2084_v60 = vmul.f32 %v8595_v44, %v10873_v43  ;;  %v2257_v22 = vadd.f32 %v8632_v39, %v2218_v46 }
 0x34b   : > { %v2119_v53 = vmul.f32 %v8592_v35, %v10868_v32 }
 0x34d   : > { %v2151_v21 = vadd.f32 %v2119_v53, %v2083_v59  ;;  %v2188_v59 = vmul.f32 %v8599_v2, %v10874_v0 }
 0x34f   : > { %v2219_v53 = vadd.f32 %v2187_v29, %v2151_v21 }
 0x35e   : > { %v2519_v1 = vpop.f32.mrb[40].mxu1 }
 0x35f   : > { %v9091_v27 = vadd.f32 %v2519_v1, %v8647_v42  ;;  %v9093_v23 = vpop.f32.mrb[41].mxu1  ;;  %v2152_v1 = vadd.f32 %v2120_v8, %v2084_v60 }
 0x360   : > { %10872 = vst [vmem:[#allocation39_spill] sm:$0xff] %v9093_v23  ;;  %v2523_v9 = vpop.f32.mrb[42].mxu1 }
 0x361   : > { %v9101_v24 = vadd.f32 %v9091_v27, %v2256_v30  ;;  %v9104_v13 = vadd.f32 %v2523_v9, %v8647_v42  ;;  %v9106_v32 = vpop.f32.mrb[43].mxu1  ;;  %3262 = vrot.lane.b32.xlu1 %v9091_v27, %s7695_s15  ;;  %v2220_v46 = vadd.f32 %v2188_v59, %v2152_v1  ;;  %v2258_v9 = vadd.f32 %v8632_v39, %v2219_v53 }
 0x362   : > { %10876 = vst [vmem:[#allocation47_spill] sm:$0xff] %v9106_v32 }
 0x363   : > { %10875 = vst [vmem:[#allocation46_spill] sm:$0xff] %v9101_v24  ;;  %v9111_v11 = vadd.f32 %v9104_v13, %v2257_v22  ;;  %3264 = vrot.lane.b32.xlu0 %v9104_v13, %s7695_s15  ;;  %v2614_v30 = vmax.f32 %v9101_v24, 0.0  ;;  %v2259_v29 = vadd.f32 %v8632_v39, %v2220_v46 }
 0x365   : > { %10877 = vst [vmem:[#allocation48_spill] sm:$0xff] %v9111_v11  ;;  %v2615_v33 = vmax.f32 %v9111_v11, 0.0 }
 0x366   : > { %v2529_v43 = vpop.f32.mrb[44].mxu1 }
 0x367   : > { %v9119_v0 = vadd.f32 %v2529_v43, %v8647_v42  ;;  %v9121_v32 = vpop.f32.mrb[45].mxu1  ;;  %v2634_v21 = vpack.c.bf16 %v2615_v33, %v2614_v30  ;;  %v10882_v33 = vld [vmem:[#allocation64_spill] sm:$0xff] }
 0x368   : > { %10878 = vst [vmem:[#allocation40_spill] sm:$0xff] %v9121_v32  ;;  %v2533_v8 = vpop.f32.mrb[46].mxu1  ;;  %v2121_v43 = vmul.f32 %v8592_v35, %v10882_v33  ;;  %v10886_v32 = vld [vmem:[#allocation62_spill] sm:$0xff]  ;;  %v2123_v33 = vmul.f32 %v8592_v35, %v8500_v6 }
 0x369   : > { %v9125_v60 = vadd.f32 %v9119_v0, %v2258_v9  ;;  %v9128_v22 = vadd.f32 %v2533_v8, %v8647_v42  ;;  %v9130_v59 = vpop.f32.mrb[47].mxu1  ;;  %6978 = vmatprep.mubr.msk.bf16.mxu0 %vm2316_vm0, %v2634_v21  ;;  %3266 = vrot.lane.b32.xlu1 %v9119_v0, %s7695_s15  ;;  %v10883_v9 = vld [vmem:[#allocation55_spill] sm:$0xff]  ;;  %v2086_v11 = vmul.f32 %v8595_v44, %v10886_v32  ;;  %v10888_v32 = vld [vmem:[#allocation65_spill] sm:$0xff] }
 0x36a   : > { %10880 = vst [vmem:[#allocation51_spill] sm:$0xff] %v9130_v59  ;;  %v2085_v21 = vmul.f32 %v8595_v44, %v10883_v9  ;;  %v10884_v8 = vld [vmem:[#allocation59_spill] sm:$0xff]  ;;  %v2087_v9 = vmul.f32 %v8595_v44, %v8514_v18 }
 0x36b   : > { %10879 = vst [vmem:[#allocation42_spill] sm:$0xff] %v9125_v60  ;;  %v9136_v1 = vadd.f32 %v9128_v22, %v2259_v29  ;;  %3268 = vrot.lane.b32.xlu0 %v9128_v22, %s7695_s15  ;;  %v2616_v53 = vmax.f32 %v9125_v60, 0.0  ;;  %v2122_v29 = vmul.f32 %v8592_v35, %v10884_v8  ;;  %v10885_v59 = vld [vmem:[#allocation63_spill] sm:$0xff] }
 0x36c   : > { %v2189_v23 = vmul.f32 %v8599_v2, %v10885_v59  ;;  %v2153_v24 = vadd.f32 %v2121_v43, %v2085_v21  ;;  %v2088_v43 = vmul.f32 %v8595_v44, %v10888_v32 }
 0x36d   : > { %10881 = vst [vmem:[#allocation50_spill] sm:$0xff] %v9136_v1  ;;  %v2617_v46 = vmax.f32 %v9136_v1, 0.0  ;;  %v10887_v1 = vld [vmem:[#allocation67_spill] sm:$0xff] }
 0x36e   : > { %v2124_v8 = vmul.f32 %v8592_v35, %v10887_v1 }
 0x36f   : > { %v2635_v30 = vpack.c.bf16 %v2617_v46, %v2616_v53  ;;  %v2190_v53 = vmul.f32 %v8599_v2, %v8539_v17  ;;  %v2154_v46 = vadd.f32 %v2122_v29, %v2086_v11  ;;  %v2191_v17 = vmul.f32 %v8599_v2, %v8547_v57 }
 0x370   : > { %v2155_v11 = vadd.f32 %v2123_v33, %v2087_v9  ;;  %v2156_v1 = vadd.f32 %v2124_v8, %v2088_v43 }
 0x371   : > { %6979 = vmatmul.mubr.msk.bf16.gmra.mrb[64].mxu0 %vm2316_vm0, %v2635_v30  ;;  %v2221_v30 = vadd.f32 %v2189_v23, %v2153_v24  ;;  %v2222_v60 = vadd.f32 %v2190_v53, %v2154_v46  ;;  %v10889_v24 = vld [vmem:[#allocation66_spill] sm:$0xff] }
 0x372   : > { %v2192_v18 = vmul.f32 %v8599_v2, %v10889_v24  ;;  %v2223_v53 = vadd.f32 %v2191_v17, %v2155_v11 }
 0x373   : > { %v2260_v40 = vadd.f32 %v8632_v39, %v2221_v30  ;;  %v2261_v21 = vadd.f32 %v8632_v39, %v2222_v60 }
 0x374   : > { %v2224_v2 = vadd.f32 %v2192_v18, %v2156_v1  ;;  %v2262_v33 = vadd.f32 %v8632_v39, %v2223_v53  ;;  %v9244_v1 = vld [vmem:[%s10616_s8] ss:$0 sm:$0xff] }
 0x376   : > { %v2263_v43 = vadd.f32 %v8632_v39, %v2224_v2 }
 0x37d   : > { %v2539_v59 = vpop.f32.mrb[48].mxu1 }
 0x37e   : > { %v9167_v23 = vadd.f32 %v2539_v59, %v8647_v42  ;;  %v9169_v6 = vpop.f32.mrb[49].mxu1 }
 0x37f   : > { %v2543_v35 = vpop.f32.mrb[50].mxu1 }
 0x380   : > { %v9175_v29 = vadd.f32 %v9167_v23, %v2260_v40  ;;  %v9178_v44 = vadd.f32 %v2543_v35, %v8647_v42  ;;  %v9180_v57 = vpop.f32.mrb[51].mxu1  ;;  %3270 = vrot.lane.b32.xlu1 %v9167_v23, %s7695_s15 }
 0x381   : > { %10890 = vst [vmem:[#allocation52_spill] sm:$0xff] %v9180_v57 }
 0x382   : > { %v9185_v46 = vadd.f32 %v9178_v44, %v2261_v21  ;;  %3272 = vrot.lane.b32.xlu0 %v9178_v44, %s7695_s15  ;;  %v2618_v60 = vmax.f32 %v9175_v29, 0.0 }
 0x384   : > { %v2619_v40 = vmax.f32 %v9185_v46, 0.0 }
 0x385   : > { %v2549_v30 = vpop.f32.mrb[52].mxu1 }
 0x386   : > { %v9193_v9 = vadd.f32 %v2549_v30, %v8647_v42  ;;  %v9195_v8 = vpop.f32.mrb[53].mxu1  ;;  %v2636_v59 = vpack.c.bf16 %v2619_v40, %v2618_v60 }
 0x387   : > { %v2553_v32 = vpop.f32.mrb[54].mxu1 }
 0x388   : > { %v9199_v17 = vadd.f32 %v9193_v9, %v2262_v33  ;;  %v9202_v24 = vadd.f32 %v2553_v32, %v8647_v42  ;;  %v9204_v18 = vpop.f32.mrb[55].mxu1  ;;  %6982 = vmatprep.mubr.msk.bf16.mxu0 %vm2316_vm0, %v2636_v59  ;;  %3274 = vrot.lane.b32.xlu1 %v9193_v9, %s7695_s15 }
 0x38a   : > { %v9210_v11 = vadd.f32 %v9202_v24, %v2263_v43  ;;  %3276 = vrot.lane.b32.xlu0 %v9202_v24, %s7695_s15  ;;  %v2620_v39 = vmax.f32 %v9199_v17, 0.0 }
 0x38c   : > { %3938 = vrot.lane.b32.xlu1 %v8657_v20, %s7696_s20  ;;  %v2621_v42 = vmax.f32 %v9210_v11, 0.0 }
 0x38e   : > { %3940 = vrot.lane.b32.xlu0 %v8672_v54, %s7696_s20  ;;  %v2637_v35 = vpack.c.bf16 %v2621_v42, %v2620_v39 }
 0x390   : > { %3942 = vrot.lane.b32.xlu1 %v8715_v56, %s7696_s20  ;;  %6983 = vmatmul.mubr.msk.bf16.gmra.mrb[68].mxu0 %vm2316_vm0, %v2637_v35 }
 0x392   : > { %3944 = vrot.lane.b32.xlu0 %v8732_v26, %s7696_s20 }
 0x394   : > { %3946 = vrot.lane.b32.xlu1 %v8710_v15, %s7696_s20 }
 0x396   : > { %3948 = vrot.lane.b32.xlu0 %v8699_v47, %s7696_s20 }
 0x398   : > { %3950 = vrot.lane.b32.xlu1 %v8758_v41, %s7696_s20 }
 0x39a   : > { %3952 = vrot.lane.b32.xlu0 %v8747_v3, %s7696_s20 }
 0x39c   : > { %3954 = vrot.lane.b32.xlu1 %v8777_v62, %s7696_s20 }
 0x39e   : > { %3956 = vrot.lane.b32.xlu0 %v8796_v63, %s7696_s20 }
 0x3a0   : > { %3958 = vrot.lane.b32.xlu1 %v8816_v25, %s7696_s20 }
 0x3a2   : > { %3960 = vrot.lane.b32.xlu0 %v8826_v19, %s7696_s20 }
 0x3a4   : > { %3962 = vrot.lane.b32.xlu1 %v8865_v31, %s7696_s20 }
 0x3a5   : > { %v6956_v21 = vpop.f32.mrb[40].mxu0 }
 0x3a6   : > { %v2752_v53 = vadd.f32 %v6956_v21, %v9244_v1  ;;  %v2743_v2 = vpop.f32.mrb[41].mxu0  ;;  %3964 = vrot.lane.b32.xlu0 %v8876_v51, %s7696_s20 }
 0x3a7   : > { %v2744_v60 = vadd.f32 %v9244_v1, %v2743_v2  ;;  %v6957_v40 = vpop.f32.mrb[42].mxu0 }
 0x3a8   : > { %v2755_v30 = vadd.f32 %v6957_v40, %v9244_v1  ;;  %v2746_v33 = vpop.f32.mrb[43].mxu0  ;;  %3966 = vrot.lane.b32.xlu1 %v8891_v58, %s7696_s20  ;;  %v2872_v32 = vmax.f32 %v2752_v53, 0.0 }
 0x3a9   : > { %v2747_v59 = vadd.f32 %v9244_v1, %v2746_v33  ;;  %v2870_v39 = vmax.f32 %v2744_v60, 0.0 }
 0x3aa   : > { %v2873_v43 = vmax.f32 %v2755_v30, 0.0  ;;  %3968 = vrot.lane.b32.xlu0 %v8900_v10, %s7696_s20 }
 0x3ab   : > { %v2871_v42 = vmax.f32 %v2747_v59, 0.0 }
 0x3ac   : > { %v2903_v35 = vpack.c.bf16 %v2873_v43, %v2872_v32  ;;  %3970 = vrot.lane.b32.xlu1 %v8937_v48, %s7696_s20 }
 0x3ad   : > { %v2902_v21 = vpack.c.bf16 %v2871_v42, %v2870_v39  ;;  %v6960_v2 = vpop.f32.mrb[44].mxu0 }
 0x3ae   : > { %v2768_v40 = vadd.f32 %v6960_v2, %v9244_v1  ;;  %v2759_v57 = vpop.f32.mrb[45].mxu0  ;;  %3972 = vrot.lane.b32.xlu0 %v8950_v12, %s7696_s20 }
 0x3af   : > { %v2760_v33 = vadd.f32 %v9244_v1, %v2759_v57  ;;  %v6961_v53 = vpop.f32.mrb[46].mxu0  ;;  %6990 = vmatprep.mubr.msk.bf16.mxu1 %vm2316_vm0, %v2902_v21 }
 0x3b0   : > { %v2771_v60 = vadd.f32 %v6961_v53, %v9244_v1  ;;  %v2762_v30 = vpop.f32.mrb[47].mxu0  ;;  %6991 = vmatmul.mubr.msk.bf16.vlgmr.msra.gmra.mrb[56].mxu1 %vm2316_vm0, %v2903_v35  ;;  %3974 = vrot.lane.b32.xlu1 %v8965_v34, %s7696_s20  ;;  %v2876_v32 = vmax.f32 %v2768_v40, 0.0 }
 0x3b1   : > { %v2763_v59 = vadd.f32 %v9244_v1, %v2762_v30  ;;  %v2874_v39 = vmax.f32 %v2760_v33, 0.0 }
 0x3b2   : > { %v2877_v43 = vmax.f32 %v2771_v60, 0.0  ;;  %3976 = vrot.lane.b32.xlu0 %v8974_v45, %s7696_s20 }
 0x3b3   : > { %v2875_v57 = vmax.f32 %v2763_v59, 0.0 }
 0x3b4   : > { %v2905_v42 = vpack.c.bf16 %v2877_v43, %v2876_v32  ;;  %3978 = vrot.lane.b32.xlu1 %v9019_v50, %s7696_s20 }
 0x3b5   : > { %v2904_v2 = vpack.c.bf16 %v2875_v57, %v2874_v39 }
 0x3b6   : > { %v6964_v21 = vpop.f32.mrb[48].mxu0  ;;  %3980 = vrot.lane.b32.xlu0 %v9030_v49, %s7696_s20 }
 0x3b7   : > { %v2784_v35 = vadd.f32 %v6964_v21, %v9244_v1  ;;  %v2775_v53 = vpop.f32.mrb[49].mxu0  ;;  %6994 = vmatprep.mubr.msk.bf16.mxu1 %vm2316_vm0, %v2904_v2 }
 0x3b8   : > { %v2776_v40 = vadd.f32 %v9244_v1, %v2775_v53  ;;  %v6965_v33 = vpop.f32.mrb[50].mxu0  ;;  %6995 = vmatmul.mubr.msk.bf16.gmra.mrb[60].mxu1 %vm2316_vm0, %v2905_v42  ;;  %3982 = vrot.lane.b32.xlu1 %v9045_v61, %s7696_s20 }
 0x3b9   : > { %v2787_v60 = vadd.f32 %v6965_v33, %v9244_v1  ;;  %v2778_v30 = vpop.f32.mrb[51].mxu0  ;;  %v2880_v32 = vmax.f32 %v2784_v35, 0.0 }
 0x3ba   : > { %v2779_v59 = vadd.f32 %v9244_v1, %v2778_v30  ;;  %3984 = vrot.lane.b32.xlu0 %v9054_v37, %s7696_s20  ;;  %v2878_v39 = vmax.f32 %v2776_v40, 0.0 }
 0x3bb   : > { %v2881_v43 = vmax.f32 %v2787_v60, 0.0 }
 0x3bc   : > { %v2879_v57 = vmax.f32 %v2779_v59, 0.0  ;;  %3986 = vrot.lane.b32.xlu1 %v9091_v27, %s7696_s20 }
 0x3bd   : > { %v2907_v2 = vpack.c.bf16 %v2881_v43, %v2880_v32 }
 0x3be   : > { %v2906_v42 = vpack.c.bf16 %v2879_v57, %v2878_v39  ;;  %3988 = vrot.lane.b32.xlu0 %v9104_v13, %s7696_s20 }
 0x3c0   : > { %6998 = vmatprep.mubr.msk.bf16.mxu1 %vm2316_vm0, %v2906_v42  ;;  %3990 = vrot.lane.b32.xlu1 %v9119_v0, %s7696_s20 }
 0x3c1   : > { %6999 = vmatmul.mubr.msk.bf16.gmra.mrb[64].mxu1 %vm2316_vm0, %v2907_v2 }
 0x3c2   : > { %3992 = vrot.lane.b32.xlu0 %v9128_v22, %s7696_s20 }
 0x3c4   : > { %3994 = vrot.lane.b32.xlu1 %v9167_v23, %s7696_s20 }
 0x3c6   : > { %3996 = vrot.lane.b32.xlu0 %v9178_v44, %s7696_s20 }
 0x3c8   : > { %3998 = vrot.lane.b32.xlu1 %v9193_v9, %s7696_s20 }
 0x3ca   : > { %4000 = vrot.lane.b32.xlu0 %v9202_v24, %s7696_s20 }
 0x3cc   : > { %4662 = vrot.lane.b32.xlu1 %v8657_v20, %s7697_s23 }
 0x3ce   : > { %4664 = vrot.lane.b32.xlu0 %v8672_v54, %s7697_s23 }
 0x3d0   : > { %4666 = vrot.lane.b32.xlu1 %v8715_v56, %s7697_s23 }
 0x3d2   : > { %4668 = vrot.lane.b32.xlu0 %v8732_v26, %s7697_s23 }
 0x3d4   : > { %4670 = vrot.lane.b32.xlu1 %v8710_v15, %s7697_s23 }
 0x3d6   : > { %4672 = vrot.lane.b32.xlu0 %v8699_v47, %s7697_s23 }
 0x3d7   : > { %v6968_v21 = vpop.f32.mrb[52].mxu0 }
 0x3d8   : > { %v2800_v35 = vadd.f32 %v6968_v21, %v9244_v1  ;;  %v2791_v53 = vpop.f32.mrb[53].mxu0  ;;  %4674 = vrot.lane.b32.xlu1 %v8758_v41, %s7697_s23 }
 0x3d9   : > { %v2792_v20 = vadd.f32 %v9244_v1, %v2791_v53  ;;  %v6969_v54 = vpop.f32.mrb[54].mxu0 }
 0x3da   : > { %v2803_v56 = vadd.f32 %v6969_v54, %v9244_v1  ;;  %v2794_v40 = vpop.f32.mrb[55].mxu0  ;;  %4676 = vrot.lane.b32.xlu0 %v8747_v3, %s7697_s23  ;;  %v2884_v15 = vmax.f32 %v2800_v35, 0.0 }
 0x3db   : > { %v2795_v26 = vadd.f32 %v9244_v1, %v2794_v40  ;;  %v2882_v33 = vmax.f32 %v2792_v20, 0.0 }
 0x3dc   : > { %v2885_v47 = vmax.f32 %v2803_v56, 0.0  ;;  %4678 = vrot.lane.b32.xlu1 %v8777_v62, %s7697_s23 }
 0x3dd   : > { %v2883_v60 = vmax.f32 %v2795_v26, 0.0 }
 0x3de   : > { %v2909_v30 = vpack.c.bf16 %v2885_v47, %v2884_v15  ;;  %4680 = vrot.lane.b32.xlu0 %v8796_v63, %s7697_s23 }
 0x3df   : > { %v2908_v59 = vpack.c.bf16 %v2883_v60, %v2882_v33 }
 0x3e0   : > { %4682 = vrot.lane.b32.xlu1 %v8816_v25, %s7697_s23 }
 0x3e1   : > { %7002 = vmatprep.mubr.msk.bf16.mxu1 %vm2316_vm0, %v2908_v59 }
 0x3e2   : > { %7003 = vmatmul.mubr.msk.bf16.gmra.mrb[68].mxu1 %vm2316_vm0, %v2909_v30  ;;  %4684 = vrot.lane.b32.xlu0 %v8826_v19, %s7697_s23 }
 0x3e4   : > { %4686 = vrot.lane.b32.xlu1 %v8865_v31, %s7697_s23 }
 0x3e6   : > { %4688 = vrot.lane.b32.xlu0 %v8876_v51, %s7697_s23 }
 0x3e8   : > { %4690 = vrot.lane.b32.xlu1 %v8891_v58, %s7697_s23 }
 0x3ea   : > { %4692 = vrot.lane.b32.xlu0 %v8900_v10, %s7697_s23 }
 0x3ec   : > { %4694 = vrot.lane.b32.xlu1 %v8937_v48, %s7697_s23 }
 0x3ee   : > { %4696 = vrot.lane.b32.xlu0 %v8950_v12, %s7697_s23 }
 0x3f0   : > { %4698 = vrot.lane.b32.xlu1 %v8965_v34, %s7697_s23 }
 0x3f2   : > { %4700 = vrot.lane.b32.xlu0 %v8974_v45, %s7697_s23 }
 0x3f4   : > { %4702 = vrot.lane.b32.xlu1 %v9019_v50, %s7697_s23  ;;  %v7459_v50 = vld [vmem:[%s10615_s7 + $0x10] sm:$0xff]  }
 0x3f5   : > { %7022 = vmatprep.subr.bf16.mxu0 %v7459_v50 }
 0x3f6   : > { %4704 = vrot.lane.b32.xlu0 %v9030_v49, %s7697_s23  ;;  %7023 = vmatpush3.bf16.msra.mxu0 %v7459_v50  ;;  %v7460_v49 = vld [vmem:[%s10615_s7 + $0x18] sm:$0xff]  }
 0x3f7   : > { %7024 = vmatprep.subr.bf16.mxu0 %v7460_v49 }
 0x3f8   : > { %4706 = vrot.lane.b32.xlu1 %v9045_v61, %s7697_s23 }
 0x3fa   : > { %4708 = vrot.lane.b32.xlu0 %v9054_v37, %s7697_s23  ;;  %7025 = vmatpush3.bf16.msra.mxu0 %v7460_v49  ;;  %v9407_v49 = vld [vmem:[%s10618_s10] ss:$0 sm:$0xff] }
 0x3fc   : > { %4710 = vrot.lane.b32.xlu1 %v9091_v27, %s7697_s23 }
 0x3fe   : > { %v6972_v19 = vpop.f32.mrb[56].mxu0  ;;  %4712 = vrot.lane.b32.xlu0 %v9104_v13, %s7697_s23 }
 0x3ff   : > { %v2816_v3 = vadd.f32 %v6972_v19, %v9244_v1  ;;  %v2807_v41 = vpop.f32.mrb[57].mxu0 }
 0x400   : > { %v2808_v62 = vadd.f32 %v9244_v1, %v2807_v41  ;;  %v6973_v63 = vpop.f32.mrb[58].mxu0  ;;  %4714 = vrot.lane.b32.xlu1 %v9119_v0, %s7697_s23 }
 0x401   : > { %v2819_v25 = vadd.f32 %v6973_v63, %v9244_v1  ;;  %v2810_v31 = vpop.f32.mrb[59].mxu0  ;;  %v2888_v58 = vmax.f32 %v2816_v3, 0.0 }
 0x402   : > { %v2811_v51 = vadd.f32 %v9244_v1, %v2810_v31  ;;  %4716 = vrot.lane.b32.xlu0 %v9128_v22, %s7697_s23  ;;  %v2886_v48 = vmax.f32 %v2808_v62, 0.0 }
 0x403   : > { %v2889_v10 = vmax.f32 %v2819_v25, 0.0 }
 0x404   : > { %v2887_v12 = vmax.f32 %v2811_v51, 0.0  ;;  %4718 = vrot.lane.b32.xlu1 %v9167_v23, %s7697_s23 }
 0x405   : > { %v2911_v34 = vpack.c.bf16 %v2889_v10, %v2888_v58 }
 0x406   : > { %v2910_v45 = vpack.c.bf16 %v2887_v12, %v2886_v48  ;;  %4720 = vrot.lane.b32.xlu0 %v9178_v44, %s7697_s23 }
 0x408   : > { %7006 = vmatprep.mubr.msk.bf16.mxu1 %vm2316_vm0, %v2910_v45  ;;  %4722 = vrot.lane.b32.xlu1 %v9193_v9, %s7697_s23  ;;  %v3215_v45 = vpop.permute.xlu0 %3214 }
 0x409   : > { %7007 = vmatmul.mubr.msk.bf16.gmra.mrb[72].mxu1 %vm2316_vm0, %v2911_v34  ;;  %v3217_v34 = vpop.permute.xlu1 %3216 }
 0x40a   : > { %4724 = vrot.lane.b32.xlu0 %v9202_v24, %s7697_s23 }
 0x40d   : > { %v3219_v50 = vpop.permute.xlu1 %3218 }
 0x41d   : > { %v6976_v61 = vpop.f32.mrb[60].mxu0 }
 0x41e   : > { %v2832_v37 = vadd.f32 %v6976_v61, %v9244_v1  ;;  %v2823_v27 = vpop.f32.mrb[61].mxu0  ;;  %v3221_v61 = vpop.permute.xlu0 %3220 }
 0x41f   : > { %v2824_v13 = vadd.f32 %v9244_v1, %v2823_v27  ;;  %v6977_v0 = vpop.f32.mrb[62].mxu0 }
 0x420   : > { %v2835_v22 = vadd.f32 %v6977_v0, %v9244_v1  ;;  %v2826_v23 = vpop.f32.mrb[63].mxu0  ;;  %v2892_v9 = vmax.f32 %v2832_v37, 0.0 }
 0x421   : > { %v2827_v44 = vadd.f32 %v9244_v1, %v2826_v23  ;;  %v2890_v32 = vmax.f32 %v2824_v13, 0.0 }
 0x422   : > { %v2893_v24 = vmax.f32 %v2835_v22, 0.0 }
 0x423   : > { %v2891_v43 = vmax.f32 %v2827_v44, 0.0 }
 0x424   : > { %v2913_v39 = vpack.c.bf16 %v2893_v24, %v2892_v9  ;;  %v3223_v9 = vpop.permute.xlu1 %3222 }
 0x425   : > { %v2912_v57 = vpack.c.bf16 %v2891_v43, %v2890_v32  ;;  %v3225_v43 = vpop.permute.xlu0 %3224 }
 0x427   : > { %7010 = vmatprep.mubr.msk.bf16.mxu1 %vm2316_vm0, %v2912_v57 }
 0x428   : > { %7011 = vmatmul.mubr.msk.bf16.gmra.mrb[76].mxu1 %vm2316_vm0, %v2913_v39 }
 0x444   : > { %v6980_v2 = vpop.f32.mrb[64].mxu0 }
 0x445   : > { %v2848_v42 = vadd.f32 %v6980_v2, %v9244_v1  ;;  %v2839_v21 = vpop.f32.mrb[65].mxu0 }
 0x446   : > { %v2840_v35 = vadd.f32 %v9244_v1, %v2839_v21  ;;  %v6981_v53 = vpop.f32.mrb[66].mxu0 }
 0x447   : > { %v2851_v20 = vadd.f32 %v6981_v53, %v9244_v1  ;;  %v2842_v54 = vpop.f32.mrb[67].mxu0  ;;  %v2896_v40 = vmax.f32 %v2848_v42, 0.0 }
 0x448   : > { %v2843_v56 = vadd.f32 %v9244_v1, %v2842_v54  ;;  %v2894_v15 = vmax.f32 %v2840_v35, 0.0  ;;  %v3227_v54 = vpop.permute.xlu1 %3226 }
 0x449   : > { %v2897_v26 = vmax.f32 %v2851_v20, 0.0 }
 0x44a   : > { %v2895_v47 = vmax.f32 %v2843_v56, 0.0 }
 0x44b   : > { %v2915_v33 = vpack.c.bf16 %v2897_v26, %v2896_v40  ;;  %v3229_v26 = vpop.permute.xlu0 %3228 }
 0x44c   : > { %v2914_v60 = vpack.c.bf16 %v2895_v47, %v2894_v15 }
 0x44e   : > { %7014 = vmatprep.mubr.msk.bf16.mxu1 %vm2316_vm0, %v2914_v60 }
 0x44f   : > { %7015 = vmatmul.mubr.msk.bf16.gmra.mrb[80].mxu1 %vm2316_vm0, %v2915_v33 }
 0x463   : > { %v6984_v30 = vpop.f32.mrb[68].mxu0 }
 0x464   : > { %v2864_v59 = vadd.f32 %v6984_v30, %v9244_v1  ;;  %v2855_v19 = vpop.f32.mrb[69].mxu0 }
 0x465   : > { %v2856_v3 = vadd.f32 %v9244_v1, %v2855_v19  ;;  %v6985_v41 = vpop.f32.mrb[70].mxu0 }
 0x466   : > { %v2867_v62 = vadd.f32 %v6985_v41, %v9244_v1  ;;  %v2858_v63 = vpop.f32.mrb[71].mxu0  ;;  %v2900_v31 = vmax.f32 %v2864_v59, 0.0 }
 0x467   : > { %v2859_v25 = vadd.f32 %v9244_v1, %v2858_v63  ;;  %v2898_v58 = vmax.f32 %v2856_v3, 0.0 }
 0x468   : > { %v2901_v51 = vmax.f32 %v2867_v62, 0.0 }
 0x469   : > { %v2899_v10 = vmax.f32 %v2859_v25, 0.0 }
 0x46a   : > { %v2917_v48 = vpack.c.bf16 %v2901_v51, %v2900_v31  ;;  %v3231_v31 = vpop.permute.xlu1 %3230  ;;  %v3233_v51 = vpop.permute.xlu0 %3232 }
 0x46b   : > { %v2916_v12 = vpack.c.bf16 %v2899_v10, %v2898_v58 }
 0x46d   : > { %7018 = vmatprep.mubr.msk.bf16.mxu1 %vm2316_vm0, %v2916_v12 }
 0x46e   : > { %7019 = vmatmul.mubr.msk.bf16.gmra.mrb[84].mxu1 %vm2316_vm0, %v2917_v48 }
 0x483   : > { %v6992_v1 = vpop.f32.mrb[56].mxu1 }
 0x484   : > { %v3032_v37 = vadd.f32 %v6992_v1, %v9407_v49  ;;  %v3023_v27 = vpop.f32.mrb[57].mxu1 }
 0x485   : > { %v3024_v13 = vadd.f32 %v9407_v49, %v3023_v27  ;;  %v6993_v0 = vpop.f32.mrb[58].mxu1 }
 0x486   : > { %v3152_v22 = vadd.f32 %v3032_v37, %v8729_v52  ;;  %v3035_v23 = vadd.f32 %v6993_v0, %v9407_v49  ;;  %v3026_v44 = vpop.f32.mrb[59].mxu1 }
 0x487   : > { %v3150_v24 = vadd.f32 %v3024_v13, %v8669_v5  ;;  %v3027_v32 = vadd.f32 %v9407_v49, %v3026_v44 }
 0x488   : > { %v3153_v39 = vadd.f32 %v3035_v23, %v8750_v28  ;;  %v9419_v42 = vadd.f32 %v3219_v50, %v3152_v22  ;;  %v10891_v23 = vld [vmem:[#allocation15_spill] sm:$0xff] }
 0x489   : > { %v9416_v57 = vadd.f32 %v3215_v45, %v3150_v24  ;;  %v3151_v2 = vadd.f32 %v3027_v32, %v8689_v14  ;;  %v3237_v24 = vpop.permute.xlu0 %3236 }
 0x48a   : > { %v9421_v21 = vadd.f32 %v3221_v61, %v3153_v39  ;;  %v3344_v15 = vmax.f32 %v9419_v42, 0.0 }
 0x48b   : > { %v9423_v52 = vadd.f32 %v3217_v34, %v3151_v2  ;;  %v6996_v35 = vpop.f32.mrb[60].mxu1  ;;  %v3342_v56 = vmax.f32 %v9416_v57, 0.0 }
 0x48c   : > { %v3345_v53 = vmax.f32 %v9421_v21, 0.0  ;;  %v3048_v5 = vadd.f32 %v6996_v35, %v9407_v49  ;;  %v3039_v20 = vpop.f32.mrb[61].mxu1 }
 0x48d   : > { %v3343_v28 = vmax.f32 %v9423_v52, 0.0  ;;  %v3040_v40 = vadd.f32 %v9407_v49, %v3039_v20  ;;  %v6997_v14 = vpop.f32.mrb[62].mxu1 }
 0x48e   : > { %v3156_v47 = vadd.f32 %v3048_v5, %v8784_v38  ;;  %v3051_v33 = vadd.f32 %v6997_v14, %v9407_v49  ;;  %v3042_v60 = vpop.f32.mrb[63].mxu1  ;;  %v3375_v3 = vpack.c.bf16 %v3345_v53, %v3344_v15  ;;  %v3241_v15 = vpop.permute.xlu0 %3240 }
 0x48f   : > { %v3154_v30 = vadd.f32 %v3040_v40, %v8740_v55  ;;  %v3043_v59 = vadd.f32 %v9407_v49, %v3042_v60  ;;  %v3374_v19 = vpack.c.bf16 %v3343_v28, %v3342_v56  ;;  %v10893_v60 = vld [vmem:[#allocation27_spill] sm:$0xff] }
 0x490   : > { %v3157_v41 = vadd.f32 %v3051_v33, %v8769_v4  ;;  %v9440_v25 = vadd.f32 %v3227_v54, %v3156_v47 }
 0x491   : > { %v9436_v62 = vadd.f32 %v3223_v9, %v3154_v30  ;;  %v3155_v63 = vadd.f32 %v3043_v59, %v8726_v7  ;;  %7026 = vmatprep.mubr.msk.bf16.mxu0 %vm2316_vm0, %v3374_v19  ;;  %v3235_v9 = vpop.permute.xlu1 %3234 }
 0x492   : > { %v9442_v38 = vadd.f32 %v3229_v26, %v3157_v41  ;;  %7027 = vmatmul.mubr.msk.bf16.vlgmr.msra.gmra.mrb[72].mxu0 %vm2316_vm0, %v3375_v3  ;;  %v3348_v34 = vmax.f32 %v9440_v25, 0.0  ;;  %v10894_v3 = vld [vmem:[#allocation25_spill] sm:$0xff] }
 0x493   : > { %v9445_v55 = vadd.f32 %v3225_v43, %v3155_v63  ;;  %v3346_v4 = vmax.f32 %v9436_v62, 0.0  ;;  %v10892_v43 = vld [vmem:[#allocation22_spill] sm:$0xff] }
 0x494   : > { %v3349_v58 = vmax.f32 %v9442_v38, 0.0  ;;  %v7000_v10 = vpop.f32.mrb[64].mxu1 }
 0x495   : > { %v3347_v48 = vmax.f32 %v9445_v55, 0.0  ;;  %v3064_v7 = vadd.f32 %v7000_v10, %v9407_v49  ;;  %v3055_v12 = vpop.f32.mrb[65].mxu1  ;;  %v3239_v40 = vpop.permute.xlu1 %3238 }
 0x496   : > { %v3056_v45 = vadd.f32 %v9407_v49, %v3055_v12  ;;  %v7001_v50 = vpop.f32.mrb[66].mxu1  ;;  %v3377_v22 = vpack.c.bf16 %v3349_v58, %v3348_v34  ;;  %v3245_v10 = vpop.permute.xlu0 %3244 }
 0x497   : > { %v3160_v61 = vadd.f32 %v3064_v7, %v8823_v36  ;;  %v3067_v1 = vadd.f32 %v7001_v50, %v9407_v49  ;;  %v3058_v37 = vpop.f32.mrb[67].mxu1  ;;  %v3376_v27 = vpack.c.bf16 %v3347_v48, %v3346_v4  ;;  %v10896_v48 = vld [vmem:[#allocation13_spill] sm:$0xff] }
 0x498   : > { %v3158_v13 = vadd.f32 %v3056_v45, %v8793_v16  ;;  %v3059_v0 = vadd.f32 %v9407_v49, %v3058_v37 }
 0x499   : > { %v3161_v44 = vadd.f32 %v3067_v1, %v10891_v23  ;;  %7030 = vmatprep.mubr.msk.bf16.mxu0 %vm2316_vm0, %v3376_v27  ;;  %v9463_v36 = vadd.f32 %v3235_v9, %v3160_v61  ;;  %v3243_v58 = vpop.permute.xlu1 %3242 }
 0x49a   : > { %v9459_v32 = vadd.f32 %v3231_v31, %v3158_v13  ;;  %v3159_v39 = vadd.f32 %v3059_v0, %v10892_v43  ;;  %7031 = vmatmul.mubr.msk.bf16.gmra.mrb[76].mxu0 %vm2316_vm0, %v3377_v22  ;;  %v10895_v31 = vld [vmem:[#allocation26_spill] sm:$0xff]  ;;  %v3249_v9 = vpop.permute.xlu0 %3248 }
 0x49b   : > { %v9465_v2 = vadd.f32 %v3237_v24, %v3161_v44  ;;  %v3352_v20 = vmax.f32 %v9463_v36, 0.0 }
 0x49c   : > { %v9467_v16 = vadd.f32 %v3233_v51, %v3159_v39  ;;  %v3350_v53 = vmax.f32 %v9459_v32, 0.0  ;;  %v10897_v39 = vld [vmem:[#allocation33_spill] sm:$0xff] }
 0x49d   : > { %v3353_v35 = vmax.f32 %v9465_v2, 0.0  ;;  %v3247_v22 = vpop.permute.xlu1 %3246 }
 0x49e   : > { %v3351_v5 = vmax.f32 %v9467_v16, 0.0 }
 0x49f   : > { %v3379_v56 = vpack.c.bf16 %v3353_v35, %v3352_v20  ;;  %v10898_v20 = vld [vmem:[#allocation14_spill] sm:$0xff] }
 0x4a0   : > { %v3378_v54 = vpack.c.bf16 %v3351_v5, %v3350_v53 }
 0x4a2   : > { %7034 = vmatprep.mubr.msk.bf16.mxu0 %vm2316_vm0, %v3378_v54 }
 0x4a3   : > { %7035 = vmatmul.mubr.msk.bf16.gmra.mrb[80].mxu0 %vm2316_vm0, %v3379_v56 }
 0x4b5   : > { %v7004_v28 = vpop.f32.mrb[68].mxu1 }
 0x4b6   : > { %v3080_v14 = vadd.f32 %v7004_v28, %v9407_v49  ;;  %v3071_v26 = vpop.f32.mrb[69].mxu1  ;;  %v10899_v28 = vld [vmem:[#allocation38_spill] sm:$0xff] }
 0x4b7   : > { %v3072_v47 = vadd.f32 %v9407_v49, %v3071_v26  ;;  %v7005_v33 = vpop.f32.mrb[70].mxu1  ;;  %v3253_v26 = vpop.permute.xlu0 %3252 }
 0x4b8   : > { %v3164_v30 = vadd.f32 %v3080_v14, %v10893_v60  ;;  %v3083_v59 = vadd.f32 %v7005_v33, %v9407_v49  ;;  %v3074_v19 = vpop.f32.mrb[71].mxu1  ;;  %v3251_v14 = vpop.permute.xlu1 %3250 }
 0x4b9   : > { %v3162_v41 = vadd.f32 %v3072_v47, %v10894_v3  ;;  %v3075_v63 = vadd.f32 %v9407_v49, %v3074_v19  ;;  %v10900_v47 = vld [vmem:[#allocation31_spill] sm:$0xff] }
 0x4ba   : > { %v3165_v51 = vadd.f32 %v3083_v59, %v10895_v31  ;;  %v9485_v12 = vadd.f32 %v3243_v58, %v3164_v30  ;;  %v7461_v58 = vld [vmem:[%s10617_s9 + $0x10] sm:$0xff]  }
 0x4bb   : > { %v9482_v4 = vadd.f32 %v3239_v40, %v3162_v41  ;;  %v3163_v7 = vadd.f32 %v3075_v63, %v10896_v48  ;;  %7058 = vmatprep.subr.bf16.mxu1 %v7461_v58 }
 0x4bc   : > { %v9487_v34 = vadd.f32 %v3245_v10, %v3165_v51  ;;  %v3356_v37 = vmax.f32 %v9485_v12, 0.0  ;;  %v7462_v10 = vld [vmem:[%s10617_s9 + $0x18] sm:$0xff]   ;;  %7059 = vmatpush3.bf16.msra.mxu1 %v7461_v58 }
 0x4bd   : > { %v9489_v45 = vadd.f32 %v3241_v15, %v3163_v7  ;;  %v3354_v61 = vmax.f32 %v9482_v4, 0.0  ;;  %7060 = vmatprep.subr.bf16.mxu1 %v7462_v10  ;;  %v3255_v7 = vpop.permute.xlu1 %3254 }
 0x4be   : > { %v3357_v50 = vmax.f32 %v9487_v34, 0.0 }
 0x4bf   : > { %v3355_v1 = vmax.f32 %v9489_v45, 0.0 }
 0x4c0   : > { %v3381_v13 = vpack.c.bf16 %v3357_v50, %v3356_v37  ;;  %7061 = vmatpush3.bf16.msra.mxu1 %v7462_v10 }
 0x4c1   : > { %v3380_v27 = vpack.c.bf16 %v3355_v1, %v3354_v61  ;;  %v3257_v1 = vpop.permute.xlu0 %3256 }
 0x4c3   : > { %7038 = vmatprep.mubr.msk.bf16.mxu0 %vm2316_vm0, %v3380_v27 }
 0x4c4   : > { %7039 = vmatmul.mubr.msk.bf16.gmra.mrb[84].mxu0 %vm2316_vm0, %v3381_v13  ;;  %v10901_v13 = vld [vmem:[#allocation28_spill] sm:$0xff] }
 0x4dc   : > { %v7008_v0 = vpop.f32.mrb[72].mxu1 }
 0x4dd   : > { %v3096_v23 = vadd.f32 %v7008_v0, %v9407_v49  ;;  %v3087_v44 = vpop.f32.mrb[73].mxu1 }
 0x4de   : > { %v3088_v24 = vadd.f32 %v9407_v49, %v3087_v44  ;;  %v7009_v43 = vpop.f32.mrb[74].mxu1  ;;  %v10902_v44 = vld [vmem:[#allocation36_spill] sm:$0xff] }
 0x4df   : > { %v3168_v35 = vadd.f32 %v3096_v23, %v10897_v39  ;;  %v3099_v53 = vadd.f32 %v7009_v43, %v9407_v49  ;;  %v3090_v5 = vpop.f32.mrb[75].mxu1  ;;  %v10903_v43 = vld [vmem:[#allocation44_spill] sm:$0xff] }
 0x4e0   : > { %v3166_v54 = vadd.f32 %v3088_v24, %v10898_v20  ;;  %v3091_v56 = vadd.f32 %v9407_v49, %v3090_v5  ;;  %v10904_v20 = vld [vmem:[#allocation37_spill] sm:$0xff] }
 0x4e1   : > { %v3169_v40 = vadd.f32 %v3099_v53, %v10899_v28  ;;  %v9507_v60 = vadd.f32 %v3251_v14, %v3168_v35  ;;  %v3259_v35 = vpop.permute.xlu1 %3258  ;;  %v3261_v53 = vpop.permute.xlu0 %3260 }
 0x4e2   : > { %v9504_v15 = vadd.f32 %v3247_v22, %v3166_v54  ;;  %v3167_v33 = vadd.f32 %v3091_v56, %v10900_v47 }
 0x4e3   : > { %v9509_v30 = vadd.f32 %v3253_v26, %v3169_v40  ;;  %v3360_v63 = vmax.f32 %v9507_v60, 0.0 }
 0x4e4   : > { %v9511_v59 = vadd.f32 %v3249_v9, %v3167_v33  ;;  %v3358_v3 = vmax.f32 %v9504_v15, 0.0 }
 0x4e5   : > { %v3361_v19 = vmax.f32 %v9509_v30, 0.0  ;;  %v3265_v58 = vpop.permute.xlu0 %3264 }
 0x4e6   : > { %v3359_v41 = vmax.f32 %v9511_v59, 0.0 }
 0x4e7   : > { %v3383_v51 = vpack.c.bf16 %v3361_v19, %v3360_v63  ;;  %v3263_v63 = vpop.permute.xlu1 %3262 }
 0x4e8   : > { %v3382_v31 = vpack.c.bf16 %v3359_v41, %v3358_v3 }
 0x4ea   : > { %7042 = vmatprep.mubr.msk.bf16.mxu0 %vm2316_vm0, %v3382_v31 }
 0x4eb   : > { %7043 = vmatmul.mubr.msk.bf16.gmra.mrb[88].mxu0 %vm2316_vm0, %v3383_v51 }
 0x4fb   : > { %v7012_v48 = vpop.f32.mrb[76].mxu1 }
 0x4fc   : > { %v3112_v50 = vadd.f32 %v7012_v48, %v9407_v49  ;;  %v3103_v61 = vpop.f32.mrb[77].mxu1 }
 0x4fd   : > { %v3104_v37 = vadd.f32 %v9407_v49, %v3103_v61  ;;  %v7013_v27 = vpop.f32.mrb[78].mxu1 }
 0x4fe   : > { %v3172_v0 = vadd.f32 %v3112_v50, %v10901_v13  ;;  %v3115_v22 = vadd.f32 %v7013_v27, %v9407_v49  ;;  %v3106_v23 = vpop.f32.mrb[79].mxu1 }
 0x4ff   : > { %v3170_v9 = vadd.f32 %v3104_v37, %v10902_v44  ;;  %v3107_v24 = vadd.f32 %v9407_v49, %v3106_v23  ;;  %v10906_v37 = vld [vmem:[#allocation46_spill] sm:$0xff]  ;;  %v3267_v23 = vpop.permute.xlu1 %3266  ;;  %v3269_v44 = vpop.permute.xlu0 %3268 }
 0x500   : > { %v3173_v39 = vadd.f32 %v3115_v22, %v10903_v43  ;;  %v9535_v56 = vadd.f32 %v3259_v35, %v3172_v0  ;;  %v10907_v0 = vld [vmem:[#allocation50_spill] sm:$0xff] }
 0x501   : > { %v9532_v5 = vadd.f32 %v3255_v7, %v3170_v9  ;;  %v3171_v54 = vadd.f32 %v3107_v24, %v10904_v20  ;;  %v10905_v7 = vld [vmem:[#allocation42_spill] sm:$0xff]  ;;  %v10908_v24 = vld [vmem:[#allocation48_spill] sm:$0xff] }
 0x502   : > { %v9537_v28 = vadd.f32 %v3261_v53, %v3173_v39  ;;  %v3364_v33 = vmax.f32 %v9535_v56, 0.0 }
 0x503   : > { %v9539_v40 = vadd.f32 %v3257_v1, %v3171_v54  ;;  %v3362_v26 = vmax.f32 %v9532_v5, 0.0 }
 0x504   : > { %v3365_v14 = vmax.f32 %v9537_v28, 0.0 }
 0x505   : > { %v3363_v47 = vmax.f32 %v9539_v40, 0.0 }
 0x506   : > { %v3385_v3 = vpack.c.bf16 %v3365_v14, %v3364_v33 }
 0x507   : > { %v3384_v19 = vpack.c.bf16 %v3363_v47, %v3362_v26 }
 0x509   : > { %7046 = vmatprep.mubr.msk.bf16.mxu0 %vm2316_vm0, %v3384_v19 }
 0x50a   : > { %7047 = vmatmul.mubr.msk.bf16.gmra.mrb[92].mxu0 %vm2316_vm0, %v3385_v3  ;;  %v3271_v3 = vpop.permute.xlu1 %3270 }
 0x522   : > { %v7016_v41 = vpop.f32.mrb[80].mxu1 }
 0x523   : > { %v3128_v31 = vadd.f32 %v7016_v41, %v9407_v49  ;;  %v3119_v51 = vpop.f32.mrb[81].mxu1 }
 0x524   : > { %v3120_v10 = vadd.f32 %v9407_v49, %v3119_v51  ;;  %v7017_v48 = vpop.f32.mrb[82].mxu1 }
 0x525   : > { %v3176_v50 = vadd.f32 %v3128_v31, %v10905_v7  ;;  %v3131_v61 = vadd.f32 %v7017_v48, %v9407_v49  ;;  %v3122_v1 = vpop.f32.mrb[83].mxu1  ;;  %v3273_v31 = vpop.permute.xlu0 %3272 }
 0x526   : > { %v3174_v27 = vadd.f32 %v3120_v10, %v10906_v37  ;;  %v3123_v13 = vadd.f32 %v9407_v49, %v3122_v1  ;;  %v3275_v37 = vpop.permute.xlu1 %3274 }
 0x527   : > { %v3177_v22 = vadd.f32 %v3131_v61, %v10907_v0  ;;  %v9557_v39 = vadd.f32 %v3267_v23, %v3176_v50 }
 0x528   : > { %v9554_v9 = vadd.f32 %v3263_v63, %v3174_v27  ;;  %v3175_v43 = vadd.f32 %v3123_v13, %v10908_v24 }
 0x529   : > { %v9559_v35 = vadd.f32 %v3269_v44, %v3177_v22  ;;  %v3368_v26 = vmax.f32 %v9557_v39, 0.0  ;;  %v3277_v27 = vpop.permute.xlu0 %3276 }
 0x52a   : > { %v9561_v53 = vadd.f32 %v3265_v58, %v3175_v43  ;;  %v3366_v54 = vmax.f32 %v9554_v9, 0.0 }
 0x52b   : > { %v3369_v20 = vmax.f32 %v9559_v35, 0.0 }
 0x52c   : > { %v3367_v14 = vmax.f32 %v9561_v53, 0.0 }
 0x52d   : > { %v3387_v33 = vpack.c.bf16 %v3369_v20, %v3368_v26 }
 0x52e   : > { %v3386_v47 = vpack.c.bf16 %v3367_v14, %v3366_v54 }
 0x530   : > { %7050 = vmatprep.mubr.msk.bf16.mxu0 %vm2316_vm0, %v3386_v47 }
 0x531   : > { %7051 = vmatmul.mubr.msk.bf16.gmra.mrb[96].mxu0 %vm2316_vm0, %v3387_v33 }
 0x541   : > { %v7020_v19 = vpop.f32.mrb[84].mxu1 }
 0x542   : > { %v3144_v41 = vadd.f32 %v7020_v19, %v9407_v49  ;;  %v3135_v63 = vpop.f32.mrb[85].mxu1 }
 0x543   : > { %v3136_v51 = vadd.f32 %v9407_v49, %v3135_v63  ;;  %v7021_v58 = vpop.f32.mrb[86].mxu1 }
 0x544   : > { %v3180_v10 = vadd.f32 %v3144_v41, %v9199_v17  ;;  %v3147_v48 = vadd.f32 %v7021_v58, %v9407_v49  ;;  %v3138_v7 = vpop.f32.mrb[87].mxu1 }
 0x545   : > { %v3178_v50 = vadd.f32 %v3136_v51, %v9175_v29  ;;  %v3139_v61 = vadd.f32 %v9407_v49, %v3138_v7 }
 0x546   : > { %v3181_v1 = vadd.f32 %v3147_v48, %v9210_v11  ;;  %v9579_v22 = vadd.f32 %v3275_v37, %v3180_v10 }
 0x547   : > { %v9576_v13 = vadd.f32 %v3271_v3, %v3178_v50  ;;  %v3179_v0 = vadd.f32 %v3139_v61, %v9185_v46  ;;  %v9594_v46 = vld [vmem:[%s10616_s8 + $0x1] ss:$0 sm:$0xff] }
 0x548   : > { %v9581_v23 = vadd.f32 %v3277_v27, %v3181_v1  ;;  %v3372_v11 = vmax.f32 %v9579_v22, 0.0 }
 0x549   : > { %v9583_v17 = vadd.f32 %v3273_v31, %v3179_v0  ;;  %v3370_v29 = vmax.f32 %v9576_v13, 0.0 }
 0x54a   : > { %v3373_v44 = vmax.f32 %v9581_v23, 0.0 }
 0x54b   : > { %v3371_v49 = vmax.f32 %v9583_v17, 0.0 }
 0x54c   : > { %v3389_v43 = vpack.c.bf16 %v3373_v44, %v3372_v11 }
 0x54d   : > { %v3388_v24 = vpack.c.bf16 %v3371_v49, %v3370_v29 }
 0x54f   : > { %7054 = vmatprep.mubr.msk.bf16.mxu0 %vm2316_vm0, %v3388_v24 }
 0x550   : > { %7055 = vmatmul.mubr.msk.bf16.gmra.mrb[100].mxu0 %vm2316_vm0, %v3389_v43 }
 0x565   : > { %v7028_v20 = vpop.f32.mrb[72].mxu0 }
 0x566   : > { %v3506_v54 = vadd.f32 %v7028_v20, %v9594_v46  ;;  %v3497_v14 = vpop.f32.mrb[73].mxu0 }
 0x567   : > { %v3498_v26 = vadd.f32 %v9594_v46, %v3497_v14  ;;  %v7029_v47 = vpop.f32.mrb[74].mxu0 }
 0x568   : > { %v3509_v33 = vadd.f32 %v7029_v47, %v9594_v46  ;;  %v3500_v19 = vpop.f32.mrb[75].mxu0  ;;  %v3626_v41 = vmax.f32 %v3506_v54, 0.0 }
 0x569   : > { %v3501_v3 = vadd.f32 %v9594_v46, %v3500_v19  ;;  %v3624_v31 = vmax.f32 %v3498_v26, 0.0 }
 0x56a   : > { %v3627_v63 = vmax.f32 %v3509_v33, 0.0 }
 0x56b   : > { %v3625_v51 = vmax.f32 %v3501_v3, 0.0 }
 0x56c   : > { %v3657_v58 = vpack.c.bf16 %v3627_v63, %v3626_v41 }
 0x56d   : > { %v3656_v10 = vpack.c.bf16 %v3625_v51, %v3624_v31  ;;  %v7032_v48 = vpop.f32.mrb[76].mxu0 }
 0x56e   : > { %v3522_v7 = vadd.f32 %v7032_v48, %v9594_v46  ;;  %v3513_v50 = vpop.f32.mrb[77].mxu0 }
 0x56f   : > { %v3514_v61 = vadd.f32 %v9594_v46, %v3513_v50  ;;  %v7033_v1 = vpop.f32.mrb[78].mxu0  ;;  %7062 = vmatprep.mubr.msk.bf16.mxu1 %vm2316_vm0, %v3656_v10 }
 0x570   : > { %v3525_v37 = vadd.f32 %v7033_v1, %v9594_v46  ;;  %v3516_v27 = vpop.f32.mrb[79].mxu0  ;;  %7063 = vmatmul.mubr.msk.bf16.vlgmr.msra.gmra.mrb[88].mxu1 %vm2316_vm0, %v3657_v58  ;;  %v3630_v44 = vmax.f32 %v3522_v7, 0.0 }
 0x571   : > { %v3517_v0 = vadd.f32 %v9594_v46, %v3516_v27  ;;  %v3628_v49 = vmax.f32 %v3514_v61, 0.0 }
 0x572   : > { %v3631_v29 = vmax.f32 %v3525_v37, 0.0 }
 0x573   : > { %v3629_v11 = vmax.f32 %v3517_v0, 0.0 }
 0x574   : > { %v3659_v24 = vpack.c.bf16 %v3631_v29, %v3630_v44 }
 0x575   : > { %v3658_v43 = vpack.c.bf16 %v3629_v11, %v3628_v49 }
 0x576   : > { %v7036_v20 = vpop.f32.mrb[80].mxu0 }
 0x577   : > { %v3538_v54 = vadd.f32 %v7036_v20, %v9594_v46  ;;  %v3529_v14 = vpop.f32.mrb[81].mxu0  ;;  %7066 = vmatprep.mubr.msk.bf16.mxu1 %vm2316_vm0, %v3658_v43 }
 0x578   : > { %v3530_v26 = vadd.f32 %v9594_v46, %v3529_v14  ;;  %v7037_v47 = vpop.f32.mrb[82].mxu0  ;;  %7067 = vmatmul.mubr.msk.bf16.gmra.mrb[92].mxu1 %vm2316_vm0, %v3659_v24 }
 0x579   : > { %v3541_v33 = vadd.f32 %v7037_v47, %v9594_v46  ;;  %v3532_v19 = vpop.f32.mrb[83].mxu0  ;;  %v3634_v41 = vmax.f32 %v3538_v54, 0.0 }
 0x57a   : > { %v3533_v3 = vadd.f32 %v9594_v46, %v3532_v19  ;;  %v3632_v31 = vmax.f32 %v3530_v26, 0.0 }
 0x57b   : > { %v3635_v63 = vmax.f32 %v3541_v33, 0.0 }
 0x57c   : > { %v3633_v51 = vmax.f32 %v3533_v3, 0.0 }
 0x57d   : > { %v3661_v58 = vpack.c.bf16 %v3635_v63, %v3634_v41 }
 0x57e   : > { %v3660_v10 = vpack.c.bf16 %v3633_v51, %v3632_v31 }
 0x580   : > { %7070 = vmatprep.mubr.msk.bf16.mxu1 %vm2316_vm0, %v3660_v10 }
 0x581   : > { %7071 = vmatmul.mubr.msk.bf16.gmra.mrb[96].mxu1 %vm2316_vm0, %v3661_v58 }
 0x597   : > { %v7040_v48 = vpop.f32.mrb[84].mxu0 }
 0x598   : > { %v3554_v7 = vadd.f32 %v7040_v48, %v9594_v46  ;;  %v3545_v50 = vpop.f32.mrb[85].mxu0  ;;  %v7463_v48 = vld [vmem:[%s10615_s7 + $0x20] sm:$0xff]  }
 0x599   : > { %v3546_v61 = vadd.f32 %v9594_v46, %v3545_v50  ;;  %v7041_v1 = vpop.f32.mrb[86].mxu0  ;;  %7094 = vmatprep.subr.bf16.mxu0 %v7463_v48 }
 0x59a   : > { %v3557_v37 = vadd.f32 %v7041_v1, %v9594_v46  ;;  %v3548_v27 = vpop.f32.mrb[87].mxu0  ;;  %v3638_v44 = vmax.f32 %v3554_v7, 0.0  ;;  %7095 = vmatpush3.bf16.msra.mxu0 %v7463_v48  ;;  %v7464_v7 = vld [vmem:[%s10615_s7 + $0x28] sm:$0xff]  }
 0x59b   : > { %v3549_v0 = vadd.f32 %v9594_v46, %v3548_v27  ;;  %v3636_v49 = vmax.f32 %v3546_v61, 0.0  ;;  %7096 = vmatprep.subr.bf16.mxu0 %v7464_v7 }
 0x59c   : > { %v3639_v29 = vmax.f32 %v3557_v37, 0.0 }
 0x59d   : > { %v3637_v11 = vmax.f32 %v3549_v0, 0.0 }
 0x59e   : > { %v3663_v24 = vpack.c.bf16 %v3639_v29, %v3638_v44  ;;  %7097 = vmatpush3.bf16.msra.mxu0 %v7464_v7 }
 0x59f   : > { %v3662_v43 = vpack.c.bf16 %v3637_v11, %v3636_v49 }
 0x5a1   : > { %7074 = vmatprep.mubr.msk.bf16.mxu1 %vm2316_vm0, %v3662_v43 }
 0x5a2   : > { %7075 = vmatmul.mubr.msk.bf16.gmra.mrb[100].mxu1 %vm2316_vm0, %v3663_v24 }
 0x5be   : > { %v7044_v20 = vpop.f32.mrb[88].mxu0 }
 0x5bf   : > { %v3570_v54 = vadd.f32 %v7044_v20, %v9594_v46  ;;  %v3561_v14 = vpop.f32.mrb[89].mxu0 }
 0x5c0   : > { %v3562_v26 = vadd.f32 %v9594_v46, %v3561_v14  ;;  %v7045_v47 = vpop.f32.mrb[90].mxu0 }
 0x5c1   : > { %v3573_v33 = vadd.f32 %v7045_v47, %v9594_v46  ;;  %v3564_v19 = vpop.f32.mrb[91].mxu0  ;;  %v3642_v41 = vmax.f32 %v3570_v54, 0.0 }
 0x5c2   : > { %v3565_v3 = vadd.f32 %v9594_v46, %v3564_v19  ;;  %v3640_v31 = vmax.f32 %v3562_v26, 0.0 }
 0x5c3   : > { %v3643_v63 = vmax.f32 %v3573_v33, 0.0 }
 0x5c4   : > { %v3641_v51 = vmax.f32 %v3565_v3, 0.0 }
 0x5c5   : > { %v3665_v58 = vpack.c.bf16 %v3643_v63, %v3642_v41 }
 0x5c6   : > { %v3664_v10 = vpack.c.bf16 %v3641_v51, %v3640_v31 }
 0x5c8   : > { %7078 = vmatprep.mubr.msk.bf16.mxu1 %vm2316_vm0, %v3664_v10 }
 0x5c9   : > { %7079 = vmatmul.mubr.msk.bf16.gmra.mrb[104].mxu1 %vm2316_vm0, %v3665_v58 }
 0x5dd   : > { %v7048_v50 = vpop.f32.mrb[92].mxu0 }
 0x5de   : > { %v3586_v61 = vadd.f32 %v7048_v50, %v9594_v46  ;;  %v3577_v1 = vpop.f32.mrb[93].mxu0 }
 0x5df   : > { %v3578_v37 = vadd.f32 %v9594_v46, %v3577_v1  ;;  %v7049_v27 = vpop.f32.mrb[94].mxu0 }
 0x5e0   : > { %v3589_v0 = vadd.f32 %v7049_v27, %v9594_v46  ;;  %v3580_v44 = vpop.f32.mrb[95].mxu0  ;;  %v3646_v49 = vmax.f32 %v3586_v61, 0.0 }
 0x5e1   : > { %v3581_v29 = vadd.f32 %v9594_v46, %v3580_v44  ;;  %v3644_v24 = vmax.f32 %v3578_v37, 0.0 }
 0x5e2   : > { %v3647_v11 = vmax.f32 %v3589_v0, 0.0 }
 0x5e3   : > { %v3645_v43 = vmax.f32 %v3581_v29, 0.0 }
 0x5e4   : > { %v3667_v20 = vpack.c.bf16 %v3647_v11, %v3646_v49 }
 0x5e5   : > { %v3666_v54 = vpack.c.bf16 %v3645_v43, %v3644_v24 }
 0x5e7   : > { %7082 = vmatprep.mubr.msk.bf16.mxu1 %vm2316_vm0, %v3666_v54 }
 0x5e8   : > { %7083 = vmatmul.mubr.msk.bf16.gmra.mrb[108].mxu1 %vm2316_vm0, %v3667_v20 }
 0x604   : > { %v7052_v14 = vpop.f32.mrb[96].mxu0 }
 0x605   : > { %v3602_v26 = vadd.f32 %v7052_v14, %v9594_v46  ;;  %v3593_v47 = vpop.f32.mrb[97].mxu0  ;;  %v3939_v14 = vpop.permute.xlu1 %3938 }
 0x606   : > { %v3594_v33 = vadd.f32 %v9594_v46, %v3593_v47  ;;  %v7053_v19 = vpop.f32.mrb[98].mxu0 }
 0x607   : > { %v3605_v3 = vadd.f32 %v7053_v19, %v9594_v46  ;;  %v3596_v41 = vpop.f32.mrb[99].mxu0  ;;  %v3650_v31 = vmax.f32 %v3602_v26, 0.0  ;;  %v3941_v26 = vpop.permute.xlu0 %3940 }
 0x608   : > { %v3597_v63 = vadd.f32 %v9594_v46, %v3596_v41  ;;  %v3648_v58 = vmax.f32 %v3594_v33, 0.0  ;;  %v9653_v33 = vld [vmem:[%s10618_s10 + $0x1] ss:$0 sm:$0xff] }
 0x609   : > { %v3651_v51 = vmax.f32 %v3605_v3, 0.0  ;;  %v3943_v47 = vpop.permute.xlu1 %3942 }
 0x60a   : > { %v3649_v10 = vmax.f32 %v3597_v63, 0.0 }
 0x60b   : > { %v3669_v48 = vpack.c.bf16 %v3651_v51, %v3650_v31  ;;  %v3945_v19 = vpop.permute.xlu0 %3944 }
 0x60c   : > { %v3668_v7 = vpack.c.bf16 %v3649_v10, %v3648_v58 }
 0x60e   : > { %7086 = vmatprep.mubr.msk.bf16.mxu1 %vm2316_vm0, %v3668_v7 }
 0x60f   : > { %7087 = vmatmul.mubr.msk.bf16.gmra.mrb[112].mxu1 %vm2316_vm0, %v3669_v48  ;;  %v3947_v48 = vpop.permute.xlu1 %3946 }
 0x623   : > { %v7056_v50 = vpop.f32.mrb[100].mxu0 }
 0x624   : > { %v3618_v61 = vadd.f32 %v7056_v50, %v9594_v46  ;;  %v3609_v1 = vpop.f32.mrb[101].mxu0 }
 0x625   : > { %v3610_v37 = vadd.f32 %v9594_v46, %v3609_v1  ;;  %v7057_v27 = vpop.f32.mrb[102].mxu0 }
 0x626   : > { %v3621_v0 = vadd.f32 %v7057_v27, %v9594_v46  ;;  %v3612_v44 = vpop.f32.mrb[103].mxu0  ;;  %v3654_v49 = vmax.f32 %v3618_v61, 0.0  ;;  %v3949_v61 = vpop.permute.xlu0 %3948 }
 0x627   : > { %v3613_v29 = vadd.f32 %v9594_v46, %v3612_v44  ;;  %v3652_v24 = vmax.f32 %v3610_v37, 0.0 }
 0x628   : > { %v3655_v11 = vmax.f32 %v3621_v0, 0.0 }
 0x629   : > { %v3653_v43 = vmax.f32 %v3613_v29, 0.0 }
 0x62a   : > { %v3671_v20 = vpack.c.bf16 %v3655_v11, %v3654_v49 }
 0x62b   : > { %v3670_v54 = vpack.c.bf16 %v3653_v43, %v3652_v24  ;;  %v3951_v24 = vpop.permute.xlu1 %3950 }
 0x62d   : > { %7090 = vmatprep.mubr.msk.bf16.mxu1 %vm2316_vm0, %v3670_v54  ;;  %v3953_v54 = vpop.permute.xlu0 %3952 }
 0x62e   : > { %7091 = vmatmul.mubr.msk.bf16.gmra.mrb[116].mxu1 %vm2316_vm0, %v3671_v20 }
 0x643   : > { %v7064_v46 = vpop.f32.mrb[88].mxu1 }
 0x644   : > { %v3788_v3 = vadd.f32 %v7064_v46, %v9653_v33  ;;  %v3779_v41 = vpop.f32.mrb[89].mxu1 }
 0x645   : > { %v3780_v63 = vadd.f32 %v9653_v33, %v3779_v41  ;;  %v7065_v31 = vpop.f32.mrb[90].mxu1 }
 0x646   : > { %v3908_v51 = vadd.f32 %v3788_v3, %v9419_v42  ;;  %v3791_v58 = vadd.f32 %v7065_v31, %v9653_v33  ;;  %v3782_v10 = vpop.f32.mrb[91].mxu1 }
 0x647   : > { %v3906_v7 = vadd.f32 %v3780_v63, %v9416_v57  ;;  %v3783_v50 = vadd.f32 %v9653_v33, %v3782_v10 }
 0x648   : > { %v3909_v1 = vadd.f32 %v3791_v58, %v9421_v21  ;;  %v9665_v0 = vadd.f32 %v3943_v47, %v3908_v51 }
 0x649   : > { %v9662_v37 = vadd.f32 %v3939_v14, %v3906_v7  ;;  %v3907_v27 = vadd.f32 %v3783_v50, %v9423_v52  ;;  %v3955_v7 = vpop.permute.xlu1 %3954  ;;  %v3957_v50 = vpop.permute.xlu0 %3956 }
 0x64a   : > { %v9667_v44 = vadd.f32 %v3945_v19, %v3909_v1  ;;  %v4068_v14 = vmax.f32 %v9665_v0, 0.0 }
 0x64b   : > { %v9669_v42 = vadd.f32 %v3941_v26, %v3907_v27  ;;  %v7068_v29 = vpop.f32.mrb[92].mxu1  ;;  %v4066_v43 = vmax.f32 %v9662_v37, 0.0 }
 0x64c   : > { %v4069_v49 = vmax.f32 %v9667_v44, 0.0  ;;  %v3804_v57 = vadd.f32 %v7068_v29, %v9653_v33  ;;  %v3795_v11 = vpop.f32.mrb[93].mxu1 }
 0x64d   : > { %v4067_v21 = vmax.f32 %v9669_v42, 0.0  ;;  %v3796_v20 = vadd.f32 %v9653_v33, %v3795_v11  ;;  %v7069_v52 = vpop.f32.mrb[94].mxu1 }
 0x64e   : > { %v3912_v26 = vadd.f32 %v3804_v57, %v9440_v25  ;;  %v3807_v47 = vadd.f32 %v7069_v52, %v9653_v33  ;;  %v3798_v19 = vpop.f32.mrb[95].mxu1  ;;  %v4099_v63 = vpack.c.bf16 %v4069_v49, %v4068_v14 }
 0x64f   : > { %v3910_v46 = vadd.f32 %v3796_v20, %v9436_v62  ;;  %v3799_v3 = vadd.f32 %v9653_v33, %v3798_v19  ;;  %v4098_v41 = vpack.c.bf16 %v4067_v21, %v4066_v43 }
 0x650   : > { %v3913_v31 = vadd.f32 %v3807_v47, %v9442_v38  ;;  %v9686_v10 = vadd.f32 %v3951_v24, %v3912_v26  ;;  %v3959_v26 = vpop.permute.xlu1 %3958  ;;  %v3961_v47 = vpop.permute.xlu0 %3960 }
 0x651   : > { %v9682_v51 = vadd.f32 %v3947_v48, %v3910_v46  ;;  %v3911_v58 = vadd.f32 %v3799_v3, %v9445_v55  ;;  %7098 = vmatprep.mubr.msk.bf16.mxu0 %vm2316_vm0, %v4098_v41 }
 0x652   : > { %v9688_v25 = vadd.f32 %v3953_v54, %v3913_v31  ;;  %7099 = vmatmul.mubr.msk.bf16.vlgmr.msra.gmra.mrb[104].mxu0 %vm2316_vm0, %v4099_v63  ;;  %v4072_v49 = vmax.f32 %v9686_v10, 0.0 }
 0x653   : > { %v9691_v62 = vadd.f32 %v3949_v61, %v3911_v58  ;;  %v4070_v38 = vmax.f32 %v9682_v51, 0.0 }
 0x654   : > { %v4073_v1 = vmax.f32 %v9688_v25, 0.0  ;;  %v7072_v27 = vpop.f32.mrb[96].mxu1 }
 0x655   : > { %v4071_v48 = vmax.f32 %v9691_v62, 0.0  ;;  %v3820_v55 = vadd.f32 %v7072_v27, %v9653_v33  ;;  %v3811_v29 = vpop.f32.mrb[97].mxu1 }
 0x656   : > { %v3812_v57 = vadd.f32 %v9653_v33, %v3811_v29  ;;  %v7073_v11 = vpop.f32.mrb[98].mxu1  ;;  %v4101_v54 = vpack.c.bf16 %v4073_v1, %v4072_v49  ;;  %v3965_v1 = vpop.permute.xlu0 %3964 }
 0x657   : > { %v3916_v24 = vadd.f32 %v3820_v55, %v9463_v36  ;;  %v3823_v61 = vadd.f32 %v7073_v11, %v9653_v33  ;;  %v3814_v43 = vpop.f32.mrb[99].mxu1  ;;  %v4100_v21 = vpack.c.bf16 %v4071_v48, %v4070_v38 }
 0x658   : > { %v3914_v20 = vadd.f32 %v3812_v57, %v9459_v32  ;;  %v3815_v52 = vadd.f32 %v9653_v33, %v3814_v43 }
 0x659   : > { %v3917_v14 = vadd.f32 %v3823_v61, %v9465_v2  ;;  %7102 = vmatprep.mubr.msk.bf16.mxu0 %vm2316_vm0, %v4100_v21  ;;  %v9709_v36 = vadd.f32 %v3959_v26, %v3916_v24 }
 0x65a   : > { %v9705_v19 = vadd.f32 %v3955_v7, %v3914_v20  ;;  %v3915_v46 = vadd.f32 %v3815_v52, %v9467_v16  ;;  %7103 = vmatmul.mubr.msk.bf16.gmra.mrb[108].mxu0 %vm2316_vm0, %v4101_v54  ;;  %v3963_v16 = vpop.permute.xlu1 %3962  ;;  %v3969_v21 = vpop.permute.xlu0 %3968 }
 0x65b   : > { %v9711_v3 = vadd.f32 %v3961_v47, %v3917_v14  ;;  %v4076_v31 = vmax.f32 %v9709_v36, 0.0 }
 0x65c   : > { %v9713_v32 = vadd.f32 %v3957_v50, %v3915_v46  ;;  %v4074_v2 = vmax.f32 %v9705_v19, 0.0 }
 0x65d   : > { %v4077_v41 = vmax.f32 %v9711_v3, 0.0 }
 0x65e   : > { %v4075_v63 = vmax.f32 %v9713_v32, 0.0  ;;  %v3967_v43 = vpop.permute.xlu1 %3966 }
 0x65f   : > { %v4103_v7 = vpack.c.bf16 %v4077_v41, %v4076_v31 }
 0x660   : > { %v4102_v58 = vpack.c.bf16 %v4075_v63, %v4074_v2  ;;  %v3973_v2 = vpop.permute.xlu0 %3972 }
 0x662   : > { %7106 = vmatprep.mubr.msk.bf16.mxu0 %vm2316_vm0, %v4102_v58 }
 0x663   : > { %7107 = vmatmul.mubr.msk.bf16.gmra.mrb[112].mxu0 %vm2316_vm0, %v4103_v7 }
 0x675   : > { %v7076_v27 = vpop.f32.mrb[100].mxu1 }
 0x676   : > { %v3836_v50 = vadd.f32 %v7076_v27, %v9653_v33  ;;  %v3827_v38 = vpop.f32.mrb[101].mxu1 }
 0x677   : > { %v3828_v48 = vadd.f32 %v9653_v33, %v3827_v38  ;;  %v7077_v55 = vpop.f32.mrb[102].mxu1 }
 0x678   : > { %v3920_v29 = vadd.f32 %v3836_v50, %v9485_v12  ;;  %v3839_v49 = vadd.f32 %v7077_v55, %v9653_v33  ;;  %v3830_v57 = vpop.f32.mrb[103].mxu1 }
 0x679   : > { %v3918_v11 = vadd.f32 %v3828_v48, %v9482_v4  ;;  %v3831_v24 = vadd.f32 %v9653_v33, %v3830_v57 }
 0x67a   : > { %v3921_v61 = vadd.f32 %v3839_v49, %v9487_v34  ;;  %v9731_v54 = vadd.f32 %v3967_v43, %v3920_v29  ;;  %v3977_v49 = vpop.permute.xlu0 %3976 }
 0x67b   : > { %v9728_v20 = vadd.f32 %v3963_v16, %v3918_v11  ;;  %v3919_v52 = vadd.f32 %v3831_v24, %v9489_v45  ;;  %v3971_v45 = vpop.permute.xlu1 %3970 }
 0x67c   : > { %v9733_v14 = vadd.f32 %v3969_v21, %v3921_v61  ;;  %v4080_v34 = vmax.f32 %v9731_v54, 0.0 }
 0x67d   : > { %v9735_v12 = vadd.f32 %v3965_v1, %v3919_v52  ;;  %v4078_v4 = vmax.f32 %v9728_v20, 0.0 }
 0x67e   : > { %v4081_v26 = vmax.f32 %v9733_v14, 0.0 }
 0x67f   : > { %v4079_v47 = vmax.f32 %v9735_v12, 0.0  ;;  %v3975_v29 = vpop.permute.xlu1 %3974 }
 0x680   : > { %v4105_v41 = vpack.c.bf16 %v4081_v26, %v4080_v34  ;;  %v3981_v34 = vpop.permute.xlu0 %3980 }
 0x681   : > { %v4104_v46 = vpack.c.bf16 %v4079_v47, %v4078_v4  ;;  %v7466_v4 = vld [vmem:[%s10617_s9 + $0x28] sm:$0xff]  }
 0x683   : > { %7110 = vmatprep.mubr.msk.bf16.mxu0 %vm2316_vm0, %v4104_v46  ;;  %v3979_v47 = vpop.permute.xlu1 %3978 }
 0x684   : > { %7111 = vmatmul.mubr.msk.bf16.gmra.mrb[116].mxu0 %vm2316_vm0, %v4105_v41 }
 0x69c   : > { %v7080_v63 = vpop.f32.mrb[104].mxu1 }
 0x69d   : > { %v3852_v31 = vadd.f32 %v7080_v63, %v9653_v33  ;;  %v3843_v58 = vpop.f32.mrb[105].mxu1 }
 0x69e   : > { %v3844_v7 = vadd.f32 %v9653_v33, %v3843_v58  ;;  %v7081_v16 = vpop.f32.mrb[106].mxu1 }
 0x69f   : > { %v3924_v1 = vadd.f32 %v3852_v31, %v9507_v60  ;;  %v3855_v27 = vadd.f32 %v7081_v16, %v9653_v33  ;;  %v3846_v50 = vpop.f32.mrb[107].mxu1 }
 0x6a0   : > { %v3922_v38 = vadd.f32 %v3844_v7, %v9504_v15  ;;  %v3847_v48 = vadd.f32 %v9653_v33, %v3846_v50  ;;  %v3983_v50 = vpop.permute.xlu1 %3982 }
 0x6a1   : > { %v3925_v55 = vadd.f32 %v3855_v27, %v9509_v30  ;;  %v9753_v24 = vadd.f32 %v3975_v29, %v3924_v1 }
 0x6a2   : > { %v9750_v57 = vadd.f32 %v3971_v45, %v3922_v38  ;;  %v3923_v11 = vadd.f32 %v3847_v48, %v9511_v59  ;;  %v7465_v59 = vld [vmem:[%s10617_s9 + $0x20] sm:$0xff]   ;;  %v3985_v38 = vpop.permute.xlu0 %3984 }
 0x6a3   : > { %v9755_v61 = vadd.f32 %v3977_v49, %v3925_v55  ;;  %v4084_v30 = vmax.f32 %v9753_v24, 0.0  ;;  %7130 = vmatprep.subr.bf16.mxu1 %v7465_v59 }
 0x6a4   : > { %v9757_v60 = vadd.f32 %v3973_v2, %v3923_v11  ;;  %v4082_v15 = vmax.f32 %v9750_v57, 0.0  ;;  %7131 = vmatpush3.bf16.msra.mxu1 %v7465_v59 }
 0x6a5   : > { %v4085_v43 = vmax.f32 %v9755_v61, 0.0  ;;  %7132 = vmatprep.subr.bf16.mxu1 %v7466_v4 }
 0x6a6   : > { %v4083_v21 = vmax.f32 %v9757_v60, 0.0 }
 0x6a7   : > { %v4107_v26 = vpack.c.bf16 %v4085_v43, %v4084_v30  ;;  %v3989_v30 = vpop.permute.xlu0 %3988 }
 0x6a8   : > { %v4106_v52 = vpack.c.bf16 %v4083_v21, %v4082_v15  ;;  %7133 = vmatpush3.bf16.msra.mxu1 %v7466_v4 }
 0x6aa   : > { %7114 = vmatprep.mubr.msk.bf16.mxu0 %vm2316_vm0, %v4106_v52 }
 0x6ab   : > { %7115 = vmatmul.mubr.msk.bf16.gmra.mrb[120].mxu0 %vm2316_vm0, %v4107_v26 }
 0x6bb   : > { %v7084_v46 = vpop.f32.mrb[108].mxu1 }
 0x6bc   : > { %v3868_v41 = vadd.f32 %v7084_v46, %v9653_v33  ;;  %v3859_v45 = vpop.f32.mrb[109].mxu1 }
 0x6bd   : > { %v3860_v2 = vadd.f32 %v9653_v33, %v3859_v45  ;;  %v7085_v63 = vpop.f32.mrb[110].mxu1 }
 0x6be   : > { %v3928_v31 = vadd.f32 %v3868_v41, %v9535_v56  ;;  %v3871_v58 = vadd.f32 %v7085_v63, %v9653_v33  ;;  %v3862_v7 = vpop.f32.mrb[111].mxu1 }
 0x6bf   : > { %v3926_v16 = vadd.f32 %v3860_v2, %v9532_v5  ;;  %v3863_v1 = vadd.f32 %v9653_v33, %v3862_v7 }
 0x6c0   : > { %v3929_v27 = vadd.f32 %v3871_v58, %v9537_v28  ;;  %v9781_v29 = vadd.f32 %v3983_v50, %v3928_v31  ;;  %v3993_v58 = vpop.permute.xlu0 %3992 }
 0x6c1   : > { %v9778_v48 = vadd.f32 %v3979_v47, %v3926_v16  ;;  %v3927_v55 = vadd.f32 %v3863_v1, %v9539_v40  ;;  %v3987_v40 = vpop.permute.xlu1 %3986 }
 0x6c2   : > { %v9783_v49 = vadd.f32 %v3985_v38, %v3929_v27  ;;  %v4088_v28 = vmax.f32 %v9781_v29, 0.0 }
 0x6c3   : > { %v9785_v56 = vadd.f32 %v3981_v34, %v3927_v55  ;;  %v4086_v5 = vmax.f32 %v9778_v48, 0.0 }
 0x6c4   : > { %v4089_v11 = vmax.f32 %v9783_v49, 0.0 }
 0x6c5   : > { %v4087_v43 = vmax.f32 %v9785_v56, 0.0  ;;  %v3991_v31 = vpop.permute.xlu1 %3990 }
 0x6c6   : > { %v4109_v21 = vpack.c.bf16 %v4089_v11, %v4088_v28 }
 0x6c7   : > { %v4108_v15 = vpack.c.bf16 %v4087_v43, %v4086_v5  ;;  %v3997_v5 = vpop.permute.xlu0 %3996 }
 0x6c9   : > { %7118 = vmatprep.mubr.msk.bf16.mxu0 %vm2316_vm0, %v4108_v15 }
 0x6ca   : > { %7119 = vmatmul.mubr.msk.bf16.gmra.mrb[124].mxu0 %vm2316_vm0, %v4109_v21 }
 0x6e2   : > { %v7088_v52 = vpop.f32.mrb[112].mxu1 }
 0x6e3   : > { %v3884_v26 = vadd.f32 %v7088_v52, %v9653_v33  ;;  %v3875_v59 = vpop.f32.mrb[113].mxu1 }
 0x6e4   : > { %v3876_v4 = vadd.f32 %v9653_v33, %v3875_v59  ;;  %v7089_v47 = vpop.f32.mrb[114].mxu1 }
 0x6e5   : > { %v3932_v34 = vadd.f32 %v3884_v26, %v9557_v39  ;;  %v3887_v46 = vadd.f32 %v7089_v47, %v9653_v33  ;;  %v3878_v41 = vpop.f32.mrb[115].mxu1 }
 0x6e6   : > { %v3930_v45 = vadd.f32 %v3876_v4, %v9554_v9  ;;  %v3879_v2 = vadd.f32 %v9653_v33, %v3878_v41 }
 0x6e7   : > { %v3933_v63 = vadd.f32 %v3887_v46, %v9559_v35  ;;  %v9803_v1 = vadd.f32 %v3991_v31, %v3932_v34  ;;  %v4001_v46 = vpop.permute.xlu0 %4000 }
 0x6e8   : > { %v9800_v7 = vadd.f32 %v3987_v40, %v3930_v45  ;;  %v3931_v16 = vadd.f32 %v3879_v2, %v9561_v53  ;;  %v3995_v53 = vpop.permute.xlu1 %3994 }
 0x6e9   : > { %v9805_v27 = vadd.f32 %v3993_v58, %v3933_v63  ;;  %v4092_v35 = vmax.f32 %v9803_v1, 0.0 }
 0x6ea   : > { %v9807_v39 = vadd.f32 %v3989_v30, %v3931_v16  ;;  %v4090_v9 = vmax.f32 %v9800_v7, 0.0 }
 0x6eb   : > { %v4093_v50 = vmax.f32 %v9805_v27, 0.0 }
 0x6ec   : > { %v4091_v38 = vmax.f32 %v9807_v39, 0.0  ;;  %v3999_v34 = vpop.permute.xlu1 %3998 }
 0x6ed   : > { %v4111_v11 = vpack.c.bf16 %v4093_v50, %v4092_v35 }
 0x6ee   : > { %v4110_v55 = vpack.c.bf16 %v4091_v38, %v4090_v9 }
 0x6f0   : > { %7122 = vmatprep.mubr.msk.bf16.mxu0 %vm2316_vm0, %v4110_v55 }
 0x6f1   : > { %7123 = vmatmul.mubr.msk.bf16.gmra.mrb[128].mxu0 %vm2316_vm0, %v4111_v11 }
 0x701   : > { %v7092_v43 = vpop.f32.mrb[116].mxu1 }
 0x702   : > { %v3900_v28 = vadd.f32 %v7092_v43, %v9653_v33  ;;  %v3891_v15 = vpop.f32.mrb[117].mxu1 }
 0x703   : > { %v3892_v21 = vadd.f32 %v9653_v33, %v3891_v15  ;;  %v7093_v40 = vpop.f32.mrb[118].mxu1 }
 0x704   : > { %v3936_v30 = vadd.f32 %v3900_v28, %v9579_v22  ;;  %v3903_v52 = vadd.f32 %v7093_v40, %v9653_v33  ;;  %v3894_v26 = vpop.f32.mrb[119].mxu1 }
 0x705   : > { %v3934_v59 = vadd.f32 %v3892_v21, %v9576_v13  ;;  %v3895_v4 = vadd.f32 %v9653_v33, %v3894_v26 }
 0x706   : > { %v3937_v47 = vadd.f32 %v3903_v52, %v9581_v23  ;;  %v9825_v2 = vadd.f32 %v3999_v34, %v3936_v30 }
 0x707   : > { %v9822_v41 = vadd.f32 %v3995_v53, %v3934_v59  ;;  %v3935_v45 = vadd.f32 %v3895_v4, %v9583_v17  ;;  %v9840_v17 = vld [vmem:[%s10616_s8 + $0x2] ss:$0 sm:$0xff] }
 0x708   : > { %v9827_v63 = vadd.f32 %v4001_v46, %v3937_v47  ;;  %v4096_v23 = vmax.f32 %v9825_v2, 0.0 }
 0x709   : > { %v9829_v22 = vadd.f32 %v3997_v5, %v3935_v45  ;;  %v4094_v13 = vmax.f32 %v9822_v41, 0.0 }
 0x70a   : > { %v4097_v31 = vmax.f32 %v9827_v63, 0.0 }
 0x70b   : > { %v4095_v33 = vmax.f32 %v9829_v22, 0.0 }
 0x70c   : > { %v4113_v16 = vpack.c.bf16 %v4097_v31, %v4096_v23 }
 0x70d   : > { %v4112_v58 = vpack.c.bf16 %v4095_v33, %v4094_v13 }
 0x70f   : > { %7126 = vmatprep.mubr.msk.bf16.mxu0 %vm2316_vm0, %v4112_v58 }
 0x710   : > { %7127 = vmatmul.mubr.msk.bf16.gmra.mrb[132].mxu0 %vm2316_vm0, %v4113_v16 }
 0x725   : > { %v7100_v50 = vpop.f32.mrb[104].mxu0 }
 0x726   : > { %v4230_v9 = vadd.f32 %v7100_v50, %v9840_v17  ;;  %v4221_v38 = vpop.f32.mrb[105].mxu0 }
 0x727   : > { %v4222_v35 = vadd.f32 %v9840_v17, %v4221_v38  ;;  %v7101_v55 = vpop.f32.mrb[106].mxu0 }
 0x728   : > { %v4233_v11 = vadd.f32 %v7101_v55, %v9840_v17  ;;  %v4224_v53 = vpop.f32.mrb[107].mxu0  ;;  %v4350_v43 = vmax.f32 %v4230_v9, 0.0 }
 0x729   : > { %v4225_v5 = vadd.f32 %v9840_v17, %v4224_v53  ;;  %v4348_v15 = vmax.f32 %v4222_v35, 0.0 }
 0x72a   : > { %v4351_v28 = vmax.f32 %v4233_v11, 0.0 }
 0x72b   : > { %v4349_v21 = vmax.f32 %v4225_v5, 0.0 }
 0x72c   : > { %v4381_v40 = vpack.c.bf16 %v4351_v28, %v4350_v43 }
 0x72d   : > { %v4380_v30 = vpack.c.bf16 %v4349_v21, %v4348_v15  ;;  %v7104_v52 = vpop.f32.mrb[108].mxu0 }
 0x72e   : > { %v4246_v26 = vadd.f32 %v7104_v52, %v9840_v17  ;;  %v4237_v59 = vpop.f32.mrb[109].mxu0 }
 0x72f   : > { %v4238_v4 = vadd.f32 %v9840_v17, %v4237_v59  ;;  %v7105_v47 = vpop.f32.mrb[110].mxu0  ;;  %7134 = vmatprep.mubr.msk.bf16.mxu1 %vm2316_vm0, %v4380_v30 }
 0x730   : > { %v4249_v34 = vadd.f32 %v7105_v47, %v9840_v17  ;;  %v4240_v46 = vpop.f32.mrb[111].mxu0  ;;  %7135 = vmatmul.mubr.msk.bf16.vlgmr.msra.gmra.mrb[120].mxu1 %vm2316_vm0, %v4381_v40  ;;  %v4354_v31 = vmax.f32 %v4246_v26, 0.0 }
 0x731   : > { %v4241_v45 = vadd.f32 %v9840_v17, %v4240_v46  ;;  %v4352_v33 = vmax.f32 %v4238_v4, 0.0 }
 0x732   : > { %v4355_v13 = vmax.f32 %v4249_v34, 0.0 }
 0x733   : > { %v4353_v23 = vmax.f32 %v4241_v45, 0.0 }
 0x734   : > { %v4383_v58 = vpack.c.bf16 %v4355_v13, %v4354_v31 }
 0x735   : > { %v4382_v16 = vpack.c.bf16 %v4353_v23, %v4352_v33 }
 0x736   : > { %v7108_v50 = vpop.f32.mrb[112].mxu0 }
 0x737   : > { %v4262_v9 = vadd.f32 %v7108_v50, %v9840_v17  ;;  %v4253_v38 = vpop.f32.mrb[113].mxu0  ;;  %7138 = vmatprep.mubr.msk.bf16.mxu1 %vm2316_vm0, %v4382_v16 }
 0x738   : > { %v4254_v35 = vadd.f32 %v9840_v17, %v4253_v38  ;;  %v7109_v55 = vpop.f32.mrb[114].mxu0  ;;  %7139 = vmatmul.mubr.msk.bf16.gmra.mrb[124].mxu1 %vm2316_vm0, %v4383_v58 }
 0x739   : > { %v4265_v11 = vadd.f32 %v7109_v55, %v9840_v17  ;;  %v4256_v53 = vpop.f32.mrb[115].mxu0  ;;  %v4358_v43 = vmax.f32 %v4262_v9, 0.0 }
 0x73a   : > { %v4257_v5 = vadd.f32 %v9840_v17, %v4256_v53  ;;  %v4356_v15 = vmax.f32 %v4254_v35, 0.0 }
 0x73b   : > { %v4359_v28 = vmax.f32 %v4265_v11, 0.0 }
 0x73c   : > { %v4357_v21 = vmax.f32 %v4257_v5, 0.0 }
 0x73d   : > { %v4385_v40 = vpack.c.bf16 %v4359_v28, %v4358_v43 }
 0x73e   : > { %v4384_v30 = vpack.c.bf16 %v4357_v21, %v4356_v15 }
 0x740   : > { %7142 = vmatprep.mubr.msk.bf16.mxu1 %vm2316_vm0, %v4384_v30 }
 0x741   : > { %7143 = vmatmul.mubr.msk.bf16.gmra.mrb[128].mxu1 %vm2316_vm0, %v4385_v40 }
 0x757   : > { %v7112_v52 = vpop.f32.mrb[116].mxu0 }
 0x758   : > { %v4278_v26 = vadd.f32 %v7112_v52, %v9840_v17  ;;  %v4269_v59 = vpop.f32.mrb[117].mxu0  ;;  %v7467_v52 = vld [vmem:[%s10615_s7 + $0x30] sm:$0xff]  }
 0x759   : > { %v4270_v4 = vadd.f32 %v9840_v17, %v4269_v59  ;;  %v7113_v47 = vpop.f32.mrb[118].mxu0  ;;  %7166 = vmatprep.subr.bf16.mxu0 %v7467_v52 }
 0x75a   : > { %v4281_v34 = vadd.f32 %v7113_v47, %v9840_v17  ;;  %v4272_v46 = vpop.f32.mrb[119].mxu0  ;;  %v4362_v31 = vmax.f32 %v4278_v26, 0.0  ;;  %7167 = vmatpush3.bf16.msra.mxu0 %v7467_v52  ;;  %v7468_v26 = vld [vmem:[%s10615_s7 + $0x38] sm:$0xff]  }
 0x75b   : > { %v4273_v45 = vadd.f32 %v9840_v17, %v4272_v46  ;;  %v4360_v33 = vmax.f32 %v4270_v4, 0.0  ;;  %7168 = vmatprep.subr.bf16.mxu0 %v7468_v26 }
 0x75c   : > { %v4363_v13 = vmax.f32 %v4281_v34, 0.0 }
 0x75d   : > { %v4361_v23 = vmax.f32 %v4273_v45, 0.0 }
 0x75e   : > { %v4387_v58 = vpack.c.bf16 %v4363_v13, %v4362_v31  ;;  %7169 = vmatpush3.bf16.msra.mxu0 %v7468_v26 }
 0x75f   : > { %v4386_v16 = vpack.c.bf16 %v4361_v23, %v4360_v33 }
 0x761   : > { %7146 = vmatprep.mubr.msk.bf16.mxu1 %vm2316_vm0, %v4386_v16 }
 0x762   : > { %7147 = vmatmul.mubr.msk.bf16.gmra.mrb[132].mxu1 %vm2316_vm0, %v4387_v58 }
 0x77e   : > { %v7116_v50 = vpop.f32.mrb[120].mxu0 }
 0x77f   : > { %v4294_v9 = vadd.f32 %v7116_v50, %v9840_v17  ;;  %v4285_v38 = vpop.f32.mrb[121].mxu0 }
 0x780   : > { %v4286_v35 = vadd.f32 %v9840_v17, %v4285_v38  ;;  %v7117_v55 = vpop.f32.mrb[122].mxu0 }
 0x781   : > { %v4297_v11 = vadd.f32 %v7117_v55, %v9840_v17  ;;  %v4288_v53 = vpop.f32.mrb[123].mxu0  ;;  %v4366_v43 = vmax.f32 %v4294_v9, 0.0 }
 0x782   : > { %v4289_v5 = vadd.f32 %v9840_v17, %v4288_v53  ;;  %v4364_v15 = vmax.f32 %v4286_v35, 0.0 }
 0x783   : > { %v4367_v28 = vmax.f32 %v4297_v11, 0.0 }
 0x784   : > { %v4365_v21 = vmax.f32 %v4289_v5, 0.0 }
 0x785   : > { %v4389_v40 = vpack.c.bf16 %v4367_v28, %v4366_v43 }
 0x786   : > { %v4388_v30 = vpack.c.bf16 %v4365_v21, %v4364_v15 }
 0x788   : > { %7150 = vmatprep.mubr.msk.bf16.mxu1 %vm2316_vm0, %v4388_v30 }
 0x789   : > { %7151 = vmatmul.mubr.msk.bf16.gmra.mrb[136].mxu1 %vm2316_vm0, %v4389_v40 }
 0x79d   : > { %v7120_v59 = vpop.f32.mrb[124].mxu0 }
 0x79e   : > { %v4310_v4 = vadd.f32 %v7120_v59, %v9840_v17  ;;  %v4301_v47 = vpop.f32.mrb[125].mxu0 }
 0x79f   : > { %v4302_v34 = vadd.f32 %v9840_v17, %v4301_v47  ;;  %v7121_v46 = vpop.f32.mrb[126].mxu0 }
 0x7a0   : > { %v4313_v45 = vadd.f32 %v7121_v46, %v9840_v17  ;;  %v4304_v31 = vpop.f32.mrb[127].mxu0  ;;  %v4370_v33 = vmax.f32 %v4310_v4, 0.0 }
 0x7a1   : > { %v4305_v13 = vadd.f32 %v9840_v17, %v4304_v31  ;;  %v4368_v58 = vmax.f32 %v4302_v34, 0.0 }
 0x7a2   : > { %v4371_v23 = vmax.f32 %v4313_v45, 0.0 }
 0x7a3   : > { %v4369_v16 = vmax.f32 %v4305_v13, 0.0 }
 0x7a4   : > { %v4391_v50 = vpack.c.bf16 %v4371_v23, %v4370_v33 }
 0x7a5   : > { %v4390_v9 = vpack.c.bf16 %v4369_v16, %v4368_v58 }
 0x7a7   : > { %7154 = vmatprep.mubr.msk.bf16.mxu1 %vm2316_vm0, %v4390_v9 }
 0x7a8   : > { %7155 = vmatmul.mubr.msk.bf16.gmra.mrb[140].mxu1 %vm2316_vm0, %v4391_v50 }
 0x7c4   : > { %v7124_v38 = vpop.f32.mrb[128].mxu0 }
 0x7c5   : > { %v4326_v35 = vadd.f32 %v7124_v38, %v9840_v17  ;;  %v4317_v55 = vpop.f32.mrb[129].mxu0  ;;  %v4663_v38 = vpop.permute.xlu1 %4662 }
 0x7c6   : > { %v4318_v11 = vadd.f32 %v9840_v17, %v4317_v55  ;;  %v7125_v53 = vpop.f32.mrb[130].mxu0 }
 0x7c7   : > { %v4329_v5 = vadd.f32 %v7125_v53, %v9840_v17  ;;  %v4320_v43 = vpop.f32.mrb[131].mxu0  ;;  %v4374_v15 = vmax.f32 %v4326_v35, 0.0  ;;  %v4665_v35 = vpop.permute.xlu0 %4664 }
 0x7c8   : > { %v4321_v28 = vadd.f32 %v9840_v17, %v4320_v43  ;;  %v4372_v40 = vmax.f32 %v4318_v11, 0.0  ;;  %v9899_v11 = vld [vmem:[%s10618_s10 + $0x2] ss:$0 sm:$0xff] }
 0x7c9   : > { %v4375_v21 = vmax.f32 %v4329_v5, 0.0  ;;  %v4667_v55 = vpop.permute.xlu1 %4666 }
 0x7ca   : > { %v4373_v30 = vmax.f32 %v4321_v28, 0.0 }
 0x7cb   : > { %v4393_v52 = vpack.c.bf16 %v4375_v21, %v4374_v15  ;;  %v4669_v53 = vpop.permute.xlu0 %4668 }
 0x7cc   : > { %v4392_v26 = vpack.c.bf16 %v4373_v30, %v4372_v40 }
 0x7ce   : > { %7158 = vmatprep.mubr.msk.bf16.mxu1 %vm2316_vm0, %v4392_v26 }
 0x7cf   : > { %7159 = vmatmul.mubr.msk.bf16.gmra.mrb[144].mxu1 %vm2316_vm0, %v4393_v52  ;;  %v4671_v52 = vpop.permute.xlu1 %4670 }
 0x7e3   : > { %v7128_v59 = vpop.f32.mrb[132].mxu0 }
 0x7e4   : > { %v4342_v4 = vadd.f32 %v7128_v59, %v9840_v17  ;;  %v4333_v47 = vpop.f32.mrb[133].mxu0 }
 0x7e5   : > { %v4334_v34 = vadd.f32 %v9840_v17, %v4333_v47  ;;  %v7129_v46 = vpop.f32.mrb[134].mxu0 }
 0x7e6   : > { %v4345_v45 = vadd.f32 %v7129_v46, %v9840_v17  ;;  %v4336_v31 = vpop.f32.mrb[135].mxu0  ;;  %v4378_v33 = vmax.f32 %v4342_v4, 0.0  ;;  %v4673_v4 = vpop.permute.xlu0 %4672 }
 0x7e7   : > { %v4337_v13 = vadd.f32 %v9840_v17, %v4336_v31  ;;  %v4376_v58 = vmax.f32 %v4334_v34, 0.0 }
 0x7e8   : > { %v4379_v23 = vmax.f32 %v4345_v45, 0.0 }
 0x7e9   : > { %v4377_v16 = vmax.f32 %v4337_v13, 0.0 }
 0x7ea   : > { %v4395_v50 = vpack.c.bf16 %v4379_v23, %v4378_v33 }
 0x7eb   : > { %v4394_v9 = vpack.c.bf16 %v4377_v16, %v4376_v58  ;;  %v4675_v58 = vpop.permute.xlu1 %4674 }
 0x7ed   : > { %7162 = vmatprep.mubr.msk.bf16.mxu1 %vm2316_vm0, %v4394_v9  ;;  %v4677_v9 = vpop.permute.xlu0 %4676 }
 0x7ee   : > { %7163 = vmatmul.mubr.msk.bf16.gmra.mrb[148].mxu1 %vm2316_vm0, %v4395_v50 }
 0x803   : > { %v7136_v17 = vpop.f32.mrb[120].mxu1 }
 0x804   : > { %v4512_v5 = vadd.f32 %v7136_v17, %v9899_v11  ;;  %v4503_v43 = vpop.f32.mrb[121].mxu1 }
 0x805   : > { %v4504_v28 = vadd.f32 %v9899_v11, %v4503_v43  ;;  %v7137_v15 = vpop.f32.mrb[122].mxu1 }
 0x806   : > { %v4632_v21 = vadd.f32 %v4512_v5, %v9665_v0  ;;  %v4515_v40 = vadd.f32 %v7137_v15, %v9899_v11  ;;  %v4506_v30 = vpop.f32.mrb[123].mxu1 }
 0x807   : > { %v4630_v26 = vadd.f32 %v4504_v28, %v9662_v37  ;;  %v4507_v59 = vadd.f32 %v9899_v11, %v4506_v30 }
 0x808   : > { %v4633_v47 = vadd.f32 %v4515_v40, %v9667_v44  ;;  %v9911_v45 = vadd.f32 %v4667_v55, %v4632_v21 }
 0x809   : > { %v9908_v34 = vadd.f32 %v4663_v38, %v4630_v26  ;;  %v4631_v46 = vadd.f32 %v4507_v59, %v9669_v42  ;;  %v4679_v26 = vpop.permute.xlu1 %4678  ;;  %v4681_v59 = vpop.permute.xlu0 %4680 }
 0x80a   : > { %v9913_v31 = vadd.f32 %v4669_v53, %v4633_v47  ;;  %v4792_v38 = vmax.f32 %v9911_v45, 0.0 }
 0x80b   : > { %v9915_v0 = vadd.f32 %v4665_v35, %v4631_v46  ;;  %v7140_v13 = vpop.f32.mrb[124].mxu1  ;;  %v4790_v16 = vmax.f32 %v9908_v34, 0.0 }
 0x80c   : > { %v4793_v33 = vmax.f32 %v9913_v31, 0.0  ;;  %v4528_v37 = vadd.f32 %v7140_v13, %v9899_v11  ;;  %v4519_v23 = vpop.f32.mrb[125].mxu1 }
 0x80d   : > { %v4791_v44 = vmax.f32 %v9915_v0, 0.0  ;;  %v4520_v50 = vadd.f32 %v9899_v11, %v4519_v23  ;;  %v7141_v42 = vpop.f32.mrb[126].mxu1 }
 0x80e   : > { %v4636_v35 = vadd.f32 %v4528_v37, %v9686_v10  ;;  %v4531_v55 = vadd.f32 %v7141_v42, %v9899_v11  ;;  %v4522_v53 = vpop.f32.mrb[127].mxu1  ;;  %v4823_v28 = vpack.c.bf16 %v4793_v33, %v4792_v38 }
 0x80f   : > { %v4634_v17 = vadd.f32 %v4520_v50, %v9682_v51  ;;  %v4523_v5 = vadd.f32 %v9899_v11, %v4522_v53  ;;  %v4822_v43 = vpack.c.bf16 %v4791_v44, %v4790_v16 }
 0x810   : > { %v4637_v15 = vadd.f32 %v4531_v55, %v9688_v25  ;;  %v9932_v30 = vadd.f32 %v4675_v58, %v4636_v35  ;;  %v4683_v35 = vpop.permute.xlu1 %4682  ;;  %v4685_v55 = vpop.permute.xlu0 %4684 }
 0x811   : > { %v9928_v21 = vadd.f32 %v4671_v52, %v4634_v17  ;;  %v4635_v40 = vadd.f32 %v4523_v5, %v9691_v62  ;;  %7170 = vmatprep.mubr.msk.bf16.mxu0 %vm2316_vm0, %v4822_v43 }
 0x812   : > { %v9934_v10 = vadd.f32 %v4677_v9, %v4637_v15  ;;  %7171 = vmatmul.mubr.msk.bf16.vlgmr.msra.gmra.mrb[136].mxu0 %vm2316_vm0, %v4823_v28  ;;  %v4796_v33 = vmax.f32 %v9932_v30, 0.0 }
 0x813   : > { %v9937_v51 = vadd.f32 %v4673_v4, %v4635_v40  ;;  %v4794_v25 = vmax.f32 %v9928_v21, 0.0 }
 0x814   : > { %v4797_v47 = vmax.f32 %v9934_v10, 0.0  ;;  %v7144_v46 = vpop.f32.mrb[128].mxu1 }
 0x815   : > { %v4795_v52 = vmax.f32 %v9937_v51, 0.0  ;;  %v4544_v62 = vadd.f32 %v7144_v46, %v9899_v11  ;;  %v4535_v13 = vpop.f32.mrb[129].mxu1 }
 0x816   : > { %v4536_v37 = vadd.f32 %v9899_v11, %v4535_v13  ;;  %v7145_v23 = vpop.f32.mrb[130].mxu1  ;;  %v4825_v9 = vpack.c.bf16 %v4797_v47, %v4796_v33  ;;  %v4689_v47 = vpop.permute.xlu0 %4688 }
 0x817   : > { %v4640_v58 = vadd.f32 %v4544_v62, %v9709_v36  ;;  %v4547_v4 = vadd.f32 %v7145_v23, %v9899_v11  ;;  %v4538_v16 = vpop.f32.mrb[131].mxu1  ;;  %v4824_v44 = vpack.c.bf16 %v4795_v52, %v4794_v25 }
 0x818   : > { %v4638_v50 = vadd.f32 %v4536_v37, %v9705_v19  ;;  %v4539_v42 = vadd.f32 %v9899_v11, %v4538_v16 }
 0x819   : > { %v4641_v38 = vadd.f32 %v4547_v4, %v9711_v3  ;;  %7174 = vmatprep.mubr.msk.bf16.mxu0 %vm2316_vm0, %v4824_v44  ;;  %v9955_v36 = vadd.f32 %v4683_v35, %v4640_v58 }
 0x81a   : > { %v9951_v53 = vadd.f32 %v4679_v26, %v4638_v50  ;;  %v4639_v17 = vadd.f32 %v4539_v42, %v9713_v32  ;;  %7175 = vmatmul.mubr.msk.bf16.gmra.mrb[140].mxu0 %vm2316_vm0, %v4825_v9  ;;  %v4687_v32 = vpop.permute.xlu1 %4686  ;;  %v4693_v44 = vpop.permute.xlu0 %4692 }
 0x81b   : > { %v9957_v5 = vadd.f32 %v4685_v55, %v4641_v38  ;;  %v4800_v15 = vmax.f32 %v9955_v36, 0.0 }
 0x81c   : > { %v9959_v19 = vadd.f32 %v4681_v59, %v4639_v17  ;;  %v4798_v3 = vmax.f32 %v9951_v53, 0.0 }
 0x81d   : > { %v4801_v43 = vmax.f32 %v9957_v5, 0.0 }
 0x81e   : > { %v4799_v28 = vmax.f32 %v9959_v19, 0.0  ;;  %v4691_v16 = vpop.permute.xlu1 %4690 }
 0x81f   : > { %v4827_v26 = vpack.c.bf16 %v4801_v43, %v4800_v15 }
 0x820   : > { %v4826_v40 = vpack.c.bf16 %v4799_v28, %v4798_v3  ;;  %v4697_v3 = vpop.permute.xlu0 %4696 }
 0x822   : > { %7178 = vmatprep.mubr.msk.bf16.mxu0 %vm2316_vm0, %v4826_v40 }
 0x823   : > { %7179 = vmatmul.mubr.msk.bf16.gmra.mrb[144].mxu0 %vm2316_vm0, %v4827_v26 }
 0x835   : > { %v7148_v46 = vpop.f32.mrb[132].mxu1 }
 0x836   : > { %v4560_v59 = vadd.f32 %v7148_v46, %v9899_v11  ;;  %v4551_v25 = vpop.f32.mrb[133].mxu1 }
 0x837   : > { %v4552_v52 = vadd.f32 %v9899_v11, %v4551_v25  ;;  %v7149_v62 = vpop.f32.mrb[134].mxu1 }
 0x838   : > { %v4644_v13 = vadd.f32 %v4560_v59, %v9731_v54  ;;  %v4563_v33 = vadd.f32 %v7149_v62, %v9899_v11  ;;  %v4554_v37 = vpop.f32.mrb[135].mxu1 }
 0x839   : > { %v4642_v23 = vadd.f32 %v4552_v52, %v9728_v20  ;;  %v4555_v58 = vadd.f32 %v9899_v11, %v4554_v37 }
 0x83a   : > { %v4645_v4 = vadd.f32 %v4563_v33, %v9733_v14  ;;  %v9977_v9 = vadd.f32 %v4691_v16, %v4644_v13  ;;  %v4701_v33 = vpop.permute.xlu0 %4700 }
 0x83b   : > { %v9974_v50 = vadd.f32 %v4687_v32, %v4642_v23  ;;  %v4643_v42 = vadd.f32 %v4555_v58, %v9735_v12  ;;  %v4695_v12 = vpop.permute.xlu1 %4694 }
 0x83c   : > { %v9979_v38 = vadd.f32 %v4693_v44, %v4645_v4  ;;  %v4804_v14 = vmax.f32 %v9977_v9, 0.0 }
 0x83d   : > { %v9981_v54 = vadd.f32 %v4689_v47, %v4643_v42  ;;  %v4802_v20 = vmax.f32 %v9974_v50, 0.0 }
 0x83e   : > { %v4805_v35 = vmax.f32 %v9979_v38, 0.0 }
 0x83f   : > { %v4803_v55 = vmax.f32 %v9981_v54, 0.0  ;;  %v4699_v13 = vpop.permute.xlu1 %4698 }
 0x840   : > { %v4829_v43 = vpack.c.bf16 %v4805_v35, %v4804_v14  ;;  %v4705_v14 = vpop.permute.xlu0 %4704 }
 0x841   : > { %v4828_v17 = vpack.c.bf16 %v4803_v55, %v4802_v20  ;;  %v7470_v20 = vld [vmem:[%s10617_s9 + $0x38] sm:$0xff]  }
 0x843   : > { %7182 = vmatprep.mubr.msk.bf16.mxu0 %vm2316_vm0, %v4828_v17  ;;  %v4703_v55 = vpop.permute.xlu1 %4702 }
 0x844   : > { %7183 = vmatmul.mubr.msk.bf16.gmra.mrb[148].mxu0 %vm2316_vm0, %v4829_v43 }
 0x85c   : > { %v7152_v28 = vpop.f32.mrb[136].mxu1 }
 0x85d   : > { %v4576_v15 = vadd.f32 %v7152_v28, %v9899_v11  ;;  %v4567_v40 = vpop.f32.mrb[137].mxu1 }
 0x85e   : > { %v4568_v26 = vadd.f32 %v9899_v11, %v4567_v40  ;;  %v7153_v32 = vpop.f32.mrb[138].mxu1 }
 0x85f   : > { %v4648_v47 = vadd.f32 %v4576_v15, %v9753_v24  ;;  %v4579_v46 = vadd.f32 %v7153_v32, %v9899_v11  ;;  %v4570_v59 = vpop.f32.mrb[139].mxu1 }
 0x860   : > { %v4646_v25 = vadd.f32 %v4568_v26, %v9750_v57  ;;  %v4571_v52 = vadd.f32 %v9899_v11, %v4570_v59  ;;  %v4707_v59 = vpop.permute.xlu1 %4706 }
 0x861   : > { %v4649_v62 = vadd.f32 %v4579_v46, %v9755_v61  ;;  %v9999_v58 = vadd.f32 %v4699_v13, %v4648_v47 }
 0x862   : > { %v9996_v37 = vadd.f32 %v4695_v12, %v4646_v25  ;;  %v4647_v23 = vadd.f32 %v4571_v52, %v9757_v60  ;;  %v7469_v60 = vld [vmem:[%s10617_s9 + $0x30] sm:$0xff]   ;;  %v4709_v25 = vpop.permute.xlu0 %4708 }
 0x863   : > { %v10001_v4 = vadd.f32 %v4701_v33, %v4649_v62  ;;  %v4808_v61 = vmax.f32 %v9999_v58, 0.0  ;;  %7202 = vmatprep.subr.bf16.mxu1 %v7469_v60 }
 0x864   : > { %v10003_v24 = vadd.f32 %v4697_v3, %v4647_v23  ;;  %v4806_v57 = vmax.f32 %v9996_v37, 0.0  ;;  %7203 = vmatpush3.bf16.msra.mxu1 %v7469_v60 }
 0x865   : > { %v4809_v16 = vmax.f32 %v10001_v4, 0.0  ;;  %7204 = vmatprep.subr.bf16.mxu1 %v7470_v20 }
 0x866   : > { %v4807_v44 = vmax.f32 %v10003_v24, 0.0 }
 0x867   : > { %v4831_v35 = vpack.c.bf16 %v4809_v16, %v4808_v61  ;;  %v4713_v61 = vpop.permute.xlu0 %4712 }
 0x868   : > { %v4830_v42 = vpack.c.bf16 %v4807_v44, %v4806_v57  ;;  %7205 = vmatpush3.bf16.msra.mxu1 %v7470_v20 }
 0x86a   : > { %7186 = vmatprep.mubr.msk.bf16.mxu0 %vm2316_vm0, %v4830_v42 }
 0x86b   : > { %7187 = vmatmul.mubr.msk.bf16.gmra.mrb[152].mxu0 %vm2316_vm0, %v4831_v35 }
 0x87b   : > { %v7156_v17 = vpop.f32.mrb[140].mxu1 }
 0x87c   : > { %v4592_v43 = vadd.f32 %v7156_v17, %v9899_v11  ;;  %v4583_v12 = vpop.f32.mrb[141].mxu1 }
 0x87d   : > { %v4584_v3 = vadd.f32 %v9899_v11, %v4583_v12  ;;  %v7157_v28 = vpop.f32.mrb[142].mxu1 }
 0x87e   : > { %v4652_v15 = vadd.f32 %v4592_v43, %v9781_v29  ;;  %v4595_v40 = vadd.f32 %v7157_v28, %v9899_v11  ;;  %v4586_v26 = vpop.f32.mrb[143].mxu1 }
 0x87f   : > { %v4650_v32 = vadd.f32 %v4584_v3, %v9778_v48  ;;  %v4587_v47 = vadd.f32 %v9899_v11, %v4586_v26 }
 0x880   : > { %v4653_v46 = vadd.f32 %v4595_v40, %v9783_v49  ;;  %v10027_v13 = vadd.f32 %v4707_v59, %v4652_v15  ;;  %v4717_v40 = vpop.permute.xlu0 %4716 }
 0x881   : > { %v10024_v52 = vadd.f32 %v4703_v55, %v4650_v32  ;;  %v4651_v62 = vadd.f32 %v4587_v47, %v9785_v56  ;;  %v4711_v56 = vpop.permute.xlu1 %4710 }
 0x882   : > { %v10029_v33 = vadd.f32 %v4709_v25, %v4653_v46  ;;  %v4812_v49 = vmax.f32 %v10027_v13, 0.0 }
 0x883   : > { %v10031_v29 = vadd.f32 %v4705_v14, %v4651_v62  ;;  %v4810_v48 = vmax.f32 %v10024_v52, 0.0 }
 0x884   : > { %v4813_v23 = vmax.f32 %v10029_v33, 0.0 }
 0x885   : > { %v4811_v16 = vmax.f32 %v10031_v29, 0.0  ;;  %v4715_v15 = vpop.permute.xlu1 %4714 }
 0x886   : > { %v4833_v44 = vpack.c.bf16 %v4813_v23, %v4812_v49 }
 0x887   : > { %v4832_v57 = vpack.c.bf16 %v4811_v16, %v4810_v48  ;;  %v4721_v48 = vpop.permute.xlu0 %4720 }
 0x889   : > { %7190 = vmatprep.mubr.msk.bf16.mxu0 %vm2316_vm0, %v4832_v57 }
 0x88a   : > { %7191 = vmatmul.mubr.msk.bf16.gmra.mrb[156].mxu0 %vm2316_vm0, %v4833_v44 }
 0x8a2   : > { %v7160_v42 = vpop.f32.mrb[144].mxu1 }
 0x8a3   : > { %v4608_v35 = vadd.f32 %v7160_v42, %v9899_v11  ;;  %v4599_v60 = vpop.f32.mrb[145].mxu1 }
 0x8a4   : > { %v4600_v20 = vadd.f32 %v9899_v11, %v4599_v60  ;;  %v7161_v55 = vpop.f32.mrb[146].mxu1 }
 0x8a5   : > { %v4656_v14 = vadd.f32 %v4608_v35, %v9803_v1  ;;  %v4611_v17 = vadd.f32 %v7161_v55, %v9899_v11  ;;  %v4602_v43 = vpop.f32.mrb[147].mxu1 }
 0x8a6   : > { %v4654_v12 = vadd.f32 %v4600_v20, %v9800_v7  ;;  %v4603_v3 = vadd.f32 %v9899_v11, %v4602_v43 }
 0x8a7   : > { %v4657_v28 = vadd.f32 %v4611_v17, %v9805_v27  ;;  %v10049_v47 = vadd.f32 %v4715_v15, %v4656_v14  ;;  %v4725_v17 = vpop.permute.xlu0 %4724 }
 0x8a8   : > { %v10046_v26 = vadd.f32 %v4711_v56, %v4654_v12  ;;  %v4655_v32 = vadd.f32 %v4603_v3, %v9807_v39  ;;  %v4719_v39 = vpop.permute.xlu1 %4718 }
 0x8a9   : > { %v10051_v46 = vadd.f32 %v4717_v40, %v4657_v28  ;;  %v4816_v27 = vmax.f32 %v10049_v47, 0.0 }
 0x8aa   : > { %v10053_v1 = vadd.f32 %v4713_v61, %v4655_v32  ;;  %v4814_v7 = vmax.f32 %v10046_v26, 0.0 }
 0x8ab   : > { %v4817_v59 = vmax.f32 %v10051_v46, 0.0 }
 0x8ac   : > { %v4815_v25 = vmax.f32 %v10053_v1, 0.0  ;;  %v4723_v14 = vpop.permute.xlu1 %4722 }
 0x8ad   : > { %v4835_v23 = vpack.c.bf16 %v4817_v59, %v4816_v27 }
 0x8ae   : > { %v4834_v62 = vpack.c.bf16 %v4815_v25, %v4814_v7 }
 0x8b0   : > { %7194 = vmatprep.mubr.msk.bf16.mxu0 %vm2316_vm0, %v4834_v62 }
 0x8b1   : > { %7195 = vmatmul.mubr.msk.bf16.gmra.mrb[160].mxu0 %vm2316_vm0, %v4835_v23 }
 0x8c1   : > { %v7164_v16 = vpop.f32.mrb[148].mxu1 }
 0x8c2   : > { %v4624_v49 = vadd.f32 %v7164_v16, %v9899_v11  ;;  %v4615_v57 = vpop.f32.mrb[149].mxu1 }
 0x8c3   : > { %v4616_v44 = vadd.f32 %v9899_v11, %v4615_v57  ;;  %v7165_v56 = vpop.f32.mrb[150].mxu1 }
 0x8c4   : > { %v4660_v61 = vadd.f32 %v4624_v49, %v9825_v2  ;;  %v4627_v42 = vadd.f32 %v7165_v56, %v9899_v11  ;;  %v4618_v35 = vpop.f32.mrb[151].mxu1 }
 0x8c5   : > { %v4658_v60 = vadd.f32 %v4616_v44, %v9822_v41  ;;  %v4619_v20 = vadd.f32 %v9899_v11, %v4618_v35 }
 0x8c6   : > { %v4661_v55 = vadd.f32 %v4627_v42, %v9827_v63  ;;  %v10071_v3 = vadd.f32 %v4723_v14, %v4660_v61 }
 0x8c7   : > { %v10068_v43 = vadd.f32 %v4719_v39, %v4658_v60  ;;  %v4659_v12 = vadd.f32 %v4619_v20, %v9829_v22  ;;  %v10086_v22 = vld [vmem:[%s10616_s8 + $0x3] ss:$0 sm:$0xff] }
 0x8c8   : > { %v10073_v28 = vadd.f32 %v4725_v17, %v4661_v55  ;;  %v4820_v63 = vmax.f32 %v10071_v3, 0.0 }
 0x8c9   : > { %v10075_v2 = vadd.f32 %v4721_v48, %v4659_v12  ;;  %v4818_v41 = vmax.f32 %v10068_v43, 0.0 }
 0x8ca   : > { %v4821_v15 = vmax.f32 %v10073_v28, 0.0 }
 0x8cb   : > { %v4819_v11 = vmax.f32 %v10075_v2, 0.0 }
 0x8cc   : > { %v4837_v32 = vpack.c.bf16 %v4821_v15, %v4820_v63 }
 0x8cd   : > { %v4836_v40 = vpack.c.bf16 %v4819_v11, %v4818_v41 }
 0x8cf   : > { %7198 = vmatprep.mubr.msk.bf16.mxu0 %vm2316_vm0, %v4836_v40 }
 0x8d0   : > { %7199 = vmatmul.mubr.msk.bf16.gmra.mrb[164].mxu0 %vm2316_vm0, %v4837_v32 }
 0x8e5   : > { %v7172_v59 = vpop.f32.mrb[136].mxu0 }
 0x8e6   : > { %v4954_v7 = vadd.f32 %v7172_v59, %v10086_v22  ;;  %v4945_v25 = vpop.f32.mrb[137].mxu0 }
 0x8e7   : > { %v4946_v27 = vadd.f32 %v10086_v22, %v4945_v25  ;;  %v7173_v62 = vpop.f32.mrb[138].mxu0 }
 0x8e8   : > { %v4957_v23 = vadd.f32 %v7173_v62, %v10086_v22  ;;  %v4948_v39 = vpop.f32.mrb[139].mxu0  ;;  %v5074_v16 = vmax.f32 %v4954_v7, 0.0 }
 0x8e9   : > { %v4949_v48 = vadd.f32 %v10086_v22, %v4948_v39  ;;  %v5072_v57 = vmax.f32 %v4946_v27, 0.0 }
 0x8ea   : > { %v5075_v49 = vmax.f32 %v4957_v23, 0.0 }
 0x8eb   : > { %v5073_v44 = vmax.f32 %v4949_v48, 0.0 }
 0x8ec   : > { %v5105_v56 = vpack.c.bf16 %v5075_v49, %v5074_v16 }
 0x8ed   : > { %v5104_v61 = vpack.c.bf16 %v5073_v44, %v5072_v57  ;;  %v7176_v42 = vpop.f32.mrb[140].mxu0 }
 0x8ee   : > { %v4970_v35 = vadd.f32 %v7176_v42, %v10086_v22  ;;  %v4961_v60 = vpop.f32.mrb[141].mxu0 }
 0x8ef   : > { %v4962_v20 = vadd.f32 %v10086_v22, %v4961_v60  ;;  %v7177_v55 = vpop.f32.mrb[142].mxu0  ;;  %7206 = vmatprep.mubr.msk.bf16.mxu1 %vm2316_vm0, %v5104_v61 }
 0x8f0   : > { %v4973_v14 = vadd.f32 %v7177_v55, %v10086_v22  ;;  %v4964_v17 = vpop.f32.mrb[143].mxu0  ;;  %7207 = vmatmul.mubr.msk.bf16.vlgmr.msra.gmra.mrb[152].mxu1 %vm2316_vm0, %v5105_v56  ;;  %v5078_v15 = vmax.f32 %v4970_v35, 0.0 }
 0x8f1   : > { %v4965_v12 = vadd.f32 %v10086_v22, %v4964_v17  ;;  %v5076_v11 = vmax.f32 %v4962_v20, 0.0 }
 0x8f2   : > { %v5079_v41 = vmax.f32 %v4973_v14, 0.0 }
 0x8f3   : > { %v5077_v63 = vmax.f32 %v4965_v12, 0.0 }
 0x8f4   : > { %v5107_v40 = vpack.c.bf16 %v5079_v41, %v5078_v15 }
 0x8f5   : > { %v5106_v32 = vpack.c.bf16 %v5077_v63, %v5076_v11 }
 0x8f6   : > { %v7180_v59 = vpop.f32.mrb[144].mxu0 }
 0x8f7   : > { %v4986_v7 = vadd.f32 %v7180_v59, %v10086_v22  ;;  %v4977_v25 = vpop.f32.mrb[145].mxu0  ;;  %7210 = vmatprep.mubr.msk.bf16.mxu1 %vm2316_vm0, %v5106_v32 }
 0x8f8   : > { %v4978_v27 = vadd.f32 %v10086_v22, %v4977_v25  ;;  %v7181_v62 = vpop.f32.mrb[146].mxu0  ;;  %7211 = vmatmul.mubr.msk.bf16.gmra.mrb[156].mxu1 %vm2316_vm0, %v5107_v40 }
 0x8f9   : > { %v4989_v23 = vadd.f32 %v7181_v62, %v10086_v22  ;;  %v4980_v39 = vpop.f32.mrb[147].mxu0  ;;  %v5082_v16 = vmax.f32 %v4986_v7, 0.0 }
 0x8fa   : > { %v4981_v48 = vadd.f32 %v10086_v22, %v4980_v39  ;;  %v5080_v57 = vmax.f32 %v4978_v27, 0.0 }
 0x8fb   : > { %v5083_v49 = vmax.f32 %v4989_v23, 0.0 }
 0x8fc   : > { %v5081_v44 = vmax.f32 %v4981_v48, 0.0 }
 0x8fd   : > { %v5109_v56 = vpack.c.bf16 %v5083_v49, %v5082_v16 }
 0x8fe   : > { %v5108_v61 = vpack.c.bf16 %v5081_v44, %v5080_v57 }
 0x900   : > { %7214 = vmatprep.mubr.msk.bf16.mxu1 %vm2316_vm0, %v5108_v61 }
 0x901   : > { %7215 = vmatmul.mubr.msk.bf16.gmra.mrb[160].mxu1 %vm2316_vm0, %v5109_v56 }
 0x917   : > { %v7184_v42 = vpop.f32.mrb[148].mxu0 }
 0x918   : > { %v5002_v35 = vadd.f32 %v7184_v42, %v10086_v22  ;;  %v4993_v60 = vpop.f32.mrb[149].mxu0  ;;  %v7471_v42 = vld [vmem:[%s10615_s7 + $0x40] sm:$0xff]  }
 0x919   : > { %v4994_v20 = vadd.f32 %v10086_v22, %v4993_v60  ;;  %v7185_v55 = vpop.f32.mrb[150].mxu0  ;;  %7238 = vmatprep.subr.bf16.mxu0 %v7471_v42 }
 0x91a   : > { %v5005_v14 = vadd.f32 %v7185_v55, %v10086_v22  ;;  %v4996_v17 = vpop.f32.mrb[151].mxu0  ;;  %v5086_v15 = vmax.f32 %v5002_v35, 0.0  ;;  %7239 = vmatpush3.bf16.msra.mxu0 %v7471_v42  ;;  %v7472_v35 = vld [vmem:[%s10615_s7 + $0x48] sm:$0xff]  }
 0x91b   : > { %v4997_v12 = vadd.f32 %v10086_v22, %v4996_v17  ;;  %v5084_v11 = vmax.f32 %v4994_v20, 0.0  ;;  %7240 = vmatprep.subr.bf16.mxu0 %v7472_v35 }
 0x91c   : > { %v5087_v41 = vmax.f32 %v5005_v14, 0.0 }
 0x91d   : > { %v5085_v63 = vmax.f32 %v4997_v12, 0.0 }
 0x91e   : > { %v5111_v40 = vpack.c.bf16 %v5087_v41, %v5086_v15  ;;  %7241 = vmatpush3.bf16.msra.mxu0 %v7472_v35 }
 0x91f   : > { %v5110_v32 = vpack.c.bf16 %v5085_v63, %v5084_v11 }
 0x921   : > { %7218 = vmatprep.mubr.msk.bf16.mxu1 %vm2316_vm0, %v5110_v32 }
 0x922   : > { %7219 = vmatmul.mubr.msk.bf16.gmra.mrb[164].mxu1 %vm2316_vm0, %v5111_v40 }
 0x93e   : > { %v7188_v59 = vpop.f32.mrb[152].mxu0 }
 0x93f   : > { %v5018_v7 = vadd.f32 %v7188_v59, %v10086_v22  ;;  %v5009_v25 = vpop.f32.mrb[153].mxu0 }
 0x940   : > { %v5010_v27 = vadd.f32 %v10086_v22, %v5009_v25  ;;  %v7189_v62 = vpop.f32.mrb[154].mxu0 }
 0x941   : > { %v5021_v23 = vadd.f32 %v7189_v62, %v10086_v22  ;;  %v5012_v39 = vpop.f32.mrb[155].mxu0  ;;  %v5090_v16 = vmax.f32 %v5018_v7, 0.0 }
 0x942   : > { %v5013_v48 = vadd.f32 %v10086_v22, %v5012_v39  ;;  %v5088_v57 = vmax.f32 %v5010_v27, 0.0 }
 0x943   : > { %v5091_v49 = vmax.f32 %v5021_v23, 0.0 }
 0x944   : > { %v5089_v44 = vmax.f32 %v5013_v48, 0.0 }
 0x945   : > { %v5113_v56 = vpack.c.bf16 %v5091_v49, %v5090_v16 }
 0x946   : > { %v5112_v61 = vpack.c.bf16 %v5089_v44, %v5088_v57 }
 0x948   : > { %7222 = vmatprep.mubr.msk.bf16.mxu1 %vm2316_vm0, %v5112_v61 }
 0x949   : > { %7223 = vmatmul.mubr.msk.bf16.gmra.mrb[168].mxu1 %vm2316_vm0, %v5113_v56 }
 0x95d   : > { %v7192_v60 = vpop.f32.mrb[156].mxu0 }
 0x95e   : > { %v5034_v20 = vadd.f32 %v7192_v60, %v10086_v22  ;;  %v5025_v55 = vpop.f32.mrb[157].mxu0 }
 0x95f   : > { %v5026_v14 = vadd.f32 %v10086_v22, %v5025_v55  ;;  %v7193_v17 = vpop.f32.mrb[158].mxu0 }
 0x960   : > { %v5037_v12 = vadd.f32 %v7193_v17, %v10086_v22  ;;  %v5028_v15 = vpop.f32.mrb[159].mxu0  ;;  %v5094_v11 = vmax.f32 %v5034_v20, 0.0 }
 0x961   : > { %v5029_v41 = vadd.f32 %v10086_v22, %v5028_v15  ;;  %v5092_v40 = vmax.f32 %v5026_v14, 0.0 }
 0x962   : > { %v5095_v63 = vmax.f32 %v5037_v12, 0.0 }
 0x963   : > { %v5093_v32 = vmax.f32 %v5029_v41, 0.0 }
 0x964   : > { %v5115_v59 = vpack.c.bf16 %v5095_v63, %v5094_v11 }
 0x965   : > { %v5114_v7 = vpack.c.bf16 %v5093_v32, %v5092_v40 }
 0x967   : > { %7226 = vmatprep.mubr.msk.bf16.mxu1 %vm2316_vm0, %v5114_v7 }
 0x968   : > { %7227 = vmatmul.mubr.msk.bf16.gmra.mrb[172].mxu1 %vm2316_vm0, %v5115_v59 }
 0x984   : > { %v7196_v25 = vpop.f32.mrb[160].mxu0 }
 0x985   : > { %v5050_v27 = vadd.f32 %v7196_v25, %v10086_v22  ;;  %v5041_v62 = vpop.f32.mrb[161].mxu0  ;;  %v10145_v25 = vld [vmem:[%s10618_s10 + $0x3] ss:$0 sm:$0xff] }
 0x986   : > { %v5042_v23 = vadd.f32 %v10086_v22, %v5041_v62  ;;  %v7197_v39 = vpop.f32.mrb[162].mxu0  ;;  %v10909_v62 = vld [vmem:[#allocation5_spill] sm:$0xff] }
 0x987   : > { %v5053_v48 = vadd.f32 %v7197_v39, %v10086_v22  ;;  %v5044_v16 = vpop.f32.mrb[163].mxu0  ;;  %v5098_v57 = vmax.f32 %v5050_v27, 0.0 }
 0x988   : > { %v5045_v49 = vadd.f32 %v10086_v22, %v5044_v16  ;;  %v5096_v56 = vmax.f32 %v5042_v23, 0.0 }
 0x989   : > { %v5099_v44 = vmax.f32 %v5053_v48, 0.0 }
 0x98a   : > { %v5097_v61 = vmax.f32 %v5045_v49, 0.0 }
 0x98b   : > { %v5117_v42 = vpack.c.bf16 %v5099_v44, %v5098_v57  ;;  %v10910_v57 = vld [vmem:[#allocation10_spill] sm:$0xff] }
 0x98c   : > { %v5116_v35 = vpack.c.bf16 %v5097_v61, %v5096_v56 }
 0x98e   : > { %7230 = vmatprep.mubr.msk.bf16.mxu1 %vm2316_vm0, %v5116_v35  ;;  %v10911_v35 = vld [vmem:[#allocation7_spill] sm:$0xff] }
 0x98f   : > { %7231 = vmatmul.mubr.msk.bf16.gmra.mrb[176].mxu1 %vm2316_vm0, %v5117_v42 }
 0x9a3   : > { %v7200_v60 = vpop.f32.mrb[164].mxu0 }
 0x9a4   : > { %v5066_v20 = vadd.f32 %v7200_v60, %v10086_v22  ;;  %v5057_v55 = vpop.f32.mrb[165].mxu0 }
 0x9a5   : > { %v5058_v14 = vadd.f32 %v10086_v22, %v5057_v55  ;;  %v7201_v17 = vpop.f32.mrb[166].mxu0 }
 0x9a6   : > { %v5069_v12 = vadd.f32 %v7201_v17, %v10086_v22  ;;  %v5060_v15 = vpop.f32.mrb[167].mxu0  ;;  %v5102_v11 = vmax.f32 %v5066_v20, 0.0 }
 0x9a7   : > { %v5061_v41 = vadd.f32 %v10086_v22, %v5060_v15  ;;  %v5100_v40 = vmax.f32 %v5058_v14, 0.0  ;;  %v7667_v22 = vld [vmem:[%s10614_s6] sm:$0x3] }
 0x9a8   : > { %v5103_v63 = vmax.f32 %v5069_v12, 0.0  ;;  %v10151_v23 = vrot.slane %v7667_v22, %v10909_v62  ;;  %v10912_v14 = vld [vmem:[#allocation19_spill] sm:$0xff] }
 0x9a9   : > { %v5101_v32 = vmax.f32 %v5061_v41, 0.0  ;;  %v10913_v41 = vld [vmem:[#allocation4_spill] sm:$0xff] }
 0x9aa   : > { %v5119_v59 = vpack.c.bf16 %v5103_v63, %v5102_v11  ;;  %v2412_v44 = vadd.f32 %v10910_v57, %v10151_v23  ;;  %v2402_v60 = vadd.f32 %v10911_v35, %v10151_v23  ;;  %v2416_v17 = vadd.f32 %v10912_v14, %v10151_v23 }
 0x9ab   : > { %v5118_v7 = vpack.c.bf16 %v5101_v32, %v5100_v40 }
 0x9ad   : > { %7234 = vmatprep.mubr.msk.bf16.mxu1 %vm2316_vm0, %v5118_v7 }
 0x9ae   : > { %7235 = vmatmul.mubr.msk.bf16.gmra.mrb[180].mxu1 %vm2316_vm0, %v5119_v59 }
 0x9c3   : > { %v7208_v27 = vpop.f32.mrb[152].mxu1 }
 0x9c4   : > { %v5236_v39 = vadd.f32 %v7208_v27, %v10145_v25  ;;  %v5227_v48 = vpop.f32.mrb[153].mxu1 }
 0x9c5   : > { %v5228_v16 = vadd.f32 %v10145_v25, %v5227_v48  ;;  %v7209_v49 = vpop.f32.mrb[154].mxu1  ;;  %v10914_v48 = vld [vmem:[#allocation11_spill] sm:$0xff] }
 0x9c6   : > { %v5356_v56 = vadd.f32 %v5236_v39, %v9911_v45  ;;  %v5239_v61 = vadd.f32 %v7209_v49, %v10145_v25  ;;  %v5230_v42 = vpop.f32.mrb[155].mxu1  ;;  %v2406_v45 = vadd.f32 %v10913_v41, %v10151_v23 }
 0x9c7   : > { %v5354_v20 = vadd.f32 %v5228_v16, %v9908_v34  ;;  %v5231_v55 = vadd.f32 %v10145_v25, %v5230_v42 }
 0x9c8   : > { %v10165_v12 = vadd.f32 %v5356_v56, %v2412_v44  ;;  %v5357_v15 = vadd.f32 %v5239_v61, %v9913_v31  ;;  %v10915_v56 = vld [vmem:[#allocation68_spill] sm:$0xff] }
 0x9c9   : > { %v10170_v11 = vadd.f32 %v5354_v20, %v2402_v60  ;;  %v5355_v63 = vadd.f32 %v5231_v55, %v9915_v0  ;;  %v2432_v0 = vadd.f32 %v10914_v48, %v10151_v23  ;;  %v2422_v61 = vadd.f32 %v10915_v56, %v10151_v23  ;;  %v10916_v20 = vld [vmem:[#allocation20_spill] sm:$0xff]  ;;  %v10918_v48 = vld [vmem:[#allocation17_spill] sm:$0xff]  ;;  %v10919_v56 = vld [vmem:[#allocation6_spill] sm:$0xff] }
 0x9ca   : > { %v10173_v40 = vadd.f32 %v5357_v15, %v2416_v17  ;;  %v5420_v16 = vmax.f32 %v10165_v12, 0.0  ;;  %v2436_v55 = vadd.f32 %v10916_v20, %v10151_v23  ;;  %v10920_v20 = vld [vmem:[#allocation12_spill] sm:$0xff] }
 0x9cb   : > { %v10175_v32 = vadd.f32 %v5355_v63, %v2406_v45  ;;  %v7212_v34 = vpop.f32.mrb[156].mxu1  ;;  %v5418_v22 = vmax.f32 %v10170_v11, 0.0 }
 0x9cc   : > { %v5421_v59 = vmax.f32 %v10173_v40, 0.0  ;;  %v5252_v7 = vadd.f32 %v7212_v34, %v10145_v25  ;;  %v5243_v27 = vpop.f32.mrb[157].mxu1 }
 0x9cd   : > { %v5419_v31 = vmax.f32 %v10175_v32, 0.0  ;;  %v5244_v62 = vadd.f32 %v10145_v25, %v5243_v27  ;;  %v7213_v39 = vpop.f32.mrb[158].mxu1 }
 0x9ce   : > { %v5360_v49 = vadd.f32 %v5252_v7, %v9932_v30  ;;  %v5255_v57 = vadd.f32 %v7213_v39, %v10145_v25  ;;  %v5246_v44 = vpop.f32.mrb[159].mxu1  ;;  %v5451_v14 = vpack.c.bf16 %v5421_v59, %v5420_v16  ;;  %v10917_v30 = vld [vmem:[#allocation69_spill] sm:$0xff] }
 0x9cf   : > { %v5358_v42 = vadd.f32 %v5244_v62, %v9928_v21  ;;  %v5247_v35 = vadd.f32 %v10145_v25, %v5246_v44  ;;  %v5450_v60 = vpack.c.bf16 %v5419_v31, %v5418_v22  ;;  %v2426_v41 = vadd.f32 %v10917_v30, %v10151_v23 }
 0x9d0   : > { %v10193_v17 = vadd.f32 %v5360_v49, %v2432_v0  ;;  %v5361_v15 = vadd.f32 %v5255_v57, %v9934_v10  ;;  %v2452_v0 = vadd.f32 %v10918_v48, %v10151_v23 }
 0x9d1   : > { %v10198_v45 = vadd.f32 %v5358_v42, %v2422_v61  ;;  %v5359_v63 = vadd.f32 %v5247_v35, %v9937_v51  ;;  %7242 = vmatprep.mubr.msk.bf16.mxu0 %vm2316_vm0, %v5450_v60  ;;  %v2442_v61 = vadd.f32 %v10919_v56, %v10151_v23  ;;  %v10923_v56 = vld [vmem:[#allocation24_spill] sm:$0xff] }
 0x9d2   : > { %v10202_v21 = vadd.f32 %v5361_v15, %v2436_v55  ;;  %7243 = vmatmul.mubr.msk.bf16.vlgmr.msra.gmra.mrb[168].mxu0 %vm2316_vm0, %v5451_v14  ;;  %v5424_v51 = vmax.f32 %v10193_v17, 0.0  ;;  %v2456_v55 = vadd.f32 %v10920_v20, %v10151_v23 }
 0x9d3   : > { %v10205_v34 = vadd.f32 %v5359_v63, %v2426_v41  ;;  %v5422_v10 = vmax.f32 %v10198_v45, 0.0 }
 0x9d4   : > { %v5425_v59 = vmax.f32 %v10202_v21, 0.0  ;;  %v7216_v7 = vpop.f32.mrb[160].mxu1 }
 0x9d5   : > { %v5423_v27 = vmax.f32 %v10205_v34, 0.0  ;;  %v5268_v22 = vadd.f32 %v7216_v7, %v10145_v25  ;;  %v5259_v31 = vpop.f32.mrb[161].mxu1 }
 0x9d6   : > { %v5260_v62 = vadd.f32 %v10145_v25, %v5259_v31  ;;  %v7217_v39 = vpop.f32.mrb[162].mxu1  ;;  %v5453_v60 = vpack.c.bf16 %v5425_v59, %v5424_v51 }
 0x9d7   : > { %v5364_v16 = vadd.f32 %v5268_v22, %v9955_v36  ;;  %v5271_v49 = vadd.f32 %v7217_v39, %v10145_v25  ;;  %v5262_v57 = vpop.f32.mrb[163].mxu1  ;;  %v5452_v44 = vpack.c.bf16 %v5423_v27, %v5422_v10  ;;  %v10921_v36 = vld [vmem:[#allocation9_spill] sm:$0xff] }
 0x9d8   : > { %v5362_v42 = vadd.f32 %v5260_v62, %v9951_v53  ;;  %v5263_v35 = vadd.f32 %v10145_v25, %v5262_v57  ;;  %v2446_v30 = vadd.f32 %v10921_v36, %v10151_v23  ;;  %v10925_v36 = vld [vmem:[#allocation21_spill] sm:$0xff] }
 0x9d9   : > { %v10223_v14 = vadd.f32 %v5364_v16, %v2452_v0  ;;  %v5365_v15 = vadd.f32 %v5271_v49, %v9957_v5  ;;  %7246 = vmatprep.mubr.msk.bf16.mxu0 %vm2316_vm0, %v5452_v44  ;;  %v10922_v0 = vld [vmem:[#allocation23_spill] sm:$0xff] }
 0x9da   : > { %v10229_v41 = vadd.f32 %v5362_v42, %v2442_v61  ;;  %v5363_v63 = vadd.f32 %v5263_v35, %v9959_v19  ;;  %7247 = vmatmul.mubr.msk.bf16.gmra.mrb[172].mxu0 %vm2316_vm0, %v5453_v60  ;;  %v2472_v16 = vadd.f32 %v10922_v0, %v10151_v23  ;;  %v2462_v61 = vadd.f32 %v10923_v56, %v10151_v23  ;;  %v10924_v60 = vld [vmem:[#allocation29_spill] sm:$0xff] }
 0x9db   : > { %v10233_v53 = vadd.f32 %v5365_v15, %v2456_v55  ;;  %v5428_v27 = vmax.f32 %v10223_v14, 0.0  ;;  %v2476_v20 = vadd.f32 %v10924_v60, %v10151_v23 }
 0x9dc   : > { %v10235_v59 = vadd.f32 %v5363_v63, %v2446_v30  ;;  %v5426_v10 = vmax.f32 %v10229_v41, 0.0 }
 0x9dd   : > { %v5429_v7 = vmax.f32 %v10233_v53, 0.0 }
 0x9de   : > { %v5427_v5 = vmax.f32 %v10235_v59, 0.0 }
 0x9df   : > { %v5455_v31 = vpack.c.bf16 %v5429_v7, %v5428_v27 }
 0x9e0   : > { %v5454_v22 = vpack.c.bf16 %v5427_v5, %v5426_v10 }
 0x9e2   : > { %7250 = vmatprep.mubr.msk.bf16.mxu0 %vm2316_vm0, %v5454_v22 }
 0x9e3   : > { %7251 = vmatmul.mubr.msk.bf16.gmra.mrb[176].mxu0 %vm2316_vm0, %v5455_v31 }
 0x9f5   : > { %v7220_v19 = vpop.f32.mrb[164].mxu1 }
 0x9f6   : > { %v5284_v51 = vadd.f32 %v7220_v19, %v10145_v25  ;;  %v5275_v62 = vpop.f32.mrb[165].mxu1 }
 0x9f7   : > { %v5276_v39 = vadd.f32 %v10145_v25, %v5275_v62  ;;  %v7221_v48 = vpop.f32.mrb[166].mxu1 }
 0x9f8   : > { %v5368_v49 = vadd.f32 %v5284_v51, %v9977_v9  ;;  %v5287_v57 = vadd.f32 %v7221_v48, %v10145_v25  ;;  %v5278_v44 = vpop.f32.mrb[167].mxu1  ;;  %v2466_v9 = vadd.f32 %v10925_v36, %v10151_v23  ;;  %v10926_v48 = vld [vmem:[#allocation35_spill] sm:$0xff]  ;;  %v10929_v36 = vld [vmem:[#allocation32_spill] sm:$0xff] }
 0x9f9   : > { %v5366_v42 = vadd.f32 %v5276_v39, %v9974_v50  ;;  %v5279_v35 = vadd.f32 %v10145_v25, %v5278_v44  ;;  %v2492_v0 = vadd.f32 %v10926_v48, %v10151_v23  ;;  %v10927_v44 = vld [vmem:[#allocation30_spill] sm:$0xff] }
 0x9fa   : > { %v10255_v55 = vadd.f32 %v5368_v49, %v2472_v16  ;;  %v5369_v15 = vadd.f32 %v5287_v57, %v9979_v38  ;;  %v2482_v56 = vadd.f32 %v10927_v44, %v10151_v23 }
 0x9fb   : > { %v10260_v30 = vadd.f32 %v5366_v42, %v2462_v61  ;;  %v5367_v63 = vadd.f32 %v5279_v35, %v9981_v54  ;;  %v10928_v35 = vld [vmem:[#allocation34_spill] sm:$0xff] }
 0x9fc   : > { %v10263_v7 = vadd.f32 %v5369_v15, %v2476_v20  ;;  %v5432_v22 = vmax.f32 %v10255_v55, 0.0  ;;  %v2496_v60 = vadd.f32 %v10928_v35, %v10151_v23 }
 0x9fd   : > { %v10265_v10 = vadd.f32 %v5367_v63, %v2466_v9  ;;  %v5430_v5 = vmax.f32 %v10260_v30, 0.0 }
 0x9fe   : > { %v5433_v50 = vmax.f32 %v10263_v7, 0.0 }
 0x9ff   : > { %v5431_v27 = vmax.f32 %v10265_v10, 0.0 }
 0xa00   : > { %v5457_v31 = vpack.c.bf16 %v5433_v50, %v5432_v22 }
 0xa01   : > { %v5456_v38 = vpack.c.bf16 %v5431_v27, %v5430_v5 }
 0xa03   : > { %7254 = vmatprep.mubr.msk.bf16.mxu0 %vm2316_vm0, %v5456_v38 }
 0xa04   : > { %7255 = vmatmul.mubr.msk.bf16.gmra.mrb[180].mxu0 %vm2316_vm0, %v5457_v31 }
 0xa1c   : > { %v7224_v19 = vpop.f32.mrb[168].mxu1 }
 0xa1d   : > { %v5300_v54 = vadd.f32 %v7224_v19, %v10145_v25  ;;  %v5291_v51 = vpop.f32.mrb[169].mxu1  ;;  %v7474_v19 = vld [vmem:[%s10617_s9 + $0x48] sm:$0xff]  }
 0xa1e   : > { %v5292_v62 = vadd.f32 %v10145_v25, %v5291_v51  ;;  %v7225_v39 = vpop.f32.mrb[170].mxu1 }
 0xa1f   : > { %v5372_v16 = vadd.f32 %v5300_v54, %v9999_v58  ;;  %v5303_v49 = vadd.f32 %v7225_v39, %v10145_v25  ;;  %v5294_v57 = vpop.f32.mrb[171].mxu1  ;;  %v2486_v58 = vadd.f32 %v10929_v36, %v10151_v23 }
 0xa20   : > { %v5370_v61 = vadd.f32 %v5292_v62, %v9996_v37  ;;  %v5295_v42 = vadd.f32 %v10145_v25, %v5294_v57 }
 0xa21   : > { %v10285_v20 = vadd.f32 %v5372_v16, %v2492_v0  ;;  %v5373_v15 = vadd.f32 %v5303_v49, %v10001_v4  ;;  %v10930_v0 = vld [vmem:[#allocation18_spill] sm:$0xff] }
 0xa22   : > { %v10290_v9 = vadd.f32 %v5370_v61, %v2482_v56  ;;  %v5371_v63 = vadd.f32 %v5295_v42, %v10003_v24  ;;  %v7473_v24 = vld [vmem:[%s10617_s9 + $0x40] sm:$0xff]   ;;  %v2512_v16 = vadd.f32 %v10930_v0, %v10151_v23  ;;  %v10931_v56 = vld [vmem:[#allocation16_spill] sm:$0xff] }
 0xa23   : > { %v10293_v50 = vadd.f32 %v5373_v15, %v2496_v60  ;;  %v5436_v38 = vmax.f32 %v10285_v20, 0.0  ;;  %7274 = vmatprep.subr.bf16.mxu1 %v7473_v24  ;;  %v2502_v61 = vadd.f32 %v10931_v56, %v10151_v23  ;;  %v10932_v60 = vld [vmem:[#allocation41_spill] sm:$0xff] }
 0xa24   : > { %v10295_v5 = vadd.f32 %v5371_v63, %v2486_v58  ;;  %v5434_v27 = vmax.f32 %v10290_v9, 0.0  ;;  %7275 = vmatpush3.bf16.msra.mxu1 %v7473_v24  ;;  %v2516_v15 = vadd.f32 %v10932_v60, %v10151_v23  ;;  %v10933_v63 = vld [vmem:[#allocation43_spill] sm:$0xff] }
 0xa25   : > { %v5437_v37 = vmax.f32 %v10293_v50, 0.0  ;;  %7276 = vmatprep.subr.bf16.mxu1 %v7474_v19 }
 0xa26   : > { %v5435_v22 = vmax.f32 %v10295_v5, 0.0 }
 0xa27   : > { %v5459_v31 = vpack.c.bf16 %v5437_v37, %v5436_v38 }
 0xa28   : > { %v5458_v4 = vpack.c.bf16 %v5435_v22, %v5434_v27  ;;  %7277 = vmatpush3.bf16.msra.mxu1 %v7474_v19 }
 0xa2a   : > { %7258 = vmatprep.mubr.msk.bf16.mxu0 %vm2316_vm0, %v5458_v4 }
 0xa2b   : > { %7259 = vmatmul.mubr.msk.bf16.gmra.mrb[184].mxu0 %vm2316_vm0, %v5459_v31 }
 0xa3b   : > { %v7228_v54 = vpop.f32.mrb[172].mxu1 }
 0xa3c   : > { %v5316_v51 = vadd.f32 %v7228_v54, %v10145_v25  ;;  %v5307_v62 = vpop.f32.mrb[173].mxu1 }
 0xa3d   : > { %v5308_v39 = vadd.f32 %v10145_v25, %v5307_v62  ;;  %v7229_v48 = vpop.f32.mrb[174].mxu1 }
 0xa3e   : > { %v5376_v49 = vadd.f32 %v5316_v51, %v10027_v13  ;;  %v5319_v57 = vadd.f32 %v7229_v48, %v10145_v25  ;;  %v5310_v44 = vpop.f32.mrb[175].mxu1  ;;  %v2506_v13 = vadd.f32 %v10933_v63, %v10151_v23  ;;  %v10934_v48 = vld [vmem:[#allocation40_spill] sm:$0xff]  ;;  %v10937_v63 = vld [vmem:[#allocation47_spill] sm:$0xff] }
 0xa3f   : > { %v5374_v42 = vadd.f32 %v5308_v39, %v10024_v52  ;;  %v5311_v35 = vadd.f32 %v10145_v25, %v5310_v44  ;;  %v2532_v0 = vadd.f32 %v10934_v48, %v10151_v23  ;;  %v10935_v44 = vld [vmem:[#allocation39_spill] sm:$0xff] }
 0xa40   : > { %v10321_v36 = vadd.f32 %v5376_v49, %v2512_v16  ;;  %v5377_v58 = vadd.f32 %v5319_v57, %v10029_v33  ;;  %v2522_v56 = vadd.f32 %v10935_v44, %v10151_v23 }
 0xa41   : > { %v10326_v37 = vadd.f32 %v5374_v42, %v2502_v61  ;;  %v5375_v27 = vadd.f32 %v5311_v35, %v10031_v29  ;;  %v10936_v35 = vld [vmem:[#allocation51_spill] sm:$0xff] }
 0xa42   : > { %v10329_v22 = vadd.f32 %v5377_v58, %v2516_v15  ;;  %v5440_v24 = vmax.f32 %v10321_v36, 0.0  ;;  %v2536_v60 = vadd.f32 %v10936_v35, %v10151_v23 }
 0xa43   : > { %v10331_v38 = vadd.f32 %v5375_v27, %v2506_v13  ;;  %v5438_v4 = vmax.f32 %v10326_v37, 0.0 }
 0xa44   : > { %v5441_v52 = vmax.f32 %v10329_v22, 0.0 }
 0xa45   : > { %v5439_v31 = vmax.f32 %v10331_v38, 0.0 }
 0xa46   : > { %v5461_v19 = vpack.c.bf16 %v5441_v52, %v5440_v24 }
 0xa47   : > { %v5460_v33 = vpack.c.bf16 %v5439_v31, %v5438_v4 }
 0xa49   : > { %7262 = vmatprep.mubr.msk.bf16.mxu0 %vm2316_vm0, %v5460_v33 }
 0xa4a   : > { %7263 = vmatmul.mubr.msk.bf16.gmra.mrb[188].mxu0 %vm2316_vm0, %v5461_v19 }
 0xa62   : > { %v7232_v54 = vpop.f32.mrb[176].mxu1 }
 0xa63   : > { %v5332_v29 = vadd.f32 %v7232_v54, %v10145_v25  ;;  %v5323_v51 = vpop.f32.mrb[177].mxu1 }
 0xa64   : > { %v5324_v62 = vadd.f32 %v10145_v25, %v5323_v51  ;;  %v7233_v39 = vpop.f32.mrb[178].mxu1 }
 0xa65   : > { %v5380_v16 = vadd.f32 %v5332_v29, %v10049_v47  ;;  %v5335_v49 = vadd.f32 %v7233_v39, %v10145_v25  ;;  %v5326_v57 = vpop.f32.mrb[179].mxu1  ;;  %v2526_v47 = vadd.f32 %v10937_v63, %v10151_v23  ;;  %v2552_v39 = vadd.f32 %v9195_v8, %v10151_v23  ;;  %v10938_v8 = vld [vmem:[#allocation52_spill] sm:$0xff] }
 0xa66   : > { %v5378_v61 = vadd.f32 %v5324_v62, %v10046_v26  ;;  %v5327_v42 = vadd.f32 %v10145_v25, %v5326_v57 }
 0xa67   : > { %v10351_v15 = vadd.f32 %v5380_v16, %v2532_v0  ;;  %v5381_v58 = vadd.f32 %v5335_v49, %v10051_v46  ;;  %v2542_v49 = vadd.f32 %v9169_v6, %v10151_v23 }
 0xa68   : > { %v10356_v13 = vadd.f32 %v5378_v61, %v2522_v56  ;;  %v5379_v27 = vadd.f32 %v5327_v42, %v10053_v1  ;;  %v2556_v56 = vadd.f32 %v9204_v18, %v10151_v23 }
 0xa69   : > { %v10359_v52 = vadd.f32 %v5381_v58, %v2536_v60  ;;  %v5444_v33 = vmax.f32 %v10351_v15, 0.0 }
 0xa6a   : > { %v10361_v4 = vadd.f32 %v5379_v27, %v2526_v47  ;;  %v5442_v31 = vmax.f32 %v10356_v13, 0.0 }
 0xa6b   : > { %v5445_v26 = vmax.f32 %v10359_v52, 0.0 }
 0xa6c   : > { %v5443_v24 = vmax.f32 %v10361_v4, 0.0 }
 0xa6d   : > { %v5463_v19 = vpack.c.bf16 %v5445_v26, %v5444_v33 }
 0xa6e   : > { %v5462_v46 = vpack.c.bf16 %v5443_v24, %v5442_v31 }
 0xa70   : > { %7266 = vmatprep.mubr.msk.bf16.mxu0 %vm2316_vm0, %v5462_v46 }
 0xa71   : > { %7267 = vmatmul.mubr.msk.bf16.gmra.mrb[192].mxu0 %vm2316_vm0, %v5463_v19 }
 0xa81   : > { %v7236_v54 = vpop.f32.mrb[180].mxu1 }
 0xa82   : > { %v5348_v1 = vadd.f32 %v7236_v54, %v10145_v25  ;;  %v5339_v29 = vpop.f32.mrb[181].mxu1 }
 0xa83   : > { %v5340_v51 = vadd.f32 %v10145_v25, %v5339_v29  ;;  %v7237_v62 = vpop.f32.mrb[182].mxu1 }
 0xa84   : > { %v5384_v48 = vadd.f32 %v5348_v1, %v10071_v3  ;;  %v5351_v0 = vadd.f32 %v7237_v62, %v10145_v25  ;;  %v5342_v16 = vpop.f32.mrb[183].mxu1  ;;  %v2546_v3 = vadd.f32 %v10938_v8, %v10151_v23 }
 0xa85   : > { %v5382_v57 = vadd.f32 %v5340_v51, %v10068_v43  ;;  %v5343_v44 = vadd.f32 %v10145_v25, %v5342_v16 }
 0xa86   : > { %v10381_v61 = vadd.f32 %v5384_v48, %v2552_v39  ;;  %v5385_v42 = vadd.f32 %v5351_v0, %v10073_v28 }
 0xa87   : > { %v10386_v35 = vadd.f32 %v5382_v57, %v2542_v49  ;;  %v5383_v60 = vadd.f32 %v5343_v44, %v10075_v2  ;;  %v10402_v2 = vld [vmem:[%s10616_s8 + $0x4] ss:$0 sm:$0xff] }
 0xa88   : > { %v10389_v58 = vadd.f32 %v5385_v42, %v2556_v56  ;;  %v5448_v63 = vmax.f32 %v10381_v61, 0.0 }
 0xa89   : > { %v10391_v6 = vadd.f32 %v5383_v60, %v2546_v3  ;;  %v5446_v25 = vmax.f32 %v10386_v35, 0.0 }
 0xa8a   : > { %v5449_v43 = vmax.f32 %v10389_v58, 0.0 }
 0xa8b   : > { %v5447_v18 = vmax.f32 %v10391_v6, 0.0 }
 0xa8c   : > { %v5465_v47 = vpack.c.bf16 %v5449_v43, %v5448_v63 }
 0xa8d   : > { %v5464_v28 = vpack.c.bf16 %v5447_v18, %v5446_v25 }
 0xa8f   : > { %7270 = vmatprep.mubr.msk.bf16.mxu0 %vm2316_vm0, %v5464_v28 }
 0xa90   : > { %7271 = vmatmul.mubr.msk.bf16.gmra.mrb[196].mxu0 %vm2316_vm0, %v5465_v47 }
 0xaa5   : > { %v7244_v23 = vpop.f32.mrb[168].mxu0 }
 0xaa6   : > { %v5582_v27 = vadd.f32 %v7244_v23, %v10402_v2  ;;  %v5573_v26 = vpop.f32.mrb[169].mxu0 }
 0xaa7   : > { %v5574_v31 = vadd.f32 %v10402_v2, %v5573_v26  ;;  %v7245_v24 = vpop.f32.mrb[170].mxu0 }
 0xaa8   : > { %v5585_v33 = vadd.f32 %v7245_v24, %v10402_v2  ;;  %v5576_v46 = vpop.f32.mrb[171].mxu0  ;;  %v5702_v54 = vmax.f32 %v5582_v27, 0.0 }
 0xaa9   : > { %v5577_v19 = vadd.f32 %v10402_v2, %v5576_v46  ;;  %v5700_v29 = vmax.f32 %v5574_v31, 0.0 }
 0xaaa   : > { %v5703_v1 = vmax.f32 %v5585_v33, 0.0 }
 0xaab   : > { %v5701_v51 = vmax.f32 %v5577_v19, 0.0 }
 0xaac   : > { %v5733_v62 = vpack.c.bf16 %v5703_v1, %v5702_v54 }
 0xaad   : > { %v5732_v39 = vpack.c.bf16 %v5701_v51, %v5700_v29  ;;  %v7248_v48 = vpop.f32.mrb[172].mxu0 }
 0xaae   : > { %v5598_v0 = vadd.f32 %v7248_v48, %v10402_v2  ;;  %v5589_v16 = vpop.f32.mrb[173].mxu0 }
 0xaaf   : > { %v5590_v49 = vadd.f32 %v10402_v2, %v5589_v16  ;;  %v7249_v57 = vpop.f32.mrb[174].mxu0  ;;  %7278 = vmatprep.mubr.msk.bf16.mxu1 %vm2316_vm0, %v5732_v39 }
 0xab0   : > { %v5601_v44 = vadd.f32 %v7249_v57, %v10402_v2  ;;  %v5592_v56 = vpop.f32.mrb[175].mxu0  ;;  %7279 = vmatmul.mubr.msk.bf16.vlgmr.msra.gmra.mrb[184].mxu1 %vm2316_vm0, %v5733_v62  ;;  %v5706_v8 = vmax.f32 %v5598_v0, 0.0 }
 0xab1   : > { %v5593_v42 = vadd.f32 %v10402_v2, %v5592_v56  ;;  %v5704_v60 = vmax.f32 %v5590_v49, 0.0 }
 0xab2   : > { %v5707_v3 = vmax.f32 %v5601_v44, 0.0 }
 0xab3   : > { %v5705_v43 = vmax.f32 %v5593_v42, 0.0 }
 0xab4   : > { %v5735_v25 = vpack.c.bf16 %v5707_v3, %v5706_v8 }
 0xab5   : > { %v5734_v18 = vpack.c.bf16 %v5705_v43, %v5704_v60 }
 0xab6   : > { %v7252_v63 = vpop.f32.mrb[176].mxu0 }
 0xab7   : > { %v5614_v28 = vadd.f32 %v7252_v63, %v10402_v2  ;;  %v5605_v47 = vpop.f32.mrb[177].mxu0  ;;  %7282 = vmatprep.mubr.msk.bf16.mxu1 %vm2316_vm0, %v5734_v18 }
 0xab8   : > { %v5606_v23 = vadd.f32 %v10402_v2, %v5605_v47  ;;  %v7253_v27 = vpop.f32.mrb[178].mxu0  ;;  %7283 = vmatmul.mubr.msk.bf16.gmra.mrb[188].mxu1 %vm2316_vm0, %v5735_v25 }
 0xab9   : > { %v5617_v26 = vadd.f32 %v7253_v27, %v10402_v2  ;;  %v5608_v31 = vpop.f32.mrb[179].mxu0  ;;  %v5710_v33 = vmax.f32 %v5614_v28, 0.0 }
 0xaba   : > { %v5609_v24 = vadd.f32 %v10402_v2, %v5608_v31  ;;  %v5708_v19 = vmax.f32 %v5606_v23, 0.0 }
 0xabb   : > { %v5711_v46 = vmax.f32 %v5617_v26, 0.0 }
 0xabc   : > { %v5709_v54 = vmax.f32 %v5609_v24, 0.0 }
 0xabd   : > { %v5737_v1 = vpack.c.bf16 %v5711_v46, %v5710_v33 }
 0xabe   : > { %v5736_v29 = vpack.c.bf16 %v5709_v54, %v5708_v19 }
 0xac0   : > { %7286 = vmatprep.mubr.msk.bf16.mxu1 %vm2316_vm0, %v5736_v29 }
 0xac1   : > { %7287 = vmatmul.mubr.msk.bf16.gmra.mrb[192].mxu1 %vm2316_vm0, %v5737_v1 }
 0xad7   : > { %v7256_v51 = vpop.f32.mrb[180].mxu0 }
 0xad8   : > { %v5630_v62 = vadd.f32 %v7256_v51, %v10402_v2  ;;  %v5621_v39 = vpop.f32.mrb[181].mxu0 }
 0xad9   : > { %v5622_v48 = vadd.f32 %v10402_v2, %v5621_v39  ;;  %v7257_v0 = vpop.f32.mrb[182].mxu0 }
 0xada   : > { %v5633_v16 = vadd.f32 %v7257_v0, %v10402_v2  ;;  %v5624_v49 = vpop.f32.mrb[183].mxu0  ;;  %v5714_v44 = vmax.f32 %v5630_v62, 0.0 }
 0xadb   : > { %v5625_v57 = vadd.f32 %v10402_v2, %v5624_v49  ;;  %v5712_v42 = vmax.f32 %v5622_v48, 0.0 }
 0xadc   : > { %v5715_v56 = vmax.f32 %v5633_v16, 0.0 }
 0xadd   : > { %v5713_v8 = vmax.f32 %v5625_v57, 0.0 }
 0xade   : > { %v5739_v3 = vpack.c.bf16 %v5715_v56, %v5714_v44 }
 0xadf   : > { %v5738_v60 = vpack.c.bf16 %v5713_v8, %v5712_v42 }
 0xae1   : > { %7290 = vmatprep.mubr.msk.bf16.mxu1 %vm2316_vm0, %v5738_v60 }
 0xae2   : > { %7291 = vmatmul.mubr.msk.bf16.gmra.mrb[196].mxu1 %vm2316_vm0, %v5739_v3 }
 0xafe   : > { %v7260_v43 = vpop.f32.mrb[184].mxu0 }
 0xaff   : > { %v5646_v25 = vadd.f32 %v7260_v43, %v10402_v2  ;;  %v5637_v18 = vpop.f32.mrb[185].mxu0 }
 0xb00   : > { %v5638_v63 = vadd.f32 %v10402_v2, %v5637_v18  ;;  %v7261_v28 = vpop.f32.mrb[186].mxu0 }
 0xb01   : > { %v5649_v47 = vadd.f32 %v7261_v28, %v10402_v2  ;;  %v5640_v23 = vpop.f32.mrb[187].mxu0  ;;  %v5718_v26 = vmax.f32 %v5646_v25, 0.0 }
 0xb02   : > { %v5641_v27 = vadd.f32 %v10402_v2, %v5640_v23  ;;  %v5716_v24 = vmax.f32 %v5638_v63, 0.0 }
 0xb03   : > { %v5719_v31 = vmax.f32 %v5649_v47, 0.0 }
 0xb04   : > { %v5717_v33 = vmax.f32 %v5641_v27, 0.0 }
 0xb05   : > { %v5741_v46 = vpack.c.bf16 %v5719_v31, %v5718_v26 }
 0xb06   : > { %v5740_v19 = vpack.c.bf16 %v5717_v33, %v5716_v24 }
 0xb08   : > { %7294 = vmatprep.mubr.msk.bf16.mxu1 %vm2316_vm0, %v5740_v19 }
 0xb09   : > { %7295 = vmatmul.mubr.msk.bf16.gmra.mrb[200].mxu1 %vm2316_vm0, %v5741_v46 }
 0xb1d   : > { %v7264_v54 = vpop.f32.mrb[188].mxu0 }
 0xb1e   : > { %v5662_v1 = vadd.f32 %v7264_v54, %v10402_v2  ;;  %v5653_v29 = vpop.f32.mrb[189].mxu0 }
 0xb1f   : > { %v5654_v51 = vadd.f32 %v10402_v2, %v5653_v29  ;;  %v7265_v62 = vpop.f32.mrb[190].mxu0 }
 0xb20   : > { %v5665_v39 = vadd.f32 %v7265_v62, %v10402_v2  ;;  %v5656_v48 = vpop.f32.mrb[191].mxu0  ;;  %v5722_v16 = vmax.f32 %v5662_v1, 0.0 }
 0xb21   : > { %v5657_v0 = vadd.f32 %v10402_v2, %v5656_v48  ;;  %v5720_v57 = vmax.f32 %v5654_v51, 0.0 }
 0xb22   : > { %v5723_v49 = vmax.f32 %v5665_v39, 0.0 }
 0xb23   : > { %v5721_v44 = vmax.f32 %v5657_v0, 0.0 }
 0xb24   : > { %v5743_v56 = vpack.c.bf16 %v5723_v49, %v5722_v16 }
 0xb25   : > { %v5742_v42 = vpack.c.bf16 %v5721_v44, %v5720_v57  ;;  %v10455_v44 = vld [vmem:[%s10618_s10 + $0x4] ss:$0 sm:$0xff] }
 0xb27   : > { %7298 = vmatprep.mubr.msk.bf16.mxu1 %vm2316_vm0, %v5742_v42 }
 0xb28   : > { %7299 = vmatmul.mubr.msk.bf16.gmra.mrb[204].mxu1 %vm2316_vm0, %v5743_v56 }
 0xb44   : > { %v7268_v8 = vpop.f32.mrb[192].mxu0 }
 0xb45   : > { %v5678_v3 = vadd.f32 %v7268_v8, %v10402_v2  ;;  %v5669_v60 = vpop.f32.mrb[193].mxu0 }
 0xb46   : > { %v5670_v43 = vadd.f32 %v10402_v2, %v5669_v60  ;;  %v7269_v25 = vpop.f32.mrb[194].mxu0 }
 0xb47   : > { %v5681_v18 = vadd.f32 %v7269_v25, %v10402_v2  ;;  %v5672_v63 = vpop.f32.mrb[195].mxu0  ;;  %v5726_v47 = vmax.f32 %v5678_v3, 0.0 }
 0xb48   : > { %v5673_v28 = vadd.f32 %v10402_v2, %v5672_v63  ;;  %v5724_v27 = vmax.f32 %v5670_v43, 0.0 }
 0xb49   : > { %v5727_v23 = vmax.f32 %v5681_v18, 0.0 }
 0xb4a   : > { %v5725_v26 = vmax.f32 %v5673_v28, 0.0 }
 0xb4b   : > { %v5745_v31 = vpack.c.bf16 %v5727_v23, %v5726_v47 }
 0xb4c   : > { %v5744_v24 = vpack.c.bf16 %v5725_v26, %v5724_v27 }
 0xb4e   : > { %7302 = vmatprep.mubr.msk.bf16.mxu1 %vm2316_vm0, %v5744_v24 }
 0xb4f   : > { %7303 = vmatmul.mubr.msk.bf16.gmra.mrb[208].mxu1 %vm2316_vm0, %v5745_v31 }
 0xb63   : > { %v7272_v33 = vpop.f32.mrb[196].mxu0 }
 0xb64   : > { %v5694_v46 = vadd.f32 %v7272_v33, %v10402_v2  ;;  %v5685_v19 = vpop.f32.mrb[197].mxu0 }
 0xb65   : > { %v5686_v54 = vadd.f32 %v10402_v2, %v5685_v19  ;;  %v7273_v1 = vpop.f32.mrb[198].mxu0 }
 0xb66   : > { %v5697_v29 = vadd.f32 %v7273_v1, %v10402_v2  ;;  %v5688_v51 = vpop.f32.mrb[199].mxu0  ;;  %v5730_v39 = vmax.f32 %v5694_v46, 0.0 }
 0xb67   : > { %v5689_v62 = vadd.f32 %v10402_v2, %v5688_v51  ;;  %v5728_v0 = vmax.f32 %v5686_v54, 0.0 }
 0xb68   : > { %v5731_v48 = vmax.f32 %v5697_v29, 0.0 }
 0xb69   : > { %v5729_v16 = vmax.f32 %v5689_v62, 0.0 }
 0xb6a   : > { %v5747_v49 = vpack.c.bf16 %v5731_v48, %v5730_v39 }
 0xb6b   : > { %v5746_v57 = vpack.c.bf16 %v5729_v16, %v5728_v0 }
 0xb6d   : > { %7306 = vmatprep.mubr.msk.bf16.mxu1 %vm2316_vm0, %v5746_v57 }
 0xb6e   : > { %7307 = vmatmul.mubr.msk.bf16.gmra.mrb[212].mxu1 %vm2316_vm0, %v5747_v49 }
 0xb83   : > { %v7280_v56 = vpop.f32.mrb[184].mxu1 }
 0xb84   : > { %v5864_v42 = vadd.f32 %v7280_v56, %v10455_v44  ;;  %v5855_v8 = vpop.f32.mrb[185].mxu1 }
 0xb85   : > { %v5856_v2 = vadd.f32 %v10455_v44, %v5855_v8  ;;  %v7281_v3 = vpop.f32.mrb[186].mxu1 }
 0xb86   : > { %v5984_v60 = vadd.f32 %v5864_v42, %v10165_v12  ;;  %v5867_v43 = vadd.f32 %v7281_v3, %v10455_v44  ;;  %v5858_v25 = vpop.f32.mrb[187].mxu1 }
 0xb87   : > { %v5982_v18 = vadd.f32 %v5856_v2, %v10170_v11  ;;  %v5859_v63 = vadd.f32 %v10455_v44, %v5858_v25 }
 0xb88   : > { %v5985_v28 = vadd.f32 %v5867_v43, %v10173_v40  ;;  %v6016_v23 = vmax.f32 %v5984_v60, 0.0 }
 0xb89   : > { %v5983_v47 = vadd.f32 %v5859_v63, %v10175_v32  ;;  %v6014_v26 = vmax.f32 %v5982_v18, 0.0 }
 0xb8a   : > { %v6017_v27 = vmax.f32 %v5985_v28, 0.0 }
 0xb8b   : > { %v6015_v31 = vmax.f32 %v5983_v47, 0.0  ;;  %v7284_v24 = vpop.f32.mrb[188].mxu1 }
 0xb8c   : > { %v10465_v33 = vpack.c.bf16 %v6017_v27, %v6016_v23  ;;  %v5880_v12 = vadd.f32 %v7284_v24, %v10455_v44  ;;  %v5871_v46 = vpop.f32.mrb[189].mxu1 }
 0xb8d   : > { %v10468_v19 = vpack.c.bf16 %v6015_v31, %v6014_v26  ;;  %v5872_v11 = vadd.f32 %v10455_v44, %v5871_v46  ;;  %v7285_v54 = vpop.f32.mrb[190].mxu1 }
 0xb8e   : > { %v5988_v1 = vadd.f32 %v5880_v12, %v10193_v17  ;;  %v5883_v40 = vadd.f32 %v7285_v54, %v10455_v44  ;;  %v5874_v32 = vpop.f32.mrb[191].mxu1 }
 0xb8f   : > { %v5986_v29 = vadd.f32 %v5872_v11, %v10198_v45  ;;  %v5875_v51 = vadd.f32 %v10455_v44, %v5874_v32 }
 0xb90   : > { %v5989_v62 = vadd.f32 %v5883_v40, %v10202_v21  ;;  %v6020_v48 = vmax.f32 %v5988_v1, 0.0 }
 0xb91   : > { %v5987_v39 = vadd.f32 %v5875_v51, %v10205_v34  ;;  %v6018_v16 = vmax.f32 %v5986_v29, 0.0 }
 0xb92   : > { %v6021_v0 = vmax.f32 %v5989_v62, 0.0 }
 0xb93   : > { %v6019_v49 = vmax.f32 %v5987_v39, 0.0 }
 0xb94   : > { %v10477_v57 = vpack.c.bf16 %v6021_v0, %v6020_v48  ;;  %v7288_v56 = vpop.f32.mrb[192].mxu1  ;;  %v6217_v0 = vld [vmem:[#allocation2] sm:$0x1] }
 0xb95   : > { %v10479_v42 = vpack.c.bf16 %v6019_v49, %v6018_v16  ;;  %v5896_v17 = vadd.f32 %v7288_v56, %v10455_v44  ;;  %v5887_v8 = vpop.f32.mrb[193].mxu1  ;;  %6220 = vperm.xlu1 %7439, %v6217_v0  }
 0xb96   : > { %v5888_v45 = vadd.f32 %v10455_v44, %v5887_v8  ;;  %v7289_v2 = vpop.f32.mrb[194].mxu1 }
 0xb97   : > { %v5992_v3 = vadd.f32 %v5896_v17, %v10223_v14  ;;  %v5899_v21 = vadd.f32 %v7289_v2, %v10455_v44  ;;  %v5890_v34 = vpop.f32.mrb[195].mxu1 }
 0xb98   : > { %v5990_v60 = vadd.f32 %v5888_v45, %v10229_v41  ;;  %v5891_v43 = vadd.f32 %v10455_v44, %v5890_v34 }
 0xb99   : > { %v5993_v25 = vadd.f32 %v5899_v21, %v10233_v53  ;;  %v6024_v63 = vmax.f32 %v5992_v3, 0.0 }
 0xb9a   : > { %v5991_v18 = vadd.f32 %v5891_v43, %v10235_v59  ;;  %v6022_v47 = vmax.f32 %v5990_v60, 0.0 }
 0xb9b   : > { %v6025_v28 = vmax.f32 %v5993_v25, 0.0 }
 0xb9c   : > { %v6023_v23 = vmax.f32 %v5991_v18, 0.0 }
 0xb9d   : > { %v10489_v27 = vpack.c.bf16 %v6025_v28, %v6024_v63 }
 0xb9e   : > { %v10491_v26 = vpack.c.bf16 %v6023_v23, %v6022_v47 }
 0xbb5   : > { %v7292_v14 = vpop.f32.mrb[196].mxu1 }
 0xbb6   : > { %v5912_v31 = vadd.f32 %v7292_v14, %v10455_v44  ;;  %v5903_v24 = vpop.f32.mrb[197].mxu1 }
 0xbb7   : > { %v5904_v41 = vadd.f32 %v10455_v44, %v5903_v24  ;;  %v7293_v12 = vpop.f32.mrb[198].mxu1 }
 0xbb8   : > { %v5996_v46 = vadd.f32 %v5912_v31, %v10255_v55  ;;  %v5915_v53 = vadd.f32 %v7293_v12, %v10455_v44  ;;  %v5906_v59 = vpop.f32.mrb[199].mxu1  ;;  %v10508_v55 = vld [vmem:[%s10619_s11] sm:$0xff] }
 0xbb9   : > { %v5994_v11 = vadd.f32 %v5904_v41, %v10260_v30  ;;  %v5907_v54 = vadd.f32 %v10455_v44, %v5906_v59  ;;  %6900 = vmatprep.mubr.msk.f32.mxu0 %vm2316_vm0, %v10508_v55 }
 0xbba   : > { %v5997_v1 = vadd.f32 %v5915_v53, %v10263_v7  ;;  %v6028_v32 = vmax.f32 %v5996_v46, 0.0 }
 0xbbb   : > { %v5995_v40 = vadd.f32 %v5907_v54, %v10265_v10  ;;  %v6026_v51 = vmax.f32 %v5994_v11, 0.0 }
 0xbbc   : > { %v6029_v29 = vmax.f32 %v5997_v1, 0.0 }
 0xbbd   : > { %v6027_v62 = vmax.f32 %v5995_v40, 0.0 }
 0xbbe   : > { %v10501_v39 = vpack.c.bf16 %v6029_v29, %v6028_v32 }
 0xbbf   : > { %v10503_v48 = vpack.c.bf16 %v6027_v62, %v6026_v51 }
 0xbdc   : > { %v7296_v30 = vpop.f32.mrb[200].mxu1 }
 0xbdd   : > { %v5928_v7 = vadd.f32 %v7296_v30, %v10455_v44  ;;  %v5919_v10 = vpop.f32.mrb[201].mxu1 }
 0xbde   : > { %v5920_v16 = vadd.f32 %v10455_v44, %v5919_v10  ;;  %v7297_v49 = vpop.f32.mrb[202].mxu1 }
 0xbdf   : > { %v6000_v56 = vadd.f32 %v5928_v7, %v10285_v20  ;;  %v5931_v17 = vadd.f32 %v7297_v49, %v10455_v44  ;;  %v5922_v8 = vpop.f32.mrb[203].mxu1 }
 0xbe0   : > { %v5998_v45 = vadd.f32 %v5920_v16, %v10290_v9  ;;  %v5923_v2 = vadd.f32 %v10455_v44, %v5922_v8 }
 0xbe1   : > { %v6001_v3 = vadd.f32 %v5931_v17, %v10293_v50  ;;  %v6032_v34 = vmax.f32 %v6000_v56, 0.0 }
 0xbe2   : > { %v5999_v21 = vadd.f32 %v5923_v2, %v10295_v5  ;;  %v6030_v43 = vmax.f32 %v5998_v45, 0.0 }
 0xbe3   : > { %v6033_v60 = vmax.f32 %v6001_v3, 0.0 }
 0xbe4   : > { %v6031_v25 = vmax.f32 %v5999_v21, 0.0 }
 0xbe5   : > { %v7316_v18 = vpack.c.bf16 %v6033_v60, %v6032_v34 }
 0xbe6   : > { %v7310_v63 = vpack.c.bf16 %v6031_v25, %v6030_v43 }
 0xbe8   : > { %7312 = vmatprep.subr.msk.bf16.mxu0 %vm10522_vm1, %v7310_v63 }
 0xbe9   : > { %7315 = vmatpush3.bf16.xpose.msk.msra.mxu0 %vm10522_vm1, %v10468_v19 }
 0xbea   : > { %7318 = vmatprep.subr.msk.bf16.mxu0 %vm10522_vm1, %v7316_v18 }
 0xbf1   : > { %7321 = vmatpush3.bf16.xpose.msk.msra.mxu0 %vm10522_vm1, %v10465_v33 }
 0xbfb   : > { %v7300_v9 = vpop.f32.mrb[204].mxu1 }
 0xbfc   : > { %v5944_v50 = vadd.f32 %v7300_v9, %v10455_v44  ;;  %v5935_v5 = vpop.f32.mrb[205].mxu1 }
 0xbfd   : > { %v5936_v28 = vadd.f32 %v10455_v44, %v5935_v5  ;;  %v7301_v47 = vpop.f32.mrb[206].mxu1 }
 0xbfe   : > { %v6004_v23 = vadd.f32 %v5944_v50, %v10321_v36  ;;  %v5947_v14 = vadd.f32 %v7301_v47, %v10455_v44  ;;  %v5938_v31 = vpop.f32.mrb[207].mxu1 }
 0xbff   : > { %v6002_v19 = vadd.f32 %v5936_v28, %v10326_v37  ;;  %v5939_v24 = vadd.f32 %v10455_v44, %v5938_v31  ;;  %v10942_v28 = vld [vmem:[#allocation3_spill] sm:$0xff] }
 0xc00   : > { %v6005_v41 = vadd.f32 %v5947_v14, %v10329_v22  ;;  %v6036_v12 = vmax.f32 %v6004_v23, 0.0 }
 0xc01   : > { %v6003_v33 = vadd.f32 %v5939_v24, %v10331_v38  ;;  %v6034_v53 = vmax.f32 %v6002_v19, 0.0 }
 0xc02   : > { %v6037_v46 = vmax.f32 %v6005_v41, 0.0 }
 0xc03   : > { %v6035_v59 = vmax.f32 %v6003_v33, 0.0 }
 0xc04   : > { %v7328_v11 = vpack.c.bf16 %v6037_v46, %v6036_v12 }
 0xc05   : > { %v7322_v54 = vpack.c.bf16 %v6035_v59, %v6034_v53 }
 0xc07   : > { %7324 = vmatprep.subr.msk.bf16.mxu0 %vm10522_vm1, %v7322_v54 }
 0xc08   : > { %7327 = vmatpush3.bf16.xpose.msk.msra.mxu0 %vm10522_vm1, %v10479_v42 }
 0xc09   : > { %7330 = vmatprep.subr.msk.bf16.mxu0 %vm10522_vm1, %v7328_v11 }
 0xc10   : > { %7333 = vmatpush3.bf16.xpose.msk.msra.mxu0 %vm10522_vm1, %v10477_v57 }
 0xc22   : > { %v7304_v36 = vpop.f32.mrb[208].mxu1 }
 0xc23   : > { %v5960_v37 = vadd.f32 %v7304_v36, %v10455_v44  ;;  %v5951_v22 = vpop.f32.mrb[209].mxu1 }
 0xc24   : > { %v5952_v38 = vadd.f32 %v10455_v44, %v5951_v22  ;;  %v7305_v1 = vpop.f32.mrb[210].mxu1 }
 0xc25   : > { %v6008_v40 = vadd.f32 %v5960_v37, %v10351_v15  ;;  %v5963_v32 = vadd.f32 %v7305_v1, %v10455_v44  ;;  %v5954_v29 = vpop.f32.mrb[211].mxu1 }
 0xc26   : > { %v6006_v42 = vadd.f32 %v5952_v38, %v10356_v13  ;;  %v5955_v51 = vadd.f32 %v10455_v44, %v5954_v29 }
 0xc27   : > { %v6009_v62 = vadd.f32 %v5963_v32, %v10359_v52  ;;  %v6040_v30 = vmax.f32 %v6008_v40, 0.0 }
 0xc28   : > { %v6007_v57 = vadd.f32 %v5955_v51, %v10361_v4  ;;  %v6038_v10 = vmax.f32 %v6006_v42, 0.0 }
 0xc29   : > { %v6041_v7 = vmax.f32 %v6009_v62, 0.0 }
 0xc2a   : > { %v6039_v0 = vmax.f32 %v6007_v57, 0.0 }
 0xc2b   : > { %v7340_v16 = vpack.c.bf16 %v6041_v7, %v6040_v30 }
 0xc2c   : > { %v7334_v49 = vpack.c.bf16 %v6039_v0, %v6038_v10 }
 0xc2e   : > { %7336 = vmatprep.subr.msk.bf16.mxu0 %vm10522_vm1, %v7334_v49 }
 0xc2f   : > { %7339 = vmatpush3.bf16.xpose.msk.msra.mxu0 %vm10522_vm1, %v10491_v26 }
 0xc30   : > { %7342 = vmatprep.subr.msk.bf16.mxu0 %vm10522_vm1, %v7340_v16 }
 0xc37   : > { %7345 = vmatpush3.bf16.xpose.msk.msra.mxu0 %vm10522_vm1, %v10489_v27 }
 0xc41   : > { %v7308_v15 = vpop.f32.mrb[212].mxu1 }
 0xc42   : > { %v5976_v13 = vadd.f32 %v7308_v15, %v10455_v44  ;;  %v5967_v52 = vpop.f32.mrb[213].mxu1 }
 0xc43   : > { %v5968_v4 = vadd.f32 %v10455_v44, %v5967_v52  ;;  %v7309_v56 = vpop.f32.mrb[214].mxu1 }
 0xc44   : > { %v6012_v17 = vadd.f32 %v5976_v13, %v10381_v61  ;;  %v5979_v8 = vadd.f32 %v7309_v56, %v10455_v44  ;;  %v5970_v45 = vpop.f32.mrb[215].mxu1  ;;  %v6221_v61 = vpop.permute.xlu1 %6220 }
 0xc45   : > { %v6010_v26 = vadd.f32 %v5968_v4, %v10386_v35  ;;  %v5971_v2 = vadd.f32 %v10455_v44, %v5970_v45  ;;  %v7698_v35 = vmov 1966171168  }
 0xc46   : > { %v6013_v3 = vadd.f32 %v5979_v8, %v10389_v58  ;;  %v6044_v21 = vmax.f32 %v6012_v17, 0.0  ;;  %v6233_v58 = vunpack.c.l.s4 %v7698_v35 }
 0xc47   : > { %v6011_v27 = vadd.f32 %v5971_v2, %v10391_v6  ;;  %v6042_v60 = vmax.f32 %v6010_v26, 0.0  ;;  %v10941_v6 = vld [vmem:[#allocation8_spill] sm:$0xff] }
 0xc48   : > { %v6045_v34 = vmax.f32 %v6013_v3, 0.0  ;;  %v6226_v44 = vrot.slane %v6221_v61, %v10941_v6  ;;  %v6234_v63 = vunpack.c.0.s8 %v6233_v58 }
 0xc49   : > { %v6043_v43 = vmax.f32 %v6011_v27, 0.0 }
 0xc4a   : > { %v7352_v25 = vpack.c.bf16 %v6045_v34, %v6044_v21  ;;  %v6237_v47 = vsub.s32 %v6234_v63, %v10942_v28 }
 0xc4b   : > { %v7346_v18 = vpack.c.bf16 %v6043_v43, %v6042_v60 }
 0xc4d   : > { %7348 = vmatprep.subr.msk.bf16.mxu0 %vm10522_vm1, %v7346_v18 }
 0xc4e   : > { %7351 = vmatpush3.bf16.xpose.msk.msra.mxu0 %vm10522_vm1, %v10503_v48 }
 0xc4f   : > { %7354 = vmatprep.subr.msk.bf16.mxu0 %vm10522_vm1, %v7352_v25 }
 0xc56   : > { %7357 = vmatpush3.bf16.xpose.msk.msra.mxu0 %vm10522_vm1, %v10501_v39  ;;  %v10943_v39 = vlaneseq }
 0xc58   : > { %vm6249_vm2 = vcmp.lt.s32.totalorder %v10943_v39, 256 }
 0xc5d   : > { %6901 = vmatmul.mubr.msk.f32.vlgmr.msra.gmra.mrb[200].mxu0 %vm2316_vm0, %v10508_v55 }
 0xd30   : > { %v6212_v9 = vpop.f32.mrb[200].mxu0 }
 0xd31   : > { %v6227_v50 = vadd.f32 %v6226_v44, %v6212_v9  ;;  %v6214_v5 = vpop.f32.mrb[201].mxu0 }
 0xd32   : > { %v6228_v48 = vadd.f32 %v6226_v44, %v6214_v5 }
 0xd34   : > { %v6231_v23 = vcombine.low %v6227_v50, %v6228_v48 }
 0xd36   : > { %v6238_v14 = vrot.slane %v6231_v23, %v6237_v47 }
 0xd38   : > { %v6245_v55 = vrot.slane %v6238_v14, %v6237_v47 }
 0xd3a   : > { %6251 = vst.msk [vmem:[%s515_s25] sm:$0x3] %vm6249_vm2, %v6245_v55 }
 0xd3b PF: > { %s25_s29 = sadd.s32 1, %s7690_s29   ;;  %s10944_s27 = smov %s7686_s28 }
 0xd3c   : > { %p22_p5 = scmp.ge.s32.totalorder %s25_s29, 4   ;;  %s10945_s28 = smov %s10947_s12 }
 0xd3e   :  { %24 = sbr.rel (!%p22_p5) target bundleno = 3 (0x3), region = 124 }

</bundles_post_ra>
